<compile_context>
chip_gen: v6e
topology: v6e:2x2x1
jax: 0.10.0
libtpu: 0.0.40
codegen_flags: <defaults>
</compile_context>

<pallas_src>
import jax
import jax.numpy as jnp
import numpy as np
from jax.experimental import pallas as pl
from jax.experimental.pallas import tpu as pltpu

EPSILON = 1e-10
NEG_SLOPE = 0.01


# ----------------------------------------------------------------------------
# Border masks: for every (dy, dx) offset of the 7x7 window (superset of 3x3),
# mask[k, y*W+x] = 1 iff (y+dy, x+dx) is inside the image.  Precomputed exactly
# in NumPy and passed to the kernel (applied in VMEM -> no padded HBM copies).
# ----------------------------------------------------------------------------
def _border_masks(H, W):
    yy, xx = np.meshgrid(np.arange(H), np.arange(W), indexing="ij")
    yy, xx = yy.ravel(), xx.ravel()
    m = np.zeros((49, H * W), np.float32)
    for dy in range(-3, 4):
        for dx in range(-3, 4):
            ok = (yy + dy >= 0) & (yy + dy < H) & (xx + dx >= 0) & (xx + dx < W)
            m[(dy + 3) * 7 + (dx + 3)] = ok.astype(np.float32)
    return m


# ----------------------------------------------------------------------------
# Fused forward kernel.  Two-stream activations are (C, 2*HW) f32 values
# (C on sublanes, stream1|stream2 concatenated on lanes).  Each conv =
# masked lane-rolls (im2col) + one bf16 MXU dot with f32 accumulation +
# bias + optional LeakyReLU / Sigmoid.
# ----------------------------------------------------------------------------
def _make_af_kernel(W, HW):
    HW2 = 2 * HW

    def kernel(x1_ref, x2_ref, masks_ref, wc1_ref, bc1_ref, wm_ref, bm_ref,
               wsp_ref, wf_ref, bf_ref, wr_ref, br_ref,
               out_ref, f1o_ref, f2o_ref, f1a_ref, f2a_ref):
        m_all = masks_ref[...]                                  # (49, 2*HW)
        masks2 = {}   # width 2*HW (stacked streams), full 7x7 window
        masks1 = {}   # width HW   (fused single stream), 3x3 window only
        for dy in range(-3, 4):
            for dx in range(-3, 4):
                if dy == 0 and dx == 0:
                    continue
                idx = (dy + 3) * 7 + (dx + 3)
                row = m_all[idx:idx + 1, :]                     # (1, 2*HW)
                masks2[(dy, dx)] = row
                if abs(dy) <= 1 and abs(dx) <= 1:
                    masks1[(dy, dx)] = row[:, :HW]              # (1, HW)

        def lrelu(v):
            return jnp.where(v >= 0, v, NEG_SLOPE * v)

        def conv(x, w, b, K, act, masks):
            """x: (Ci, L) f32, w: (Co, K*K*Ci) bf16, b: (Co, 1) f32 or None.

            Lane rolls wrap around, but every wrapped position is exactly a
            position whose (y+dy, x+dx) source is outside the image, so the
            border mask zeroes it (this also covers the stream1|stream2
            boundary in the stacked layout)."""
            P = K // 2
            pieces = []
            for ky in range(K):
                for kx in range(K):
                    dy, dx = ky - P, kx - P
                    if dy == 0 and dx == 0:
                        pieces.append(x)
                    else:
                        s = dy * W + dx
                        pieces.append(jnp.roll(x, -s, axis=1) * masks[(dy, dx)])
            xcol = pieces[0] if len(pieces) == 1 else jnp.concatenate(pieces, axis=0)
            y = jnp.dot(w, xcol.astype(jnp.bfloat16),
                        preferred_element_type=jnp.float32)
            if b is not None:
                y = y + b
            if act == "lrelu":
                y = lrelu(y)
            elif act == "sigmoid":
                y = jax.nn.sigmoid(y)
            return y

        # Stack the two streams along the lane axis: (Cpad, 2*HW)
        x = jnp.concatenate([x1_ref[0], x2_ref[0]], axis=1).astype(jnp.float32)

        # --- conv1 (shared weights, both streams in one dot) --------------------
        F = conv(x, wc1_ref[...], bc1_ref[...], 3, "lrelu", masks2)

        # --- 3 Resblocks: conv -> lrelu -> conv (shared weights, no skip) -------
        for r in range(3):
            F = conv(conv(F, wm_ref[2 * r], bm_ref[2 * r], 3, "lrelu", masks2),
                     wm_ref[2 * r + 1], bm_ref[2 * r + 1], 3, None, masks2)

        # --- attention.conv1 (shared) -------------------------------------------
        Fo = conv(F, wm_ref[6], bm_ref[6], 3, "lrelu", masks2)   # (Co, 2*HW)
        f1o_ref[0] = Fo[:, :HW].astype(f1o_ref.dtype)
        f2o_ref[0] = Fo[:, HW:].astype(f2o_ref.dtype)

        # --- ChannelAttentionBlock ----------------------------------------------
        ca1 = jnp.mean(Fo[:, :HW], axis=1, keepdims=True)        # (Co, 1)
        ca2 = jnp.mean(Fo[:, HW:], axis=1, keepdims=True)
        e1, e2 = jnp.exp(ca1), jnp.exp(ca2)
        s1 = e1 / (e2 + e1 + EPSILON)
        s2 = e2 / (e1 + e2 + EPSILON)
        lane = jax.lax.broadcasted_iota(jnp.int32, Fo.shape, 1)
        xc = jnp.where(lane < HW, s1, s2) * Fo                   # (Co, 2*HW)

        # --- SpatialAttentionBlock ----------------------------------------------
        # stats rows: [channel-mean, channel-max, 0*6] -> aligned 8-row im2col
        # pieces; the matching weight columns for the zero rows are zero.
        # One dot with M=2 gives row0 = conv(wsp[0]) and row1 = conv(wsp[1]) over
        # all lanes; the per-stream results are the matching lane halves.
        ridx = jax.lax.broadcasted_iota(jnp.int32, (8, HW2), 0)
        avg = jnp.mean(xc, axis=0, keepdims=True)                # (1, 2*HW)
        mx = jnp.max(xc, axis=0, keepdims=True)
        stats = jnp.where(ridx == 0, avg, 0.0) + jnp.where(ridx == 1, mx, 0.0)
        att_both = conv(stats, wsp_ref[...], None, 7, None, masks2)   # (2, 2*HW)
        ea1 = jnp.exp(att_both[0:1, :HW])                        # att1 (stream 1)
        ea2 = jnp.exp(att_both[1:2, HW:])                        # att2 (stream 2)
        sm1 = ea1 / (ea2 + ea2 + EPSILON)   # asymmetric denominator, as in source
        sm2 = ea2 / (ea1 + ea2 + EPSILON)
        Fa = jnp.concatenate([sm1, sm2], axis=1) * xc            # (Co, 2*HW)
        f1a_ref[0] = Fa[:, :HW].astype(f1a_ref.dtype)
        f2a_ref[0] = Fa[:, HW:].astype(f2a_ref.dtype)

        # --- attention.conv2 (shared) -------------------------------------------
        Ff = conv(Fa, wm_ref[7], bm_ref[7], 3, "lrelu", masks2)

        # --- 1x1 fusion on channel concat ----------------------------------------
        cat = jnp.concatenate([Ff[:, :HW], Ff[:, HW:]], axis=0)  # (2*Co, HW)
        fus = conv(cat, wf_ref[...], bf_ref[...], 1, None, masks1)

        # --- EX3: 4 x (conv + lrelu) ----------------------------------------------
        for i in range(4):
            fus = conv(fus, wm_ref[8 + i], bm_ref[8 + i], 3, "lrelu", masks1)

        # --- restruction + sigmoid ------------------------------------------------
        out = conv(fus, wr_ref[...], br_ref[...], 3, "sigmoid", masks1)
        out_ref[0] = out.astype(out_ref.dtype)

    return kernel


# ----------------------------------------------------------------------------
# Parameters (deterministic synthetic init, canonical layout (Cout, K, K, Cin)).
# Main stack order: rb1.a, rb1.b, rb2.a, rb2.b, rb3.a, rb3.b,
#                   attention.conv1, attention.conv2, EX3[0..3]
# ----------------------------------------------------------------------------
def init_params(key, in_ch, out_ch):
    keys = iter(jax.random.split(key, 40))
    scale = 0.1

    def w_(cout, k, cin):
        return jax.random.normal(next(keys), (cout, k, k, cin), jnp.float32) * scale

    def b_(cout):
        return jax.random.normal(next(keys), (cout,), jnp.float32) * scale

    p = {}
    p["conv1"] = (w_(out_ch, 3, in_ch), b_(out_ch))
    p["main"] = (jnp.stack([w_(out_ch, 3, out_ch) for _ in range(12)]),
                 jnp.stack([b_(out_ch) for _ in range(12)]))
    p["sp"] = jax.random.normal(next(keys), (2, 7, 7, 2), jnp.float32) * scale
    p["fusion"] = (w_(out_ch, 1, 2 * out_ch), b_(out_ch))
    p["restruction"] = (w_(in_ch, 3, out_ch), b_(in_ch))
    return p


# ----------------------------------------------------------------------------
# Pallas wrapper: NCHW in / NCHW out (like the PyTorch module).
# ----------------------------------------------------------------------------
def af_forward_pallas(params, x1, x2):
    N, Cin, H, W = x1.shape
    HW = H * W
    wc1, bc1 = params["conv1"]
    wm, bm = params["main"]
    wsp = params["sp"]
    wf, bf = params["fusion"]
    wr, br = params["restruction"]
    Co = wc1.shape[0]
    Cpad = -(-Cin // 8) * 8          # pad input channels to an 8-row multiple

    # Kernel-layout weights (pre-cast to bf16): (Cout,K,K,Cin) -> (Cout,K*K*Cin);
    # zero-pad the input-channel axis of conv1 / spatial weights to 8-row pieces.
    wc1_k = jnp.pad(wc1, ((0, 0), (0, 0), (0, 0), (0, Cpad - Cin))
                    ).reshape(Co, 9 * Cpad).astype(jnp.bfloat16)
    wm_k = wm.reshape(12, Co, 9 * Co).astype(jnp.bfloat16)
    wsp_k = jnp.pad(wsp, ((0, 0), (0, 0), (0, 0), (0, 6))
                    ).reshape(2, 49 * 8).astype(jnp.bfloat16)
    wf_k = wf.reshape(Co, 2 * Co).astype(jnp.bfloat16)
    wr_k = wr.reshape(Cin, 9 * Co).astype(jnp.bfloat16)
    bc1_k = bc1.reshape(Co, 1)
    bm_k = bm.reshape(12, Co, 1)
    bf_k = bf.reshape(Co, 1)
    br_k = br.reshape(Cin, 1)

    # Masks for the stacked (2*HW-wide) layout: identical per stream half.
    masks = jnp.asarray(np.tile(_border_masks(H, W), (1, 2)))   # (49, 2*HW)

    def flat_pad(x):  # NCHW -> (N, Cpad, H*W); one-time tiny channel pad
        return jnp.pad(x.reshape(N, Cin, HW), ((0, 0), (0, Cpad - Cin), (0, 0)))

    x1f, x2f = flat_pad(x1), flat_pad(x2)

    full = lambda shape: pl.BlockSpec(shape, lambda n, _s=len(shape): (0,) * _s)
    act_spec = lambda c: pl.BlockSpec((1, c, HW), lambda n: (n, 0, 0))

    outs = pl.pallas_call(
        _make_af_kernel(W, HW),
        out_shape=(
            jax.ShapeDtypeStruct((N, Cin, HW), jnp.float32),
            jax.ShapeDtypeStruct((N, Co, HW), jnp.float32),
            jax.ShapeDtypeStruct((N, Co, HW), jnp.float32),
            jax.ShapeDtypeStruct((N, Co, HW), jnp.float32),
            jax.ShapeDtypeStruct((N, Co, HW), jnp.float32),
        ),
        grid=(N,),
        in_specs=[
            act_spec(Cpad), act_spec(Cpad),
            full(masks.shape),
            full(wc1_k.shape), full(bc1_k.shape),
            full(wm_k.shape), full(bm_k.shape),
            full(wsp_k.shape),
            full(wf_k.shape), full(bf_k.shape),
            full(wr_k.shape), full(br_k.shape),
        ],
        out_specs=(
            act_spec(Cin), act_spec(Co), act_spec(Co), act_spec(Co), act_spec(Co),
        ),
        compiler_params=pltpu.CompilerParams(dimension_semantics=("parallel",)),
    )(x1f, x2f, masks, wc1_k, bc1_k, wm_k, bm_k, wsp_k, wf_k, bf_k, wr_k, br_k)

    out, f1o, f2o, f1a, f2a = outs
    return (out.reshape(N, Cin, H, W),
            f1o.reshape(N, Co, H, W), f2o.reshape(N, Co, H, W),
            f1a.reshape(N, Co, H, W), f2a.reshape(N, Co, H, W))


# ----------------------------------------------------------------------------
# Pure-JAX reference (independent implementation via lax.conv, NCHW like torch).
# Uses the same bf16-input / f32-accumulation numerics as the kernel.
# ----------------------------------------------------------------------------
def _ref_conv(x, w, b, act=None):
    w_oihw = jnp.transpose(w, (0, 3, 1, 2))
    y = jax.lax.conv_general_dilated(
        x.astype(jnp.bfloat16), w_oihw.astype(jnp.bfloat16),
        window_strides=(1, 1), padding="SAME",
        dimension_numbers=("NCHW", "OIHW", "NCHW"),
        preferred_element_type=jnp.float32)
    if b is not None:
        y = y + b.reshape(1, -1, 1, 1)
    if act == "lrelu":
        y = jnp.where(y >= 0, y, NEG_SLOPE * y)
    elif act == "sigmoid":
        y = jax.nn.sigmoid(y)
    return y


def af_forward_ref(params, x1, x2):
    wc1, bc1 = params["conv1"]
    wm, bm = params["main"]
    wsp = params["sp"]
    wf, bf = params["fusion"]
    wr, br = params["restruction"]

    F1 = _ref_conv(x1, wc1, bc1, "lrelu")
    F2 = _ref_conv(x2, wc1, bc1, "lrelu")
    for r in range(3):
        F1 = _ref_conv(_ref_conv(F1, wm[2 * r], bm[2 * r], "lrelu"),
                       wm[2 * r + 1], bm[2 * r + 1], None)
        F2 = _ref_conv(_ref_conv(F2, wm[2 * r], bm[2 * r], "lrelu"),
                       wm[2 * r + 1], bm[2 * r + 1], None)

    F1o = _ref_conv(F1, wm[6], bm[6], "lrelu")
    F2o = _ref_conv(F2, wm[6], bm[6], "lrelu")

    ca1 = jnp.mean(F1o, axis=(2, 3), keepdims=True)
    ca2 = jnp.mean(F2o, axis=(2, 3), keepdims=True)
    e1, e2 = jnp.exp(ca1), jnp.exp(ca2)
    x1c = e1 / (e2 + e1 + EPSILON) * F1o
    x2c = e2 / (e1 + e2 + EPSILON) * F2o

    def stats(x):
        return jnp.concatenate([jnp.mean(x, axis=1, keepdims=True),
                                jnp.max(x, axis=1, keepdims=True)], axis=1)

    att1 = _ref_conv(stats(x1c), wsp[0][None], None, None)
    att2 = _ref_conv(stats(x2c), wsp[1][None], None, None)
    ea1, ea2 = jnp.exp(att1), jnp.exp(att2)
    F1a = ea1 / (ea2 + ea2 + EPSILON) * x1c
    F2a = ea2 / (ea1 + ea2 + EPSILON) * x2c

    F1f = _ref_conv(F1a, wm[7], bm[7], "lrelu")
    F2f = _ref_conv(F2a, wm[7], bm[7], "lrelu")

    fus = _ref_conv(jnp.concatenate([F1f, F2f], axis=1), wf, bf, None)
    for i in range(4):
        fus = _ref_conv(fus, wm[8 + i], bm[8 + i], "lrelu")
    out = _ref_conv(fus, wr, br, "sigmoid")
    return out, F1o, F2o, F1a, F2a


# ----------------------------------------------------------------------------
if __name__ == "__main__":
    key = jax.random.PRNGKey(0)
    kp, k1, k2 = jax.random.split(key, 3)

    in_ch, out_ch = 4, 8
    N, H, W = 2, 16, 16

    params = init_params(kp, in_ch, out_ch)
    x1 = jax.random.normal(k1, (N, in_ch, H, W), jnp.float32)   # NCHW like PyTorch
    x2 = jax.random.normal(k2, (N, in_ch, H, W), jnp.float32)

    outs = jax.block_until_ready(jax.jit(af_forward_pallas)(params, x1, x2))
    refs = jax.block_until_ready(jax.jit(af_forward_ref)(params, x1, x2))

    for o, r in zip(outs, refs):
        np.testing.assert_allclose(np.asarray(o), np.asarray(r),
                                   rtol=2e-3, atol=2e-3)

    print("KERNEL_OK")
</pallas_src>

<mosaic_0001>
module attributes {stable_mosaic.version = 11 : i64} {
  func.func @kernel(%arg0: i32, %arg1: memref<1x8x256xf32, #tpu.memory_space<vmem>>, %arg2: memref<1x8x256xf32, #tpu.memory_space<vmem>>, %arg3: memref<49x512xf32, #tpu.memory_space<vmem>>, %arg4: memref<8x72xbf16, #tpu.memory_space<vmem>>, %arg5: memref<8x1xf32, #tpu.memory_space<vmem>>, %arg6: memref<12x8x72xbf16, #tpu.memory_space<vmem>>, %arg7: memref<12x8x1xf32, #tpu.memory_space<vmem>>, %arg8: memref<2x392xbf16, #tpu.memory_space<vmem>>, %arg9: memref<8x16xbf16, #tpu.memory_space<vmem>>, %arg10: memref<8x1xf32, #tpu.memory_space<vmem>>, %arg11: memref<4x72xbf16, #tpu.memory_space<vmem>>, %arg12: memref<4x1xf32, #tpu.memory_space<vmem>>, %arg13: memref<1x4x256xf32, #tpu.memory_space<vmem>>, %arg14: memref<1x8x256xf32, #tpu.memory_space<vmem>>, %arg15: memref<1x8x256xf32, #tpu.memory_space<vmem>>, %arg16: memref<1x8x256xf32, #tpu.memory_space<vmem>>, %arg17: memref<1x8x256xf32, #tpu.memory_space<vmem>>) attributes {dimension_semantics = [#tpu.dimension_semantics<parallel>], iteration_bounds = array<i64: 2>, scalar_prefetch = 0 : i64, scratch_operands = 0 : i64, tpu.core_type = #tpu.core_type<tc>, window_params = [{transform_indices = @transform_0, window_bounds = array<i64: 1, 8, 256>}, {transform_indices = @transform_1, window_bounds = array<i64: 1, 8, 256>}, {pipeline_mode = #tpu.pipeline_mode<synchronous>, transform_indices = @transform_2, window_bounds = array<i64: 49, 512>}, {pipeline_mode = #tpu.pipeline_mode<synchronous>, transform_indices = @transform_3, window_bounds = array<i64: 8, 72>}, {pipeline_mode = #tpu.pipeline_mode<synchronous>, transform_indices = @transform_4, window_bounds = array<i64: 8, 1>}, {pipeline_mode = #tpu.pipeline_mode<synchronous>, transform_indices = @transform_5, window_bounds = array<i64: 12, 8, 72>}, {pipeline_mode = #tpu.pipeline_mode<synchronous>, transform_indices = @transform_6, window_bounds = array<i64: 12, 8, 1>}, {pipeline_mode = #tpu.pipeline_mode<synchronous>, transform_indices = @transform_7, window_bounds = array<i64: 2, 392>}, {pipeline_mode = #tpu.pipeline_mode<synchronous>, transform_indices = @transform_8, window_bounds = array<i64: 8, 16>}, {pipeline_mode = #tpu.pipeline_mode<synchronous>, transform_indices = @transform_9, window_bounds = array<i64: 8, 1>}, {pipeline_mode = #tpu.pipeline_mode<synchronous>, transform_indices = @transform_10, window_bounds = array<i64: 4, 72>}, {pipeline_mode = #tpu.pipeline_mode<synchronous>, transform_indices = @transform_11, window_bounds = array<i64: 4, 1>}, {transform_indices = @transform_12, window_bounds = array<i64: 1, 4, 256>}, {transform_indices = @transform_13, window_bounds = array<i64: 1, 8, 256>}, {transform_indices = @transform_14, window_bounds = array<i64: 1, 8, 256>}, {transform_indices = @transform_15, window_bounds = array<i64: 1, 8, 256>}, {transform_indices = @transform_16, window_bounds = array<i64: 1, 8, 256>}]} {
    %c0 = arith.constant 0 : index
    %c0_0 = arith.constant 0 : index
    %0 = vector.load %arg3[%c0, %c0_0] : memref<49x512xf32, #tpu.memory_space<vmem>>, vector<49x512xf32>
    %1 = vector.extract_strided_slice %0 {offsets = [0, 0], sizes = [1, 512], strides = [1, 1]} : vector<49x512xf32> to vector<1x512xf32>
    %2 = vector.extract_strided_slice %0 {offsets = [1, 0], sizes = [1, 512], strides = [1, 1]} : vector<49x512xf32> to vector<1x512xf32>
    %3 = vector.extract_strided_slice %0 {offsets = [2, 0], sizes = [1, 512], strides = [1, 1]} : vector<49x512xf32> to vector<1x512xf32>
    %4 = vector.extract_strided_slice %0 {offsets = [3, 0], sizes = [1, 512], strides = [1, 1]} : vector<49x512xf32> to vector<1x512xf32>
    %5 = vector.extract_strided_slice %0 {offsets = [4, 0], sizes = [1, 512], strides = [1, 1]} : vector<49x512xf32> to vector<1x512xf32>
    %6 = vector.extract_strided_slice %0 {offsets = [5, 0], sizes = [1, 512], strides = [1, 1]} : vector<49x512xf32> to vector<1x512xf32>
    %7 = vector.extract_strided_slice %0 {offsets = [6, 0], sizes = [1, 512], strides = [1, 1]} : vector<49x512xf32> to vector<1x512xf32>
    %8 = vector.extract_strided_slice %0 {offsets = [7, 0], sizes = [1, 512], strides = [1, 1]} : vector<49x512xf32> to vector<1x512xf32>
    %9 = vector.extract_strided_slice %0 {offsets = [8, 0], sizes = [1, 512], strides = [1, 1]} : vector<49x512xf32> to vector<1x512xf32>
    %10 = vector.extract_strided_slice %0 {offsets = [9, 0], sizes = [1, 512], strides = [1, 1]} : vector<49x512xf32> to vector<1x512xf32>
    %11 = vector.extract_strided_slice %0 {offsets = [10, 0], sizes = [1, 512], strides = [1, 1]} : vector<49x512xf32> to vector<1x512xf32>
    %12 = vector.extract_strided_slice %0 {offsets = [11, 0], sizes = [1, 512], strides = [1, 1]} : vector<49x512xf32> to vector<1x512xf32>
    %13 = vector.extract_strided_slice %0 {offsets = [12, 0], sizes = [1, 512], strides = [1, 1]} : vector<49x512xf32> to vector<1x512xf32>
    %14 = vector.extract_strided_slice %0 {offsets = [13, 0], sizes = [1, 512], strides = [1, 1]} : vector<49x512xf32> to vector<1x512xf32>
    %15 = vector.extract_strided_slice %0 {offsets = [14, 0], sizes = [1, 512], strides = [1, 1]} : vector<49x512xf32> to vector<1x512xf32>
    %16 = vector.extract_strided_slice %0 {offsets = [15, 0], sizes = [1, 512], strides = [1, 1]} : vector<49x512xf32> to vector<1x512xf32>
    %17 = vector.extract_strided_slice %0 {offsets = [16, 0], sizes = [1, 512], strides = [1, 1]} : vector<49x512xf32> to vector<1x512xf32>
    %18 = vector.extract_strided_slice %17 {offsets = [0, 0], sizes = [1, 256], strides = [1, 1]} : vector<1x512xf32> to vector<1x256xf32>
    %19 = vector.extract_strided_slice %0 {offsets = [17, 0], sizes = [1, 512], strides = [1, 1]} : vector<49x512xf32> to vector<1x512xf32>
    %20 = vector.extract_strided_slice %19 {offsets = [0, 0], sizes = [1, 256], strides = [1, 1]} : vector<1x512xf32> to vector<1x256xf32>
    %21 = vector.extract_strided_slice %0 {offsets = [18, 0], sizes = [1, 512], strides = [1, 1]} : vector<49x512xf32> to vector<1x512xf32>
    %22 = vector.extract_strided_slice %21 {offsets = [0, 0], sizes = [1, 256], strides = [1, 1]} : vector<1x512xf32> to vector<1x256xf32>
    %23 = vector.extract_strided_slice %0 {offsets = [19, 0], sizes = [1, 512], strides = [1, 1]} : vector<49x512xf32> to vector<1x512xf32>
    %24 = vector.extract_strided_slice %0 {offsets = [20, 0], sizes = [1, 512], strides = [1, 1]} : vector<49x512xf32> to vector<1x512xf32>
    %25 = vector.extract_strided_slice %0 {offsets = [21, 0], sizes = [1, 512], strides = [1, 1]} : vector<49x512xf32> to vector<1x512xf32>
    %26 = vector.extract_strided_slice %0 {offsets = [22, 0], sizes = [1, 512], strides = [1, 1]} : vector<49x512xf32> to vector<1x512xf32>
    %27 = vector.extract_strided_slice %0 {offsets = [23, 0], sizes = [1, 512], strides = [1, 1]} : vector<49x512xf32> to vector<1x512xf32>
    %28 = vector.extract_strided_slice %27 {offsets = [0, 0], sizes = [1, 256], strides = [1, 1]} : vector<1x512xf32> to vector<1x256xf32>
    %29 = vector.extract_strided_slice %0 {offsets = [25, 0], sizes = [1, 512], strides = [1, 1]} : vector<49x512xf32> to vector<1x512xf32>
    %30 = vector.extract_strided_slice %29 {offsets = [0, 0], sizes = [1, 256], strides = [1, 1]} : vector<1x512xf32> to vector<1x256xf32>
    %31 = vector.extract_strided_slice %0 {offsets = [26, 0], sizes = [1, 512], strides = [1, 1]} : vector<49x512xf32> to vector<1x512xf32>
    %32 = vector.extract_strided_slice %0 {offsets = [27, 0], sizes = [1, 512], strides = [1, 1]} : vector<49x512xf32> to vector<1x512xf32>
    %33 = vector.extract_strided_slice %0 {offsets = [28, 0], sizes = [1, 512], strides = [1, 1]} : vector<49x512xf32> to vector<1x512xf32>
    %34 = vector.extract_strided_slice %0 {offsets = [29, 0], sizes = [1, 512], strides = [1, 1]} : vector<49x512xf32> to vector<1x512xf32>
    %35 = vector.extract_strided_slice %0 {offsets = [30, 0], sizes = [1, 512], strides = [1, 1]} : vector<49x512xf32> to vector<1x512xf32>
    %36 = vector.extract_strided_slice %35 {offsets = [0, 0], sizes = [1, 256], strides = [1, 1]} : vector<1x512xf32> to vector<1x256xf32>
    %37 = vector.extract_strided_slice %0 {offsets = [31, 0], sizes = [1, 512], strides = [1, 1]} : vector<49x512xf32> to vector<1x512xf32>
    %38 = vector.extract_strided_slice %37 {offsets = [0, 0], sizes = [1, 256], strides = [1, 1]} : vector<1x512xf32> to vector<1x256xf32>
    %39 = vector.extract_strided_slice %0 {offsets = [32, 0], sizes = [1, 512], strides = [1, 1]} : vector<49x512xf32> to vector<1x512xf32>
    %40 = vector.extract_strided_slice %39 {offsets = [0, 0], sizes = [1, 256], strides = [1, 1]} : vector<1x512xf32> to vector<1x256xf32>
    %41 = vector.extract_strided_slice %0 {offsets = [33, 0], sizes = [1, 512], strides = [1, 1]} : vector<49x512xf32> to vector<1x512xf32>
    %42 = vector.extract_strided_slice %0 {offsets = [34, 0], sizes = [1, 512], strides = [1, 1]} : vector<49x512xf32> to vector<1x512xf32>
    %43 = vector.extract_strided_slice %0 {offsets = [35, 0], sizes = [1, 512], strides = [1, 1]} : vector<49x512xf32> to vector<1x512xf32>
    %44 = vector.extract_strided_slice %0 {offsets = [36, 0], sizes = [1, 512], strides = [1, 1]} : vector<49x512xf32> to vector<1x512xf32>
    %45 = vector.extract_strided_slice %0 {offsets = [37, 0], sizes = [1, 512], strides = [1, 1]} : vector<49x512xf32> to vector<1x512xf32>
    %46 = vector.extract_strided_slice %0 {offsets = [38, 0], sizes = [1, 512], strides = [1, 1]} : vector<49x512xf32> to vector<1x512xf32>
    %47 = vector.extract_strided_slice %0 {offsets = [39, 0], sizes = [1, 512], strides = [1, 1]} : vector<49x512xf32> to vector<1x512xf32>
    %48 = vector.extract_strided_slice %0 {offsets = [40, 0], sizes = [1, 512], strides = [1, 1]} : vector<49x512xf32> to vector<1x512xf32>
    %49 = vector.extract_strided_slice %0 {offsets = [41, 0], sizes = [1, 512], strides = [1, 1]} : vector<49x512xf32> to vector<1x512xf32>
    %50 = vector.extract_strided_slice %0 {offsets = [42, 0], sizes = [1, 512], strides = [1, 1]} : vector<49x512xf32> to vector<1x512xf32>
    %51 = vector.extract_strided_slice %0 {offsets = [43, 0], sizes = [1, 512], strides = [1, 1]} : vector<49x512xf32> to vector<1x512xf32>
    %52 = vector.extract_strided_slice %0 {offsets = [44, 0], sizes = [1, 512], strides = [1, 1]} : vector<49x512xf32> to vector<1x512xf32>
    %53 = vector.extract_strided_slice %0 {offsets = [45, 0], sizes = [1, 512], strides = [1, 1]} : vector<49x512xf32> to vector<1x512xf32>
    %54 = vector.extract_strided_slice %0 {offsets = [46, 0], sizes = [1, 512], strides = [1, 1]} : vector<49x512xf32> to vector<1x512xf32>
    %55 = vector.extract_strided_slice %0 {offsets = [47, 0], sizes = [1, 512], strides = [1, 1]} : vector<49x512xf32> to vector<1x512xf32>
    %56 = vector.extract_strided_slice %0 {offsets = [48, 0], sizes = [1, 512], strides = [1, 1]} : vector<49x512xf32> to vector<1x512xf32>
    %c0_1 = arith.constant 0 : index
    %c0_2 = arith.constant 0 : index
    %c0_3 = arith.constant 0 : index
    %57 = vector.load %arg1[%c0_1, %c0_2, %c0_3] : memref<1x8x256xf32, #tpu.memory_space<vmem>>, vector<1x8x256xf32>
    %58 = vector.shape_cast %57 : vector<1x8x256xf32> to vector<8x256xf32>
    %c0_4 = arith.constant 0 : index
    %c0_5 = arith.constant 0 : index
    %c0_6 = arith.constant 0 : index
    %59 = vector.load %arg2[%c0_4, %c0_5, %c0_6] : memref<1x8x256xf32, #tpu.memory_space<vmem>>, vector<1x8x256xf32>
    %60 = vector.shape_cast %59 : vector<1x8x256xf32> to vector<8x256xf32>
    %61 = tpu.concatenate %58, %60 in 1 : vector<8x256xf32>, vector<8x256xf32> -> vector<8x512xf32>
    %c0_7 = arith.constant 0 : index
    %c0_8 = arith.constant 0 : index
    %62 = vector.load %arg4[%c0_7, %c0_8] : memref<8x72xbf16, #tpu.memory_space<vmem>>, vector<8x72xbf16>
    %c0_9 = arith.constant 0 : index
    %c0_10 = arith.constant 0 : index
    %63 = vector.load %arg5[%c0_9, %c0_10] : memref<8x1xf32, #tpu.memory_space<vmem>>, vector<8x1xf32>
    %64 = vector.extract_strided_slice %61 {offsets = [0, 495], sizes = [8, 17], strides = [1, 1]} : vector<8x512xf32> to vector<8x17xf32>
    %65 = vector.extract_strided_slice %61 {offsets = [0, 0], sizes = [8, 495], strides = [1, 1]} : vector<8x512xf32> to vector<8x495xf32>
    %66 = tpu.concatenate %64, %65 in 1 : vector<8x17xf32>, vector<8x495xf32> -> vector<8x512xf32>
    %67 = vector.broadcast %17 : vector<1x512xf32> to vector<8x512xf32>
    %68 = arith.mulf %66, %67 : vector<8x512xf32>
    %69 = vector.extract_strided_slice %61 {offsets = [0, 496], sizes = [8, 16], strides = [1, 1]} : vector<8x512xf32> to vector<8x16xf32>
    %70 = vector.extract_strided_slice %61 {offsets = [0, 0], sizes = [8, 496], strides = [1, 1]} : vector<8x512xf32> to vector<8x496xf32>
    %71 = tpu.concatenate %69, %70 in 1 : vector<8x16xf32>, vector<8x496xf32> -> vector<8x512xf32>
    %72 = vector.broadcast %19 : vector<1x512xf32> to vector<8x512xf32>
    %73 = arith.mulf %71, %72 : vector<8x512xf32>
    %74 = vector.extract_strided_slice %61 {offsets = [0, 497], sizes = [8, 15], strides = [1, 1]} : vector<8x512xf32> to vector<8x15xf32>
    %75 = vector.extract_strided_slice %61 {offsets = [0, 0], sizes = [8, 497], strides = [1, 1]} : vector<8x512xf32> to vector<8x497xf32>
    %76 = tpu.concatenate %74, %75 in 1 : vector<8x15xf32>, vector<8x497xf32> -> vector<8x512xf32>
    %77 = vector.broadcast %21 : vector<1x512xf32> to vector<8x512xf32>
    %78 = arith.mulf %76, %77 : vector<8x512xf32>
    %79 = vector.extract_strided_slice %61 {offsets = [0, 511], sizes = [8, 1], strides = [1, 1]} : vector<8x512xf32> to vector<8x1xf32>
    %80 = vector.extract_strided_slice %61 {offsets = [0, 0], sizes = [8, 511], strides = [1, 1]} : vector<8x512xf32> to vector<8x511xf32>
    %81 = tpu.concatenate %79, %80 in 1 : vector<8x1xf32>, vector<8x511xf32> -> vector<8x512xf32>
    %82 = vector.broadcast %27 : vector<1x512xf32> to vector<8x512xf32>
    %83 = arith.mulf %81, %82 : vector<8x512xf32>
    %84 = vector.extract_strided_slice %61 {offsets = [0, 1], sizes = [8, 511], strides = [1, 1]} : vector<8x512xf32> to vector<8x511xf32>
    %85 = vector.extract_strided_slice %61 {offsets = [0, 0], sizes = [8, 1], strides = [1, 1]} : vector<8x512xf32> to vector<8x1xf32>
    %86 = tpu.concatenate %84, %85 in 1 : vector<8x511xf32>, vector<8x1xf32> -> vector<8x512xf32>
    %87 = vector.broadcast %29 : vector<1x512xf32> to vector<8x512xf32>
    %88 = arith.mulf %86, %87 : vector<8x512xf32>
    %89 = vector.extract_strided_slice %61 {offsets = [0, 15], sizes = [8, 497], strides = [1, 1]} : vector<8x512xf32> to vector<8x497xf32>
    %90 = vector.extract_strided_slice %61 {offsets = [0, 0], sizes = [8, 15], strides = [1, 1]} : vector<8x512xf32> to vector<8x15xf32>
    %91 = tpu.concatenate %89, %90 in 1 : vector<8x497xf32>, vector<8x15xf32> -> vector<8x512xf32>
    %92 = vector.broadcast %35 : vector<1x512xf32> to vector<8x512xf32>
    %93 = arith.mulf %91, %92 : vector<8x512xf32>
    %94 = vector.extract_strided_slice %61 {offsets = [0, 16], sizes = [8, 496], strides = [1, 1]} : vector<8x512xf32> to vector<8x496xf32>
    %95 = vector.extract_strided_slice %61 {offsets = [0, 0], sizes = [8, 16], strides = [1, 1]} : vector<8x512xf32> to vector<8x16xf32>
    %96 = tpu.concatenate %94, %95 in 1 : vector<8x496xf32>, vector<8x16xf32> -> vector<8x512xf32>
    %97 = vector.broadcast %37 : vector<1x512xf32> to vector<8x512xf32>
    %98 = arith.mulf %96, %97 : vector<8x512xf32>
    %99 = vector.extract_strided_slice %61 {offsets = [0, 17], sizes = [8, 495], strides = [1, 1]} : vector<8x512xf32> to vector<8x495xf32>
    %100 = vector.extract_strided_slice %61 {offsets = [0, 0], sizes = [8, 17], strides = [1, 1]} : vector<8x512xf32> to vector<8x17xf32>
    %101 = tpu.concatenate %99, %100 in 1 : vector<8x495xf32>, vector<8x17xf32> -> vector<8x512xf32>
    %102 = vector.broadcast %39 : vector<1x512xf32> to vector<8x512xf32>
    %103 = arith.mulf %101, %102 : vector<8x512xf32>
    %104 = tpu.concatenate %68, %73, %78, %83, %61, %88, %93, %98, %103 in 0 : vector<8x512xf32>, vector<8x512xf32>, vector<8x512xf32>, vector<8x512xf32>, vector<8x512xf32>, vector<8x512xf32>, vector<8x512xf32>, vector<8x512xf32>, vector<8x512xf32> -> vector<72x512xf32>
    %105 = arith.truncf %104 : vector<72x512xf32> to vector<72x512xbf16>
    %cst = arith.constant dense<0.000000e+00> : vector<8x512xf32>
    %106 = tpu.matmul %62, %105, %cst {dimension_numbers = #tpu.dot_dimension_numbers<[1], [0], [0], [1], [0, 0, 1, 1], [], []>} : vector<8x72xbf16>, vector<72x512xbf16>, vector<8x512xf32> -> vector<8x512xf32>
    %107 = vector.broadcast %63 : vector<8x1xf32> to vector<8x512xf32>
    %108 = arith.addf %106, %107 : vector<8x512xf32>
    %cst_11 = arith.constant 0.000000e+00 : f32
    %109 = vector.broadcast %cst_11 : f32 to vector<8x512xf32>
    %110 = arith.cmpf oge, %108, %109 : vector<8x512xf32>
    %cst_12 = arith.constant 0.00999999977 : f32
    %111 = vector.broadcast %cst_12 : f32 to vector<8x512xf32>
    %112 = arith.mulf %111, %108 : vector<8x512xf32>
    %113 = arith.select %110, %108, %112 : vector<8x512xi1>, vector<8x512xf32>
    %c0_13 = arith.constant 0 : index
    %c0_14 = arith.constant 0 : index
    %c0_15 = arith.constant 0 : index
    %114 = vector.load %arg6[%c0_13, %c0_14, %c0_15] : memref<12x8x72xbf16, #tpu.memory_space<vmem>>, vector<1x8x72xbf16>
    %115 = vector.shape_cast %114 : vector<1x8x72xbf16> to vector<8x72xbf16>
    %c0_16 = arith.constant 0 : index
    %c0_17 = arith.constant 0 : index
    %c0_18 = arith.constant 0 : index
    %116 = vector.load %arg7[%c0_16, %c0_17, %c0_18] : memref<12x8x1xf32, #tpu.memory_space<vmem>>, vector<1x8x1xf32>
    %117 = vector.shape_cast %116 : vector<1x8x1xf32> to vector<8x1xf32>
    %118 = vector.extract_strided_slice %113 {offsets = [0, 495], sizes = [8, 17], strides = [1, 1]} : vector<8x512xf32> to vector<8x17xf32>
    %119 = vector.extract_strided_slice %113 {offsets = [0, 0], sizes = [8, 495], strides = [1, 1]} : vector<8x512xf32> to vector<8x495xf32>
    %120 = tpu.concatenate %118, %119 in 1 : vector<8x17xf32>, vector<8x495xf32> -> vector<8x512xf32>
    %121 = vector.broadcast %17 : vector<1x512xf32> to vector<8x512xf32>
    %122 = arith.mulf %120, %121 : vector<8x512xf32>
    %123 = vector.extract_strided_slice %113 {offsets = [0, 496], sizes = [8, 16], strides = [1, 1]} : vector<8x512xf32> to vector<8x16xf32>
    %124 = vector.extract_strided_slice %113 {offsets = [0, 0], sizes = [8, 496], strides = [1, 1]} : vector<8x512xf32> to vector<8x496xf32>
    %125 = tpu.concatenate %123, %124 in 1 : vector<8x16xf32>, vector<8x496xf32> -> vector<8x512xf32>
    %126 = vector.broadcast %19 : vector<1x512xf32> to vector<8x512xf32>
    %127 = arith.mulf %125, %126 : vector<8x512xf32>
    %128 = vector.extract_strided_slice %113 {offsets = [0, 497], sizes = [8, 15], strides = [1, 1]} : vector<8x512xf32> to vector<8x15xf32>
    %129 = vector.extract_strided_slice %113 {offsets = [0, 0], sizes = [8, 497], strides = [1, 1]} : vector<8x512xf32> to vector<8x497xf32>
    %130 = tpu.concatenate %128, %129 in 1 : vector<8x15xf32>, vector<8x497xf32> -> vector<8x512xf32>
    %131 = vector.broadcast %21 : vector<1x512xf32> to vector<8x512xf32>
    %132 = arith.mulf %130, %131 : vector<8x512xf32>
    %133 = vector.extract_strided_slice %113 {offsets = [0, 511], sizes = [8, 1], strides = [1, 1]} : vector<8x512xf32> to vector<8x1xf32>
    %134 = vector.extract_strided_slice %113 {offsets = [0, 0], sizes = [8, 511], strides = [1, 1]} : vector<8x512xf32> to vector<8x511xf32>
    %135 = tpu.concatenate %133, %134 in 1 : vector<8x1xf32>, vector<8x511xf32> -> vector<8x512xf32>
    %136 = vector.broadcast %27 : vector<1x512xf32> to vector<8x512xf32>
    %137 = arith.mulf %135, %136 : vector<8x512xf32>
    %138 = vector.extract_strided_slice %113 {offsets = [0, 1], sizes = [8, 511], strides = [1, 1]} : vector<8x512xf32> to vector<8x511xf32>
    %139 = vector.extract_strided_slice %113 {offsets = [0, 0], sizes = [8, 1], strides = [1, 1]} : vector<8x512xf32> to vector<8x1xf32>
    %140 = tpu.concatenate %138, %139 in 1 : vector<8x511xf32>, vector<8x1xf32> -> vector<8x512xf32>
    %141 = vector.broadcast %29 : vector<1x512xf32> to vector<8x512xf32>
    %142 = arith.mulf %140, %141 : vector<8x512xf32>
    %143 = vector.extract_strided_slice %113 {offsets = [0, 15], sizes = [8, 497], strides = [1, 1]} : vector<8x512xf32> to vector<8x497xf32>
    %144 = vector.extract_strided_slice %113 {offsets = [0, 0], sizes = [8, 15], strides = [1, 1]} : vector<8x512xf32> to vector<8x15xf32>
    %145 = tpu.concatenate %143, %144 in 1 : vector<8x497xf32>, vector<8x15xf32> -> vector<8x512xf32>
    %146 = vector.broadcast %35 : vector<1x512xf32> to vector<8x512xf32>
    %147 = arith.mulf %145, %146 : vector<8x512xf32>
    %148 = vector.extract_strided_slice %113 {offsets = [0, 16], sizes = [8, 496], strides = [1, 1]} : vector<8x512xf32> to vector<8x496xf32>
    %149 = vector.extract_strided_slice %113 {offsets = [0, 0], sizes = [8, 16], strides = [1, 1]} : vector<8x512xf32> to vector<8x16xf32>
    %150 = tpu.concatenate %148, %149 in 1 : vector<8x496xf32>, vector<8x16xf32> -> vector<8x512xf32>
    %151 = vector.broadcast %37 : vector<1x512xf32> to vector<8x512xf32>
    %152 = arith.mulf %150, %151 : vector<8x512xf32>
    %153 = vector.extract_strided_slice %113 {offsets = [0, 17], sizes = [8, 495], strides = [1, 1]} : vector<8x512xf32> to vector<8x495xf32>
    %154 = vector.extract_strided_slice %113 {offsets = [0, 0], sizes = [8, 17], strides = [1, 1]} : vector<8x512xf32> to vector<8x17xf32>
    %155 = tpu.concatenate %153, %154 in 1 : vector<8x495xf32>, vector<8x17xf32> -> vector<8x512xf32>
    %156 = vector.broadcast %39 : vector<1x512xf32> to vector<8x512xf32>
    %157 = arith.mulf %155, %156 : vector<8x512xf32>
    %158 = tpu.concatenate %122, %127, %132, %137, %113, %142, %147, %152, %157 in 0 : vector<8x512xf32>, vector<8x512xf32>, vector<8x512xf32>, vector<8x512xf32>, vector<8x512xf32>, vector<8x512xf32>, vector<8x512xf32>, vector<8x512xf32>, vector<8x512xf32> -> vector<72x512xf32>
    %159 = arith.truncf %158 : vector<72x512xf32> to vector<72x512xbf16>
    %cst_19 = arith.constant dense<0.000000e+00> : vector<8x512xf32>
    %160 = tpu.matmul %115, %159, %cst_19 {dimension_numbers = #tpu.dot_dimension_numbers<[1], [0], [0], [1], [0, 0, 1, 1], [], []>} : vector<8x72xbf16>, vector<72x512xbf16>, vector<8x512xf32> -> vector<8x512xf32>
    %161 = vector.broadcast %117 : vector<8x1xf32> to vector<8x512xf32>
    %162 = arith.addf %160, %161 : vector<8x512xf32>
    %cst_20 = arith.constant 0.000000e+00 : f32
    %163 = vector.broadcast %cst_20 : f32 to vector<8x512xf32>
    %164 = arith.cmpf oge, %162, %163 : vector<8x512xf32>
    %cst_21 = arith.constant 0.00999999977 : f32
    %165 = vector.broadcast %cst_21 : f32 to vector<8x512xf32>
    %166 = arith.mulf %165, %162 : vector<8x512xf32>
    %167 = arith.select %164, %162, %166 : vector<8x512xi1>, vector<8x512xf32>
    %c1 = arith.constant 1 : index
    %c0_22 = arith.constant 0 : index
    %c0_23 = arith.constant 0 : index
    %168 = vector.load %arg6[%c1, %c0_22, %c0_23] : memref<12x8x72xbf16, #tpu.memory_space<vmem>>, vector<1x8x72xbf16>
    %169 = vector.shape_cast %168 : vector<1x8x72xbf16> to vector<8x72xbf16>
    %c1_24 = arith.constant 1 : index
    %c0_25 = arith.constant 0 : index
    %c0_26 = arith.constant 0 : index
    %170 = vector.load %arg7[%c1_24, %c0_25, %c0_26] : memref<12x8x1xf32, #tpu.memory_space<vmem>>, vector<1x8x1xf32>
    %171 = vector.shape_cast %170 : vector<1x8x1xf32> to vector<8x1xf32>
    %172 = vector.extract_strided_slice %167 {offsets = [0, 495], sizes = [8, 17], strides = [1, 1]} : vector<8x512xf32> to vector<8x17xf32>
    %173 = vector.extract_strided_slice %167 {offsets = [0, 0], sizes = [8, 495], strides = [1, 1]} : vector<8x512xf32> to vector<8x495xf32>
    %174 = tpu.concatenate %172, %173 in 1 : vector<8x17xf32>, vector<8x495xf32> -> vector<8x512xf32>
    %175 = vector.broadcast %17 : vector<1x512xf32> to vector<8x512xf32>
    %176 = arith.mulf %174, %175 : vector<8x512xf32>
    %177 = vector.extract_strided_slice %167 {offsets = [0, 496], sizes = [8, 16], strides = [1, 1]} : vector<8x512xf32> to vector<8x16xf32>
    %178 = vector.extract_strided_slice %167 {offsets = [0, 0], sizes = [8, 496], strides = [1, 1]} : vector<8x512xf32> to vector<8x496xf32>
    %179 = tpu.concatenate %177, %178 in 1 : vector<8x16xf32>, vector<8x496xf32> -> vector<8x512xf32>
    %180 = vector.broadcast %19 : vector<1x512xf32> to vector<8x512xf32>
    %181 = arith.mulf %179, %180 : vector<8x512xf32>
    %182 = vector.extract_strided_slice %167 {offsets = [0, 497], sizes = [8, 15], strides = [1, 1]} : vector<8x512xf32> to vector<8x15xf32>
    %183 = vector.extract_strided_slice %167 {offsets = [0, 0], sizes = [8, 497], strides = [1, 1]} : vector<8x512xf32> to vector<8x497xf32>
    %184 = tpu.concatenate %182, %183 in 1 : vector<8x15xf32>, vector<8x497xf32> -> vector<8x512xf32>
    %185 = vector.broadcast %21 : vector<1x512xf32> to vector<8x512xf32>
    %186 = arith.mulf %184, %185 : vector<8x512xf32>
    %187 = vector.extract_strided_slice %167 {offsets = [0, 511], sizes = [8, 1], strides = [1, 1]} : vector<8x512xf32> to vector<8x1xf32>
    %188 = vector.extract_strided_slice %167 {offsets = [0, 0], sizes = [8, 511], strides = [1, 1]} : vector<8x512xf32> to vector<8x511xf32>
    %189 = tpu.concatenate %187, %188 in 1 : vector<8x1xf32>, vector<8x511xf32> -> vector<8x512xf32>
    %190 = vector.broadcast %27 : vector<1x512xf32> to vector<8x512xf32>
    %191 = arith.mulf %189, %190 : vector<8x512xf32>
    %192 = vector.extract_strided_slice %167 {offsets = [0, 1], sizes = [8, 511], strides = [1, 1]} : vector<8x512xf32> to vector<8x511xf32>
    %193 = vector.extract_strided_slice %167 {offsets = [0, 0], sizes = [8, 1], strides = [1, 1]} : vector<8x512xf32> to vector<8x1xf32>
    %194 = tpu.concatenate %192, %193 in 1 : vector<8x511xf32>, vector<8x1xf32> -> vector<8x512xf32>
    %195 = vector.broadcast %29 : vector<1x512xf32> to vector<8x512xf32>
    %196 = arith.mulf %194, %195 : vector<8x512xf32>
    %197 = vector.extract_strided_slice %167 {offsets = [0, 15], sizes = [8, 497], strides = [1, 1]} : vector<8x512xf32> to vector<8x497xf32>
    %198 = vector.extract_strided_slice %167 {offsets = [0, 0], sizes = [8, 15], strides = [1, 1]} : vector<8x512xf32> to vector<8x15xf32>
    %199 = tpu.concatenate %197, %198 in 1 : vector<8x497xf32>, vector<8x15xf32> -> vector<8x512xf32>
    %200 = vector.broadcast %35 : vector<1x512xf32> to vector<8x512xf32>
    %201 = arith.mulf %199, %200 : vector<8x512xf32>
    %202 = vector.extract_strided_slice %167 {offsets = [0, 16], sizes = [8, 496], strides = [1, 1]} : vector<8x512xf32> to vector<8x496xf32>
    %203 = vector.extract_strided_slice %167 {offsets = [0, 0], sizes = [8, 16], strides = [1, 1]} : vector<8x512xf32> to vector<8x16xf32>
    %204 = tpu.concatenate %202, %203 in 1 : vector<8x496xf32>, vector<8x16xf32> -> vector<8x512xf32>
    %205 = vector.broadcast %37 : vector<1x512xf32> to vector<8x512xf32>
    %206 = arith.mulf %204, %205 : vector<8x512xf32>
    %207 = vector.extract_strided_slice %167 {offsets = [0, 17], sizes = [8, 495], strides = [1, 1]} : vector<8x512xf32> to vector<8x495xf32>
    %208 = vector.extract_strided_slice %167 {offsets = [0, 0], sizes = [8, 17], strides = [1, 1]} : vector<8x512xf32> to vector<8x17xf32>
    %209 = tpu.concatenate %207, %208 in 1 : vector<8x495xf32>, vector<8x17xf32> -> vector<8x512xf32>
    %210 = vector.broadcast %39 : vector<1x512xf32> to vector<8x512xf32>
    %211 = arith.mulf %209, %210 : vector<8x512xf32>
    %212 = tpu.concatenate %176, %181, %186, %191, %167, %196, %201, %206, %211 in 0 : vector<8x512xf32>, vector<8x512xf32>, vector<8x512xf32>, vector<8x512xf32>, vector<8x512xf32>, vector<8x512xf32>, vector<8x512xf32>, vector<8x512xf32>, vector<8x512xf32> -> vector<72x512xf32>
    %213 = arith.truncf %212 : vector<72x512xf32> to vector<72x512xbf16>
    %cst_27 = arith.constant dense<0.000000e+00> : vector<8x512xf32>
    %214 = tpu.matmul %169, %213, %cst_27 {dimension_numbers = #tpu.dot_dimension_numbers<[1], [0], [0], [1], [0, 0, 1, 1], [], []>} : vector<8x72xbf16>, vector<72x512xbf16>, vector<8x512xf32> -> vector<8x512xf32>
    %215 = vector.broadcast %171 : vector<8x1xf32> to vector<8x512xf32>
    %216 = arith.addf %214, %215 : vector<8x512xf32>
    %c2 = arith.constant 2 : index
    %c0_28 = arith.constant 0 : index
    %c0_29 = arith.constant 0 : index
    %217 = vector.load %arg6[%c2, %c0_28, %c0_29] : memref<12x8x72xbf16, #tpu.memory_space<vmem>>, vector<1x8x72xbf16>
    %218 = vector.shape_cast %217 : vector<1x8x72xbf16> to vector<8x72xbf16>
    %c2_30 = arith.constant 2 : index
    %c0_31 = arith.constant 0 : index
    %c0_32 = arith.constant 0 : index
    %219 = vector.load %arg7[%c2_30, %c0_31, %c0_32] : memref<12x8x1xf32, #tpu.memory_space<vmem>>, vector<1x8x1xf32>
    %220 = vector.shape_cast %219 : vector<1x8x1xf32> to vector<8x1xf32>
    %221 = vector.extract_strided_slice %216 {offsets = [0, 495], sizes = [8, 17], strides = [1, 1]} : vector<8x512xf32> to vector<8x17xf32>
    %222 = vector.extract_strided_slice %216 {offsets = [0, 0], sizes = [8, 495], strides = [1, 1]} : vector<8x512xf32> to vector<8x495xf32>
    %223 = tpu.concatenate %221, %222 in 1 : vector<8x17xf32>, vector<8x495xf32> -> vector<8x512xf32>
    %224 = vector.broadcast %17 : vector<1x512xf32> to vector<8x512xf32>
    %225 = arith.mulf %223, %224 : vector<8x512xf32>
    %226 = vector.extract_strided_slice %216 {offsets = [0, 496], sizes = [8, 16], strides = [1, 1]} : vector<8x512xf32> to vector<8x16xf32>
    %227 = vector.extract_strided_slice %216 {offsets = [0, 0], sizes = [8, 496], strides = [1, 1]} : vector<8x512xf32> to vector<8x496xf32>
    %228 = tpu.concatenate %226, %227 in 1 : vector<8x16xf32>, vector<8x496xf32> -> vector<8x512xf32>
    %229 = vector.broadcast %19 : vector<1x512xf32> to vector<8x512xf32>
    %230 = arith.mulf %228, %229 : vector<8x512xf32>
    %231 = vector.extract_strided_slice %216 {offsets = [0, 497], sizes = [8, 15], strides = [1, 1]} : vector<8x512xf32> to vector<8x15xf32>
    %232 = vector.extract_strided_slice %216 {offsets = [0, 0], sizes = [8, 497], strides = [1, 1]} : vector<8x512xf32> to vector<8x497xf32>
    %233 = tpu.concatenate %231, %232 in 1 : vector<8x15xf32>, vector<8x497xf32> -> vector<8x512xf32>
    %234 = vector.broadcast %21 : vector<1x512xf32> to vector<8x512xf32>
    %235 = arith.mulf %233, %234 : vector<8x512xf32>
    %236 = vector.extract_strided_slice %216 {offsets = [0, 511], sizes = [8, 1], strides = [1, 1]} : vector<8x512xf32> to vector<8x1xf32>
    %237 = vector.extract_strided_slice %216 {offsets = [0, 0], sizes = [8, 511], strides = [1, 1]} : vector<8x512xf32> to vector<8x511xf32>
    %238 = tpu.concatenate %236, %237 in 1 : vector<8x1xf32>, vector<8x511xf32> -> vector<8x512xf32>
    %239 = vector.broadcast %27 : vector<1x512xf32> to vector<8x512xf32>
    %240 = arith.mulf %238, %239 : vector<8x512xf32>
    %241 = vector.extract_strided_slice %216 {offsets = [0, 1], sizes = [8, 511], strides = [1, 1]} : vector<8x512xf32> to vector<8x511xf32>
    %242 = vector.extract_strided_slice %216 {offsets = [0, 0], sizes = [8, 1], strides = [1, 1]} : vector<8x512xf32> to vector<8x1xf32>
    %243 = tpu.concatenate %241, %242 in 1 : vector<8x511xf32>, vector<8x1xf32> -> vector<8x512xf32>
    %244 = vector.broadcast %29 : vector<1x512xf32> to vector<8x512xf32>
    %245 = arith.mulf %243, %244 : vector<8x512xf32>
    %246 = vector.extract_strided_slice %216 {offsets = [0, 15], sizes = [8, 497], strides = [1, 1]} : vector<8x512xf32> to vector<8x497xf32>
    %247 = vector.extract_strided_slice %216 {offsets = [0, 0], sizes = [8, 15], strides = [1, 1]} : vector<8x512xf32> to vector<8x15xf32>
    %248 = tpu.concatenate %246, %247 in 1 : vector<8x497xf32>, vector<8x15xf32> -> vector<8x512xf32>
    %249 = vector.broadcast %35 : vector<1x512xf32> to vector<8x512xf32>
    %250 = arith.mulf %248, %249 : vector<8x512xf32>
    %251 = vector.extract_strided_slice %216 {offsets = [0, 16], sizes = [8, 496], strides = [1, 1]} : vector<8x512xf32> to vector<8x496xf32>
    %252 = vector.extract_strided_slice %216 {offsets = [0, 0], sizes = [8, 16], strides = [1, 1]} : vector<8x512xf32> to vector<8x16xf32>
    %253 = tpu.concatenate %251, %252 in 1 : vector<8x496xf32>, vector<8x16xf32> -> vector<8x512xf32>
    %254 = vector.broadcast %37 : vector<1x512xf32> to vector<8x512xf32>
    %255 = arith.mulf %253, %254 : vector<8x512xf32>
    %256 = vector.extract_strided_slice %216 {offsets = [0, 17], sizes = [8, 495], strides = [1, 1]} : vector<8x512xf32> to vector<8x495xf32>
    %257 = vector.extract_strided_slice %216 {offsets = [0, 0], sizes = [8, 17], strides = [1, 1]} : vector<8x512xf32> to vector<8x17xf32>
    %258 = tpu.concatenate %256, %257 in 1 : vector<8x495xf32>, vector<8x17xf32> -> vector<8x512xf32>
    %259 = vector.broadcast %39 : vector<1x512xf32> to vector<8x512xf32>
    %260 = arith.mulf %258, %259 : vector<8x512xf32>
    %261 = tpu.concatenate %225, %230, %235, %240, %216, %245, %250, %255, %260 in 0 : vector<8x512xf32>, vector<8x512xf32>, vector<8x512xf32>, vector<8x512xf32>, vector<8x512xf32>, vector<8x512xf32>, vector<8x512xf32>, vector<8x512xf32>, vector<8x512xf32> -> vector<72x512xf32>
    %262 = arith.truncf %261 : vector<72x512xf32> to vector<72x512xbf16>
    %cst_33 = arith.constant dense<0.000000e+00> : vector<8x512xf32>
    %263 = tpu.matmul %218, %262, %cst_33 {dimension_numbers = #tpu.dot_dimension_numbers<[1], [0], [0], [1], [0, 0, 1, 1], [], []>} : vector<8x72xbf16>, vector<72x512xbf16>, vector<8x512xf32> -> vector<8x512xf32>
    %264 = vector.broadcast %220 : vector<8x1xf32> to vector<8x512xf32>
    %265 = arith.addf %263, %264 : vector<8x512xf32>
    %cst_34 = arith.constant 0.000000e+00 : f32
    %266 = vector.broadcast %cst_34 : f32 to vector<8x512xf32>
    %267 = arith.cmpf oge, %265, %266 : vector<8x512xf32>
    %cst_35 = arith.constant 0.00999999977 : f32
    %268 = vector.broadcast %cst_35 : f32 to vector<8x512xf32>
    %269 = arith.mulf %268, %265 : vector<8x512xf32>
    %270 = arith.select %267, %265, %269 : vector<8x512xi1>, vector<8x512xf32>
    %c3 = arith.constant 3 : index
    %c0_36 = arith.constant 0 : index
    %c0_37 = arith.constant 0 : index
    %271 = vector.load %arg6[%c3, %c0_36, %c0_37] : memref<12x8x72xbf16, #tpu.memory_space<vmem>>, vector<1x8x72xbf16>
    %272 = vector.shape_cast %271 : vector<1x8x72xbf16> to vector<8x72xbf16>
    %c3_38 = arith.constant 3 : index
    %c0_39 = arith.constant 0 : index
    %c0_40 = arith.constant 0 : index
    %273 = vector.load %arg7[%c3_38, %c0_39, %c0_40] : memref<12x8x1xf32, #tpu.memory_space<vmem>>, vector<1x8x1xf32>
    %274 = vector.shape_cast %273 : vector<1x8x1xf32> to vector<8x1xf32>
    %275 = vector.extract_strided_slice %270 {offsets = [0, 495], sizes = [8, 17], strides = [1, 1]} : vector<8x512xf32> to vector<8x17xf32>
    %276 = vector.extract_strided_slice %270 {offsets = [0, 0], sizes = [8, 495], strides = [1, 1]} : vector<8x512xf32> to vector<8x495xf32>
    %277 = tpu.concatenate %275, %276 in 1 : vector<8x17xf32>, vector<8x495xf32> -> vector<8x512xf32>
    %278 = vector.broadcast %17 : vector<1x512xf32> to vector<8x512xf32>
    %279 = arith.mulf %277, %278 : vector<8x512xf32>
    %280 = vector.extract_strided_slice %270 {offsets = [0, 496], sizes = [8, 16], strides = [1, 1]} : vector<8x512xf32> to vector<8x16xf32>
    %281 = vector.extract_strided_slice %270 {offsets = [0, 0], sizes = [8, 496], strides = [1, 1]} : vector<8x512xf32> to vector<8x496xf32>
    %282 = tpu.concatenate %280, %281 in 1 : vector<8x16xf32>, vector<8x496xf32> -> vector<8x512xf32>
    %283 = vector.broadcast %19 : vector<1x512xf32> to vector<8x512xf32>
    %284 = arith.mulf %282, %283 : vector<8x512xf32>
    %285 = vector.extract_strided_slice %270 {offsets = [0, 497], sizes = [8, 15], strides = [1, 1]} : vector<8x512xf32> to vector<8x15xf32>
    %286 = vector.extract_strided_slice %270 {offsets = [0, 0], sizes = [8, 497], strides = [1, 1]} : vector<8x512xf32> to vector<8x497xf32>
    %287 = tpu.concatenate %285, %286 in 1 : vector<8x15xf32>, vector<8x497xf32> -> vector<8x512xf32>
    %288 = vector.broadcast %21 : vector<1x512xf32> to vector<8x512xf32>
    %289 = arith.mulf %287, %288 : vector<8x512xf32>
    %290 = vector.extract_strided_slice %270 {offsets = [0, 511], sizes = [8, 1], strides = [1, 1]} : vector<8x512xf32> to vector<8x1xf32>
    %291 = vector.extract_strided_slice %270 {offsets = [0, 0], sizes = [8, 511], strides = [1, 1]} : vector<8x512xf32> to vector<8x511xf32>
    %292 = tpu.concatenate %290, %291 in 1 : vector<8x1xf32>, vector<8x511xf32> -> vector<8x512xf32>
    %293 = vector.broadcast %27 : vector<1x512xf32> to vector<8x512xf32>
    %294 = arith.mulf %292, %293 : vector<8x512xf32>
    %295 = vector.extract_strided_slice %270 {offsets = [0, 1], sizes = [8, 511], strides = [1, 1]} : vector<8x512xf32> to vector<8x511xf32>
    %296 = vector.extract_strided_slice %270 {offsets = [0, 0], sizes = [8, 1], strides = [1, 1]} : vector<8x512xf32> to vector<8x1xf32>
    %297 = tpu.concatenate %295, %296 in 1 : vector<8x511xf32>, vector<8x1xf32> -> vector<8x512xf32>
    %298 = vector.broadcast %29 : vector<1x512xf32> to vector<8x512xf32>
    %299 = arith.mulf %297, %298 : vector<8x512xf32>
    %300 = vector.extract_strided_slice %270 {offsets = [0, 15], sizes = [8, 497], strides = [1, 1]} : vector<8x512xf32> to vector<8x497xf32>
    %301 = vector.extract_strided_slice %270 {offsets = [0, 0], sizes = [8, 15], strides = [1, 1]} : vector<8x512xf32> to vector<8x15xf32>
    %302 = tpu.concatenate %300, %301 in 1 : vector<8x497xf32>, vector<8x15xf32> -> vector<8x512xf32>
    %303 = vector.broadcast %35 : vector<1x512xf32> to vector<8x512xf32>
    %304 = arith.mulf %302, %303 : vector<8x512xf32>
    %305 = vector.extract_strided_slice %270 {offsets = [0, 16], sizes = [8, 496], strides = [1, 1]} : vector<8x512xf32> to vector<8x496xf32>
    %306 = vector.extract_strided_slice %270 {offsets = [0, 0], sizes = [8, 16], strides = [1, 1]} : vector<8x512xf32> to vector<8x16xf32>
    %307 = tpu.concatenate %305, %306 in 1 : vector<8x496xf32>, vector<8x16xf32> -> vector<8x512xf32>
    %308 = vector.broadcast %37 : vector<1x512xf32> to vector<8x512xf32>
    %309 = arith.mulf %307, %308 : vector<8x512xf32>
    %310 = vector.extract_strided_slice %270 {offsets = [0, 17], sizes = [8, 495], strides = [1, 1]} : vector<8x512xf32> to vector<8x495xf32>
    %311 = vector.extract_strided_slice %270 {offsets = [0, 0], sizes = [8, 17], strides = [1, 1]} : vector<8x512xf32> to vector<8x17xf32>
    %312 = tpu.concatenate %310, %311 in 1 : vector<8x495xf32>, vector<8x17xf32> -> vector<8x512xf32>
    %313 = vector.broadcast %39 : vector<1x512xf32> to vector<8x512xf32>
    %314 = arith.mulf %312, %313 : vector<8x512xf32>
    %315 = tpu.concatenate %279, %284, %289, %294, %270, %299, %304, %309, %314 in 0 : vector<8x512xf32>, vector<8x512xf32>, vector<8x512xf32>, vector<8x512xf32>, vector<8x512xf32>, vector<8x512xf32>, vector<8x512xf32>, vector<8x512xf32>, vector<8x512xf32> -> vector<72x512xf32>
    %316 = arith.truncf %315 : vector<72x512xf32> to vector<72x512xbf16>
    %cst_41 = arith.constant dense<0.000000e+00> : vector<8x512xf32>
    %317 = tpu.matmul %272, %316, %cst_41 {dimension_numbers = #tpu.dot_dimension_numbers<[1], [0], [0], [1], [0, 0, 1, 1], [], []>} : vector<8x72xbf16>, vector<72x512xbf16>, vector<8x512xf32> -> vector<8x512xf32>
    %318 = vector.broadcast %274 : vector<8x1xf32> to vector<8x512xf32>
    %319 = arith.addf %317, %318 : vector<8x512xf32>
    %c4 = arith.constant 4 : index
    %c0_42 = arith.constant 0 : index
    %c0_43 = arith.constant 0 : index
    %320 = vector.load %arg6[%c4, %c0_42, %c0_43] : memref<12x8x72xbf16, #tpu.memory_space<vmem>>, vector<1x8x72xbf16>
    %321 = vector.shape_cast %320 : vector<1x8x72xbf16> to vector<8x72xbf16>
    %c4_44 = arith.constant 4 : index
    %c0_45 = arith.constant 0 : index
    %c0_46 = arith.constant 0 : index
    %322 = vector.load %arg7[%c4_44, %c0_45, %c0_46] : memref<12x8x1xf32, #tpu.memory_space<vmem>>, vector<1x8x1xf32>
    %323 = vector.shape_cast %322 : vector<1x8x1xf32> to vector<8x1xf32>
    %324 = vector.extract_strided_slice %319 {offsets = [0, 495], sizes = [8, 17], strides = [1, 1]} : vector<8x512xf32> to vector<8x17xf32>
    %325 = vector.extract_strided_slice %319 {offsets = [0, 0], sizes = [8, 495], strides = [1, 1]} : vector<8x512xf32> to vector<8x495xf32>
    %326 = tpu.concatenate %324, %325 in 1 : vector<8x17xf32>, vector<8x495xf32> -> vector<8x512xf32>
    %327 = vector.broadcast %17 : vector<1x512xf32> to vector<8x512xf32>
    %328 = arith.mulf %326, %327 : vector<8x512xf32>
    %329 = vector.extract_strided_slice %319 {offsets = [0, 496], sizes = [8, 16], strides = [1, 1]} : vector<8x512xf32> to vector<8x16xf32>
    %330 = vector.extract_strided_slice %319 {offsets = [0, 0], sizes = [8, 496], strides = [1, 1]} : vector<8x512xf32> to vector<8x496xf32>
    %331 = tpu.concatenate %329, %330 in 1 : vector<8x16xf32>, vector<8x496xf32> -> vector<8x512xf32>
    %332 = vector.broadcast %19 : vector<1x512xf32> to vector<8x512xf32>
    %333 = arith.mulf %331, %332 : vector<8x512xf32>
    %334 = vector.extract_strided_slice %319 {offsets = [0, 497], sizes = [8, 15], strides = [1, 1]} : vector<8x512xf32> to vector<8x15xf32>
    %335 = vector.extract_strided_slice %319 {offsets = [0, 0], sizes = [8, 497], strides = [1, 1]} : vector<8x512xf32> to vector<8x497xf32>
    %336 = tpu.concatenate %334, %335 in 1 : vector<8x15xf32>, vector<8x497xf32> -> vector<8x512xf32>
    %337 = vector.broadcast %21 : vector<1x512xf32> to vector<8x512xf32>
    %338 = arith.mulf %336, %337 : vector<8x512xf32>
    %339 = vector.extract_strided_slice %319 {offsets = [0, 511], sizes = [8, 1], strides = [1, 1]} : vector<8x512xf32> to vector<8x1xf32>
    %340 = vector.extract_strided_slice %319 {offsets = [0, 0], sizes = [8, 511], strides = [1, 1]} : vector<8x512xf32> to vector<8x511xf32>
    %341 = tpu.concatenate %339, %340 in 1 : vector<8x1xf32>, vector<8x511xf32> -> vector<8x512xf32>
    %342 = vector.broadcast %27 : vector<1x512xf32> to vector<8x512xf32>
    %343 = arith.mulf %341, %342 : vector<8x512xf32>
    %344 = vector.extract_strided_slice %319 {offsets = [0, 1], sizes = [8, 511], strides = [1, 1]} : vector<8x512xf32> to vector<8x511xf32>
    %345 = vector.extract_strided_slice %319 {offsets = [0, 0], sizes = [8, 1], strides = [1, 1]} : vector<8x512xf32> to vector<8x1xf32>
    %346 = tpu.concatenate %344, %345 in 1 : vector<8x511xf32>, vector<8x1xf32> -> vector<8x512xf32>
    %347 = vector.broadcast %29 : vector<1x512xf32> to vector<8x512xf32>
    %348 = arith.mulf %346, %347 : vector<8x512xf32>
    %349 = vector.extract_strided_slice %319 {offsets = [0, 15], sizes = [8, 497], strides = [1, 1]} : vector<8x512xf32> to vector<8x497xf32>
    %350 = vector.extract_strided_slice %319 {offsets = [0, 0], sizes = [8, 15], strides = [1, 1]} : vector<8x512xf32> to vector<8x15xf32>
    %351 = tpu.concatenate %349, %350 in 1 : vector<8x497xf32>, vector<8x15xf32> -> vector<8x512xf32>
    %352 = vector.broadcast %35 : vector<1x512xf32> to vector<8x512xf32>
    %353 = arith.mulf %351, %352 : vector<8x512xf32>
    %354 = vector.extract_strided_slice %319 {offsets = [0, 16], sizes = [8, 496], strides = [1, 1]} : vector<8x512xf32> to vector<8x496xf32>
    %355 = vector.extract_strided_slice %319 {offsets = [0, 0], sizes = [8, 16], strides = [1, 1]} : vector<8x512xf32> to vector<8x16xf32>
    %356 = tpu.concatenate %354, %355 in 1 : vector<8x496xf32>, vector<8x16xf32> -> vector<8x512xf32>
    %357 = vector.broadcast %37 : vector<1x512xf32> to vector<8x512xf32>
    %358 = arith.mulf %356, %357 : vector<8x512xf32>
    %359 = vector.extract_strided_slice %319 {offsets = [0, 17], sizes = [8, 495], strides = [1, 1]} : vector<8x512xf32> to vector<8x495xf32>
    %360 = vector.extract_strided_slice %319 {offsets = [0, 0], sizes = [8, 17], strides = [1, 1]} : vector<8x512xf32> to vector<8x17xf32>
    %361 = tpu.concatenate %359, %360 in 1 : vector<8x495xf32>, vector<8x17xf32> -> vector<8x512xf32>
    %362 = vector.broadcast %39 : vector<1x512xf32> to vector<8x512xf32>
    %363 = arith.mulf %361, %362 : vector<8x512xf32>
    %364 = tpu.concatenate %328, %333, %338, %343, %319, %348, %353, %358, %363 in 0 : vector<8x512xf32>, vector<8x512xf32>, vector<8x512xf32>, vector<8x512xf32>, vector<8x512xf32>, vector<8x512xf32>, vector<8x512xf32>, vector<8x512xf32>, vector<8x512xf32> -> vector<72x512xf32>
    %365 = arith.truncf %364 : vector<72x512xf32> to vector<72x512xbf16>
    %cst_47 = arith.constant dense<0.000000e+00> : vector<8x512xf32>
    %366 = tpu.matmul %321, %365, %cst_47 {dimension_numbers = #tpu.dot_dimension_numbers<[1], [0], [0], [1], [0, 0, 1, 1], [], []>} : vector<8x72xbf16>, vector<72x512xbf16>, vector<8x512xf32> -> vector<8x512xf32>
    %367 = vector.broadcast %323 : vector<8x1xf32> to vector<8x512xf32>
    %368 = arith.addf %366, %367 : vector<8x512xf32>
    %cst_48 = arith.constant 0.000000e+00 : f32
    %369 = vector.broadcast %cst_48 : f32 to vector<8x512xf32>
    %370 = arith.cmpf oge, %368, %369 : vector<8x512xf32>
    %cst_49 = arith.constant 0.00999999977 : f32
    %371 = vector.broadcast %cst_49 : f32 to vector<8x512xf32>
    %372 = arith.mulf %371, %368 : vector<8x512xf32>
    %373 = arith.select %370, %368, %372 : vector<8x512xi1>, vector<8x512xf32>
    %c5 = arith.constant 5 : index
    %c0_50 = arith.constant 0 : index
    %c0_51 = arith.constant 0 : index
    %374 = vector.load %arg6[%c5, %c0_50, %c0_51] : memref<12x8x72xbf16, #tpu.memory_space<vmem>>, vector<1x8x72xbf16>
    %375 = vector.shape_cast %374 : vector<1x8x72xbf16> to vector<8x72xbf16>
    %c5_52 = arith.constant 5 : index
    %c0_53 = arith.constant 0 : index
    %c0_54 = arith.constant 0 : index
    %376 = vector.load %arg7[%c5_52, %c0_53, %c0_54] : memref<12x8x1xf32, #tpu.memory_space<vmem>>, vector<1x8x1xf32>
    %377 = vector.shape_cast %376 : vector<1x8x1xf32> to vector<8x1xf32>
    %378 = vector.extract_strided_slice %373 {offsets = [0, 495], sizes = [8, 17], strides = [1, 1]} : vector<8x512xf32> to vector<8x17xf32>
    %379 = vector.extract_strided_slice %373 {offsets = [0, 0], sizes = [8, 495], strides = [1, 1]} : vector<8x512xf32> to vector<8x495xf32>
    %380 = tpu.concatenate %378, %379 in 1 : vector<8x17xf32>, vector<8x495xf32> -> vector<8x512xf32>
    %381 = vector.broadcast %17 : vector<1x512xf32> to vector<8x512xf32>
    %382 = arith.mulf %380, %381 : vector<8x512xf32>
    %383 = vector.extract_strided_slice %373 {offsets = [0, 496], sizes = [8, 16], strides = [1, 1]} : vector<8x512xf32> to vector<8x16xf32>
    %384 = vector.extract_strided_slice %373 {offsets = [0, 0], sizes = [8, 496], strides = [1, 1]} : vector<8x512xf32> to vector<8x496xf32>
    %385 = tpu.concatenate %383, %384 in 1 : vector<8x16xf32>, vector<8x496xf32> -> vector<8x512xf32>
    %386 = vector.broadcast %19 : vector<1x512xf32> to vector<8x512xf32>
    %387 = arith.mulf %385, %386 : vector<8x512xf32>
    %388 = vector.extract_strided_slice %373 {offsets = [0, 497], sizes = [8, 15], strides = [1, 1]} : vector<8x512xf32> to vector<8x15xf32>
    %389 = vector.extract_strided_slice %373 {offsets = [0, 0], sizes = [8, 497], strides = [1, 1]} : vector<8x512xf32> to vector<8x497xf32>
    %390 = tpu.concatenate %388, %389 in 1 : vector<8x15xf32>, vector<8x497xf32> -> vector<8x512xf32>
    %391 = vector.broadcast %21 : vector<1x512xf32> to vector<8x512xf32>
    %392 = arith.mulf %390, %391 : vector<8x512xf32>
    %393 = vector.extract_strided_slice %373 {offsets = [0, 511], sizes = [8, 1], strides = [1, 1]} : vector<8x512xf32> to vector<8x1xf32>
    %394 = vector.extract_strided_slice %373 {offsets = [0, 0], sizes = [8, 511], strides = [1, 1]} : vector<8x512xf32> to vector<8x511xf32>
    %395 = tpu.concatenate %393, %394 in 1 : vector<8x1xf32>, vector<8x511xf32> -> vector<8x512xf32>
    %396 = vector.broadcast %27 : vector<1x512xf32> to vector<8x512xf32>
    %397 = arith.mulf %395, %396 : vector<8x512xf32>
    %398 = vector.extract_strided_slice %373 {offsets = [0, 1], sizes = [8, 511], strides = [1, 1]} : vector<8x512xf32> to vector<8x511xf32>
    %399 = vector.extract_strided_slice %373 {offsets = [0, 0], sizes = [8, 1], strides = [1, 1]} : vector<8x512xf32> to vector<8x1xf32>
    %400 = tpu.concatenate %398, %399 in 1 : vector<8x511xf32>, vector<8x1xf32> -> vector<8x512xf32>
    %401 = vector.broadcast %29 : vector<1x512xf32> to vector<8x512xf32>
    %402 = arith.mulf %400, %401 : vector<8x512xf32>
    %403 = vector.extract_strided_slice %373 {offsets = [0, 15], sizes = [8, 497], strides = [1, 1]} : vector<8x512xf32> to vector<8x497xf32>
    %404 = vector.extract_strided_slice %373 {offsets = [0, 0], sizes = [8, 15], strides = [1, 1]} : vector<8x512xf32> to vector<8x15xf32>
    %405 = tpu.concatenate %403, %404 in 1 : vector<8x497xf32>, vector<8x15xf32> -> vector<8x512xf32>
    %406 = vector.broadcast %35 : vector<1x512xf32> to vector<8x512xf32>
    %407 = arith.mulf %405, %406 : vector<8x512xf32>
    %408 = vector.extract_strided_slice %373 {offsets = [0, 16], sizes = [8, 496], strides = [1, 1]} : vector<8x512xf32> to vector<8x496xf32>
    %409 = vector.extract_strided_slice %373 {offsets = [0, 0], sizes = [8, 16], strides = [1, 1]} : vector<8x512xf32> to vector<8x16xf32>
    %410 = tpu.concatenate %408, %409 in 1 : vector<8x496xf32>, vector<8x16xf32> -> vector<8x512xf32>
    %411 = vector.broadcast %37 : vector<1x512xf32> to vector<8x512xf32>
    %412 = arith.mulf %410, %411 : vector<8x512xf32>
    %413 = vector.extract_strided_slice %373 {offsets = [0, 17], sizes = [8, 495], strides = [1, 1]} : vector<8x512xf32> to vector<8x495xf32>
    %414 = vector.extract_strided_slice %373 {offsets = [0, 0], sizes = [8, 17], strides = [1, 1]} : vector<8x512xf32> to vector<8x17xf32>
    %415 = tpu.concatenate %413, %414 in 1 : vector<8x495xf32>, vector<8x17xf32> -> vector<8x512xf32>
    %416 = vector.broadcast %39 : vector<1x512xf32> to vector<8x512xf32>
    %417 = arith.mulf %415, %416 : vector<8x512xf32>
    %418 = tpu.concatenate %382, %387, %392, %397, %373, %402, %407, %412, %417 in 0 : vector<8x512xf32>, vector<8x512xf32>, vector<8x512xf32>, vector<8x512xf32>, vector<8x512xf32>, vector<8x512xf32>, vector<8x512xf32>, vector<8x512xf32>, vector<8x512xf32> -> vector<72x512xf32>
    %419 = arith.truncf %418 : vector<72x512xf32> to vector<72x512xbf16>
    %cst_55 = arith.constant dense<0.000000e+00> : vector<8x512xf32>
    %420 = tpu.matmul %375, %419, %cst_55 {dimension_numbers = #tpu.dot_dimension_numbers<[1], [0], [0], [1], [0, 0, 1, 1], [], []>} : vector<8x72xbf16>, vector<72x512xbf16>, vector<8x512xf32> -> vector<8x512xf32>
    %421 = vector.broadcast %377 : vector<8x1xf32> to vector<8x512xf32>
    %422 = arith.addf %420, %421 : vector<8x512xf32>
    %c6 = arith.constant 6 : index
    %c0_56 = arith.constant 0 : index
    %c0_57 = arith.constant 0 : index
    %423 = vector.load %arg6[%c6, %c0_56, %c0_57] : memref<12x8x72xbf16, #tpu.memory_space<vmem>>, vector<1x8x72xbf16>
    %424 = vector.shape_cast %423 : vector<1x8x72xbf16> to vector<8x72xbf16>
    %c6_58 = arith.constant 6 : index
    %c0_59 = arith.constant 0 : index
    %c0_60 = arith.constant 0 : index
    %425 = vector.load %arg7[%c6_58, %c0_59, %c0_60] : memref<12x8x1xf32, #tpu.memory_space<vmem>>, vector<1x8x1xf32>
    %426 = vector.shape_cast %425 : vector<1x8x1xf32> to vector<8x1xf32>
    %427 = vector.extract_strided_slice %422 {offsets = [0, 495], sizes = [8, 17], strides = [1, 1]} : vector<8x512xf32> to vector<8x17xf32>
    %428 = vector.extract_strided_slice %422 {offsets = [0, 0], sizes = [8, 495], strides = [1, 1]} : vector<8x512xf32> to vector<8x495xf32>
    %429 = tpu.concatenate %427, %428 in 1 : vector<8x17xf32>, vector<8x495xf32> -> vector<8x512xf32>
    %430 = vector.broadcast %17 : vector<1x512xf32> to vector<8x512xf32>
    %431 = arith.mulf %429, %430 : vector<8x512xf32>
    %432 = vector.extract_strided_slice %422 {offsets = [0, 496], sizes = [8, 16], strides = [1, 1]} : vector<8x512xf32> to vector<8x16xf32>
    %433 = vector.extract_strided_slice %422 {offsets = [0, 0], sizes = [8, 496], strides = [1, 1]} : vector<8x512xf32> to vector<8x496xf32>
    %434 = tpu.concatenate %432, %433 in 1 : vector<8x16xf32>, vector<8x496xf32> -> vector<8x512xf32>
    %435 = vector.broadcast %19 : vector<1x512xf32> to vector<8x512xf32>
    %436 = arith.mulf %434, %435 : vector<8x512xf32>
    %437 = vector.extract_strided_slice %422 {offsets = [0, 497], sizes = [8, 15], strides = [1, 1]} : vector<8x512xf32> to vector<8x15xf32>
    %438 = vector.extract_strided_slice %422 {offsets = [0, 0], sizes = [8, 497], strides = [1, 1]} : vector<8x512xf32> to vector<8x497xf32>
    %439 = tpu.concatenate %437, %438 in 1 : vector<8x15xf32>, vector<8x497xf32> -> vector<8x512xf32>
    %440 = vector.broadcast %21 : vector<1x512xf32> to vector<8x512xf32>
    %441 = arith.mulf %439, %440 : vector<8x512xf32>
    %442 = vector.extract_strided_slice %422 {offsets = [0, 511], sizes = [8, 1], strides = [1, 1]} : vector<8x512xf32> to vector<8x1xf32>
    %443 = vector.extract_strided_slice %422 {offsets = [0, 0], sizes = [8, 511], strides = [1, 1]} : vector<8x512xf32> to vector<8x511xf32>
    %444 = tpu.concatenate %442, %443 in 1 : vector<8x1xf32>, vector<8x511xf32> -> vector<8x512xf32>
    %445 = vector.broadcast %27 : vector<1x512xf32> to vector<8x512xf32>
    %446 = arith.mulf %444, %445 : vector<8x512xf32>
    %447 = vector.extract_strided_slice %422 {offsets = [0, 1], sizes = [8, 511], strides = [1, 1]} : vector<8x512xf32> to vector<8x511xf32>
    %448 = vector.extract_strided_slice %422 {offsets = [0, 0], sizes = [8, 1], strides = [1, 1]} : vector<8x512xf32> to vector<8x1xf32>
    %449 = tpu.concatenate %447, %448 in 1 : vector<8x511xf32>, vector<8x1xf32> -> vector<8x512xf32>
    %450 = vector.broadcast %29 : vector<1x512xf32> to vector<8x512xf32>
    %451 = arith.mulf %449, %450 : vector<8x512xf32>
    %452 = vector.extract_strided_slice %422 {offsets = [0, 15], sizes = [8, 497], strides = [1, 1]} : vector<8x512xf32> to vector<8x497xf32>
    %453 = vector.extract_strided_slice %422 {offsets = [0, 0], sizes = [8, 15], strides = [1, 1]} : vector<8x512xf32> to vector<8x15xf32>
    %454 = tpu.concatenate %452, %453 in 1 : vector<8x497xf32>, vector<8x15xf32> -> vector<8x512xf32>
    %455 = vector.broadcast %35 : vector<1x512xf32> to vector<8x512xf32>
    %456 = arith.mulf %454, %455 : vector<8x512xf32>
    %457 = vector.extract_strided_slice %422 {offsets = [0, 16], sizes = [8, 496], strides = [1, 1]} : vector<8x512xf32> to vector<8x496xf32>
    %458 = vector.extract_strided_slice %422 {offsets = [0, 0], sizes = [8, 16], strides = [1, 1]} : vector<8x512xf32> to vector<8x16xf32>
    %459 = tpu.concatenate %457, %458 in 1 : vector<8x496xf32>, vector<8x16xf32> -> vector<8x512xf32>
    %460 = vector.broadcast %37 : vector<1x512xf32> to vector<8x512xf32>
    %461 = arith.mulf %459, %460 : vector<8x512xf32>
    %462 = vector.extract_strided_slice %422 {offsets = [0, 17], sizes = [8, 495], strides = [1, 1]} : vector<8x512xf32> to vector<8x495xf32>
    %463 = vector.extract_strided_slice %422 {offsets = [0, 0], sizes = [8, 17], strides = [1, 1]} : vector<8x512xf32> to vector<8x17xf32>
    %464 = tpu.concatenate %462, %463 in 1 : vector<8x495xf32>, vector<8x17xf32> -> vector<8x512xf32>
    %465 = vector.broadcast %39 : vector<1x512xf32> to vector<8x512xf32>
    %466 = arith.mulf %464, %465 : vector<8x512xf32>
    %467 = tpu.concatenate %431, %436, %441, %446, %422, %451, %456, %461, %466 in 0 : vector<8x512xf32>, vector<8x512xf32>, vector<8x512xf32>, vector<8x512xf32>, vector<8x512xf32>, vector<8x512xf32>, vector<8x512xf32>, vector<8x512xf32>, vector<8x512xf32> -> vector<72x512xf32>
    %468 = arith.truncf %467 : vector<72x512xf32> to vector<72x512xbf16>
    %cst_61 = arith.constant dense<0.000000e+00> : vector<8x512xf32>
    %469 = tpu.matmul %424, %468, %cst_61 {dimension_numbers = #tpu.dot_dimension_numbers<[1], [0], [0], [1], [0, 0, 1, 1], [], []>} : vector<8x72xbf16>, vector<72x512xbf16>, vector<8x512xf32> -> vector<8x512xf32>
    %470 = vector.broadcast %426 : vector<8x1xf32> to vector<8x512xf32>
    %471 = arith.addf %469, %470 : vector<8x512xf32>
    %cst_62 = arith.constant 0.000000e+00 : f32
    %472 = vector.broadcast %cst_62 : f32 to vector<8x512xf32>
    %473 = arith.cmpf oge, %471, %472 : vector<8x512xf32>
    %cst_63 = arith.constant 0.00999999977 : f32
    %474 = vector.broadcast %cst_63 : f32 to vector<8x512xf32>
    %475 = arith.mulf %474, %471 : vector<8x512xf32>
    %476 = arith.select %473, %471, %475 : vector<8x512xi1>, vector<8x512xf32>
    %477 = vector.extract_strided_slice %476 {offsets = [0, 0], sizes = [8, 256], strides = [1, 1]} : vector<8x512xf32> to vector<8x256xf32>
    %c0_64 = arith.constant 0 : index
    %c0_65 = arith.constant 0 : index
    %c0_66 = arith.constant 0 : index
    %478 = vector.load %arg14[%c0_64, %c0_65, %c0_66] : memref<1x8x256xf32, #tpu.memory_space<vmem>>, vector<1x8x256xf32>
    %479 = vector.shape_cast %478 : vector<1x8x256xf32> to vector<8x256xf32>
    %480 = vector.shape_cast %477 : vector<8x256xf32> to vector<1x8x256xf32>
    tpu.vector_store %arg14[%c0_64, %c0_65, %c0_66], %480 {strides = array<i32>} : memref<1x8x256xf32, #tpu.memory_space<vmem>>, vector<1x8x256xf32>,
    %481 = vector.extract_strided_slice %476 {offsets = [0, 256], sizes = [8, 256], strides = [1, 1]} : vector<8x512xf32> to vector<8x256xf32>
    %c0_67 = arith.constant 0 : index
    %c0_68 = arith.constant 0 : index
    %c0_69 = arith.constant 0 : index
    %482 = vector.load %arg15[%c0_67, %c0_68, %c0_69] : memref<1x8x256xf32, #tpu.memory_space<vmem>>, vector<1x8x256xf32>
    %483 = vector.shape_cast %482 : vector<1x8x256xf32> to vector<8x256xf32>
    %484 = vector.shape_cast %481 : vector<8x256xf32> to vector<1x8x256xf32>
    tpu.vector_store %arg15[%c0_67, %c0_68, %c0_69], %484 {strides = array<i32>} : memref<1x8x256xf32, #tpu.memory_space<vmem>>, vector<1x8x256xf32>,
    %485 = vector.extract_strided_slice %476 {offsets = [0, 0], sizes = [8, 256], strides = [1, 1]} : vector<8x512xf32> to vector<8x256xf32>
    %cst_70 = arith.constant dense<0.000000e+00> : vector<8xf32>
    %486 = vector.multi_reduction <add>, %485, %cst_70 [1] : vector<8x256xf32> to vector<8xf32>
    %487 = vector.shape_cast %486 : vector<8xf32> to vector<8x1xf32>
    %cst_71 = arith.constant 2.560000e+02 : f32
    %488 = vector.broadcast %cst_71 : f32 to vector<8x1xf32>
    %489 = arith.divf %487, %488 : vector<8x1xf32>
    %490 = vector.extract_strided_slice %476 {offsets = [0, 256], sizes = [8, 256], strides = [1, 1]} : vector<8x512xf32> to vector<8x256xf32>
    %cst_72 = arith.constant dense<0.000000e+00> : vector<8xf32>
    %491 = vector.multi_reduction <add>, %490, %cst_72 [1] : vector<8x256xf32> to vector<8xf32>
    %492 = vector.shape_cast %491 : vector<8xf32> to vector<8x1xf32>
    %cst_73 = arith.constant 2.560000e+02 : f32
    %493 = vector.broadcast %cst_73 : f32 to vector<8x1xf32>
    %494 = arith.divf %492, %493 : vector<8x1xf32>
    %495 = math.exp %489 : vector<8x1xf32>
    %496 = math.exp %494 : vector<8x1xf32>
    %497 = arith.addf %496, %495 : vector<8x1xf32>
    %cst_74 = arith.constant 1.000000e-10 : f32
    %498 = vector.broadcast %cst_74 : f32 to vector<8x1xf32>
    %499 = arith.addf %497, %498 : vector<8x1xf32>
    %500 = arith.divf %495, %499 : vector<8x1xf32>
    %501 = arith.addf %495, %496 : vector<8x1xf32>
    %cst_75 = arith.constant 1.000000e-10 : f32
    %502 = vector.broadcast %cst_75 : f32 to vector<8x1xf32>
    %503 = arith.addf %501, %502 : vector<8x1xf32>
    %504 = arith.divf %496, %503 : vector<8x1xf32>
    %505 = tpu.iota {dimensions = array<i32: 1>} : vector<8x512xi32>
    %c256_i32 = arith.constant 256 : i32
    %506 = vector.broadcast %c256_i32 : i32 to vector<8x512xi32>
    %507 = arith.cmpi slt, %505, %506 : vector<8x512xi32>
    %508 = vector.shape_cast %500 : vector<8x1xf32> to vector<8x1xf32>
    %509 = vector.broadcast %508 : vector<8x1xf32> to vector<8x512xf32>
    %510 = vector.shape_cast %504 : vector<8x1xf32> to vector<8x1xf32>
    %511 = vector.broadcast %510 : vector<8x1xf32> to vector<8x512xf32>
    %512 = arith.select %507, %509, %511 : vector<8x512xi1>, vector<8x512xf32>
    %513 = arith.mulf %512, %476 : vector<8x512xf32>
    %514 = tpu.iota {dimensions = array<i32: 0>} : vector<8x512xi32>
    %cst_76 = arith.constant dense<0.000000e+00> : vector<512xf32>
    %515 = vector.multi_reduction <add>, %513, %cst_76 [0] : vector<8x512xf32> to vector<512xf32>
    %516 = vector.shape_cast %515 : vector<512xf32> to vector<1x512xf32>
    %cst_77 = arith.constant 8.000000e+00 : f32
    %517 = vector.broadcast %cst_77 : f32 to vector<1x512xf32>
    %518 = arith.divf %516, %517 : vector<1x512xf32>
    %cst_78 = arith.constant dense<0xFF800000> : vector<512xf32>
    %519 = vector.multi_reduction <maximumf>, %513, %cst_78 [0] : vector<8x512xf32> to vector<512xf32>
    %520 = vector.shape_cast %519 : vector<512xf32> to vector<1x512xf32>
    %c0_i32 = arith.constant 0 : i32
    %521 = vector.broadcast %c0_i32 : i32 to vector<8x512xi32>
    %522 = arith.cmpi eq, %514, %521 : vector<8x512xi32>
    %cst_79 = arith.constant 0.000000e+00 : f32
    %523 = vector.shape_cast %518 : vector<1x512xf32> to vector<1x512xf32>
    %524 = vector.broadcast %523 : vector<1x512xf32> to vector<8x512xf32>
    %525 = vector.broadcast %cst_79 : f32 to vector<8x512xf32>
    %526 = arith.select %522, %524, %525 : vector<8x512xi1>, vector<8x512xf32>
    %c1_i32 = arith.constant 1 : i32
    %527 = vector.broadcast %c1_i32 : i32 to vector<8x512xi32>
    %528 = arith.cmpi eq, %514, %527 : vector<8x512xi32>
    %cst_80 = arith.constant 0.000000e+00 : f32
    %529 = vector.shape_cast %520 : vector<1x512xf32> to vector<1x512xf32>
    %530 = vector.broadcast %529 : vector<1x512xf32> to vector<8x512xf32>
    %531 = vector.broadcast %cst_80 : f32 to vector<8x512xf32>
    %532 = arith.select %528, %530, %531 : vector<8x512xi1>, vector<8x512xf32>
    %533 = arith.addf %526, %532 : vector<8x512xf32>
    %c0_81 = arith.constant 0 : index
    %c0_82 = arith.constant 0 : index
    %534 = vector.load %arg8[%c0_81, %c0_82] : memref<2x392xbf16, #tpu.memory_space<vmem>>, vector<2x392xbf16>
    %535 = vector.extract_strided_slice %533 {offsets = [0, 461], sizes = [8, 51], strides = [1, 1]} : vector<8x512xf32> to vector<8x51xf32>
    %536 = vector.extract_strided_slice %533 {offsets = [0, 0], sizes = [8, 461], strides = [1, 1]} : vector<8x512xf32> to vector<8x461xf32>
    %537 = tpu.concatenate %535, %536 in 1 : vector<8x51xf32>, vector<8x461xf32> -> vector<8x512xf32>
    %538 = vector.broadcast %1 : vector<1x512xf32> to vector<8x512xf32>
    %539 = arith.mulf %537, %538 : vector<8x512xf32>
    %540 = vector.extract_strided_slice %533 {offsets = [0, 462], sizes = [8, 50], strides = [1, 1]} : vector<8x512xf32> to vector<8x50xf32>
    %541 = vector.extract_strided_slice %533 {offsets = [0, 0], sizes = [8, 462], strides = [1, 1]} : vector<8x512xf32> to vector<8x462xf32>
    %542 = tpu.concatenate %540, %541 in 1 : vector<8x50xf32>, vector<8x462xf32> -> vector<8x512xf32>
    %543 = vector.broadcast %2 : vector<1x512xf32> to vector<8x512xf32>
    %544 = arith.mulf %542, %543 : vector<8x512xf32>
    %545 = vector.extract_strided_slice %533 {offsets = [0, 463], sizes = [8, 49], strides = [1, 1]} : vector<8x512xf32> to vector<8x49xf32>
    %546 = vector.extract_strided_slice %533 {offsets = [0, 0], sizes = [8, 463], strides = [1, 1]} : vector<8x512xf32> to vector<8x463xf32>
    %547 = tpu.concatenate %545, %546 in 1 : vector<8x49xf32>, vector<8x463xf32> -> vector<8x512xf32>
    %548 = vector.broadcast %3 : vector<1x512xf32> to vector<8x512xf32>
    %549 = arith.mulf %547, %548 : vector<8x512xf32>
    %550 = vector.extract_strided_slice %533 {offsets = [0, 464], sizes = [8, 48], strides = [1, 1]} : vector<8x512xf32> to vector<8x48xf32>
    %551 = vector.extract_strided_slice %533 {offsets = [0, 0], sizes = [8, 464], strides = [1, 1]} : vector<8x512xf32> to vector<8x464xf32>
    %552 = tpu.concatenate %550, %551 in 1 : vector<8x48xf32>, vector<8x464xf32> -> vector<8x512xf32>
    %553 = vector.broadcast %4 : vector<1x512xf32> to vector<8x512xf32>
    %554 = arith.mulf %552, %553 : vector<8x512xf32>
    %555 = vector.extract_strided_slice %533 {offsets = [0, 465], sizes = [8, 47], strides = [1, 1]} : vector<8x512xf32> to vector<8x47xf32>
    %556 = vector.extract_strided_slice %533 {offsets = [0, 0], sizes = [8, 465], strides = [1, 1]} : vector<8x512xf32> to vector<8x465xf32>
    %557 = tpu.concatenate %555, %556 in 1 : vector<8x47xf32>, vector<8x465xf32> -> vector<8x512xf32>
    %558 = vector.broadcast %5 : vector<1x512xf32> to vector<8x512xf32>
    %559 = arith.mulf %557, %558 : vector<8x512xf32>
    %560 = vector.extract_strided_slice %533 {offsets = [0, 466], sizes = [8, 46], strides = [1, 1]} : vector<8x512xf32> to vector<8x46xf32>
    %561 = vector.extract_strided_slice %533 {offsets = [0, 0], sizes = [8, 466], strides = [1, 1]} : vector<8x512xf32> to vector<8x466xf32>
    %562 = tpu.concatenate %560, %561 in 1 : vector<8x46xf32>, vector<8x466xf32> -> vector<8x512xf32>
    %563 = vector.broadcast %6 : vector<1x512xf32> to vector<8x512xf32>
    %564 = arith.mulf %562, %563 : vector<8x512xf32>
    %565 = vector.extract_strided_slice %533 {offsets = [0, 467], sizes = [8, 45], strides = [1, 1]} : vector<8x512xf32> to vector<8x45xf32>
    %566 = vector.extract_strided_slice %533 {offsets = [0, 0], sizes = [8, 467], strides = [1, 1]} : vector<8x512xf32> to vector<8x467xf32>
    %567 = tpu.concatenate %565, %566 in 1 : vector<8x45xf32>, vector<8x467xf32> -> vector<8x512xf32>
    %568 = vector.broadcast %7 : vector<1x512xf32> to vector<8x512xf32>
    %569 = arith.mulf %567, %568 : vector<8x512xf32>
    %570 = vector.extract_strided_slice %533 {offsets = [0, 477], sizes = [8, 35], strides = [1, 1]} : vector<8x512xf32> to vector<8x35xf32>
    %571 = vector.extract_strided_slice %533 {offsets = [0, 0], sizes = [8, 477], strides = [1, 1]} : vector<8x512xf32> to vector<8x477xf32>
    %572 = tpu.concatenate %570, %571 in 1 : vector<8x35xf32>, vector<8x477xf32> -> vector<8x512xf32>
    %573 = vector.broadcast %8 : vector<1x512xf32> to vector<8x512xf32>
    %574 = arith.mulf %572, %573 : vector<8x512xf32>
    %575 = vector.extract_strided_slice %533 {offsets = [0, 478], sizes = [8, 34], strides = [1, 1]} : vector<8x512xf32> to vector<8x34xf32>
    %576 = vector.extract_strided_slice %533 {offsets = [0, 0], sizes = [8, 478], strides = [1, 1]} : vector<8x512xf32> to vector<8x478xf32>
    %577 = tpu.concatenate %575, %576 in 1 : vector<8x34xf32>, vector<8x478xf32> -> vector<8x512xf32>
    %578 = vector.broadcast %9 : vector<1x512xf32> to vector<8x512xf32>
    %579 = arith.mulf %577, %578 : vector<8x512xf32>
    %580 = vector.extract_strided_slice %533 {offsets = [0, 479], sizes = [8, 33], strides = [1, 1]} : vector<8x512xf32> to vector<8x33xf32>
    %581 = vector.extract_strided_slice %533 {offsets = [0, 0], sizes = [8, 479], strides = [1, 1]} : vector<8x512xf32> to vector<8x479xf32>
    %582 = tpu.concatenate %580, %581 in 1 : vector<8x33xf32>, vector<8x479xf32> -> vector<8x512xf32>
    %583 = vector.broadcast %10 : vector<1x512xf32> to vector<8x512xf32>
    %584 = arith.mulf %582, %583 : vector<8x512xf32>
    %585 = vector.extract_strided_slice %533 {offsets = [0, 480], sizes = [8, 32], strides = [1, 1]} : vector<8x512xf32> to vector<8x32xf32>
    %586 = vector.extract_strided_slice %533 {offsets = [0, 0], sizes = [8, 480], strides = [1, 1]} : vector<8x512xf32> to vector<8x480xf32>
    %587 = tpu.concatenate %585, %586 in 1 : vector<8x32xf32>, vector<8x480xf32> -> vector<8x512xf32>
    %588 = vector.broadcast %11 : vector<1x512xf32> to vector<8x512xf32>
    %589 = arith.mulf %587, %588 : vector<8x512xf32>
    %590 = vector.extract_strided_slice %533 {offsets = [0, 481], sizes = [8, 31], strides = [1, 1]} : vector<8x512xf32> to vector<8x31xf32>
    %591 = vector.extract_strided_slice %533 {offsets = [0, 0], sizes = [8, 481], strides = [1, 1]} : vector<8x512xf32> to vector<8x481xf32>
    %592 = tpu.concatenate %590, %591 in 1 : vector<8x31xf32>, vector<8x481xf32> -> vector<8x512xf32>
    %593 = vector.broadcast %12 : vector<1x512xf32> to vector<8x512xf32>
    %594 = arith.mulf %592, %593 : vector<8x512xf32>
    %595 = vector.extract_strided_slice %533 {offsets = [0, 482], sizes = [8, 30], strides = [1, 1]} : vector<8x512xf32> to vector<8x30xf32>
    %596 = vector.extract_strided_slice %533 {offsets = [0, 0], sizes = [8, 482], strides = [1, 1]} : vector<8x512xf32> to vector<8x482xf32>
    %597 = tpu.concatenate %595, %596 in 1 : vector<8x30xf32>, vector<8x482xf32> -> vector<8x512xf32>
    %598 = vector.broadcast %13 : vector<1x512xf32> to vector<8x512xf32>
    %599 = arith.mulf %597, %598 : vector<8x512xf32>
    %600 = vector.extract_strided_slice %533 {offsets = [0, 483], sizes = [8, 29], strides = [1, 1]} : vector<8x512xf32> to vector<8x29xf32>
    %601 = vector.extract_strided_slice %533 {offsets = [0, 0], sizes = [8, 483], strides = [1, 1]} : vector<8x512xf32> to vector<8x483xf32>
    %602 = tpu.concatenate %600, %601 in 1 : vector<8x29xf32>, vector<8x483xf32> -> vector<8x512xf32>
    %603 = vector.broadcast %14 : vector<1x512xf32> to vector<8x512xf32>
    %604 = arith.mulf %602, %603 : vector<8x512xf32>
    %605 = vector.extract_strided_slice %533 {offsets = [0, 493], sizes = [8, 19], strides = [1, 1]} : vector<8x512xf32> to vector<8x19xf32>
    %606 = vector.extract_strided_slice %533 {offsets = [0, 0], sizes = [8, 493], strides = [1, 1]} : vector<8x512xf32> to vector<8x493xf32>
    %607 = tpu.concatenate %605, %606 in 1 : vector<8x19xf32>, vector<8x493xf32> -> vector<8x512xf32>
    %608 = vector.broadcast %15 : vector<1x512xf32> to vector<8x512xf32>
    %609 = arith.mulf %607, %608 : vector<8x512xf32>
    %610 = vector.extract_strided_slice %533 {offsets = [0, 494], sizes = [8, 18], strides = [1, 1]} : vector<8x512xf32> to vector<8x18xf32>
    %611 = vector.extract_strided_slice %533 {offsets = [0, 0], sizes = [8, 494], strides = [1, 1]} : vector<8x512xf32> to vector<8x494xf32>
    %612 = tpu.concatenate %610, %611 in 1 : vector<8x18xf32>, vector<8x494xf32> -> vector<8x512xf32>
    %613 = vector.broadcast %16 : vector<1x512xf32> to vector<8x512xf32>
    %614 = arith.mulf %612, %613 : vector<8x512xf32>
    %615 = vector.extract_strided_slice %533 {offsets = [0, 495], sizes = [8, 17], strides = [1, 1]} : vector<8x512xf32> to vector<8x17xf32>
    %616 = vector.extract_strided_slice %533 {offsets = [0, 0], sizes = [8, 495], strides = [1, 1]} : vector<8x512xf32> to vector<8x495xf32>
    %617 = tpu.concatenate %615, %616 in 1 : vector<8x17xf32>, vector<8x495xf32> -> vector<8x512xf32>
    %618 = vector.broadcast %17 : vector<1x512xf32> to vector<8x512xf32>
    %619 = arith.mulf %617, %618 : vector<8x512xf32>
    %620 = vector.extract_strided_slice %533 {offsets = [0, 496], sizes = [8, 16], strides = [1, 1]} : vector<8x512xf32> to vector<8x16xf32>
    %621 = vector.extract_strided_slice %533 {offsets = [0, 0], sizes = [8, 496], strides = [1, 1]} : vector<8x512xf32> to vector<8x496xf32>
    %622 = tpu.concatenate %620, %621 in 1 : vector<8x16xf32>, vector<8x496xf32> -> vector<8x512xf32>
    %623 = vector.broadcast %19 : vector<1x512xf32> to vector<8x512xf32>
    %624 = arith.mulf %622, %623 : vector<8x512xf32>
    %625 = vector.extract_strided_slice %533 {offsets = [0, 497], sizes = [8, 15], strides = [1, 1]} : vector<8x512xf32> to vector<8x15xf32>
    %626 = vector.extract_strided_slice %533 {offsets = [0, 0], sizes = [8, 497], strides = [1, 1]} : vector<8x512xf32> to vector<8x497xf32>
    %627 = tpu.concatenate %625, %626 in 1 : vector<8x15xf32>, vector<8x497xf32> -> vector<8x512xf32>
    %628 = vector.broadcast %21 : vector<1x512xf32> to vector<8x512xf32>
    %629 = arith.mulf %627, %628 : vector<8x512xf32>
    %630 = vector.extract_strided_slice %533 {offsets = [0, 498], sizes = [8, 14], strides = [1, 1]} : vector<8x512xf32> to vector<8x14xf32>
    %631 = vector.extract_strided_slice %533 {offsets = [0, 0], sizes = [8, 498], strides = [1, 1]} : vector<8x512xf32> to vector<8x498xf32>
    %632 = tpu.concatenate %630, %631 in 1 : vector<8x14xf32>, vector<8x498xf32> -> vector<8x512xf32>
    %633 = vector.broadcast %23 : vector<1x512xf32> to vector<8x512xf32>
    %634 = arith.mulf %632, %633 : vector<8x512xf32>
    %635 = vector.extract_strided_slice %533 {offsets = [0, 499], sizes = [8, 13], strides = [1, 1]} : vector<8x512xf32> to vector<8x13xf32>
    %636 = vector.extract_strided_slice %533 {offsets = [0, 0], sizes = [8, 499], strides = [1, 1]} : vector<8x512xf32> to vector<8x499xf32>
    %637 = tpu.concatenate %635, %636 in 1 : vector<8x13xf32>, vector<8x499xf32> -> vector<8x512xf32>
    %638 = vector.broadcast %24 : vector<1x512xf32> to vector<8x512xf32>
    %639 = arith.mulf %637, %638 : vector<8x512xf32>
    %640 = vector.extract_strided_slice %533 {offsets = [0, 509], sizes = [8, 3], strides = [1, 1]} : vector<8x512xf32> to vector<8x3xf32>
    %641 = vector.extract_strided_slice %533 {offsets = [0, 0], sizes = [8, 509], strides = [1, 1]} : vector<8x512xf32> to vector<8x509xf32>
    %642 = tpu.concatenate %640, %641 in 1 : vector<8x3xf32>, vector<8x509xf32> -> vector<8x512xf32>
    %643 = vector.broadcast %25 : vector<1x512xf32> to vector<8x512xf32>
    %644 = arith.mulf %642, %643 : vector<8x512xf32>
    %645 = vector.extract_strided_slice %533 {offsets = [0, 510], sizes = [8, 2], strides = [1, 1]} : vector<8x512xf32> to vector<8x2xf32>
    %646 = vector.extract_strided_slice %533 {offsets = [0, 0], sizes = [8, 510], strides = [1, 1]} : vector<8x512xf32> to vector<8x510xf32>
    %647 = tpu.concatenate %645, %646 in 1 : vector<8x2xf32>, vector<8x510xf32> -> vector<8x512xf32>
    %648 = vector.broadcast %26 : vector<1x512xf32> to vector<8x512xf32>
    %649 = arith.mulf %647, %648 : vector<8x512xf32>
    %650 = vector.extract_strided_slice %533 {offsets = [0, 511], sizes = [8, 1], strides = [1, 1]} : vector<8x512xf32> to vector<8x1xf32>
    %651 = vector.extract_strided_slice %533 {offsets = [0, 0], sizes = [8, 511], strides = [1, 1]} : vector<8x512xf32> to vector<8x511xf32>
    %652 = tpu.concatenate %650, %651 in 1 : vector<8x1xf32>, vector<8x511xf32> -> vector<8x512xf32>
    %653 = vector.broadcast %27 : vector<1x512xf32> to vector<8x512xf32>
    %654 = arith.mulf %652, %653 : vector<8x512xf32>
    %655 = vector.extract_strided_slice %533 {offsets = [0, 1], sizes = [8, 511], strides = [1, 1]} : vector<8x512xf32> to vector<8x511xf32>
    %656 = vector.extract_strided_slice %533 {offsets = [0, 0], sizes = [8, 1], strides = [1, 1]} : vector<8x512xf32> to vector<8x1xf32>
    %657 = tpu.concatenate %655, %656 in 1 : vector<8x511xf32>, vector<8x1xf32> -> vector<8x512xf32>
    %658 = vector.broadcast %29 : vector<1x512xf32> to vector<8x512xf32>
    %659 = arith.mulf %657, %658 : vector<8x512xf32>
    %660 = vector.extract_strided_slice %533 {offsets = [0, 2], sizes = [8, 510], strides = [1, 1]} : vector<8x512xf32> to vector<8x510xf32>
    %661 = vector.extract_strided_slice %533 {offsets = [0, 0], sizes = [8, 2], strides = [1, 1]} : vector<8x512xf32> to vector<8x2xf32>
    %662 = tpu.concatenate %660, %661 in 1 : vector<8x510xf32>, vector<8x2xf32> -> vector<8x512xf32>
    %663 = vector.broadcast %31 : vector<1x512xf32> to vector<8x512xf32>
    %664 = arith.mulf %662, %663 : vector<8x512xf32>
    %665 = vector.extract_strided_slice %533 {offsets = [0, 3], sizes = [8, 509], strides = [1, 1]} : vector<8x512xf32> to vector<8x509xf32>
    %666 = vector.extract_strided_slice %533 {offsets = [0, 0], sizes = [8, 3], strides = [1, 1]} : vector<8x512xf32> to vector<8x3xf32>
    %667 = tpu.concatenate %665, %666 in 1 : vector<8x509xf32>, vector<8x3xf32> -> vector<8x512xf32>
    %668 = vector.broadcast %32 : vector<1x512xf32> to vector<8x512xf32>
    %669 = arith.mulf %667, %668 : vector<8x512xf32>
    %670 = vector.extract_strided_slice %533 {offsets = [0, 13], sizes = [8, 499], strides = [1, 1]} : vector<8x512xf32> to vector<8x499xf32>
    %671 = vector.extract_strided_slice %533 {offsets = [0, 0], sizes = [8, 13], strides = [1, 1]} : vector<8x512xf32> to vector<8x13xf32>
    %672 = tpu.concatenate %670, %671 in 1 : vector<8x499xf32>, vector<8x13xf32> -> vector<8x512xf32>
    %673 = vector.broadcast %33 : vector<1x512xf32> to vector<8x512xf32>
    %674 = arith.mulf %672, %673 : vector<8x512xf32>
    %675 = vector.extract_strided_slice %533 {offsets = [0, 14], sizes = [8, 498], strides = [1, 1]} : vector<8x512xf32> to vector<8x498xf32>
    %676 = vector.extract_strided_slice %533 {offsets = [0, 0], sizes = [8, 14], strides = [1, 1]} : vector<8x512xf32> to vector<8x14xf32>
    %677 = tpu.concatenate %675, %676 in 1 : vector<8x498xf32>, vector<8x14xf32> -> vector<8x512xf32>
    %678 = vector.broadcast %34 : vector<1x512xf32> to vector<8x512xf32>
    %679 = arith.mulf %677, %678 : vector<8x512xf32>
    %680 = vector.extract_strided_slice %533 {offsets = [0, 15], sizes = [8, 497], strides = [1, 1]} : vector<8x512xf32> to vector<8x497xf32>
    %681 = vector.extract_strided_slice %533 {offsets = [0, 0], sizes = [8, 15], strides = [1, 1]} : vector<8x512xf32> to vector<8x15xf32>
    %682 = tpu.concatenate %680, %681 in 1 : vector<8x497xf32>, vector<8x15xf32> -> vector<8x512xf32>
    %683 = vector.broadcast %35 : vector<1x512xf32> to vector<8x512xf32>
    %684 = arith.mulf %682, %683 : vector<8x512xf32>
    %685 = vector.extract_strided_slice %533 {offsets = [0, 16], sizes = [8, 496], strides = [1, 1]} : vector<8x512xf32> to vector<8x496xf32>
    %686 = vector.extract_strided_slice %533 {offsets = [0, 0], sizes = [8, 16], strides = [1, 1]} : vector<8x512xf32> to vector<8x16xf32>
    %687 = tpu.concatenate %685, %686 in 1 : vector<8x496xf32>, vector<8x16xf32> -> vector<8x512xf32>
    %688 = vector.broadcast %37 : vector<1x512xf32> to vector<8x512xf32>
    %689 = arith.mulf %687, %688 : vector<8x512xf32>
    %690 = vector.extract_strided_slice %533 {offsets = [0, 17], sizes = [8, 495], strides = [1, 1]} : vector<8x512xf32> to vector<8x495xf32>
    %691 = vector.extract_strided_slice %533 {offsets = [0, 0], sizes = [8, 17], strides = [1, 1]} : vector<8x512xf32> to vector<8x17xf32>
    %692 = tpu.concatenate %690, %691 in 1 : vector<8x495xf32>, vector<8x17xf32> -> vector<8x512xf32>
    %693 = vector.broadcast %39 : vector<1x512xf32> to vector<8x512xf32>
    %694 = arith.mulf %692, %693 : vector<8x512xf32>
    %695 = vector.extract_strided_slice %533 {offsets = [0, 18], sizes = [8, 494], strides = [1, 1]} : vector<8x512xf32> to vector<8x494xf32>
    %696 = vector.extract_strided_slice %533 {offsets = [0, 0], sizes = [8, 18], strides = [1, 1]} : vector<8x512xf32> to vector<8x18xf32>
    %697 = tpu.concatenate %695, %696 in 1 : vector<8x494xf32>, vector<8x18xf32> -> vector<8x512xf32>
    %698 = vector.broadcast %41 : vector<1x512xf32> to vector<8x512xf32>
    %699 = arith.mulf %697, %698 : vector<8x512xf32>
    %700 = vector.extract_strided_slice %533 {offsets = [0, 19], sizes = [8, 493], strides = [1, 1]} : vector<8x512xf32> to vector<8x493xf32>
    %701 = vector.extract_strided_slice %533 {offsets = [0, 0], sizes = [8, 19], strides = [1, 1]} : vector<8x512xf32> to vector<8x19xf32>
    %702 = tpu.concatenate %700, %701 in 1 : vector<8x493xf32>, vector<8x19xf32> -> vector<8x512xf32>
    %703 = vector.broadcast %42 : vector<1x512xf32> to vector<8x512xf32>
    %704 = arith.mulf %702, %703 : vector<8x512xf32>
    %705 = vector.extract_strided_slice %533 {offsets = [0, 29], sizes = [8, 483], strides = [1, 1]} : vector<8x512xf32> to vector<8x483xf32>
    %706 = vector.extract_strided_slice %533 {offsets = [0, 0], sizes = [8, 29], strides = [1, 1]} : vector<8x512xf32> to vector<8x29xf32>
    %707 = tpu.concatenate %705, %706 in 1 : vector<8x483xf32>, vector<8x29xf32> -> vector<8x512xf32>
    %708 = vector.broadcast %43 : vector<1x512xf32> to vector<8x512xf32>
    %709 = arith.mulf %707, %708 : vector<8x512xf32>
    %710 = vector.extract_strided_slice %533 {offsets = [0, 30], sizes = [8, 482], strides = [1, 1]} : vector<8x512xf32> to vector<8x482xf32>
    %711 = vector.extract_strided_slice %533 {offsets = [0, 0], sizes = [8, 30], strides = [1, 1]} : vector<8x512xf32> to vector<8x30xf32>
    %712 = tpu.concatenate %710, %711 in 1 : vector<8x482xf32>, vector<8x30xf32> -> vector<8x512xf32>
    %713 = vector.broadcast %44 : vector<1x512xf32> to vector<8x512xf32>
    %714 = arith.mulf %712, %713 : vector<8x512xf32>
    %715 = vector.extract_strided_slice %533 {offsets = [0, 31], sizes = [8, 481], strides = [1, 1]} : vector<8x512xf32> to vector<8x481xf32>
    %716 = vector.extract_strided_slice %533 {offsets = [0, 0], sizes = [8, 31], strides = [1, 1]} : vector<8x512xf32> to vector<8x31xf32>
    %717 = tpu.concatenate %715, %716 in 1 : vector<8x481xf32>, vector<8x31xf32> -> vector<8x512xf32>
    %718 = vector.broadcast %45 : vector<1x512xf32> to vector<8x512xf32>
    %719 = arith.mulf %717, %718 : vector<8x512xf32>
    %720 = vector.extract_strided_slice %533 {offsets = [0, 32], sizes = [8, 480], strides = [1, 1]} : vector<8x512xf32> to vector<8x480xf32>
    %721 = vector.extract_strided_slice %533 {offsets = [0, 0], sizes = [8, 32], strides = [1, 1]} : vector<8x512xf32> to vector<8x32xf32>
    %722 = tpu.concatenate %720, %721 in 1 : vector<8x480xf32>, vector<8x32xf32> -> vector<8x512xf32>
    %723 = vector.broadcast %46 : vector<1x512xf32> to vector<8x512xf32>
    %724 = arith.mulf %722, %723 : vector<8x512xf32>
    %725 = vector.extract_strided_slice %533 {offsets = [0, 33], sizes = [8, 479], strides = [1, 1]} : vector<8x512xf32> to vector<8x479xf32>
    %726 = vector.extract_strided_slice %533 {offsets = [0, 0], sizes = [8, 33], strides = [1, 1]} : vector<8x512xf32> to vector<8x33xf32>
    %727 = tpu.concatenate %725, %726 in 1 : vector<8x479xf32>, vector<8x33xf32> -> vector<8x512xf32>
    %728 = vector.broadcast %47 : vector<1x512xf32> to vector<8x512xf32>
    %729 = arith.mulf %727, %728 : vector<8x512xf32>
    %730 = vector.extract_strided_slice %533 {offsets = [0, 34], sizes = [8, 478], strides = [1, 1]} : vector<8x512xf32> to vector<8x478xf32>
    %731 = vector.extract_strided_slice %533 {offsets = [0, 0], sizes = [8, 34], strides = [1, 1]} : vector<8x512xf32> to vector<8x34xf32>
    %732 = tpu.concatenate %730, %731 in 1 : vector<8x478xf32>, vector<8x34xf32> -> vector<8x512xf32>
    %733 = vector.broadcast %48 : vector<1x512xf32> to vector<8x512xf32>
    %734 = arith.mulf %732, %733 : vector<8x512xf32>
    %735 = vector.extract_strided_slice %533 {offsets = [0, 35], sizes = [8, 477], strides = [1, 1]} : vector<8x512xf32> to vector<8x477xf32>
    %736 = vector.extract_strided_slice %533 {offsets = [0, 0], sizes = [8, 35], strides = [1, 1]} : vector<8x512xf32> to vector<8x35xf32>
    %737 = tpu.concatenate %735, %736 in 1 : vector<8x477xf32>, vector<8x35xf32> -> vector<8x512xf32>
    %738 = vector.broadcast %49 : vector<1x512xf32> to vector<8x512xf32>
    %739 = arith.mulf %737, %738 : vector<8x512xf32>
    %740 = vector.extract_strided_slice %533 {offsets = [0, 45], sizes = [8, 467], strides = [1, 1]} : vector<8x512xf32> to vector<8x467xf32>
    %741 = vector.extract_strided_slice %533 {offsets = [0, 0], sizes = [8, 45], strides = [1, 1]} : vector<8x512xf32> to vector<8x45xf32>
    %742 = tpu.concatenate %740, %741 in 1 : vector<8x467xf32>, vector<8x45xf32> -> vector<8x512xf32>
    %743 = vector.broadcast %50 : vector<1x512xf32> to vector<8x512xf32>
    %744 = arith.mulf %742, %743 : vector<8x512xf32>
    %745 = vector.extract_strided_slice %533 {offsets = [0, 46], sizes = [8, 466], strides = [1, 1]} : vector<8x512xf32> to vector<8x466xf32>
    %746 = vector.extract_strided_slice %533 {offsets = [0, 0], sizes = [8, 46], strides = [1, 1]} : vector<8x512xf32> to vector<8x46xf32>
    %747 = tpu.concatenate %745, %746 in 1 : vector<8x466xf32>, vector<8x46xf32> -> vector<8x512xf32>
    %748 = vector.broadcast %51 : vector<1x512xf32> to vector<8x512xf32>
    %749 = arith.mulf %747, %748 : vector<8x512xf32>
    %750 = vector.extract_strided_slice %533 {offsets = [0, 47], sizes = [8, 465], strides = [1, 1]} : vector<8x512xf32> to vector<8x465xf32>
    %751 = vector.extract_strided_slice %533 {offsets = [0, 0], sizes = [8, 47], strides = [1, 1]} : vector<8x512xf32> to vector<8x47xf32>
    %752 = tpu.concatenate %750, %751 in 1 : vector<8x465xf32>, vector<8x47xf32> -> vector<8x512xf32>
    %753 = vector.broadcast %52 : vector<1x512xf32> to vector<8x512xf32>
    %754 = arith.mulf %752, %753 : vector<8x512xf32>
    %755 = vector.extract_strided_slice %533 {offsets = [0, 48], sizes = [8, 464], strides = [1, 1]} : vector<8x512xf32> to vector<8x464xf32>
    %756 = vector.extract_strided_slice %533 {offsets = [0, 0], sizes = [8, 48], strides = [1, 1]} : vector<8x512xf32> to vector<8x48xf32>
    %757 = tpu.concatenate %755, %756 in 1 : vector<8x464xf32>, vector<8x48xf32> -> vector<8x512xf32>
    %758 = vector.broadcast %53 : vector<1x512xf32> to vector<8x512xf32>
    %759 = arith.mulf %757, %758 : vector<8x512xf32>
    %760 = vector.extract_strided_slice %533 {offsets = [0, 49], sizes = [8, 463], strides = [1, 1]} : vector<8x512xf32> to vector<8x463xf32>
    %761 = vector.extract_strided_slice %533 {offsets = [0, 0], sizes = [8, 49], strides = [1, 1]} : vector<8x512xf32> to vector<8x49xf32>
    %762 = tpu.concatenate %760, %761 in 1 : vector<8x463xf32>, vector<8x49xf32> -> vector<8x512xf32>
    %763 = vector.broadcast %54 : vector<1x512xf32> to vector<8x512xf32>
    %764 = arith.mulf %762, %763 : vector<8x512xf32>
    %765 = vector.extract_strided_slice %533 {offsets = [0, 50], sizes = [8, 462], strides = [1, 1]} : vector<8x512xf32> to vector<8x462xf32>
    %766 = vector.extract_strided_slice %533 {offsets = [0, 0], sizes = [8, 50], strides = [1, 1]} : vector<8x512xf32> to vector<8x50xf32>
    %767 = tpu.concatenate %765, %766 in 1 : vector<8x462xf32>, vector<8x50xf32> -> vector<8x512xf32>
    %768 = vector.broadcast %55 : vector<1x512xf32> to vector<8x512xf32>
    %769 = arith.mulf %767, %768 : vector<8x512xf32>
    %770 = vector.extract_strided_slice %533 {offsets = [0, 51], sizes = [8, 461], strides = [1, 1]} : vector<8x512xf32> to vector<8x461xf32>
    %771 = vector.extract_strided_slice %533 {offsets = [0, 0], sizes = [8, 51], strides = [1, 1]} : vector<8x512xf32> to vector<8x51xf32>
    %772 = tpu.concatenate %770, %771 in 1 : vector<8x461xf32>, vector<8x51xf32> -> vector<8x512xf32>
    %773 = vector.broadcast %56 : vector<1x512xf32> to vector<8x512xf32>
    %774 = arith.mulf %772, %773 : vector<8x512xf32>
    %775 = tpu.concatenate %539, %544, %549, %554, %559, %564, %569, %574, %579, %584, %589, %594, %599, %604, %609, %614 in 0 : vector<8x512xf32>, vector<8x512xf32>, vector<8x512xf32>, vector<8x512xf32>, vector<8x512xf32>, vector<8x512xf32>, vector<8x512xf32>, vector<8x512xf32>, vector<8x512xf32>, vector<8x512xf32>, vector<8x512xf32>, vector<8x512xf32>, vector<8x512xf32>, vector<8x512xf32>, vector<8x512xf32>, vector<8x512xf32> -> vector<128x512xf32>
    %776 = tpu.concatenate %619, %624, %629, %634, %639, %644, %649, %654, %533, %659, %664, %669, %674, %679, %684, %689 in 0 : vector<8x512xf32>, vector<8x512xf32>, vector<8x512xf32>, vector<8x512xf32>, vector<8x512xf32>, vector<8x512xf32>, vector<8x512xf32>, vector<8x512xf32>, vector<8x512xf32>, vector<8x512xf32>, vector<8x512xf32>, vector<8x512xf32>, vector<8x512xf32>, vector<8x512xf32>, vector<8x512xf32>, vector<8x512xf32> -> vector<128x512xf32>
    %777 = tpu.concatenate %694, %699, %704, %709, %714, %719, %724, %729, %734, %739, %744, %749, %754, %759, %764, %769 in 0 : vector<8x512xf32>, vector<8x512xf32>, vector<8x512xf32>, vector<8x512xf32>, vector<8x512xf32>, vector<8x512xf32>, vector<8x512xf32>, vector<8x512xf32>, vector<8x512xf32>, vector<8x512xf32>, vector<8x512xf32>, vector<8x512xf32>, vector<8x512xf32>, vector<8x512xf32>, vector<8x512xf32>, vector<8x512xf32> -> vector<128x512xf32>
    %778 = tpu.concatenate %775, %776, %777, %774 in 0 : vector<128x512xf32>, vector<128x512xf32>, vector<128x512xf32>, vector<8x512xf32> -> vector<392x512xf32>
    %779 = arith.truncf %778 : vector<392x512xf32> to vector<392x512xbf16>
    %cst_83 = arith.constant dense<0.000000e+00> : vector<2x512xf32>
    %780 = tpu.matmul %534, %779, %cst_83 {dimension_numbers = #tpu.dot_dimension_numbers<[1], [0], [0], [1], [0, 0, 1, 1], [], []>} : vector<2x392xbf16>, vector<392x512xbf16>, vector<2x512xf32> -> vector<2x512xf32>
    %781 = vector.extract_strided_slice %780 {offsets = [0, 0], sizes = [1, 256], strides = [1, 1]} : vector<2x512xf32> to vector<1x256xf32>
    %782 = math.exp %781 : vector<1x256xf32>
    %783 = vector.extract_strided_slice %780 {offsets = [1, 256], sizes = [1, 256], strides = [1, 1]} : vector<2x512xf32> to vector<1x256xf32>
    %784 = math.exp %783 : vector<1x256xf32>
    %785 = arith.addf %784, %784 : vector<1x256xf32>
    %cst_84 = arith.constant 1.000000e-10 : f32
    %786 = vector.broadcast %cst_84 : f32 to vector<1x256xf32>
    %787 = arith.addf %785, %786 : vector<1x256xf32>
    %788 = arith.divf %782, %787 : vector<1x256xf32>
    %789 = arith.addf %782, %784 : vector<1x256xf32>
    %cst_85 = arith.constant 1.000000e-10 : f32
    %790 = vector.broadcast %cst_85 : f32 to vector<1x256xf32>
    %791 = arith.addf %789, %790 : vector<1x256xf32>
    %792 = arith.divf %784, %791 : vector<1x256xf32>
    %793 = tpu.concatenate %788, %792 in 1 : vector<1x256xf32>, vector<1x256xf32> -> vector<1x512xf32>
    %794 = vector.broadcast %793 : vector<1x512xf32> to vector<8x512xf32>
    %795 = arith.mulf %794, %513 : vector<8x512xf32>
    %796 = vector.extract_strided_slice %795 {offsets = [0, 0], sizes = [8, 256], strides = [1, 1]} : vector<8x512xf32> to vector<8x256xf32>
    %c0_86 = arith.constant 0 : index
    %c0_87 = arith.constant 0 : index
    %c0_88 = arith.constant 0 : index
    %797 = vector.load %arg16[%c0_86, %c0_87, %c0_88] : memref<1x8x256xf32, #tpu.memory_space<vmem>>, vector<1x8x256xf32>
    %798 = vector.shape_cast %797 : vector<1x8x256xf32> to vector<8x256xf32>
    %799 = vector.shape_cast %796 : vector<8x256xf32> to vector<1x8x256xf32>
    tpu.vector_store %arg16[%c0_86, %c0_87, %c0_88], %799 {strides = array<i32>} : memref<1x8x256xf32, #tpu.memory_space<vmem>>, vector<1x8x256xf32>,
    %800 = vector.extract_strided_slice %795 {offsets = [0, 256], sizes = [8, 256], strides = [1, 1]} : vector<8x512xf32> to vector<8x256xf32>
    %c0_89 = arith.constant 0 : index
    %c0_90 = arith.constant 0 : index
    %c0_91 = arith.constant 0 : index
    %801 = vector.load %arg17[%c0_89, %c0_90, %c0_91] : memref<1x8x256xf32, #tpu.memory_space<vmem>>, vector<1x8x256xf32>
    %802 = vector.shape_cast %801 : vector<1x8x256xf32> to vector<8x256xf32>
    %803 = vector.shape_cast %800 : vector<8x256xf32> to vector<1x8x256xf32>
    tpu.vector_store %arg17[%c0_89, %c0_90, %c0_91], %803 {strides = array<i32>} : memref<1x8x256xf32, #tpu.memory_space<vmem>>, vector<1x8x256xf32>,
    %c7 = arith.constant 7 : index
    %c0_92 = arith.constant 0 : index
    %c0_93 = arith.constant 0 : index
    %804 = vector.load %arg6[%c7, %c0_92, %c0_93] : memref<12x8x72xbf16, #tpu.memory_space<vmem>>, vector<1x8x72xbf16>
    %805 = vector.shape_cast %804 : vector<1x8x72xbf16> to vector<8x72xbf16>
    %c7_94 = arith.constant 7 : index
    %c0_95 = arith.constant 0 : index
    %c0_96 = arith.constant 0 : index
    %806 = vector.load %arg7[%c7_94, %c0_95, %c0_96] : memref<12x8x1xf32, #tpu.memory_space<vmem>>, vector<1x8x1xf32>
    %807 = vector.shape_cast %806 : vector<1x8x1xf32> to vector<8x1xf32>
    %808 = vector.extract_strided_slice %795 {offsets = [0, 495], sizes = [8, 17], strides = [1, 1]} : vector<8x512xf32> to vector<8x17xf32>
    %809 = vector.extract_strided_slice %795 {offsets = [0, 0], sizes = [8, 495], strides = [1, 1]} : vector<8x512xf32> to vector<8x495xf32>
    %810 = tpu.concatenate %808, %809 in 1 : vector<8x17xf32>, vector<8x495xf32> -> vector<8x512xf32>
    %811 = vector.broadcast %17 : vector<1x512xf32> to vector<8x512xf32>
    %812 = arith.mulf %810, %811 : vector<8x512xf32>
    %813 = vector.extract_strided_slice %795 {offsets = [0, 496], sizes = [8, 16], strides = [1, 1]} : vector<8x512xf32> to vector<8x16xf32>
    %814 = vector.extract_strided_slice %795 {offsets = [0, 0], sizes = [8, 496], strides = [1, 1]} : vector<8x512xf32> to vector<8x496xf32>
    %815 = tpu.concatenate %813, %814 in 1 : vector<8x16xf32>, vector<8x496xf32> -> vector<8x512xf32>
    %816 = vector.broadcast %19 : vector<1x512xf32> to vector<8x512xf32>
    %817 = arith.mulf %815, %816 : vector<8x512xf32>
    %818 = vector.extract_strided_slice %795 {offsets = [0, 497], sizes = [8, 15], strides = [1, 1]} : vector<8x512xf32> to vector<8x15xf32>
    %819 = vector.extract_strided_slice %795 {offsets = [0, 0], sizes = [8, 497], strides = [1, 1]} : vector<8x512xf32> to vector<8x497xf32>
    %820 = tpu.concatenate %818, %819 in 1 : vector<8x15xf32>, vector<8x497xf32> -> vector<8x512xf32>
    %821 = vector.broadcast %21 : vector<1x512xf32> to vector<8x512xf32>
    %822 = arith.mulf %820, %821 : vector<8x512xf32>
    %823 = vector.extract_strided_slice %795 {offsets = [0, 511], sizes = [8, 1], strides = [1, 1]} : vector<8x512xf32> to vector<8x1xf32>
    %824 = vector.extract_strided_slice %795 {offsets = [0, 0], sizes = [8, 511], strides = [1, 1]} : vector<8x512xf32> to vector<8x511xf32>
    %825 = tpu.concatenate %823, %824 in 1 : vector<8x1xf32>, vector<8x511xf32> -> vector<8x512xf32>
    %826 = vector.broadcast %27 : vector<1x512xf32> to vector<8x512xf32>
    %827 = arith.mulf %825, %826 : vector<8x512xf32>
    %828 = vector.extract_strided_slice %795 {offsets = [0, 1], sizes = [8, 511], strides = [1, 1]} : vector<8x512xf32> to vector<8x511xf32>
    %829 = vector.extract_strided_slice %795 {offsets = [0, 0], sizes = [8, 1], strides = [1, 1]} : vector<8x512xf32> to vector<8x1xf32>
    %830 = tpu.concatenate %828, %829 in 1 : vector<8x511xf32>, vector<8x1xf32> -> vector<8x512xf32>
    %831 = vector.broadcast %29 : vector<1x512xf32> to vector<8x512xf32>
    %832 = arith.mulf %830, %831 : vector<8x512xf32>
    %833 = vector.extract_strided_slice %795 {offsets = [0, 15], sizes = [8, 497], strides = [1, 1]} : vector<8x512xf32> to vector<8x497xf32>
    %834 = vector.extract_strided_slice %795 {offsets = [0, 0], sizes = [8, 15], strides = [1, 1]} : vector<8x512xf32> to vector<8x15xf32>
    %835 = tpu.concatenate %833, %834 in 1 : vector<8x497xf32>, vector<8x15xf32> -> vector<8x512xf32>
    %836 = vector.broadcast %35 : vector<1x512xf32> to vector<8x512xf32>
    %837 = arith.mulf %835, %836 : vector<8x512xf32>
    %838 = vector.extract_strided_slice %795 {offsets = [0, 16], sizes = [8, 496], strides = [1, 1]} : vector<8x512xf32> to vector<8x496xf32>
    %839 = vector.extract_strided_slice %795 {offsets = [0, 0], sizes = [8, 16], strides = [1, 1]} : vector<8x512xf32> to vector<8x16xf32>
    %840 = tpu.concatenate %838, %839 in 1 : vector<8x496xf32>, vector<8x16xf32> -> vector<8x512xf32>
    %841 = vector.broadcast %37 : vector<1x512xf32> to vector<8x512xf32>
    %842 = arith.mulf %840, %841 : vector<8x512xf32>
    %843 = vector.extract_strided_slice %795 {offsets = [0, 17], sizes = [8, 495], strides = [1, 1]} : vector<8x512xf32> to vector<8x495xf32>
    %844 = vector.extract_strided_slice %795 {offsets = [0, 0], sizes = [8, 17], strides = [1, 1]} : vector<8x512xf32> to vector<8x17xf32>
    %845 = tpu.concatenate %843, %844 in 1 : vector<8x495xf32>, vector<8x17xf32> -> vector<8x512xf32>
    %846 = vector.broadcast %39 : vector<1x512xf32> to vector<8x512xf32>
    %847 = arith.mulf %845, %846 : vector<8x512xf32>
    %848 = tpu.concatenate %812, %817, %822, %827, %795, %832, %837, %842, %847 in 0 : vector<8x512xf32>, vector<8x512xf32>, vector<8x512xf32>, vector<8x512xf32>, vector<8x512xf32>, vector<8x512xf32>, vector<8x512xf32>, vector<8x512xf32>, vector<8x512xf32> -> vector<72x512xf32>
    %849 = arith.truncf %848 : vector<72x512xf32> to vector<72x512xbf16>
    %cst_97 = arith.constant dense<0.000000e+00> : vector<8x512xf32>
    %850 = tpu.matmul %805, %849, %cst_97 {dimension_numbers = #tpu.dot_dimension_numbers<[1], [0], [0], [1], [0, 0, 1, 1], [], []>} : vector<8x72xbf16>, vector<72x512xbf16>, vector<8x512xf32> -> vector<8x512xf32>
    %851 = vector.broadcast %807 : vector<8x1xf32> to vector<8x512xf32>
    %852 = arith.addf %850, %851 : vector<8x512xf32>
    %cst_98 = arith.constant 0.000000e+00 : f32
    %853 = vector.broadcast %cst_98 : f32 to vector<8x512xf32>
    %854 = arith.cmpf oge, %852, %853 : vector<8x512xf32>
    %cst_99 = arith.constant 0.00999999977 : f32
    %855 = vector.broadcast %cst_99 : f32 to vector<8x512xf32>
    %856 = arith.mulf %855, %852 : vector<8x512xf32>
    %857 = arith.select %854, %852, %856 : vector<8x512xi1>, vector<8x512xf32>
    %858 = vector.extract_strided_slice %857 {offsets = [0, 0], sizes = [8, 256], strides = [1, 1]} : vector<8x512xf32> to vector<8x256xf32>
    %859 = vector.extract_strided_slice %857 {offsets = [0, 256], sizes = [8, 256], strides = [1, 1]} : vector<8x512xf32> to vector<8x256xf32>
    %860 = tpu.concatenate %858, %859 in 0 : vector<8x256xf32>, vector<8x256xf32> -> vector<16x256xf32>
    %c0_100 = arith.constant 0 : index
    %c0_101 = arith.constant 0 : index
    %861 = vector.load %arg9[%c0_100, %c0_101] : memref<8x16xbf16, #tpu.memory_space<vmem>>, vector<8x16xbf16>
    %c0_102 = arith.constant 0 : index
    %c0_103 = arith.constant 0 : index
    %862 = vector.load %arg10[%c0_102, %c0_103] : memref<8x1xf32, #tpu.memory_space<vmem>>, vector<8x1xf32>
    %863 = arith.truncf %860 : vector<16x256xf32> to vector<16x256xbf16>
    %cst_104 = arith.constant dense<0.000000e+00> : vector<8x256xf32>
    %864 = tpu.matmul %861, %863, %cst_104 {dimension_numbers = #tpu.dot_dimension_numbers<[1], [0], [0], [1], [0, 0, 1, 1], [], []>} : vector<8x16xbf16>, vector<16x256xbf16>, vector<8x256xf32> -> vector<8x256xf32>
    %865 = vector.broadcast %862 : vector<8x1xf32> to vector<8x256xf32>
    %866 = arith.addf %864, %865 : vector<8x256xf32>
    %c8 = arith.constant 8 : index
    %c0_105 = arith.constant 0 : index
    %c0_106 = arith.constant 0 : index
    %867 = vector.load %arg6[%c8, %c0_105, %c0_106] : memref<12x8x72xbf16, #tpu.memory_space<vmem>>, vector<1x8x72xbf16>
    %868 = vector.shape_cast %867 : vector<1x8x72xbf16> to vector<8x72xbf16>
    %c8_107 = arith.constant 8 : index
    %c0_108 = arith.constant 0 : index
    %c0_109 = arith.constant 0 : index
    %869 = vector.load %arg7[%c8_107, %c0_108, %c0_109] : memref<12x8x1xf32, #tpu.memory_space<vmem>>, vector<1x8x1xf32>
    %870 = vector.shape_cast %869 : vector<1x8x1xf32> to vector<8x1xf32>
    %871 = vector.extract_strided_slice %866 {offsets = [0, 239], sizes = [8, 17], strides = [1, 1]} : vector<8x256xf32> to vector<8x17xf32>
    %872 = vector.extract_strided_slice %866 {offsets = [0, 0], sizes = [8, 239], strides = [1, 1]} : vector<8x256xf32> to vector<8x239xf32>
    %873 = tpu.concatenate %871, %872 in 1 : vector<8x17xf32>, vector<8x239xf32> -> vector<8x256xf32>
    %874 = vector.broadcast %18 : vector<1x256xf32> to vector<8x256xf32>
    %875 = arith.mulf %873, %874 : vector<8x256xf32>
    %876 = vector.extract_strided_slice %866 {offsets = [0, 240], sizes = [8, 16], strides = [1, 1]} : vector<8x256xf32> to vector<8x16xf32>
    %877 = vector.extract_strided_slice %866 {offsets = [0, 0], sizes = [8, 240], strides = [1, 1]} : vector<8x256xf32> to vector<8x240xf32>
    %878 = tpu.concatenate %876, %877 in 1 : vector<8x16xf32>, vector<8x240xf32> -> vector<8x256xf32>
    %879 = vector.broadcast %20 : vector<1x256xf32> to vector<8x256xf32>
    %880 = arith.mulf %878, %879 : vector<8x256xf32>
    %881 = vector.extract_strided_slice %866 {offsets = [0, 241], sizes = [8, 15], strides = [1, 1]} : vector<8x256xf32> to vector<8x15xf32>
    %882 = vector.extract_strided_slice %866 {offsets = [0, 0], sizes = [8, 241], strides = [1, 1]} : vector<8x256xf32> to vector<8x241xf32>
    %883 = tpu.concatenate %881, %882 in 1 : vector<8x15xf32>, vector<8x241xf32> -> vector<8x256xf32>
    %884 = vector.broadcast %22 : vector<1x256xf32> to vector<8x256xf32>
    %885 = arith.mulf %883, %884 : vector<8x256xf32>
    %886 = vector.extract_strided_slice %866 {offsets = [0, 255], sizes = [8, 1], strides = [1, 1]} : vector<8x256xf32> to vector<8x1xf32>
    %887 = vector.extract_strided_slice %866 {offsets = [0, 0], sizes = [8, 255], strides = [1, 1]} : vector<8x256xf32> to vector<8x255xf32>
    %888 = tpu.concatenate %886, %887 in 1 : vector<8x1xf32>, vector<8x255xf32> -> vector<8x256xf32>
    %889 = vector.broadcast %28 : vector<1x256xf32> to vector<8x256xf32>
    %890 = arith.mulf %888, %889 : vector<8x256xf32>
    %891 = vector.extract_strided_slice %866 {offsets = [0, 1], sizes = [8, 255], strides = [1, 1]} : vector<8x256xf32> to vector<8x255xf32>
    %892 = vector.extract_strided_slice %866 {offsets = [0, 0], sizes = [8, 1], strides = [1, 1]} : vector<8x256xf32> to vector<8x1xf32>
    %893 = tpu.concatenate %891, %892 in 1 : vector<8x255xf32>, vector<8x1xf32> -> vector<8x256xf32>
    %894 = vector.broadcast %30 : vector<1x256xf32> to vector<8x256xf32>
    %895 = arith.mulf %893, %894 : vector<8x256xf32>
    %896 = vector.extract_strided_slice %866 {offsets = [0, 15], sizes = [8, 241], strides = [1, 1]} : vector<8x256xf32> to vector<8x241xf32>
    %897 = vector.extract_strided_slice %866 {offsets = [0, 0], sizes = [8, 15], strides = [1, 1]} : vector<8x256xf32> to vector<8x15xf32>
    %898 = tpu.concatenate %896, %897 in 1 : vector<8x241xf32>, vector<8x15xf32> -> vector<8x256xf32>
    %899 = vector.broadcast %36 : vector<1x256xf32> to vector<8x256xf32>
    %900 = arith.mulf %898, %899 : vector<8x256xf32>
    %901 = vector.extract_strided_slice %866 {offsets = [0, 16], sizes = [8, 240], strides = [1, 1]} : vector<8x256xf32> to vector<8x240xf32>
    %902 = vector.extract_strided_slice %866 {offsets = [0, 0], sizes = [8, 16], strides = [1, 1]} : vector<8x256xf32> to vector<8x16xf32>
    %903 = tpu.concatenate %901, %902 in 1 : vector<8x240xf32>, vector<8x16xf32> -> vector<8x256xf32>
    %904 = vector.broadcast %38 : vector<1x256xf32> to vector<8x256xf32>
    %905 = arith.mulf %903, %904 : vector<8x256xf32>
    %906 = vector.extract_strided_slice %866 {offsets = [0, 17], sizes = [8, 239], strides = [1, 1]} : vector<8x256xf32> to vector<8x239xf32>
    %907 = vector.extract_strided_slice %866 {offsets = [0, 0], sizes = [8, 17], strides = [1, 1]} : vector<8x256xf32> to vector<8x17xf32>
    %908 = tpu.concatenate %906, %907 in 1 : vector<8x239xf32>, vector<8x17xf32> -> vector<8x256xf32>
    %909 = vector.broadcast %40 : vector<1x256xf32> to vector<8x256xf32>
    %910 = arith.mulf %908, %909 : vector<8x256xf32>
    %911 = tpu.concatenate %875, %880, %885, %890, %866, %895, %900, %905, %910 in 0 : vector<8x256xf32>, vector<8x256xf32>, vector<8x256xf32>, vector<8x256xf32>, vector<8x256xf32>, vector<8x256xf32>, vector<8x256xf32>, vector<8x256xf32>, vector<8x256xf32> -> vector<72x256xf32>
    %912 = arith.truncf %911 : vector<72x256xf32> to vector<72x256xbf16>
    %cst_110 = arith.constant dense<0.000000e+00> : vector<8x256xf32>
    %913 = tpu.matmul %868, %912, %cst_110 {dimension_numbers = #tpu.dot_dimension_numbers<[1], [0], [0], [1], [0, 0, 1, 1], [], []>} : vector<8x72xbf16>, vector<72x256xbf16>, vector<8x256xf32> -> vector<8x256xf32>
    %914 = vector.broadcast %870 : vector<8x1xf32> to vector<8x256xf32>
    %915 = arith.addf %913, %914 : vector<8x256xf32>
    %cst_111 = arith.constant 0.000000e+00 : f32
    %916 = vector.broadcast %cst_111 : f32 to vector<8x256xf32>
    %917 = arith.cmpf oge, %915, %916 : vector<8x256xf32>
    %cst_112 = arith.constant 0.00999999977 : f32
    %918 = vector.broadcast %cst_112 : f32 to vector<8x256xf32>
    %919 = arith.mulf %918, %915 : vector<8x256xf32>
    %920 = arith.select %917, %915, %919 : vector<8x256xi1>, vector<8x256xf32>
    %c9 = arith.constant 9 : index
    %c0_113 = arith.constant 0 : index
    %c0_114 = arith.constant 0 : index
    %921 = vector.load %arg6[%c9, %c0_113, %c0_114] : memref<12x8x72xbf16, #tpu.memory_space<vmem>>, vector<1x8x72xbf16>
    %922 = vector.shape_cast %921 : vector<1x8x72xbf16> to vector<8x72xbf16>
    %c9_115 = arith.constant 9 : index
    %c0_116 = arith.constant 0 : index
    %c0_117 = arith.constant 0 : index
    %923 = vector.load %arg7[%c9_115, %c0_116, %c0_117] : memref<12x8x1xf32, #tpu.memory_space<vmem>>, vector<1x8x1xf32>
    %924 = vector.shape_cast %923 : vector<1x8x1xf32> to vector<8x1xf32>
    %925 = vector.extract_strided_slice %920 {offsets = [0, 239], sizes = [8, 17], strides = [1, 1]} : vector<8x256xf32> to vector<8x17xf32>
    %926 = vector.extract_strided_slice %920 {offsets = [0, 0], sizes = [8, 239], strides = [1, 1]} : vector<8x256xf32> to vector<8x239xf32>
    %927 = tpu.concatenate %925, %926 in 1 : vector<8x17xf32>, vector<8x239xf32> -> vector<8x256xf32>
    %928 = vector.broadcast %18 : vector<1x256xf32> to vector<8x256xf32>
    %929 = arith.mulf %927, %928 : vector<8x256xf32>
    %930 = vector.extract_strided_slice %920 {offsets = [0, 240], sizes = [8, 16], strides = [1, 1]} : vector<8x256xf32> to vector<8x16xf32>
    %931 = vector.extract_strided_slice %920 {offsets = [0, 0], sizes = [8, 240], strides = [1, 1]} : vector<8x256xf32> to vector<8x240xf32>
    %932 = tpu.concatenate %930, %931 in 1 : vector<8x16xf32>, vector<8x240xf32> -> vector<8x256xf32>
    %933 = vector.broadcast %20 : vector<1x256xf32> to vector<8x256xf32>
    %934 = arith.mulf %932, %933 : vector<8x256xf32>
    %935 = vector.extract_strided_slice %920 {offsets = [0, 241], sizes = [8, 15], strides = [1, 1]} : vector<8x256xf32> to vector<8x15xf32>
    %936 = vector.extract_strided_slice %920 {offsets = [0, 0], sizes = [8, 241], strides = [1, 1]} : vector<8x256xf32> to vector<8x241xf32>
    %937 = tpu.concatenate %935, %936 in 1 : vector<8x15xf32>, vector<8x241xf32> -> vector<8x256xf32>
    %938 = vector.broadcast %22 : vector<1x256xf32> to vector<8x256xf32>
    %939 = arith.mulf %937, %938 : vector<8x256xf32>
    %940 = vector.extract_strided_slice %920 {offsets = [0, 255], sizes = [8, 1], strides = [1, 1]} : vector<8x256xf32> to vector<8x1xf32>
    %941 = vector.extract_strided_slice %920 {offsets = [0, 0], sizes = [8, 255], strides = [1, 1]} : vector<8x256xf32> to vector<8x255xf32>
    %942 = tpu.concatenate %940, %941 in 1 : vector<8x1xf32>, vector<8x255xf32> -> vector<8x256xf32>
    %943 = vector.broadcast %28 : vector<1x256xf32> to vector<8x256xf32>
    %944 = arith.mulf %942, %943 : vector<8x256xf32>
    %945 = vector.extract_strided_slice %920 {offsets = [0, 1], sizes = [8, 255], strides = [1, 1]} : vector<8x256xf32> to vector<8x255xf32>
    %946 = vector.extract_strided_slice %920 {offsets = [0, 0], sizes = [8, 1], strides = [1, 1]} : vector<8x256xf32> to vector<8x1xf32>
    %947 = tpu.concatenate %945, %946 in 1 : vector<8x255xf32>, vector<8x1xf32> -> vector<8x256xf32>
    %948 = vector.broadcast %30 : vector<1x256xf32> to vector<8x256xf32>
    %949 = arith.mulf %947, %948 : vector<8x256xf32>
    %950 = vector.extract_strided_slice %920 {offsets = [0, 15], sizes = [8, 241], strides = [1, 1]} : vector<8x256xf32> to vector<8x241xf32>
    %951 = vector.extract_strided_slice %920 {offsets = [0, 0], sizes = [8, 15], strides = [1, 1]} : vector<8x256xf32> to vector<8x15xf32>
    %952 = tpu.concatenate %950, %951 in 1 : vector<8x241xf32>, vector<8x15xf32> -> vector<8x256xf32>
    %953 = vector.broadcast %36 : vector<1x256xf32> to vector<8x256xf32>
    %954 = arith.mulf %952, %953 : vector<8x256xf32>
    %955 = vector.extract_strided_slice %920 {offsets = [0, 16], sizes = [8, 240], strides = [1, 1]} : vector<8x256xf32> to vector<8x240xf32>
    %956 = vector.extract_strided_slice %920 {offsets = [0, 0], sizes = [8, 16], strides = [1, 1]} : vector<8x256xf32> to vector<8x16xf32>
    %957 = tpu.concatenate %955, %956 in 1 : vector<8x240xf32>, vector<8x16xf32> -> vector<8x256xf32>
    %958 = vector.broadcast %38 : vector<1x256xf32> to vector<8x256xf32>
    %959 = arith.mulf %957, %958 : vector<8x256xf32>
    %960 = vector.extract_strided_slice %920 {offsets = [0, 17], sizes = [8, 239], strides = [1, 1]} : vector<8x256xf32> to vector<8x239xf32>
    %961 = vector.extract_strided_slice %920 {offsets = [0, 0], sizes = [8, 17], strides = [1, 1]} : vector<8x256xf32> to vector<8x17xf32>
    %962 = tpu.concatenate %960, %961 in 1 : vector<8x239xf32>, vector<8x17xf32> -> vector<8x256xf32>
    %963 = vector.broadcast %40 : vector<1x256xf32> to vector<8x256xf32>
    %964 = arith.mulf %962, %963 : vector<8x256xf32>
    %965 = tpu.concatenate %929, %934, %939, %944, %920, %949, %954, %959, %964 in 0 : vector<8x256xf32>, vector<8x256xf32>, vector<8x256xf32>, vector<8x256xf32>, vector<8x256xf32>, vector<8x256xf32>, vector<8x256xf32>, vector<8x256xf32>, vector<8x256xf32> -> vector<72x256xf32>
    %966 = arith.truncf %965 : vector<72x256xf32> to vector<72x256xbf16>
    %cst_118 = arith.constant dense<0.000000e+00> : vector<8x256xf32>
    %967 = tpu.matmul %922, %966, %cst_118 {dimension_numbers = #tpu.dot_dimension_numbers<[1], [0], [0], [1], [0, 0, 1, 1], [], []>} : vector<8x72xbf16>, vector<72x256xbf16>, vector<8x256xf32> -> vector<8x256xf32>
    %968 = vector.broadcast %924 : vector<8x1xf32> to vector<8x256xf32>
    %969 = arith.addf %967, %968 : vector<8x256xf32>
    %cst_119 = arith.constant 0.000000e+00 : f32
    %970 = vector.broadcast %cst_119 : f32 to vector<8x256xf32>
    %971 = arith.cmpf oge, %969, %970 : vector<8x256xf32>
    %cst_120 = arith.constant 0.00999999977 : f32
    %972 = vector.broadcast %cst_120 : f32 to vector<8x256xf32>
    %973 = arith.mulf %972, %969 : vector<8x256xf32>
    %974 = arith.select %971, %969, %973 : vector<8x256xi1>, vector<8x256xf32>
    %c10 = arith.constant 10 : index
    %c0_121 = arith.constant 0 : index
    %c0_122 = arith.constant 0 : index
    %975 = vector.load %arg6[%c10, %c0_121, %c0_122] : memref<12x8x72xbf16, #tpu.memory_space<vmem>>, vector<1x8x72xbf16>
    %976 = vector.shape_cast %975 : vector<1x8x72xbf16> to vector<8x72xbf16>
    %c10_123 = arith.constant 10 : index
    %c0_124 = arith.constant 0 : index
    %c0_125 = arith.constant 0 : index
    %977 = vector.load %arg7[%c10_123, %c0_124, %c0_125] : memref<12x8x1xf32, #tpu.memory_space<vmem>>, vector<1x8x1xf32>
    %978 = vector.shape_cast %977 : vector<1x8x1xf32> to vector<8x1xf32>
    %979 = vector.extract_strided_slice %974 {offsets = [0, 239], sizes = [8, 17], strides = [1, 1]} : vector<8x256xf32> to vector<8x17xf32>
    %980 = vector.extract_strided_slice %974 {offsets = [0, 0], sizes = [8, 239], strides = [1, 1]} : vector<8x256xf32> to vector<8x239xf32>
    %981 = tpu.concatenate %979, %980 in 1 : vector<8x17xf32>, vector<8x239xf32> -> vector<8x256xf32>
    %982 = vector.broadcast %18 : vector<1x256xf32> to vector<8x256xf32>
    %983 = arith.mulf %981, %982 : vector<8x256xf32>
    %984 = vector.extract_strided_slice %974 {offsets = [0, 240], sizes = [8, 16], strides = [1, 1]} : vector<8x256xf32> to vector<8x16xf32>
    %985 = vector.extract_strided_slice %974 {offsets = [0, 0], sizes = [8, 240], strides = [1, 1]} : vector<8x256xf32> to vector<8x240xf32>
    %986 = tpu.concatenate %984, %985 in 1 : vector<8x16xf32>, vector<8x240xf32> -> vector<8x256xf32>
    %987 = vector.broadcast %20 : vector<1x256xf32> to vector<8x256xf32>
    %988 = arith.mulf %986, %987 : vector<8x256xf32>
    %989 = vector.extract_strided_slice %974 {offsets = [0, 241], sizes = [8, 15], strides = [1, 1]} : vector<8x256xf32> to vector<8x15xf32>
    %990 = vector.extract_strided_slice %974 {offsets = [0, 0], sizes = [8, 241], strides = [1, 1]} : vector<8x256xf32> to vector<8x241xf32>
    %991 = tpu.concatenate %989, %990 in 1 : vector<8x15xf32>, vector<8x241xf32> -> vector<8x256xf32>
    %992 = vector.broadcast %22 : vector<1x256xf32> to vector<8x256xf32>
    %993 = arith.mulf %991, %992 : vector<8x256xf32>
    %994 = vector.extract_strided_slice %974 {offsets = [0, 255], sizes = [8, 1], strides = [1, 1]} : vector<8x256xf32> to vector<8x1xf32>
    %995 = vector.extract_strided_slice %974 {offsets = [0, 0], sizes = [8, 255], strides = [1, 1]} : vector<8x256xf32> to vector<8x255xf32>
    %996 = tpu.concatenate %994, %995 in 1 : vector<8x1xf32>, vector<8x255xf32> -> vector<8x256xf32>
    %997 = vector.broadcast %28 : vector<1x256xf32> to vector<8x256xf32>
    %998 = arith.mulf %996, %997 : vector<8x256xf32>
    %999 = vector.extract_strided_slice %974 {offsets = [0, 1], sizes = [8, 255], strides = [1, 1]} : vector<8x256xf32> to vector<8x255xf32>
    %1000 = vector.extract_strided_slice %974 {offsets = [0, 0], sizes = [8, 1], strides = [1, 1]} : vector<8x256xf32> to vector<8x1xf32>
    %1001 = tpu.concatenate %999, %1000 in 1 : vector<8x255xf32>, vector<8x1xf32> -> vector<8x256xf32>
    %1002 = vector.broadcast %30 : vector<1x256xf32> to vector<8x256xf32>
    %1003 = arith.mulf %1001, %1002 : vector<8x256xf32>
    %1004 = vector.extract_strided_slice %974 {offsets = [0, 15], sizes = [8, 241], strides = [1, 1]} : vector<8x256xf32> to vector<8x241xf32>
    %1005 = vector.extract_strided_slice %974 {offsets = [0, 0], sizes = [8, 15], strides = [1, 1]} : vector<8x256xf32> to vector<8x15xf32>
    %1006 = tpu.concatenate %1004, %1005 in 1 : vector<8x241xf32>, vector<8x15xf32> -> vector<8x256xf32>
    %1007 = vector.broadcast %36 : vector<1x256xf32> to vector<8x256xf32>
    %1008 = arith.mulf %1006, %1007 : vector<8x256xf32>
    %1009 = vector.extract_strided_slice %974 {offsets = [0, 16], sizes = [8, 240], strides = [1, 1]} : vector<8x256xf32> to vector<8x240xf32>
    %1010 = vector.extract_strided_slice %974 {offsets = [0, 0], sizes = [8, 16], strides = [1, 1]} : vector<8x256xf32> to vector<8x16xf32>
    %1011 = tpu.concatenate %1009, %1010 in 1 : vector<8x240xf32>, vector<8x16xf32> -> vector<8x256xf32>
    %1012 = vector.broadcast %38 : vector<1x256xf32> to vector<8x256xf32>
    %1013 = arith.mulf %1011, %1012 : vector<8x256xf32>
    %1014 = vector.extract_strided_slice %974 {offsets = [0, 17], sizes = [8, 239], strides = [1, 1]} : vector<8x256xf32> to vector<8x239xf32>
    %1015 = vector.extract_strided_slice %974 {offsets = [0, 0], sizes = [8, 17], strides = [1, 1]} : vector<8x256xf32> to vector<8x17xf32>
    %1016 = tpu.concatenate %1014, %1015 in 1 : vector<8x239xf32>, vector<8x17xf32> -> vector<8x256xf32>
    %1017 = vector.broadcast %40 : vector<1x256xf32> to vector<8x256xf32>
    %1018 = arith.mulf %1016, %1017 : vector<8x256xf32>
    %1019 = tpu.concatenate %983, %988, %993, %998, %974, %1003, %1008, %1013, %1018 in 0 : vector<8x256xf32>, vector<8x256xf32>, vector<8x256xf32>, vector<8x256xf32>, vector<8x256xf32>, vector<8x256xf32>, vector<8x256xf32>, vector<8x256xf32>, vector<8x256xf32> -> vector<72x256xf32>
    %1020 = arith.truncf %1019 : vector<72x256xf32> to vector<72x256xbf16>
    %cst_126 = arith.constant dense<0.000000e+00> : vector<8x256xf32>
    %1021 = tpu.matmul %976, %1020, %cst_126 {dimension_numbers = #tpu.dot_dimension_numbers<[1], [0], [0], [1], [0, 0, 1, 1], [], []>} : vector<8x72xbf16>, vector<72x256xbf16>, vector<8x256xf32> -> vector<8x256xf32>
    %1022 = vector.broadcast %978 : vector<8x1xf32> to vector<8x256xf32>
    %1023 = arith.addf %1021, %1022 : vector<8x256xf32>
    %cst_127 = arith.constant 0.000000e+00 : f32
    %1024 = vector.broadcast %cst_127 : f32 to vector<8x256xf32>
    %1025 = arith.cmpf oge, %1023, %1024 : vector<8x256xf32>
    %cst_128 = arith.constant 0.00999999977 : f32
    %1026 = vector.broadcast %cst_128 : f32 to vector<8x256xf32>
    %1027 = arith.mulf %1026, %1023 : vector<8x256xf32>
    %1028 = arith.select %1025, %1023, %1027 : vector<8x256xi1>, vector<8x256xf32>
    %c11 = arith.constant 11 : index
    %c0_129 = arith.constant 0 : index
    %c0_130 = arith.constant 0 : index
    %1029 = vector.load %arg6[%c11, %c0_129, %c0_130] : memref<12x8x72xbf16, #tpu.memory_space<vmem>>, vector<1x8x72xbf16>
    %1030 = vector.shape_cast %1029 : vector<1x8x72xbf16> to vector<8x72xbf16>
    %c11_131 = arith.constant 11 : index
    %c0_132 = arith.constant 0 : index
    %c0_133 = arith.constant 0 : index
    %1031 = vector.load %arg7[%c11_131, %c0_132, %c0_133] : memref<12x8x1xf32, #tpu.memory_space<vmem>>, vector<1x8x1xf32>
    %1032 = vector.shape_cast %1031 : vector<1x8x1xf32> to vector<8x1xf32>
    %1033 = vector.extract_strided_slice %1028 {offsets = [0, 239], sizes = [8, 17], strides = [1, 1]} : vector<8x256xf32> to vector<8x17xf32>
    %1034 = vector.extract_strided_slice %1028 {offsets = [0, 0], sizes = [8, 239], strides = [1, 1]} : vector<8x256xf32> to vector<8x239xf32>
    %1035 = tpu.concatenate %1033, %1034 in 1 : vector<8x17xf32>, vector<8x239xf32> -> vector<8x256xf32>
    %1036 = vector.broadcast %18 : vector<1x256xf32> to vector<8x256xf32>
    %1037 = arith.mulf %1035, %1036 : vector<8x256xf32>
    %1038 = vector.extract_strided_slice %1028 {offsets = [0, 240], sizes = [8, 16], strides = [1, 1]} : vector<8x256xf32> to vector<8x16xf32>
    %1039 = vector.extract_strided_slice %1028 {offsets = [0, 0], sizes = [8, 240], strides = [1, 1]} : vector<8x256xf32> to vector<8x240xf32>
    %1040 = tpu.concatenate %1038, %1039 in 1 : vector<8x16xf32>, vector<8x240xf32> -> vector<8x256xf32>
    %1041 = vector.broadcast %20 : vector<1x256xf32> to vector<8x256xf32>
    %1042 = arith.mulf %1040, %1041 : vector<8x256xf32>
    %1043 = vector.extract_strided_slice %1028 {offsets = [0, 241], sizes = [8, 15], strides = [1, 1]} : vector<8x256xf32> to vector<8x15xf32>
    %1044 = vector.extract_strided_slice %1028 {offsets = [0, 0], sizes = [8, 241], strides = [1, 1]} : vector<8x256xf32> to vector<8x241xf32>
    %1045 = tpu.concatenate %1043, %1044 in 1 : vector<8x15xf32>, vector<8x241xf32> -> vector<8x256xf32>
    %1046 = vector.broadcast %22 : vector<1x256xf32> to vector<8x256xf32>
    %1047 = arith.mulf %1045, %1046 : vector<8x256xf32>
    %1048 = vector.extract_strided_slice %1028 {offsets = [0, 255], sizes = [8, 1], strides = [1, 1]} : vector<8x256xf32> to vector<8x1xf32>
    %1049 = vector.extract_strided_slice %1028 {offsets = [0, 0], sizes = [8, 255], strides = [1, 1]} : vector<8x256xf32> to vector<8x255xf32>
    %1050 = tpu.concatenate %1048, %1049 in 1 : vector<8x1xf32>, vector<8x255xf32> -> vector<8x256xf32>
    %1051 = vector.broadcast %28 : vector<1x256xf32> to vector<8x256xf32>
    %1052 = arith.mulf %1050, %1051 : vector<8x256xf32>
    %1053 = vector.extract_strided_slice %1028 {offsets = [0, 1], sizes = [8, 255], strides = [1, 1]} : vector<8x256xf32> to vector<8x255xf32>
    %1054 = vector.extract_strided_slice %1028 {offsets = [0, 0], sizes = [8, 1], strides = [1, 1]} : vector<8x256xf32> to vector<8x1xf32>
    %1055 = tpu.concatenate %1053, %1054 in 1 : vector<8x255xf32>, vector<8x1xf32> -> vector<8x256xf32>
    %1056 = vector.broadcast %30 : vector<1x256xf32> to vector<8x256xf32>
    %1057 = arith.mulf %1055, %1056 : vector<8x256xf32>
    %1058 = vector.extract_strided_slice %1028 {offsets = [0, 15], sizes = [8, 241], strides = [1, 1]} : vector<8x256xf32> to vector<8x241xf32>
    %1059 = vector.extract_strided_slice %1028 {offsets = [0, 0], sizes = [8, 15], strides = [1, 1]} : vector<8x256xf32> to vector<8x15xf32>
    %1060 = tpu.concatenate %1058, %1059 in 1 : vector<8x241xf32>, vector<8x15xf32> -> vector<8x256xf32>
    %1061 = vector.broadcast %36 : vector<1x256xf32> to vector<8x256xf32>
    %1062 = arith.mulf %1060, %1061 : vector<8x256xf32>
    %1063 = vector.extract_strided_slice %1028 {offsets = [0, 16], sizes = [8, 240], strides = [1, 1]} : vector<8x256xf32> to vector<8x240xf32>
    %1064 = vector.extract_strided_slice %1028 {offsets = [0, 0], sizes = [8, 16], strides = [1, 1]} : vector<8x256xf32> to vector<8x16xf32>
    %1065 = tpu.concatenate %1063, %1064 in 1 : vector<8x240xf32>, vector<8x16xf32> -> vector<8x256xf32>
    %1066 = vector.broadcast %38 : vector<1x256xf32> to vector<8x256xf32>
    %1067 = arith.mulf %1065, %1066 : vector<8x256xf32>
    %1068 = vector.extract_strided_slice %1028 {offsets = [0, 17], sizes = [8, 239], strides = [1, 1]} : vector<8x256xf32> to vector<8x239xf32>
    %1069 = vector.extract_strided_slice %1028 {offsets = [0, 0], sizes = [8, 17], strides = [1, 1]} : vector<8x256xf32> to vector<8x17xf32>
    %1070 = tpu.concatenate %1068, %1069 in 1 : vector<8x239xf32>, vector<8x17xf32> -> vector<8x256xf32>
    %1071 = vector.broadcast %40 : vector<1x256xf32> to vector<8x256xf32>
    %1072 = arith.mulf %1070, %1071 : vector<8x256xf32>
    %1073 = tpu.concatenate %1037, %1042, %1047, %1052, %1028, %1057, %1062, %1067, %1072 in 0 : vector<8x256xf32>, vector<8x256xf32>, vector<8x256xf32>, vector<8x256xf32>, vector<8x256xf32>, vector<8x256xf32>, vector<8x256xf32>, vector<8x256xf32>, vector<8x256xf32> -> vector<72x256xf32>
    %1074 = arith.truncf %1073 : vector<72x256xf32> to vector<72x256xbf16>
    %cst_134 = arith.constant dense<0.000000e+00> : vector<8x256xf32>
    %1075 = tpu.matmul %1030, %1074, %cst_134 {dimension_numbers = #tpu.dot_dimension_numbers<[1], [0], [0], [1], [0, 0, 1, 1], [], []>} : vector<8x72xbf16>, vector<72x256xbf16>, vector<8x256xf32> -> vector<8x256xf32>
    %1076 = vector.broadcast %1032 : vector<8x1xf32> to vector<8x256xf32>
    %1077 = arith.addf %1075, %1076 : vector<8x256xf32>
    %cst_135 = arith.constant 0.000000e+00 : f32
    %1078 = vector.broadcast %cst_135 : f32 to vector<8x256xf32>
    %1079 = arith.cmpf oge, %1077, %1078 : vector<8x256xf32>
    %cst_136 = arith.constant 0.00999999977 : f32
    %1080 = vector.broadcast %cst_136 : f32 to vector<8x256xf32>
    %1081 = arith.mulf %1080, %1077 : vector<8x256xf32>
    %1082 = arith.select %1079, %1077, %1081 : vector<8x256xi1>, vector<8x256xf32>
    %c0_137 = arith.constant 0 : index
    %c0_138 = arith.constant 0 : index
    %1083 = vector.load %arg11[%c0_137, %c0_138] : memref<4x72xbf16, #tpu.memory_space<vmem>>, vector<4x72xbf16>
    %c0_139 = arith.constant 0 : index
    %c0_140 = arith.constant 0 : index
    %1084 = vector.load %arg12[%c0_139, %c0_140] : memref<4x1xf32, #tpu.memory_space<vmem>>, vector<4x1xf32>
    %1085 = vector.extract_strided_slice %1082 {offsets = [0, 239], sizes = [8, 17], strides = [1, 1]} : vector<8x256xf32> to vector<8x17xf32>
    %1086 = vector.extract_strided_slice %1082 {offsets = [0, 0], sizes = [8, 239], strides = [1, 1]} : vector<8x256xf32> to vector<8x239xf32>
    %1087 = tpu.concatenate %1085, %1086 in 1 : vector<8x17xf32>, vector<8x239xf32> -> vector<8x256xf32>
    %1088 = vector.broadcast %18 : vector<1x256xf32> to vector<8x256xf32>
    %1089 = arith.mulf %1087, %1088 : vector<8x256xf32>
    %1090 = vector.extract_strided_slice %1082 {offsets = [0, 240], sizes = [8, 16], strides = [1, 1]} : vector<8x256xf32> to vector<8x16xf32>
    %1091 = vector.extract_strided_slice %1082 {offsets = [0, 0], sizes = [8, 240], strides = [1, 1]} : vector<8x256xf32> to vector<8x240xf32>
    %1092 = tpu.concatenate %1090, %1091 in 1 : vector<8x16xf32>, vector<8x240xf32> -> vector<8x256xf32>
    %1093 = vector.broadcast %20 : vector<1x256xf32> to vector<8x256xf32>
    %1094 = arith.mulf %1092, %1093 : vector<8x256xf32>
    %1095 = vector.extract_strided_slice %1082 {offsets = [0, 241], sizes = [8, 15], strides = [1, 1]} : vector<8x256xf32> to vector<8x15xf32>
    %1096 = vector.extract_strided_slice %1082 {offsets = [0, 0], sizes = [8, 241], strides = [1, 1]} : vector<8x256xf32> to vector<8x241xf32>
    %1097 = tpu.concatenate %1095, %1096 in 1 : vector<8x15xf32>, vector<8x241xf32> -> vector<8x256xf32>
    %1098 = vector.broadcast %22 : vector<1x256xf32> to vector<8x256xf32>
    %1099 = arith.mulf %1097, %1098 : vector<8x256xf32>
    %1100 = vector.extract_strided_slice %1082 {offsets = [0, 255], sizes = [8, 1], strides = [1, 1]} : vector<8x256xf32> to vector<8x1xf32>
    %1101 = vector.extract_strided_slice %1082 {offsets = [0, 0], sizes = [8, 255], strides = [1, 1]} : vector<8x256xf32> to vector<8x255xf32>
    %1102 = tpu.concatenate %1100, %1101 in 1 : vector<8x1xf32>, vector<8x255xf32> -> vector<8x256xf32>
    %1103 = vector.broadcast %28 : vector<1x256xf32> to vector<8x256xf32>
    %1104 = arith.mulf %1102, %1103 : vector<8x256xf32>
    %1105 = vector.extract_strided_slice %1082 {offsets = [0, 1], sizes = [8, 255], strides = [1, 1]} : vector<8x256xf32> to vector<8x255xf32>
    %1106 = vector.extract_strided_slice %1082 {offsets = [0, 0], sizes = [8, 1], strides = [1, 1]} : vector<8x256xf32> to vector<8x1xf32>
    %1107 = tpu.concatenate %1105, %1106 in 1 : vector<8x255xf32>, vector<8x1xf32> -> vector<8x256xf32>
    %1108 = vector.broadcast %30 : vector<1x256xf32> to vector<8x256xf32>
    %1109 = arith.mulf %1107, %1108 : vector<8x256xf32>
    %1110 = vector.extract_strided_slice %1082 {offsets = [0, 15], sizes = [8, 241], strides = [1, 1]} : vector<8x256xf32> to vector<8x241xf32>
    %1111 = vector.extract_strided_slice %1082 {offsets = [0, 0], sizes = [8, 15], strides = [1, 1]} : vector<8x256xf32> to vector<8x15xf32>
    %1112 = tpu.concatenate %1110, %1111 in 1 : vector<8x241xf32>, vector<8x15xf32> -> vector<8x256xf32>
    %1113 = vector.broadcast %36 : vector<1x256xf32> to vector<8x256xf32>
    %1114 = arith.mulf %1112, %1113 : vector<8x256xf32>
    %1115 = vector.extract_strided_slice %1082 {offsets = [0, 16], sizes = [8, 240], strides = [1, 1]} : vector<8x256xf32> to vector<8x240xf32>
    %1116 = vector.extract_strided_slice %1082 {offsets = [0, 0], sizes = [8, 16], strides = [1, 1]} : vector<8x256xf32> to vector<8x16xf32>
    %1117 = tpu.concatenate %1115, %1116 in 1 : vector<8x240xf32>, vector<8x16xf32> -> vector<8x256xf32>
    %1118 = vector.broadcast %38 : vector<1x256xf32> to vector<8x256xf32>
    %1119 = arith.mulf %1117, %1118 : vector<8x256xf32>
    %1120 = vector.extract_strided_slice %1082 {offsets = [0, 17], sizes = [8, 239], strides = [1, 1]} : vector<8x256xf32> to vector<8x239xf32>
    %1121 = vector.extract_strided_slice %1082 {offsets = [0, 0], sizes = [8, 17], strides = [1, 1]} : vector<8x256xf32> to vector<8x17xf32>
    %1122 = tpu.concatenate %1120, %1121 in 1 : vector<8x239xf32>, vector<8x17xf32> -> vector<8x256xf32>
    %1123 = vector.broadcast %40 : vector<1x256xf32> to vector<8x256xf32>
    %1124 = arith.mulf %1122, %1123 : vector<8x256xf32>
    %1125 = tpu.concatenate %1089, %1094, %1099, %1104, %1082, %1109, %1114, %1119, %1124 in 0 : vector<8x256xf32>, vector<8x256xf32>, vector<8x256xf32>, vector<8x256xf32>, vector<8x256xf32>, vector<8x256xf32>, vector<8x256xf32>, vector<8x256xf32>, vector<8x256xf32> -> vector<72x256xf32>
    %1126 = arith.truncf %1125 : vector<72x256xf32> to vector<72x256xbf16>
    %cst_141 = arith.constant dense<0.000000e+00> : vector<4x256xf32>
    %1127 = tpu.matmul %1083, %1126, %cst_141 {dimension_numbers = #tpu.dot_dimension_numbers<[1], [0], [0], [1], [0, 0, 1, 1], [], []>} : vector<4x72xbf16>, vector<72x256xbf16>, vector<4x256xf32> -> vector<4x256xf32>
    %1128 = vector.broadcast %1084 : vector<4x1xf32> to vector<4x256xf32>
    %1129 = arith.addf %1127, %1128 : vector<4x256xf32>
    %1130 = arith.negf %1129 : vector<4x256xf32>
    %1131 = math.exp %1130 : vector<4x256xf32>
    %cst_142 = arith.constant 1.000000e+00 : f32
    %1132 = vector.broadcast %cst_142 : f32 to vector<4x256xf32>
    %1133 = arith.addf %1132, %1131 : vector<4x256xf32>
    %1134 = arith.divf %1132, %1133 : vector<4x256xf32>
    %c0_143 = arith.constant 0 : index
    %c0_144 = arith.constant 0 : index
    %c0_145 = arith.constant 0 : index
    %1135 = vector.load %arg13[%c0_143, %c0_144, %c0_145] : memref<1x4x256xf32, #tpu.memory_space<vmem>>, vector<1x4x256xf32>
    %1136 = vector.shape_cast %1135 : vector<1x4x256xf32> to vector<4x256xf32>
    %1137 = vector.shape_cast %1134 : vector<4x256xf32> to vector<1x4x256xf32>
    tpu.vector_store %arg13[%c0_143, %c0_144, %c0_145], %1137 {strides = array<i32>} : memref<1x4x256xf32, #tpu.memory_space<vmem>>, vector<1x4x256xf32>,
    return
  }
  func.func @transform_0(%arg0: i32) -> (i32, i32, i32) {
    %c0_i32 = arith.constant 0 : i32
    %c0_i32_0 = arith.constant 0 : i32
    %c0_i32_1 = arith.constant 0 : i32
    return %arg0, %c0_i32, %c0_i32_0 : i32, i32, i32
  }
  func.func @transform_1(%arg0: i32) -> (i32, i32, i32) {
    %c0_i32 = arith.constant 0 : i32
    %c0_i32_0 = arith.constant 0 : i32
    %c0_i32_1 = arith.constant 0 : i32
    return %arg0, %c0_i32, %c0_i32_0 : i32, i32, i32
  }
  func.func @transform_2(%arg0: i32) -> (i32, i32) {
    %c0_i32 = arith.constant 0 : i32
    %c0_i32_0 = arith.constant 0 : i32
    %c0_i32_1 = arith.constant 0 : i32
    return %c0_i32, %c0_i32_0 : i32, i32
  }
  func.func @transform_3(%arg0: i32) -> (i32, i32) {
    %c0_i32 = arith.constant 0 : i32
    %c0_i32_0 = arith.constant 0 : i32
    %c0_i32_1 = arith.constant 0 : i32
    return %c0_i32, %c0_i32_0 : i32, i32
  }
  func.func @transform_4(%arg0: i32) -> (i32, i32) {
    %c0_i32 = arith.constant 0 : i32
    %c0_i32_0 = arith.constant 0 : i32
    %c0_i32_1 = arith.constant 0 : i32
    return %c0_i32, %c0_i32_0 : i32, i32
  }
  func.func @transform_5(%arg0: i32) -> (i32, i32, i32) {
    %c0_i32 = arith.constant 0 : i32
    %c0_i32_0 = arith.constant 0 : i32
    %c0_i32_1 = arith.constant 0 : i32
    %c0_i32_2 = arith.constant 0 : i32
    return %c0_i32, %c0_i32_0, %c0_i32_1 : i32, i32, i32
  }
  func.func @transform_6(%arg0: i32) -> (i32, i32, i32) {
    %c0_i32 = arith.constant 0 : i32
    %c0_i32_0 = arith.constant 0 : i32
    %c0_i32_1 = arith.constant 0 : i32
    %c0_i32_2 = arith.constant 0 : i32
    return %c0_i32, %c0_i32_0, %c0_i32_1 : i32, i32, i32
  }
  func.func @transform_7(%arg0: i32) -> (i32, i32) {
    %c0_i32 = arith.constant 0 : i32
    %c0_i32_0 = arith.constant 0 : i32
    %c0_i32_1 = arith.constant 0 : i32
    return %c0_i32, %c0_i32_0 : i32, i32
  }
  func.func @transform_8(%arg0: i32) -> (i32, i32) {
    %c0_i32 = arith.constant 0 : i32
    %c0_i32_0 = arith.constant 0 : i32
    %c0_i32_1 = arith.constant 0 : i32
    return %c0_i32, %c0_i32_0 : i32, i32
  }
  func.func @transform_9(%arg0: i32) -> (i32, i32) {
    %c0_i32 = arith.constant 0 : i32
    %c0_i32_0 = arith.constant 0 : i32
    %c0_i32_1 = arith.constant 0 : i32
    return %c0_i32, %c0_i32_0 : i32, i32
  }
  func.func @transform_10(%arg0: i32) -> (i32, i32) {
    %c0_i32 = arith.constant 0 : i32
    %c0_i32_0 = arith.constant 0 : i32
    %c0_i32_1 = arith.constant 0 : i32
    return %c0_i32, %c0_i32_0 : i32, i32
  }
  func.func @transform_11(%arg0: i32) -> (i32, i32) {
    %c0_i32 = arith.constant 0 : i32
    %c0_i32_0 = arith.constant 0 : i32
    %c0_i32_1 = arith.constant 0 : i32
    return %c0_i32, %c0_i32_0 : i32, i32
  }
  func.func @transform_12(%arg0: i32) -> (i32, i32, i32) {
    %c0_i32 = arith.constant 0 : i32
    %c0_i32_0 = arith.constant 0 : i32
    %c0_i32_1 = arith.constant 0 : i32
    return %arg0, %c0_i32, %c0_i32_0 : i32, i32, i32
  }
  func.func @transform_13(%arg0: i32) -> (i32, i32, i32) {
    %c0_i32 = arith.constant 0 : i32
    %c0_i32_0 = arith.constant 0 : i32
    %c0_i32_1 = arith.constant 0 : i32
    return %arg0, %c0_i32, %c0_i32_0 : i32, i32, i32
  }
  func.func @transform_14(%arg0: i32) -> (i32, i32, i32) {
    %c0_i32 = arith.constant 0 : i32
    %c0_i32_0 = arith.constant 0 : i32
    %c0_i32_1 = arith.constant 0 : i32
    return %arg0, %c0_i32, %c0_i32_0 : i32, i32, i32
  }
  func.func @transform_15(%arg0: i32) -> (i32, i32, i32) {
    %c0_i32 = arith.constant 0 : i32
    %c0_i32_0 = arith.constant 0 : i32
    %c0_i32_1 = arith.constant 0 : i32
    return %arg0, %c0_i32, %c0_i32_0 : i32, i32, i32
  }
  func.func @transform_16(%arg0: i32) -> (i32, i32, i32) {
    %c0_i32 = arith.constant 0 : i32
    %c0_i32_0 = arith.constant 0 : i32
    %c0_i32_1 = arith.constant 0 : i32
    return %arg0, %c0_i32, %c0_i32_0 : i32, i32, i32
  }
}

</mosaic_0001>

<bundles_post_ra>
// kernel: af_forward_pallas.1
= control target key start
LH: loop header
LB: loop body
LE: loop exit
PB: predicated region body
PF: predicated region fallthrough
CT: control target
= control target key end

     0   :  { %s7132_s21 = smov 0   ;;  %s10942_s0 = inlined_call_operand.vmem [shape: f32[2,8,256], index: 0, kind: input, shape index: {}]   ;;  %s10943_s1 = inlined_call_operand.vmem [shape: f32[2,8,256], index: 1, kind: input, shape index: {}]   ;;  %s10944_s2 = inlined_call_operand.vmem [shape: f32[49,512], index: 2, kind: input, shape index: {}]   ;;  %s10945_s3 = inlined_call_operand.vmem [shape: bf16[8,72], index: 3, kind: input, shape index: {}]   ;;  %s10946_s4 = inlined_call_operand.vmem [shape: f32[8,1], index: 4, kind: input, shape index: {}]   ;;  %s10947_s5 = inlined_call_operand.vmem [shape: bf16[12,8,72], index: 5, kind: input, shape index: {}]   ;;  %s10948_s6 = inlined_call_operand.vmem [shape: f32[12,8,1], index: 6, kind: input, shape index: {}]   ;;  %s10949_s7 = inlined_call_operand.vmem [shape: bf16[2,392], index: 7, kind: input, shape index: {}]   ;;  %s10950_s8 = inlined_call_operand.vmem [shape: bf16[8,16], index: 8, kind: input, shape index: {}]   ;;  %s10951_s9 = inlined_call_operand.vmem [shape: f32[8,1], index: 9, kind: input, shape index: {}]   ;;  %s10952_s10 = inlined_call_operand.vmem [shape: bf16[4,72], index: 10, kind: input, shape index: {}]   ;;  %s10953_s11 = inlined_call_operand.vmem [shape: f32[4,1], index: 11, kind: input, shape index: {}]   ;;  %s10954_s12 = inlined_call_operand.vmem [shape: f32[2,4,256], index: 12, kind: output, shape index: {0}]   ;;  %s10955_s13 = inlined_call_operand.vmem [shape: f32[2,8,256], index: 13, kind: output, shape index: {1}]   ;;  %s10956_s14 = inlined_call_operand.vmem [shape: f32[2,8,256], index: 14, kind: output, shape index: {2}]   ;;  %s10957_s15 = inlined_call_operand.vmem [shape: f32[2,8,256], index: 15, kind: output, shape index: {3}]   ;;  %s10958_s16 = inlined_call_operand.vmem [shape: f32[2,8,256], index: 16, kind: output, shape index: {4}]  }
   0x1   :  { %11186 = sst [smem:[#allocation85_spill]] %s10942_s0 }
   0x2   :  { %11187 = sst [smem:[#allocation86_spill]] %s10943_s1 }
   0x3   :  { %11188 = sst [smem:[#allocation87_spill]] %s10945_s3 }
   0x4   :  { %11189 = sst [smem:[#allocation88_spill]] %s10946_s4 }
   0x5 LB: > { %s6779_s22 = sadd.s32 4294967295, %s6995_s21   ;;  %p6783_p0 = scmp.ge.s32.totalorder %s6995_s21, 1  ;;  %s6995_s21 = sphi %s7132_s21, %s27_s21  }
   0x6   : > { %p481_p1 = scmp.lt.s32.totalorder %s6995_s21, 3 }
   0x8   : > { %p482_p2 = pnand %p6783_p0, %p481_p1 }
   0xa   : > { %485 = sbr.rel (%p482_p2) target bundleno = 6384 (0x18f0), region = 68 }
   0xf   : > { %p556_p3 = scmp.lt.s32.totalorder %s6779_s22, 1  ;;  %s11190_s1 = sld [smem:[#allocation86_spill]]  ;;  %v10967_v4 = vmov 0   ;;  %v648_v6 = vlaneseq  ;;  %v611_v9 = vld [vmem:[%s10944_s2 + $0x98] sm:$0xff]  ;;  %v610_v10 = vld [vmem:[%s10944_s2 + $0x90] sm:$0xff]  ;;  %v609_v12 = vld [vmem:[%s10944_s2 + $0x88] sm:$0xff] }
  0x10   : > { %s11191_s29 = sld [smem:[#allocation85_spill]]  ;;  %s11073_s0 = smov 111   ;;  %1008 = vmatprep.mubr.bf16.mxu0 %v10967_v4  ;;  %1049 = vmatprep.mubr.bf16.mxu1 %v10967_v4  ;;  %v608_v13 = vld [vmem:[%s10944_s2 + $0x80] sm:$0xff]  ;;  %vm11172_vm0 = vcmask 908288   ;;  %vm11170_vm1 = vcmask 1043456   ;;  %v607_v39 = vld [vmem:[%s10944_s2 + $0x78] sm:$0xff] }
  0x11   : > { %s11629_s22 = smov (!%p556_p3, %s6779_s22), 1  ;;  %s11089_s17 = smov 113   ;;  %6945 = vset.pattern.permute.xlu0 %v10967_v4  ;;  %6946 = vset.pattern.permute.xlu1 %v10967_v4  ;;  %v7232_v7 = vshrl.u32 %v648_v6, 7  ;;  %v605_v42 = vld [vmem:[%s10944_s2 + $0x68] sm:$0xff]  ;;  %v606_v43 = vld [vmem:[%s10944_s2 + $0x70] sm:$0xff]  ;;  %vm866_vm2 = vcmask 916480  }
  0x12   : > { %s7143_s23 = sshll.u32 %s11629_s22, 4  ;;  %s11001_s18 = smov 112   ;;  %v604_v45 = vld [vmem:[%s10944_s2 + $0x60] sm:$0xff]  ;;  %vm828_vm3 = vcmask 924672   ;;  %vm790_vm4 = vcmask 1039360   ;;  %vm11086_vm5 = vcmask 7168  }
  0x13   : > { %s10961_s19 = smov 127   ;;  %s10999_s20 = smov 15   ;;  %11193 = vst [vmem:[#allocation2_spill] sm:$0xff] %v7232_v7  ;;  %v7235_v8 = vsub.s32 0, %v7232_v7  ;;  %v7277_v40 = vsub.s32 7, %v7232_v7  ;;  %v7280_v41 = vsub.s32 6, %v7232_v7 }
  0x14   : > { %s10965_s24 = smov 1   ;;  %s10959_s25 = smov 17   ;;  %vm11072_vm6 = vcmask 121856   ;;  %vm11052_vm7 = vcmask 130048   ;;  %vm11061_vm8 = vcmask 138240   ;;  %vm11024_vm9 = vcmask 588800  }
  0x15   : > { %s565_s26 = scalar_lea.vmem %s11190_s1, %s7143_s23  ;;  %s11192_s4 = sld [smem:[#allocation88_spill]]  ;;  %11194 = vst [vmem:[#allocation3_spill] sm:$0xff] %v7235_v8  ;;  %v7250_v15 = vrot.slane %v611_v9, %v7235_v8  ;;  %v7253_v16 = vrot.slane %v610_v10, %v7235_v8  ;;  %v7256_v17 = vrot.slane %v609_v12, %v7235_v8  ;;  %v7259_v18 = vrot.slane %v608_v13, %v7235_v8 }
  0x16   : > { %v7149_v0 = vld [vmem:[%s565_s26] sm:$0xff]  ;;  %s560_s30 = scalar_lea.vmem %s11191_s29, %s7143_s23  ;;  %v7161_v2 = vld [vmem:[%s565_s26 + $0x8] sm:$0xff]  ;;  %s10963_s26 = smov 16   ;;  %11199 = vst [vmem:[#allocation8_spill] sm:$0xff] %v7277_v40  ;;  %11200 = vst [vmem:[#allocation9_spill] sm:$0xff] %v7280_v41  ;;  %v7292_v46 = vrot.slane %v607_v39, %v7280_v41  ;;  %v7296_v49 = vrot.slane %v605_v42, %v7280_v41  ;;  %v7299_v50 = vrot.slane %v604_v45, %v7277_v40 }
  0x17   : > { %900 = vrot.lane.b32.xlu1 %v7149_v0, %s11073_s0  ;;  %v7157_v1 = vld [vmem:[%s560_s30] sm:$0xff]  ;;  %v7163_v3 = vld [vmem:[%s560_s30 + $0x8] sm:$0xff]  ;;  %11195 = vst [vmem:[#allocation4_spill] sm:$0xff] %v7250_v15  ;;  %11196 = vst [vmem:[#allocation5_spill] sm:$0xff] %v7253_v16  ;;  %v7302_v51 = vrot.slane %v607_v39, %v7277_v40  ;;  %v7305_v52 = vrot.slane %v606_v43, %v7280_v41  ;;  %v7309_v54 = vrot.slane %v605_v42, %v7277_v40  ;;  %s11231_s3 = sld [smem:[#allocation87_spill]]  ;;  %s11234_s29 = smov 17  }
  0x18   : > { %896 = vrot.lane.b32.xlu0 %v7157_v1, %s11073_s0  ;;  %11197 = vst [vmem:[#allocation6_spill] sm:$0xff] %v7256_v17  ;;  %11198 = vst [vmem:[#allocation7_spill] sm:$0xff] %v7259_v18  ;;  %v7312_v55 = vrot.slane %v606_v43, %v7277_v40  ;;  %v7315_v56 = vrot.slane %v604_v45, %v7280_v41  ;;  %s11235_s30 = smov 16   ;;  %s11005_s27 = smov 79  }
  0x19   : > { %11201 = vst [vmem:[#allocation10_spill] sm:$0xff] %v7292_v46  ;;  %11202 = vst [vmem:[#allocation11_spill] sm:$0xff] %v7296_v49  ;;  %s11004_s28 = smov 78   ;;  %s11373_s1 = smov 77  }
  0x1a   : > { %11203 = vst [vmem:[#allocation12_spill] sm:$0xff] %v7299_v50  ;;  %11204 = vst [vmem:[#allocation13_spill] sm:$0xff] %v7302_v51 }
  0x1b   : > { %902 = vrot.lane.b32.xlu1 %v7161_v2, %s11073_s0  ;;  %v625_v5 = vld [vmem:[%s11192_s4] sm:$0xff]  ;;  %11205 = vst [vmem:[#allocation14_spill] sm:$0xff] %v7305_v52  ;;  %11206 = vst [vmem:[#allocation15_spill] sm:$0xff] %v7309_v54  ;;  %s585_s4 = scalar_lea.vmem %s10957_s15, %s7143_s23 }
  0x1c   : > { %898 = vrot.lane.b32.xlu0 %v7163_v3, %s11073_s0  ;;  %11207 = vst [vmem:[#allocation16_spill] sm:$0xff] %v7312_v55  ;;  %11208 = vst [vmem:[#allocation17_spill] sm:$0xff] %v7315_v56 }
  0x1f   : > { %822 = vrot.lane.b32.xlu1 %v7163_v3, %s11089_s17 }
  0x20   : > { %820 = vrot.lane.b32.xlu0 %v7157_v1, %s11089_s17 }
  0x23   : > { %826 = vrot.lane.b32.xlu1 %v7161_v2, %s11089_s17 }
  0x24   : > { %824 = vrot.lane.b32.xlu0 %v7149_v0, %s11089_s17 }
  0x27   : > { %860 = vrot.lane.b32.xlu1 %v7163_v3, %s11001_s18 }
  0x28   : > { %858 = vrot.lane.b32.xlu0 %v7157_v1, %s11001_s18 }
  0x2b   : > { %864 = vrot.lane.b32.xlu1 %v7161_v2, %s11001_s18 }
  0x2c   : > { %862 = vrot.lane.b32.xlu0 %v7149_v0, %s11001_s18 }
  0x2f   : > { %784 = vrot.lane.b32.xlu1 %v7163_v3, %s10961_s19 }
  0x30   : > { %782 = vrot.lane.b32.xlu0 %v7157_v1, %s10961_s19 }
  0x33   : > { %788 = vrot.lane.b32.xlu1 %v7161_v2, %s10961_s19 }
  0x34   : > { %786 = vrot.lane.b32.xlu0 %v7149_v0, %s10961_s19  ;;  %s11010_s19 = smov 30  }
  0x37   : > { %709 = vrot.lane.b32.xlu1 %v7157_v1, %s10999_s20 }
  0x38   : > { %706 = vrot.lane.b32.xlu0 %v7161_v2, %s10999_s20 }
  0x3b   : > { %713 = vrot.lane.b32.xlu1 %v7149_v0, %s10999_s20 }
  0x3c   : > { %711 = vrot.lane.b32.xlu0 %v7163_v3, %s10999_s20 }
  0x3f   : > { %747 = vrot.lane.b32.xlu1 %v7157_v1, %s10965_s24 }
  0x40   : > { %744 = vrot.lane.b32.xlu0 %v7161_v2, %s10965_s24 }
  0x43   : > { %751 = vrot.lane.b32.xlu1 %v7149_v0, %s10965_s24 }
  0x44   : > { %749 = vrot.lane.b32.xlu0 %v7163_v3, %s10965_s24  ;;  %s580_s24 = scalar_lea.vmem %s10956_s14, %s7143_s23 }
  0x47   : > { %633 = vrot.lane.b32.xlu1 %v7157_v1, %s10959_s25 }
  0x48   : > { %627 = vrot.lane.b32.xlu0 %v7161_v2, %s10959_s25 }
  0x4b   : > { %637 = vrot.lane.b32.xlu1 %v7149_v0, %s10959_s25 }
  0x4c   : > { %635 = vrot.lane.b32.xlu0 %v7163_v3, %s10959_s25  ;;  %s11232_s25 = smov 1  }
  0x4f   : > { %671 = vrot.lane.b32.xlu1 %v7157_v1, %s10963_s26 }
  0x50   : > { %668 = vrot.lane.b32.xlu0 %v7161_v2, %s10963_s26 }
  0x53   : > { %675 = vrot.lane.b32.xlu1 %v7149_v0, %s10963_s26 }
  0x54   : > { %673 = vrot.lane.b32.xlu0 %v7163_v3, %s10963_s26  ;;  %s11233_s26 = smov 127  }
  0x58   : > { %956 = vperm.xlu0 %6945, %v625_v5   ;;  %v7323_v5 = vsub.s32 1, %v7232_v7 }
  0x5a   : > { %11209 = vst [vmem:[#allocation18_spill] sm:$0xff] %v7323_v5 }
  0x89   : > { %v901_v11 = vpop.permute.xlu1 %900 }
  0x8a   : > { %v897_v14 = vpop.permute.xlu0 %896 }
  0x8d   : > { %v903_v19 = vpop.permute.xlu1 %902 }
  0x8e   : > { %v907_v20 = vsel %vm11172_vm0, %v901_v11, %v903_v19  ;;  %v899_v21 = vpop.permute.xlu0 %898  ;;  %v913_v22 = vsel %vm11172_vm0, %v903_v19, %v897_v14 }
  0x8f   : > { %v905_v23 = vsel %vm11172_vm0, %v897_v14, %v899_v21  ;;  %v906_v24 = vsel %vm11172_vm0, %v899_v21, %v901_v11  ;;  %v933_v25 = vmul.f32 %v7250_v15, %v913_v22  ;;  %v932_v26 = vmul.f32 %v7253_v16, %v907_v20 }
  0x90   : > { %v931_v27 = vmul.f32 %v7256_v17, %v906_v24  ;;  %v930_v28 = vmul.f32 %v7259_v18, %v905_v23 }
  0x91   : > { %v823_v29 = vpop.permute.xlu1 %822  ;;  %v953_v30 = vpack.c.bf16 %v933_v25, %v933_v25  ;;  %v952_v31 = vpack.c.bf16 %v932_v26, %v932_v26  ;;  %v7335_v26 = vrot.slane %v604_v45, %v7323_v5 }
  0x92   : > { %v821_v32 = vpop.permute.xlu0 %820  ;;  %v951_v33 = vpack.c.bf16 %v931_v27, %v931_v27  ;;  %v950_v34 = vpack.c.bf16 %v930_v28, %v930_v28  ;;  %v7338_v28 = vrot.slane %v607_v39, %v7323_v5 }
  0x93   : > { %6800 = vmatprep.subr.msk.bf16.mxu1 %vm11170_vm1, %v953_v30  ;;  %v971_v35 = vsel %vm11170_vm1, %v952_v31, 0  ;;  %v829_v60 = vsel %vm828_vm3, %v821_v32, %v823_v29  ;;  %11210 = vst [vmem:[#allocation19_spill] sm:$0xff] %v7335_v26  ;;  %v7342_v30 = vrot.slane %v605_v42, %v7323_v5  ;;  %v7345_v31 = vrot.slane %v606_v43, %v7323_v5 }
  0x94   : > { %6798 = vmatprep.subr.msk.bf16.mxu0 %vm11170_vm1, %v951_v33  ;;  %v965_v36 = vsel %vm11170_vm1, %v950_v34, 0  ;;  %1024 = vmatpush1.bf16.msra.mxu1 %v971_v35  ;;  %v854_v20 = vmul.f32 %v7315_v56, %v829_v60  ;;  %11211 = vst [vmem:[#allocation20_spill] sm:$0xff] %v7338_v28  ;;  %v7362_v60 = vsub.s32 2, %v7232_v7 }
  0x95   : > { %983 = vmatpush1.bf16.msra.mxu0 %v965_v36  ;;  %v827_v37 = vpop.permute.xlu1 %826  ;;  %11212 = vst [vmem:[#allocation21_spill] sm:$0xff] %v7342_v30  ;;  %11213 = vst [vmem:[#allocation22_spill] sm:$0xff] %v7345_v31 }
  0x96   : > { %v825_v38 = vpop.permute.xlu0 %824  ;;  %v837_v48 = vsel %vm828_vm3, %v827_v37, %v821_v32  ;;  %11214 = vst [vmem:[#allocation23_spill] sm:$0xff] %v7362_v60 }
  0x97   : > { %v830_v57 = vsel %vm828_vm3, %v823_v29, %v825_v38  ;;  %v831_v58 = vsel %vm828_vm3, %v825_v38, %v827_v37  ;;  %v857_v61 = vmul.f32 %v7292_v46, %v837_v48 }
  0x98   : > { %v855_v12 = vmul.f32 %v7296_v49, %v830_v57  ;;  %v856_v13 = vmul.f32 %v7305_v52, %v831_v58 }
  0x99   : > { %v861_v44 = vpop.permute.xlu1 %860 }
  0x9a   : > { %v859_v47 = vpop.permute.xlu0 %858 }
  0x9b   : > { %v867_v53 = vsel %vm866_vm2, %v859_v47, %v861_v44 }
  0x9c   : > { %v892_v6 = vmul.f32 %v7299_v50, %v867_v53 }
  0x9d   : > { %v865_v59 = vpop.permute.xlu1 %864 }
  0x9e   : > { %v875_v62 = vsel %vm866_vm2, %v865_v59, %v859_v47  ;;  %v863_v63 = vpop.permute.xlu0 %862  ;;  %v946_v27 = vpack.c.bf16 %v892_v6, %v854_v20 }
  0x9f   : > { %v895_v9 = vmul.f32 %v7302_v51, %v875_v62  ;;  %v868_v10 = vsel %vm866_vm2, %v861_v44, %v863_v63  ;;  %v869_v11 = vsel %vm866_vm2, %v863_v63, %v865_v59  ;;  %v603_v59 = vld [vmem:[%s10944_s2 + $0x58] sm:$0xff] }
  0xa0   : > { %v893_v14 = vmul.f32 %v7309_v54, %v868_v10  ;;  %v894_v19 = vmul.f32 %v7312_v55, %v869_v11  ;;  %v7384_v10 = vrot.slane %v603_v59, %v7277_v40 }
  0xa1   : > { %v785_v21 = vpop.permute.xlu1 %784  ;;  %v949_v22 = vpack.c.bf16 %v895_v9, %v857_v61  ;;  %v7374_v61 = vrot.slane %v603_v59, %v7362_v60 }
  0xa2   : > { %v783_v23 = vpop.permute.xlu0 %782  ;;  %v947_v24 = vpack.c.bf16 %v893_v14, %v855_v12  ;;  %v948_v25 = vpack.c.bf16 %v894_v19, %v856_v13  ;;  %11218 = vst [vmem:[#allocation27_spill] sm:$0xff] %v7384_v10 }
  0xa3   : > { %1025 = vmatprep.subr.bf16.mxu1 %v949_v22  ;;  %v791_v29 = vsel %vm790_vm4, %v783_v23, %v785_v21  ;;  %11215 = vst [vmem:[#allocation24_spill] sm:$0xff] %v7374_v61 }
  0xa4   : > { %984 = vmatprep.subr.bf16.mxu0 %v947_v24  ;;  %1026 = vmatpush1.bf16.msra.mxu1 %v948_v25  ;;  %v816_v35 = vmul.f32 %v7335_v26, %v791_v29 }
  0xa5   : > { %985 = vmatpush1.bf16.msra.mxu0 %v946_v27  ;;  %v789_v32 = vpop.permute.xlu1 %788 }
  0xa6   : > { %v799_v33 = vsel %vm790_vm4, %v789_v32, %v783_v23  ;;  %v787_v34 = vpop.permute.xlu0 %786  ;;  %v942_v53 = vpack.c.bf16 %v816_v35, %v7157_v1 }
  0xa7   : > { %v819_v36 = vmul.f32 %v7338_v28, %v799_v33  ;;  %v792_v37 = vsel %vm790_vm4, %v785_v21, %v787_v34  ;;  %v793_v38 = vsel %vm790_vm4, %v787_v34, %v789_v32 }
  0xa8   : > { %v817_v39 = vmul.f32 %v7342_v30, %v792_v37  ;;  %v818_v42 = vmul.f32 %v7345_v31, %v793_v38 }
  0xa9   : > { %v710_v44 = vpop.permute.xlu1 %709  ;;  %v945_v43 = vpack.c.bf16 %v819_v36, %v7161_v2  ;;  %v601_v2 = vld [vmem:[%s10944_s2 + $0x48] sm:$0xff] }
  0xaa   : > { %v707_v45 = vpop.permute.xlu0 %706  ;;  %v943_v47 = vpack.c.bf16 %v817_v39, %v7163_v3  ;;  %v944_v48 = vpack.c.bf16 %v818_v42, %v7149_v0  ;;  %v602_v0 = vld [vmem:[%s10944_s2 + $0x50] sm:$0xff]  ;;  %v600_v3 = vld [vmem:[%s10944_s2 + $0x40] sm:$0xff]  ;;  %v7378_v6 = vrot.slane %v601_v2, %v7362_v60  ;;  %v7391_v13 = vrot.slane %v601_v2, %v7277_v40 }
  0xab   : > { %1027 = vmatprep.subr.bf16.mxu1 %v945_v43  ;;  %v7381_v9 = vrot.slane %v600_v3, %v7277_v40  ;;  %v7387_v11 = vrot.slane %v602_v0, %v7362_v60  ;;  %v7394_v14 = vrot.slane %v602_v0, %v7277_v40  ;;  %v7397_v19 = vrot.slane %v600_v3, %v7362_v60 }
  0xac   : > { %986 = vmatprep.subr.bf16.mxu0 %v943_v47  ;;  %1028 = vmatpush1.bf16.msra.mxu1 %v944_v48  ;;  %11216 = vst [vmem:[#allocation25_spill] sm:$0xff] %v7378_v6  ;;  %11220 = vst [vmem:[#allocation29_spill] sm:$0xff] %v7391_v13  ;;  %v723_v23 = vsel %vm11072_vm6, %v707_v45, %v710_v44 }
  0xad   : > { %987 = vmatpush1.bf16.msra.mxu0 %v942_v53  ;;  %v714_v57 = vpop.permute.xlu1 %713  ;;  %11217 = vst [vmem:[#allocation26_spill] sm:$0xff] %v7381_v9  ;;  %11219 = vst [vmem:[#allocation28_spill] sm:$0xff] %v7387_v11  ;;  %v740_v39 = vmul.f32 %v7397_v19, %v723_v23 }
  0xae   : > { %v712_v58 = vpop.permute.xlu0 %711  ;;  %v718_v63 = vsel %vm11072_vm6, %v714_v57, %v707_v45  ;;  %11221 = vst [vmem:[#allocation30_spill] sm:$0xff] %v7394_v14  ;;  %11222 = vst [vmem:[#allocation31_spill] sm:$0xff] %v7397_v19 }
  0xaf   : > { %v716_v20 = vsel %vm11072_vm6, %v710_v44, %v712_v58  ;;  %v717_v21 = vsel %vm11072_vm6, %v712_v58, %v714_v57  ;;  %v743_v24 = vmul.f32 %v7374_v61, %v718_v63 }
  0xb0   : > { %v741_v35 = vmul.f32 %v7378_v6, %v716_v20  ;;  %v742_v36 = vmul.f32 %v7387_v11, %v717_v21  ;;  %v7421_v20 = vrot.slane %v600_v3, %v7323_v5  ;;  %v7424_v21 = vrot.slane %v603_v59, %v7323_v5 }
  0xb1   : > { %v748_v1 = vpop.permute.xlu1 %747 }
  0xb2   : > { %v745_v62 = vpop.permute.xlu0 %744  ;;  %11225 = vst [vmem:[#allocation34_spill] sm:$0xff] %v7421_v20  ;;  %11226 = vst [vmem:[#allocation35_spill] sm:$0xff] %v7424_v21 }
  0xb3   : > { %v761_v12 = vsel %vm11086_vm5, %v745_v62, %v748_v1 }
  0xb4   : > { %v778_v29 = vmul.f32 %v7381_v9, %v761_v12  ;;  %v7418_v12 = vrot.slane %v601_v2, %v7235_v8 }
  0xb5   : > { %v752_v22 = vpop.permute.xlu1 %751 }
  0xb6   : > { %v756_v25 = vsel %vm11086_vm5, %v752_v22, %v745_v62  ;;  %v750_v27 = vpop.permute.xlu0 %749  ;;  %v938_v48 = vpack.c.bf16 %v778_v29, %v740_v39  ;;  %11224 = vst [vmem:[#allocation33_spill] sm:$0xff] %v7418_v12 }
  0xb7   : > { %v781_v32 = vmul.f32 %v7384_v10, %v756_v25  ;;  %v754_v33 = vsel %vm11086_vm5, %v748_v1, %v750_v27  ;;  %v755_v34 = vsel %vm11086_vm5, %v750_v27, %v752_v22  ;;  %v7414_v1 = vrot.slane %v603_v59, %v7235_v8 }
  0xb8   : > { %v779_v37 = vmul.f32 %v7391_v13, %v754_v33  ;;  %v780_v38 = vmul.f32 %v7394_v14, %v755_v34  ;;  %v7427_v22 = vrot.slane %v602_v0, %v7235_v8  ;;  %v7434_v25 = vrot.slane %v602_v0, %v7323_v5 }
  0xb9   : > { %v634_v42 = vpop.permute.xlu1 %633  ;;  %v941_v44 = vpack.c.bf16 %v781_v32, %v743_v24  ;;  %11223 = vst [vmem:[#allocation32_spill] sm:$0xff] %v7414_v1  ;;  %v7431_v24 = vrot.slane %v601_v2, %v7323_v5  ;;  %v7437_v27 = vrot.slane %v600_v3, %v7235_v8 }
  0xba   : > { %v628_v43 = vpop.permute.xlu0 %627  ;;  %v939_v45 = vpack.c.bf16 %v779_v37, %v741_v35  ;;  %v940_v47 = vpack.c.bf16 %v780_v38, %v742_v36  ;;  %11227 = vst [vmem:[#allocation36_spill] sm:$0xff] %v7427_v22  ;;  %11229 = vst [vmem:[#allocation38_spill] sm:$0xff] %v7434_v25 }
  0xbb   : > { %1029 = vmatprep.subr.bf16.mxu1 %v941_v44  ;;  %11228 = vst [vmem:[#allocation37_spill] sm:$0xff] %v7431_v24  ;;  %11230 = vst [vmem:[#allocation39_spill] sm:$0xff] %v7437_v27  ;;  %v647_v33 = vsel %vm11061_vm8, %v628_v43, %v634_v42 }
  0xbc   : > { %988 = vmatprep.subr.bf16.mxu0 %v939_v45  ;;  %1030 = vmatpush1.bf16.msra.mxu1 %v940_v47 }
  0xbd   : > { %989 = vmatpush1.bf16.msra.mxu0 %v938_v48  ;;  %v638_v53 = vpop.permute.xlu1 %637 }
  0xbe   : > { %v636_v57 = vpop.permute.xlu0 %635  ;;  %v642_v63 = vsel %vm11061_vm8, %v638_v53, %v628_v43  ;;  %v664_v43 = vmul.f32 %v7437_v27, %v647_v33 }
  0xbf   : > { %v640_v29 = vsel %vm11061_vm8, %v634_v42, %v636_v57  ;;  %v641_v32 = vsel %vm11061_vm8, %v636_v57, %v638_v53  ;;  %v667_v34 = vmul.f32 %v7414_v1, %v642_v63  ;;  %v624_v57 = vld [vmem:[%s11231_s3] sm:$0xf] }
  0xc0   : > { %v665_v38 = vmul.f32 %v7418_v12, %v640_v29  ;;  %v666_v39 = vmul.f32 %v7427_v22, %v641_v32 }
  0xc1   : > { %v672_v58 = vpop.permute.xlu1 %671 }
  0xc2   : > { %v669_v62 = vpop.permute.xlu0 %668 }
  0xc3   : > { %v685_v23 = vsel %vm11052_vm7, %v669_v62, %v672_v58 }
  0xc4   : > { %v702_v2 = vmul.f32 %v7421_v20, %v685_v23 }
  0xc5   : > { %v676_v59 = vpop.permute.xlu1 %675 }
  0xc6   : > { %v680_v35 = vsel %vm11052_vm7, %v676_v59, %v669_v62  ;;  %v674_v36 = vpop.permute.xlu0 %673  ;;  %v934_v53 = vpack.c.bf16 %v702_v2, %v664_v43 }
  0xc7   : > { %v705_v0 = vmul.f32 %v7424_v21, %v680_v35  ;;  %v678_v37 = vsel %vm11052_vm7, %v672_v58, %v674_v36  ;;  %v679_v3 = vsel %vm11052_vm7, %v674_v36, %v676_v59 }
  0xc8   : > { %v703_v44 = vmul.f32 %v7431_v24, %v678_v37  ;;  %v704_v42 = vmul.f32 %v7434_v25, %v679_v3 }
  0xc9   : > { %v937_v45 = vpack.c.bf16 %v705_v0, %v667_v34 }
  0xca   : > { %v935_v47 = vpack.c.bf16 %v703_v44, %v665_v38  ;;  %v936_v48 = vpack.c.bf16 %v704_v42, %v666_v39 }
  0xcb   : > { %1031 = vmatprep.subr.bf16.mxu1 %v937_v45 }
  0xcc   : > { %990 = vmatprep.subr.bf16.mxu0 %v935_v47  ;;  %1032 = vmatpush1.bf16.msra.mxu1 %v936_v48  ;;  %v1071_v47 = vld [vmem:[%s10948_s6] sm:$0xff] }
  0xcd   : > { %991 = vmatpush1.bf16.msra.mxu0 %v934_v53 }
  0xcf   : > { %6801 = vmatmul.mubr.msk.bf16.vlgmr.msra.gmra.mxu1 %vm11024_vm9, %v624_v57 }
  0xd0   : > { %6799 = vmatmul.mubr.msk.bf16.vlgmr.msra.gmra.mxu0 %vm11024_vm9, %v624_v57  ;;  %1357 = vmatprep.mubr.bf16.mxu1 %v10967_v4 }
  0xd1   : > { %1316 = vmatprep.mubr.bf16.mxu0 %v10967_v4 }
  0xd3   : > { %v957_v58 = vpop.permute.xlu0 %956 }
 0x18f   : > { %v1051_v62 = vpop.f32.mrf.mxu1 }
 0x190   : > { %v1010_v63 = vpop.f32.mrf.mxu0  ;;  %v1052_v23 = vadd.f32 %v1051_v62, %v957_v58 }
 0x191   : > { %v1011_v29 = vadd.f32 %v1010_v63, %v957_v58  ;;  %v1053_v32 = vpop.f32.mrf.mxu1 }
 0x192   : > { %vm1060_vm10 = vcmp.ge.f32.partialorder %v1052_v23, 0.0  ;;  %v1064_v59 = vmul.f32 0.01, %v1052_v23  ;;  %v1012_v33 = vpop.f32.mrf.mxu0  ;;  %v1054_v38 = vadd.f32 %v1053_v32, %v957_v58 }
 0x193   : > { %vm1058_vm11 = vcmp.ge.f32.partialorder %v1011_v29, 0.0  ;;  %v1062_v34 = vmul.f32 0.01, %v1011_v29  ;;  %v1055_v35 = vpop.f32.mrf.mxu1  ;;  %v1013_v39 = vadd.f32 %v1012_v33, %v957_v58 }
 0x194   : > { %v7460_v36 = vsel %vm1060_vm10, %v1052_v23, %v1064_v59  ;;  %v1014_v2 = vpop.f32.mrf.mxu0  ;;  %v1065_v44 = vmul.f32 0.01, %v1054_v38  ;;  %vm1061_vm12 = vcmp.ge.f32.partialorder %v1054_v38, 0.0 }
 0x195   : > { %v7462_v0 = vsel %vm1058_vm11, %v1011_v29, %v1062_v34  ;;  %v1056_v37 = vpop.f32.mrf.mxu1  ;;  %1227 = vrot.lane.b32.xlu0 %v7460_v36, %s11073_s0  ;;  %v1063_v42 = vmul.f32 0.01, %v1013_v39  ;;  %vm1059_vm13 = vcmp.ge.f32.partialorder %v1013_v39, 0.0 }
 0x196   : > { %v1015_v3 = vpop.f32.mrf.mxu0  ;;  %1223 = vrot.lane.b32.xlu1 %v7462_v0, %s11073_s0  ;;  %v7492_v43 = vsel %vm1061_vm12, %v1054_v38, %v1065_v44 }
 0x197   : > { %v7494_v45 = vsel %vm1059_vm13, %v1013_v39, %v1063_v42 }
 0x199   : > { %1181 = vrot.lane.b32.xlu0 %v7462_v0, %s11089_s17 }
 0x19a   : > { %1121 = vrot.lane.b32.xlu1 %v7462_v0, %s10999_s20 }
 0x19d   : > { %1185 = vrot.lane.b32.xlu0 %v7460_v36, %s11089_s17 }
 0x19e   : > { %1125 = vrot.lane.b32.xlu1 %v7460_v36, %s10999_s20 }
 0x1a1   : > { %1202 = vrot.lane.b32.xlu0 %v7462_v0, %s11001_s18 }
 0x1a2   : > { %1142 = vrot.lane.b32.xlu1 %v7462_v0, %s11232_s25 }
 0x1a5   : > { %1206 = vrot.lane.b32.xlu0 %v7460_v36, %s11001_s18 }
 0x1a6   : > { %1146 = vrot.lane.b32.xlu1 %v7460_v36, %s11232_s25 }
 0x1a9   : > { %1160 = vrot.lane.b32.xlu0 %v7462_v0, %s11233_s26 }
 0x1aa   : > { %1079 = vrot.lane.b32.xlu1 %v7462_v0, %s11234_s29 }
 0x1ad   : > { %1164 = vrot.lane.b32.xlu0 %v7460_v36, %s11233_s26 }
 0x1ae   : > { %1083 = vrot.lane.b32.xlu1 %v7460_v36, %s11234_s29 }
 0x1b1   : > { %1118 = vrot.lane.b32.xlu0 %v7492_v43, %s10999_s20 }
 0x1b2   : > { %1225 = vrot.lane.b32.xlu1 %v7494_v45, %s11073_s0 }
 0x1b5   : > { %1123 = vrot.lane.b32.xlu0 %v7494_v45, %s10999_s20 }
 0x1b6   : > { %1229 = vrot.lane.b32.xlu1 %v7492_v43, %s11073_s0 }
 0x1b9   : > { %1139 = vrot.lane.b32.xlu0 %v7492_v43, %s11232_s25 }
 0x1ba   : > { %1183 = vrot.lane.b32.xlu1 %v7494_v45, %s11089_s17 }
 0x1bd   : > { %1144 = vrot.lane.b32.xlu0 %v7494_v45, %s11232_s25 }
 0x1be   : > { %1187 = vrot.lane.b32.xlu1 %v7492_v43, %s11089_s17 }
 0x1c1   : > { %1073 = vrot.lane.b32.xlu0 %v7492_v43, %s11234_s29 }
 0x1c2   : > { %1204 = vrot.lane.b32.xlu1 %v7494_v45, %s11001_s18 }
 0x1c5   : > { %1081 = vrot.lane.b32.xlu0 %v7494_v45, %s11234_s29 }
 0x1c6   : > { %1208 = vrot.lane.b32.xlu1 %v7492_v43, %s11001_s18 }
 0x1c9   : > { %1097 = vrot.lane.b32.xlu0 %v7492_v43, %s11235_s30 }
 0x1ca   : > { %1162 = vrot.lane.b32.xlu1 %v7494_v45, %s11233_s26 }
 0x1cd   : > { %1102 = vrot.lane.b32.xlu0 %v7494_v45, %s11235_s30 }
 0x1ce   : > { %1166 = vrot.lane.b32.xlu1 %v7492_v43, %s11233_s26 }
 0x1d1   : > { %1266 = vperm.xlu0 %6945, %v1071_v47  }
 0x1d2   : > { %1100 = vrot.lane.b32.xlu1 %v7462_v0, %s11235_s30 }
 0x1d6   : > { %1104 = vrot.lane.b32.xlu1 %v7460_v36, %s11235_s30 }
 0x207   : > { %v1228_v48 = vpop.permute.xlu0 %1227 }
 0x208   : > { %v1224_v53 = vpop.permute.xlu1 %1223 }
 0x20b   : > { %v1182_v57 = vpop.permute.xlu0 %1181 }
 0x20c   : > { %v7535_v58 = vpop.permute.xlu1 %1121 }
 0x20f   : > { %v1186_v62 = vpop.permute.xlu0 %1185 }
 0x210   : > { %v7537_v63 = vpop.permute.xlu1 %1125 }
 0x213   : > { %v1203_v23 = vpop.permute.xlu0 %1202 }
 0x214   : > { %v7539_v29 = vpop.permute.xlu1 %1142 }
 0x217   : > { %v1207_v32 = vpop.permute.xlu0 %1206 }
 0x218   : > { %v7541_v59 = vpop.permute.xlu1 %1146 }
 0x21b   : > { %v7543_v33 = vpop.permute.xlu0 %1160 }
 0x21c   : > { %v7545_v34 = vpop.permute.xlu1 %1079 }
 0x21f   : > { %v7547_v35 = vpop.permute.xlu0 %1164 }
 0x220   : > { %v7549_v2 = vpop.permute.xlu1 %1083 }
 0x223   : > { %v7551_v37 = vpop.permute.xlu0 %1118 }
 0x224   : > { %v1226_v3 = vpop.permute.xlu1 %1225 }
 0x225   : > { %v1231_v38 = vsel %vm11172_vm0, %v1224_v53, %v1226_v3  ;;  %v1232_v39 = vsel %vm11172_vm0, %v1226_v3, %v1228_v48 }
 0x226   : > { %v1240_v44 = vmul.f32 %v1231_v38, %v7259_v18  ;;  %v1241_v42 = vmul.f32 %v1232_v39, %v7256_v17 }
 0x227   : > { %v7557_v47 = vpop.permute.xlu0 %1123 }
 0x228   : > { %v1260_v4 = vpack.c.bf16 %v1240_v44, %v1240_v44  ;;  %v1261_v5 = vpack.c.bf16 %v1241_v42, %v1241_v42  ;;  %v1230_v8 = vpop.permute.xlu1 %1229 }
 0x229   : > { %v1233_v60 = vsel %vm11172_vm0, %v1228_v48, %v1230_v8  ;;  %v1239_v40 = vsel %vm11172_vm0, %v1230_v8, %v1224_v53 }
 0x22a   : > { %v1242_v41 = vmul.f32 %v1233_v60, %v7253_v16  ;;  %v1243_v7 = vmul.f32 %v1239_v40, %v7250_v15  ;;  %6802 = vmatprep.subr.msk.bf16.mxu0 %vm11170_vm1, %v1261_v5  ;;  %v1273_v3 = vsel %vm11170_vm1, %v1260_v4, 0 }
 0x22b   : > { %1291 = vmatpush1.bf16.msra.mxu0 %v1273_v3  ;;  %v1140_v38 = vpop.permute.xlu0 %1139 }
 0x22c   : > { %v1262_v39 = vpack.c.bf16 %v1242_v41, %v1242_v41  ;;  %v1263_v17 = vpack.c.bf16 %v1243_v7, %v1243_v7  ;;  %v1184_v18 = vpop.permute.xlu1 %1183 }
 0x22d   : > { %v1189_v60 = vsel %vm828_vm3, %v1182_v57, %v1184_v18  ;;  %v1190_v40 = vsel %vm828_vm3, %v1184_v18, %v1186_v62 }
 0x22e   : > { %6804 = vmatprep.subr.msk.bf16.mxu1 %vm11170_vm1, %v1263_v17  ;;  %v1279_v44 = vsel %vm11170_vm1, %v1262_v39, 0  ;;  %v1198_v7 = vmul.f32 %v1189_v60, %v7315_v56  ;;  %v1199_v17 = vmul.f32 %v1190_v40, %v7296_v49 }
 0x22f   : > { %1332 = vmatpush1.bf16.msra.mxu1 %v1279_v44  ;;  %v1145_v48 = vpop.permute.xlu0 %1144 }
 0x230   : > { %v1188_v8 = vpop.permute.xlu1 %1187 }
 0x231   : > { %v1191_v39 = vsel %vm828_vm3, %v1186_v62, %v1188_v8  ;;  %v1197_v44 = vsel %vm828_vm3, %v1188_v8, %v1182_v57  ;;  %v1148_v57 = vsel %vm11086_vm5, %v7539_v29, %v1145_v48  ;;  %v1134_v62 = vsel %vm11072_vm6, %v7551_v37, %v7535_v58 }
 0x232   : > { %v1200_v60 = vmul.f32 %v1191_v39, %v7305_v52  ;;  %v1201_v40 = vmul.f32 %v1197_v44, %v7292_v46 }
 0x233   : > { %v7569_v53 = vpop.permute.xlu0 %1073 }
 0x234   : > { %v1205_v5 = vpop.permute.xlu1 %1204 }
 0x235   : > { %v1210_v4 = vsel %vm866_vm2, %v1203_v23, %v1205_v5  ;;  %v1211_v41 = vsel %vm866_vm2, %v1205_v5, %v1207_v32 }
 0x236   : > { %v1219_v42 = vmul.f32 %v1210_v4, %v7299_v50  ;;  %v1220_v3 = vmul.f32 %v1211_v41, %v7309_v54 }
 0x237   : > { %v7579_v15 = vpop.permute.xlu0 %1081 }
 0x238   : > { %v1256_v18 = vpack.c.bf16 %v1219_v42, %v1198_v7  ;;  %v1209_v16 = vpop.permute.xlu1 %1208  ;;  %v1257_v21 = vpack.c.bf16 %v1220_v3, %v1199_v17  ;;  %v1150_v17 = vsel %vm11086_vm5, %v7541_v59, %v1140_v38  ;;  %v1157_v42 = vmul.f32 %v1148_v57, %v7391_v13 }
 0x239   : > { %v1212_v25 = vsel %vm866_vm2, %v1207_v32, %v1209_v16  ;;  %v1218_v5 = vsel %vm866_vm2, %v1209_v16, %v1203_v23  ;;  %v1127_v23 = vsel %vm11072_vm6, %v7535_v58, %v7557_v47  ;;  %v1129_v58 = vsel %vm11072_vm6, %v7537_v63, %v7551_v37 }
 0x23a   : > { %v1221_v4 = vmul.f32 %v1212_v25, %v7312_v55  ;;  %v1222_v41 = vmul.f32 %v1218_v5, %v7302_v51  ;;  %1292 = vmatprep.subr.bf16.mxu0 %v1257_v21  ;;  %v1155_v25 = vsel %vm11086_vm5, %v1140_v38, %v7539_v29  ;;  %v1136_v29 = vmul.f32 %v1127_v23, %v7378_v6 }
 0x23b   : > { %1293 = vmatpush1.bf16.msra.mxu0 %v1256_v18  ;;  %v1098_v3 = vpop.permute.xlu0 %1097  ;;  %v1156_v18 = vmul.f32 %v1155_v25, %v7381_v9  ;;  %v1149_v57 = vsel %vm11086_vm5, %v1145_v48, %v7541_v59  ;;  %v1128_v59 = vsel %vm11072_vm6, %v7557_v47, %v7537_v63 }
 0x23c   : > { %v1258_v32 = vpack.c.bf16 %v1221_v4, %v1200_v60  ;;  %v1163_v8 = vpop.permute.xlu1 %1162  ;;  %v1259_v16 = vpack.c.bf16 %v1222_v41, %v1201_v40  ;;  %v1135_v40 = vmul.f32 %v1134_v62, %v7397_v19  ;;  %v1159_v4 = vmul.f32 %v1150_v17, %v7384_v10 }
 0x23d   : > { %v1168_v21 = vsel %vm790_vm4, %v7543_v33, %v1163_v8  ;;  %v1169_v7 = vsel %vm790_vm4, %v1163_v8, %v7547_v35  ;;  %v1249_v8 = vpack.c.bf16 %v1157_v42, %v1136_v29  ;;  %v1092_v62 = vsel %vm11061_vm8, %v7569_v53, %v7545_v34 }
 0x23e   : > { %v1177_v39 = vmul.f32 %v1168_v21, %v7335_v26  ;;  %v1178_v44 = vmul.f32 %v1169_v7, %v7342_v30  ;;  %1333 = vmatprep.subr.bf16.mxu1 %v1259_v16  ;;  %v1158_v21 = vmul.f32 %v1149_v57, %v7394_v14  ;;  %v1093_v42 = vmul.f32 %v1092_v62, %v7437_v27 }
 0x23f   : > { %1334 = vmatpush1.bf16.msra.mxu1 %v1258_v32  ;;  %v1103_v48 = vpop.permute.xlu0 %1102 }
 0x240   : > { %v1252_v5 = vpack.c.bf16 %v1177_v39, %v7462_v0  ;;  %v1167_v38 = vpop.permute.xlu1 %1166  ;;  %v1253_v60 = vpack.c.bf16 %v1178_v44, %v7494_v45  ;;  %v1138_v45 = vmul.f32 %v1129_v58, %v7374_v61  ;;  %v1086_v44 = vsel %vm11061_vm8, %v7579_v15, %v7549_v2 }
 0x241   : > { %v1170_v41 = vsel %vm790_vm4, %v7547_v35, %v1167_v38  ;;  %v1176_v37 = vsel %vm790_vm4, %v1167_v38, %v7543_v33  ;;  %v1085_v35 = vsel %vm11061_vm8, %v7545_v34, %v7579_v15  ;;  %v1248_v33 = vpack.c.bf16 %v1156_v18, %v1135_v40  ;;  %v1070_v15 = vld [vmem:[%s10947_s5] sm:$0xf] }
 0x242   : > { %v1179_v32 = vmul.f32 %v1170_v41, %v7345_v31  ;;  %v1180_v0 = vmul.f32 %v1176_v37, %v7338_v28  ;;  %1294 = vmatprep.subr.bf16.mxu0 %v1253_v60  ;;  %v1251_v34 = vpack.c.bf16 %v1159_v4, %v1138_v45  ;;  %v1094_v39 = vmul.f32 %v1085_v35, %v7418_v12  ;;  %v11237_v37 = vld [vmem:[#allocation35_spill] sm:$0xff] }
 0x243   : > { %1295 = vmatpush1.bf16.msra.mxu0 %v1252_v5  ;;  %v1095_v4 = vmul.f32 %v1086_v44, %v7427_v22  ;;  %v6807_v44 = vld [vmem:[%s10948_s6 + $0x8] sm:$0xff] }
 0x244   : > { %v1254_v16 = vpack.c.bf16 %v1179_v32, %v7460_v36  ;;  %1296 = vmatprep.subr.bf16.mxu0 %v1249_v8  ;;  %v1101_v23 = vpop.permute.xlu1 %1100  ;;  %v1255_v25 = vpack.c.bf16 %v1180_v0, %v7492_v43  ;;  %v1137_v36 = vmul.f32 %v1128_v59, %v7387_v11  ;;  %v1087_v43 = vsel %vm11061_vm8, %v7549_v2, %v7569_v53  ;;  %v11236_v53 = vld [vmem:[#allocation38_spill] sm:$0xff] }
 0x245   : > { %v1106_v7 = vsel %vm11052_vm7, %v1101_v23, %v1103_v48  ;;  %v1113_v17 = vsel %vm11052_vm7, %v1098_v3, %v1101_v23  ;;  %v1096_v40 = vmul.f32 %v1087_v43, %v7414_v1 }
 0x246   : > { %v1114_v63 = vmul.f32 %v1113_v17, %v7421_v20  ;;  %v1115_v47 = vmul.f32 %v1106_v7, %v7431_v24  ;;  %1335 = vmatprep.subr.bf16.mxu1 %v1255_v25  ;;  %v1250_v5 = vpack.c.bf16 %v1158_v21, %v1137_v36 }
 0x247   : > { %1297 = vmatpush1.bf16.msra.mxu0 %v1248_v33  ;;  %1336 = vmatpush1.bf16.msra.mxu1 %v1254_v16 }
 0x248   : > { %v1244_v58 = vpack.c.bf16 %v1114_v63, %v1093_v42  ;;  %1337 = vmatprep.subr.bf16.mxu1 %v1251_v34  ;;  %v1105_v29 = vpop.permute.xlu1 %1104  ;;  %v1245_v18 = vpack.c.bf16 %v1115_v47, %v1094_v39 }
 0x249   : > { %v1107_v38 = vsel %vm11052_vm7, %v1103_v48, %v1105_v29  ;;  %v1108_v60 = vsel %vm11052_vm7, %v1105_v29, %v1098_v3  ;;  %v11238_v3 = vmov 0  }
 0x24a   : > { %v1116_v41 = vmul.f32 %v1107_v38, %v11236_v53  ;;  %v1117_v57 = vmul.f32 %v1108_v60, %v11237_v37  ;;  %1298 = vmatprep.subr.bf16.mxu0 %v1245_v18 }
 0x24b   : > { %1299 = vmatpush1.bf16.msra.mxu0 %v1244_v58  ;;  %1338 = vmatpush1.bf16.msra.mxu1 %v1250_v5 }
 0x24c   : > { %v1246_v2 = vpack.c.bf16 %v1116_v41, %v1095_v4  ;;  %v1247_v32 = vpack.c.bf16 %v1117_v57, %v1096_v40  ;;  %v1267_v0 = vpop.permute.xlu0 %1266 }
 0x24e   : > { %6803 = vmatmul.mubr.msk.bf16.vlgmr.msra.gmra.mxu0 %vm11024_vm9, %v1070_v15  ;;  %1339 = vmatprep.subr.bf16.mxu1 %v1247_v32 }
 0x24f   : > { %1340 = vmatpush1.bf16.msra.mxu1 %v1246_v2  ;;  %1626 = vmatprep.mubr.bf16.mxu0 %v11238_v3 }
 0x252   : > { %6805 = vmatmul.mubr.msk.bf16.vlgmr.msra.gmra.mxu1 %vm11024_vm9, %v1070_v15 }
 0x253   : > { %1667 = vmatprep.mubr.bf16.mxu1 %v11238_v3 }
 0x30e   : > { %v1318_v8 = vpop.f32.mrf.mxu0 }
 0x30f   : > { %v1319_v45 = vadd.f32 %v1318_v8, %v1267_v0 }
 0x310   : > { %v1320_v62 = vpop.f32.mrf.mxu0 }
 0x311   : > { %vm1366_vm14 = vcmp.ge.f32.partialorder %v1319_v45, 0.0  ;;  %v1370_v35 = vmul.f32 0.01, %v1319_v45  ;;  %v1321_v42 = vadd.f32 %v1320_v62, %v1267_v0  ;;  %v11239_v62 = vld [vmem:[#allocation7_spill] sm:$0xff] }
 0x312   : > { %v1322_v59 = vpop.f32.mrf.mxu0  ;;  %v1359_v33 = vpop.f32.mrf.mxu1 }
 0x313   : > { %v7662_v48 = vsel %vm1366_vm14, %v1319_v45, %v1370_v35  ;;  %v1360_v16 = vadd.f32 %v1359_v33, %v1267_v0  ;;  %v1371_v39 = vmul.f32 0.01, %v1321_v42  ;;  %vm1367_vm10 = vcmp.ge.f32.partialorder %v1321_v42, 0.0  ;;  %v11240_v59 = vld [vmem:[#allocation6_spill] sm:$0xff] }
 0x314   : > { %v1323_v23 = vpop.f32.mrf.mxu0  ;;  %1431 = vrot.lane.b32.xlu0 %v7662_v48, %s10999_s20  ;;  %1533 = vrot.lane.b32.xlu1 %v7662_v48, %s11073_s0  ;;  %v1361_v25 = vpop.f32.mrf.mxu1 }
 0x315   : > { %vm1368_vm15 = vcmp.ge.f32.partialorder %v1360_v16, 0.0  ;;  %v1372_v21 = vmul.f32 0.01, %v1360_v16  ;;  %v1362_v63 = vadd.f32 %v1361_v25, %v1267_v0  ;;  %v7690_v47 = vsel %vm1367_vm10, %v1321_v42, %v1371_v39  ;;  %v11241_v42 = vld [vmem:[#allocation5_spill] sm:$0xff] }
 0x316   : > { %v1363_v7 = vpop.f32.mrf.mxu1 }
 0x317   : > { %v7668_v17 = vsel %vm1368_vm15, %v1360_v16, %v1372_v21  ;;  %v1373_v36 = vmul.f32 0.01, %v1362_v63  ;;  %vm1369_vm11 = vcmp.ge.f32.partialorder %v1362_v63, 0.0 }
 0x318   : > { %v1364_v34 = vpop.f32.mrf.mxu1  ;;  %1435 = vrot.lane.b32.xlu0 %v7668_v17, %s10999_s20  ;;  %1537 = vrot.lane.b32.xlu1 %v7668_v17, %s11073_s0 }
 0x319   : > { %v7696_v43 = vsel %vm1369_vm11, %v1362_v63, %v1373_v36  ;;  %v11242_v63 = vld [vmem:[#allocation4_spill] sm:$0xff] }
 0x31c   : > { %1452 = vrot.lane.b32.xlu0 %v7662_v48, %s11232_s25  ;;  %1491 = vrot.lane.b32.xlu1 %v7662_v48, %s11089_s17 }
 0x320   : > { %1456 = vrot.lane.b32.xlu0 %v7668_v17, %s11232_s25  ;;  %1495 = vrot.lane.b32.xlu1 %v7668_v17, %s11089_s17 }
 0x324   : > { %1389 = vrot.lane.b32.xlu0 %v7662_v48, %s11234_s29  ;;  %1512 = vrot.lane.b32.xlu1 %v7662_v48, %s11001_s18 }
 0x328   : > { %1393 = vrot.lane.b32.xlu0 %v7668_v17, %s11234_s29  ;;  %1516 = vrot.lane.b32.xlu1 %v7668_v17, %s11001_s18 }
 0x32c   : > { %1535 = vrot.lane.b32.xlu0 %v7690_v47, %s11073_s0  ;;  %1470 = vrot.lane.b32.xlu1 %v7662_v48, %s11233_s26 }
 0x330   : > { %1539 = vrot.lane.b32.xlu0 %v7696_v43, %s11073_s0  ;;  %1474 = vrot.lane.b32.xlu1 %v7668_v17, %s11233_s26 }
 0x334   : > { %1493 = vrot.lane.b32.xlu0 %v7690_v47, %s11089_s17  ;;  %1428 = vrot.lane.b32.xlu1 %v7696_v43, %s10999_s20 }
 0x338   : > { %1497 = vrot.lane.b32.xlu0 %v7696_v43, %s11089_s17  ;;  %1433 = vrot.lane.b32.xlu1 %v7690_v47, %s10999_s20 }
 0x33c   : > { %1514 = vrot.lane.b32.xlu0 %v7690_v47, %s11001_s18  ;;  %1449 = vrot.lane.b32.xlu1 %v7696_v43, %s11232_s25 }
 0x340   : > { %1518 = vrot.lane.b32.xlu0 %v7696_v43, %s11001_s18  ;;  %1454 = vrot.lane.b32.xlu1 %v7690_v47, %s11232_s25 }
 0x344   : > { %1472 = vrot.lane.b32.xlu0 %v7690_v47, %s11233_s26  ;;  %1383 = vrot.lane.b32.xlu1 %v7696_v43, %s11234_s29 }
 0x348   : > { %1476 = vrot.lane.b32.xlu0 %v7696_v43, %s11233_s26  ;;  %1391 = vrot.lane.b32.xlu1 %v7690_v47, %s11234_s29 }
 0x34c   : > { %1410 = vrot.lane.b32.xlu0 %v7662_v48, %s11235_s30  ;;  %1407 = vrot.lane.b32.xlu1 %v7696_v43, %s11235_s30 }
 0x350   : > { %1414 = vrot.lane.b32.xlu0 %v7668_v17, %s11235_s30  ;;  %1412 = vrot.lane.b32.xlu1 %v7690_v47, %s11235_s30 }
 0x354   : > { %1576 = vperm.xlu1 %6946, %v6807_v44  }
 0x386   : > { %v7737_v58 = vpop.permute.xlu0 %1431  ;;  %v1534_v29 = vpop.permute.xlu1 %1533 }
 0x38a   : > { %v7739_v18 = vpop.permute.xlu0 %1435  ;;  %v1538_v5 = vpop.permute.xlu1 %1537 }
 0x38e   : > { %v7741_v38 = vpop.permute.xlu0 %1452  ;;  %v1492_v60 = vpop.permute.xlu1 %1491 }
 0x392   : > { %v7743_v40 = vpop.permute.xlu0 %1456  ;;  %v1496_v4 = vpop.permute.xlu1 %1495 }
 0x396   : > { %v7745_v41 = vpop.permute.xlu0 %1389  ;;  %v1513_v57 = vpop.permute.xlu1 %1512 }
 0x39a   : > { %v7747_v15 = vpop.permute.xlu0 %1393  ;;  %v1517_v2 = vpop.permute.xlu1 %1516 }
 0x39e   : > { %v1536_v32 = vpop.permute.xlu0 %1535  ;;  %v7749_v0 = vpop.permute.xlu1 %1470 }
 0x39f   : > { %v1541_v8 = vsel %vm11172_vm0, %v1534_v29, %v1536_v32  ;;  %v1542_v45 = vsel %vm11172_vm0, %v1536_v32, %v1538_v5 }
 0x3a0   : > { %v1550_v35 = vmul.f32 %v1541_v8, %v11239_v62  ;;  %v1551_v33 = vmul.f32 %v1542_v45, %v11240_v59 }
 0x3a2   : > { %v1570_v16 = vpack.c.bf16 %v1550_v35, %v1550_v35  ;;  %v1571_v23 = vpack.c.bf16 %v1551_v33, %v1551_v33  ;;  %v1540_v25 = vpop.permute.xlu0 %1539  ;;  %v7755_v21 = vpop.permute.xlu1 %1474 }
 0x3a3   : > { %v1543_v7 = vsel %vm11172_vm0, %v1538_v5, %v1540_v25  ;;  %v1549_v34 = vsel %vm11172_vm0, %v1540_v25, %v1534_v29 }
 0x3a4   : > { %v1552_v39 = vmul.f32 %v1543_v7, %v11241_v42  ;;  %v1553_v36 = vmul.f32 %v1549_v34, %v11242_v63  ;;  %6808 = vmatprep.subr.msk.bf16.mxu0 %vm11170_vm1, %v1571_v23  ;;  %v1583_v44 = vsel %vm11170_vm1, %v1570_v16, 0 }
 0x3a5   : > { %1601 = vmatpush1.bf16.msra.mxu0 %v1583_v44 }
 0x3a6   : > { %v1572_v32 = vpack.c.bf16 %v1552_v39, %v1552_v39  ;;  %v1573_v8 = vpack.c.bf16 %v1553_v36, %v1553_v36  ;;  %v1494_v45 = vpop.permute.xlu0 %1493  ;;  %v1429_v35 = vpop.permute.xlu1 %1428 }
 0x3a7   : > { %v1499_v25 = vsel %vm828_vm3, %v1492_v60, %v1494_v45  ;;  %v1500_v7 = vsel %vm828_vm3, %v1494_v45, %v1496_v4 }
 0x3a8   : > { %6810 = vmatprep.subr.msk.bf16.mxu1 %vm11170_vm1, %v1573_v8  ;;  %v1589_v33 = vsel %vm11170_vm1, %v1572_v32, 0  ;;  %v1508_v36 = vmul.f32 %v1499_v25, %v7315_v56  ;;  %v1509_v44 = vmul.f32 %v1500_v7, %v7296_v49 }
 0x3a9   : > { %1642 = vmatpush1.bf16.msra.mxu1 %v1589_v33 }
 0x3aa   : > { %v1498_v5 = vpop.permute.xlu0 %1497  ;;  %v1434_v29 = vpop.permute.xlu1 %1433 }
 0x3ab   : > { %v1501_v33 = vsel %vm828_vm3, %v1496_v4, %v1498_v5  ;;  %v1507_v63 = vsel %vm828_vm3, %v1498_v5, %v1492_v60 }
 0x3ac   : > { %v1510_v25 = vmul.f32 %v1501_v33, %v7305_v52  ;;  %v1511_v7 = vmul.f32 %v1507_v63, %v7292_v46 }
 0x3ae   : > { %v1515_v34 = vpop.permute.xlu0 %1514  ;;  %v1450_v23 = vpop.permute.xlu1 %1449 }
 0x3af   : > { %v1520_v16 = vsel %vm866_vm2, %v1513_v57, %v1515_v34  ;;  %v1521_v39 = vsel %vm866_vm2, %v1515_v34, %v1517_v2  ;;  %v1460_v33 = vsel %vm11086_vm5, %v7743_v40, %v1450_v23 }
 0x3b0   : > { %v1529_v8 = vmul.f32 %v1520_v16, %v7299_v50  ;;  %v1530_v32 = vmul.f32 %v1521_v39, %v7309_v54 }
 0x3b2   : > { %v1566_v42 = vpack.c.bf16 %v1529_v8, %v1508_v36  ;;  %v1519_v45 = vpop.permute.xlu0 %1518  ;;  %v1455_v59 = vpop.permute.xlu1 %1454  ;;  %v1567_v62 = vpack.c.bf16 %v1530_v32, %v1509_v44  ;;  %v1439_v32 = vsel %vm11072_vm6, %v7739_v18, %v1429_v35 }
 0x3b3   : > { %v1522_v3 = vsel %vm866_vm2, %v1517_v2, %v1519_v45  ;;  %v1528_v34 = vsel %vm866_vm2, %v1519_v45, %v1513_v57  ;;  %v1458_v60 = vsel %vm11086_vm5, %v7741_v38, %v1455_v59  ;;  %v1437_v57 = vsel %vm11072_vm6, %v7737_v58, %v1434_v29 }
 0x3b4   : > { %v1531_v16 = vmul.f32 %v1522_v3, %v7312_v55  ;;  %v1532_v39 = vmul.f32 %v1528_v34, %v7302_v51  ;;  %1602 = vmatprep.subr.bf16.mxu0 %v1567_v62  ;;  %v1465_v62 = vsel %vm11086_vm5, %v1450_v23, %v7741_v38  ;;  %v1467_v63 = vmul.f32 %v1458_v60, %v7391_v13 }
 0x3b5   : > { %1603 = vmatpush1.bf16.msra.mxu0 %v1566_v42  ;;  %v1444_v45 = vsel %vm11072_vm6, %v1429_v35, %v7737_v58  ;;  %v1446_v34 = vmul.f32 %v1437_v57, %v7378_v6  ;;  %v1459_v60 = vsel %vm11086_vm5, %v1455_v59, %v7743_v40  ;;  %v1469_v58 = vmul.f32 %v1460_v33, %v7384_v10 }
 0x3b6   : > { %v1568_v4 = vpack.c.bf16 %v1531_v16, %v1510_v25  ;;  %v1473_v5 = vpop.permute.xlu0 %1472  ;;  %v1384_v36 = vpop.permute.xlu1 %1383  ;;  %v1569_v44 = vpack.c.bf16 %v1532_v39, %v1511_v7  ;;  %v1466_v39 = vmul.f32 %v1465_v62, %v7381_v9  ;;  %v1448_v40 = vmul.f32 %v1439_v32, %v7374_v61 }
 0x3b7   : > { %v1478_v2 = vsel %vm790_vm4, %v7749_v0, %v1473_v5  ;;  %v1479_v3 = vsel %vm790_vm4, %v1473_v5, %v7755_v21  ;;  %v1559_v5 = vpack.c.bf16 %v1467_v63, %v1446_v34  ;;  %v1468_v59 = vmul.f32 %v1459_v60, %v7394_v14 }
 0x3b8   : > { %v1487_v42 = vmul.f32 %v1478_v2, %v7335_v26  ;;  %v1488_v8 = vmul.f32 %v1479_v3, %v7342_v30  ;;  %1643 = vmatprep.subr.bf16.mxu1 %v1569_v44  ;;  %v1438_v44 = vsel %vm11072_vm6, %v1434_v29, %v7739_v18  ;;  %v1397_v62 = vsel %vm11061_vm8, %v7747_v15, %v1384_v36 }
 0x3b9   : > { %1644 = vmatpush1.bf16.msra.mxu1 %v1568_v4  ;;  %v1447_v18 = vmul.f32 %v1438_v44, %v7387_v11  ;;  %v1406_v32 = vmul.f32 %v1397_v62, %v7414_v1 }
 0x3ba   : > { %v1562_v38 = vpack.c.bf16 %v1487_v42, %v7662_v48  ;;  %v1477_v25 = vpop.permute.xlu0 %1476  ;;  %v1392_v7 = vpop.permute.xlu1 %1391  ;;  %v1563_v16 = vpack.c.bf16 %v1488_v8, %v7690_v47  ;;  %v1445_v47 = vmul.f32 %v1444_v45, %v7397_v19  ;;  %v1561_v42 = vpack.c.bf16 %v1469_v58, %v1448_v40 }
 0x3bb   : > { %v1480_v23 = vsel %vm790_vm4, %v7755_v21, %v1477_v25  ;;  %v1486_v4 = vsel %vm790_vm4, %v1477_v25, %v7749_v0  ;;  %v1395_v63 = vsel %vm11061_vm8, %v7745_v41, %v1392_v7  ;;  %v1560_v8 = vpack.c.bf16 %v1468_v59, %v1447_v18 }
 0x3bc   : > { %v1489_v35 = vmul.f32 %v1480_v23, %v7345_v31  ;;  %v1490_v48 = vmul.f32 %v1486_v4, %v7338_v28  ;;  %1604 = vmatprep.subr.bf16.mxu0 %v1563_v16  ;;  %v1558_v3 = vpack.c.bf16 %v1466_v39, %v1445_v47  ;;  %v1404_v33 = vmul.f32 %v1395_v63, %v7418_v12 }
 0x3bd   : > { %1605 = vmatpush1.bf16.msra.mxu0 %v1562_v38 }
 0x3be   : > { %v1564_v0 = vpack.c.bf16 %v1489_v35, %v7668_v17  ;;  %v1411_v21 = vpop.permute.xlu0 %1410  ;;  %1606 = vmatprep.subr.bf16.mxu0 %v1559_v5  ;;  %v1408_v57 = vpop.permute.xlu1 %1407  ;;  %v1565_v2 = vpack.c.bf16 %v1490_v48, %v7696_v43  ;;  %v1396_v17 = vsel %vm11061_vm8, %v1392_v7, %v7747_v15  ;;  %v1402_v43 = vsel %vm11061_vm8, %v1384_v36, %v7745_v41  ;;  %v6806_v48 = vld [vmem:[%s10947_s5 + $0x4] sm:$0xf] }
 0x3bf   : > { %v1423_v29 = vsel %vm11052_vm7, %v1408_v57, %v1411_v21  ;;  %v1405_v7 = vmul.f32 %v1396_v17, %v7427_v22  ;;  %v1403_v60 = vmul.f32 %v1402_v43, %v7437_v27  ;;  %v11243_v5 = vmov 0  }
 0x3c0   : > { %1645 = vmatprep.subr.bf16.mxu1 %v1565_v2  ;;  %v1424_v38 = vmul.f32 %v1423_v29, %v7421_v20 }
 0x3c1   : > { %1607 = vmatpush1.bf16.msra.mxu0 %v1558_v3  ;;  %1646 = vmatpush1.bf16.msra.mxu1 %v1564_v0 }
 0x3c2   : > { %v1415_v45 = vpop.permute.xlu0 %1414  ;;  %1647 = vmatprep.subr.bf16.mxu1 %v1561_v42  ;;  %v1413_v34 = vpop.permute.xlu1 %1412  ;;  %v1554_v35 = vpack.c.bf16 %v1424_v38, %v1403_v60  ;;  %v6813_v42 = vld [vmem:[%s10948_s6 + $0x10] sm:$0xff] }
 0x3c3   : > { %v1418_v25 = vsel %vm11052_vm7, %v1415_v45, %v1408_v57  ;;  %v1416_v16 = vsel %vm11052_vm7, %v1411_v21, %v1413_v34  ;;  %v1417_v15 = vsel %vm11052_vm7, %v1413_v34, %v1415_v45 }
 0x3c4   : > { %v1427_v39 = vmul.f32 %v1418_v25, %v11237_v37  ;;  %v1425_v41 = vmul.f32 %v1416_v16, %v7431_v24  ;;  %v1426_v36 = vmul.f32 %v1417_v15, %v11236_v53 }
 0x3c5   : > { %1648 = vmatpush1.bf16.msra.mxu1 %v1560_v8 }
 0x3c6   : > { %v1556_v23 = vpack.c.bf16 %v1426_v36, %v1405_v7  ;;  %v1555_v4 = vpack.c.bf16 %v1425_v41, %v1404_v33  ;;  %v1557_v58 = vpack.c.bf16 %v1427_v39, %v1406_v32 }
 0x3c8   : > { %1608 = vmatprep.subr.bf16.mxu0 %v1555_v4  ;;  %1649 = vmatprep.subr.bf16.mxu1 %v1557_v58  ;;  %v11245_v58 = vld [vmem:[#allocation6_spill] sm:$0xff] }
 0x3c9   : > { %1609 = vmatpush1.bf16.msra.mxu0 %v1554_v35  ;;  %1650 = vmatpush1.bf16.msra.mxu1 %v1556_v23  ;;  %v11244_v23 = vld [vmem:[#allocation7_spill] sm:$0xff] }
 0x3cc   : > { %6809 = vmatmul.mubr.msk.bf16.vlgmr.msra.gmra.mxu0 %vm11024_vm9, %v6806_v48  ;;  %6811 = vmatmul.mubr.msk.bf16.vlgmr.msra.gmra.mxu1 %vm11024_vm9, %v6806_v48 }
 0x3cd   : > { %1924 = vmatprep.mubr.bf16.mxu0 %v11243_v5  ;;  %1965 = vmatprep.mubr.bf16.mxu1 %v11243_v5 }
 0x3cf   : > { %v1577_v47 = vpop.permute.xlu1 %1576 }
 0x48c   : > { %v1628_v44 = vpop.f32.mrf.mxu0  ;;  %v1669_v40 = vpop.f32.mrf.mxu1 }
 0x48d   : > { %v7848_v59 = vadd.f32 %v1628_v44, %v1577_v47  ;;  %v7854_v3 = vadd.f32 %v1669_v40, %v1577_v47 }
 0x48e   : > { %v1630_v0 = vpop.f32.mrf.mxu0  ;;  %v1671_v21 = vpop.f32.mrf.mxu1 }
 0x48f   : > { %1729 = vrot.lane.b32.xlu1 %v7848_v59, %s10999_s20  ;;  %1831 = vrot.lane.b32.xlu0 %v7848_v59, %s11073_s0  ;;  %v7876_v18 = vadd.f32 %v1630_v0, %v1577_v47  ;;  %v7882_v29 = vadd.f32 %v1671_v21, %v1577_v47 }
 0x490   : > { %v1632_v57 = vpop.f32.mrf.mxu0  ;;  %v1673_v2 = vpop.f32.mrf.mxu1 }
 0x491   : > { %v11246_v57 = vld [vmem:[#allocation5_spill] sm:$0xff] }
 0x492   : > { %v1633_v62 = vpop.f32.mrf.mxu0  ;;  %v1674_v63 = vpop.f32.mrf.mxu1 }
 0x493   : > { %1733 = vrot.lane.b32.xlu1 %v7854_v3, %s10999_s20  ;;  %1835 = vrot.lane.b32.xlu0 %v7854_v3, %s11073_s0  ;;  %v11247_v62 = vld [vmem:[#allocation4_spill] sm:$0xff] }
 0x497   : > { %1750 = vrot.lane.b32.xlu1 %v7848_v59, %s11232_s25  ;;  %1789 = vrot.lane.b32.xlu0 %v7848_v59, %s11089_s17 }
 0x49b   : > { %1754 = vrot.lane.b32.xlu1 %v7854_v3, %s11232_s25  ;;  %1793 = vrot.lane.b32.xlu0 %v7854_v3, %s11089_s17 }
 0x49f   : > { %1687 = vrot.lane.b32.xlu1 %v7848_v59, %s11234_s29  ;;  %1810 = vrot.lane.b32.xlu0 %v7848_v59, %s11001_s18 }
 0x4a3   : > { %1691 = vrot.lane.b32.xlu1 %v7854_v3, %s11234_s29  ;;  %1814 = vrot.lane.b32.xlu0 %v7854_v3, %s11001_s18 }
 0x4a7   : > { %1833 = vrot.lane.b32.xlu1 %v7876_v18, %s11073_s0  ;;  %1768 = vrot.lane.b32.xlu0 %v7848_v59, %s11233_s26 }
 0x4ab   : > { %1837 = vrot.lane.b32.xlu1 %v7882_v29, %s11073_s0  ;;  %1772 = vrot.lane.b32.xlu0 %v7854_v3, %s11233_s26 }
 0x4af   : > { %1791 = vrot.lane.b32.xlu1 %v7876_v18, %s11089_s17  ;;  %1726 = vrot.lane.b32.xlu0 %v7882_v29, %s10999_s20 }
 0x4b3   : > { %1795 = vrot.lane.b32.xlu1 %v7882_v29, %s11089_s17  ;;  %1731 = vrot.lane.b32.xlu0 %v7876_v18, %s10999_s20 }
 0x4b7   : > { %1812 = vrot.lane.b32.xlu1 %v7876_v18, %s11001_s18  ;;  %1747 = vrot.lane.b32.xlu0 %v7882_v29, %s11232_s25 }
 0x4bb   : > { %1816 = vrot.lane.b32.xlu1 %v7882_v29, %s11001_s18  ;;  %1752 = vrot.lane.b32.xlu0 %v7876_v18, %s11232_s25 }
 0x4bf   : > { %1770 = vrot.lane.b32.xlu1 %v7876_v18, %s11233_s26  ;;  %1681 = vrot.lane.b32.xlu0 %v7882_v29, %s11234_s29 }
 0x4c3   : > { %1774 = vrot.lane.b32.xlu1 %v7882_v29, %s11233_s26  ;;  %1689 = vrot.lane.b32.xlu0 %v7876_v18, %s11234_s29 }
 0x4c7   : > { %1708 = vrot.lane.b32.xlu1 %v7848_v59, %s11235_s30  ;;  %1705 = vrot.lane.b32.xlu0 %v7882_v29, %s11235_s30 }
 0x4cb   : > { %1712 = vrot.lane.b32.xlu1 %v7854_v3, %s11235_s30  ;;  %1710 = vrot.lane.b32.xlu0 %v7876_v18, %s11235_s30 }
 0x4cf   : > { %1874 = vperm.xlu0 %6945, %v6813_v42  }
 0x501   : > { %v7923_v17 = vpop.permute.xlu1 %1729  ;;  %v1832_v8 = vpop.permute.xlu0 %1831 }
 0x505   : > { %v7925_v43 = vpop.permute.xlu1 %1733  ;;  %v1836_v32 = vpop.permute.xlu0 %1835 }
 0x509   : > { %v7927_v33 = vpop.permute.xlu1 %1750  ;;  %v1790_v45 = vpop.permute.xlu0 %1789 }
 0x50d   : > { %v7929_v34 = vpop.permute.xlu1 %1754  ;;  %v1794_v38 = vpop.permute.xlu0 %1793 }
 0x511   : > { %v7931_v25 = vpop.permute.xlu1 %1687  ;;  %v1811_v16 = vpop.permute.xlu0 %1810 }
 0x515   : > { %v7933_v15 = vpop.permute.xlu1 %1691  ;;  %v1815_v7 = vpop.permute.xlu0 %1814 }
 0x519   : > { %v1834_v39 = vpop.permute.xlu1 %1833  ;;  %v7935_v41 = vpop.permute.xlu0 %1768 }
 0x51a   : > { %v1839_v36 = vsel %vm11172_vm0, %v1832_v8, %v1834_v39  ;;  %v1840_v60 = vsel %vm11172_vm0, %v1834_v39, %v1836_v32 }
 0x51b   : > { %v1848_v4 = vmul.f32 %v1839_v36, %v11244_v23  ;;  %v1849_v35 = vmul.f32 %v1840_v60, %v11245_v58 }
 0x51d   : > { %v1868_v48 = vpack.c.bf16 %v1848_v4, %v1848_v4  ;;  %v1869_v47 = vpack.c.bf16 %v1849_v35, %v1849_v35  ;;  %v1838_v44 = vpop.permute.xlu1 %1837  ;;  %v7941_v40 = vpop.permute.xlu0 %1772 }
 0x51e   : > { %v1841_v0 = vsel %vm11172_vm0, %v1836_v32, %v1838_v44  ;;  %v1847_v21 = vsel %vm11172_vm0, %v1838_v44, %v1832_v8 }
 0x51f   : > { %v1850_v2 = vmul.f32 %v1841_v0, %v11246_v57  ;;  %v1851_v63 = vmul.f32 %v1847_v21, %v11247_v62  ;;  %6814 = vmatprep.subr.msk.bf16.mxu0 %vm11170_vm1, %v1869_v47  ;;  %v1881_v42 = vsel %vm11170_vm1, %v1868_v48, 0 }
 0x520   : > { %1899 = vmatpush1.bf16.msra.mxu0 %v1881_v42 }
 0x521   : > { %v1870_v39 = vpack.c.bf16 %v1850_v2, %v1850_v2  ;;  %v1871_v36 = vpack.c.bf16 %v1851_v63, %v1851_v63  ;;  %v1792_v60 = vpop.permute.xlu1 %1791  ;;  %v1727_v4 = vpop.permute.xlu0 %1726 }
 0x522   : > { %v1797_v44 = vsel %vm828_vm3, %v1790_v45, %v1792_v60  ;;  %v1798_v0 = vsel %vm828_vm3, %v1792_v60, %v1794_v38 }
 0x523   : > { %6816 = vmatprep.subr.msk.bf16.mxu1 %vm11170_vm1, %v1871_v36  ;;  %v1887_v35 = vsel %vm11170_vm1, %v1870_v39, 0  ;;  %v1806_v63 = vmul.f32 %v1797_v44, %v7315_v56  ;;  %v1807_v42 = vmul.f32 %v1798_v0, %v7296_v49 }
 0x524   : > { %1940 = vmatpush1.bf16.msra.mxu1 %v1887_v35 }
 0x525   : > { %v1796_v32 = vpop.permute.xlu1 %1795  ;;  %v1732_v8 = vpop.permute.xlu0 %1731 }
 0x526   : > { %v1799_v35 = vsel %vm828_vm3, %v1794_v38, %v1796_v32  ;;  %v1805_v62 = vsel %vm828_vm3, %v1796_v32, %v1790_v45 }
 0x527   : > { %v1808_v44 = vmul.f32 %v1799_v35, %v7305_v52  ;;  %v1809_v0 = vmul.f32 %v1805_v62, %v7292_v46 }
 0x529   : > { %v1813_v21 = vpop.permute.xlu1 %1812  ;;  %v1748_v47 = vpop.permute.xlu0 %1747 }
 0x52a   : > { %v1818_v48 = vsel %vm866_vm2, %v1811_v16, %v1813_v21  ;;  %v1819_v2 = vsel %vm866_vm2, %v1813_v21, %v1815_v7  ;;  %v1758_v35 = vsel %vm11086_vm5, %v7929_v34, %v1748_v47 }
 0x52b   : > { %v1827_v36 = vmul.f32 %v1818_v48, %v7299_v50  ;;  %v1828_v39 = vmul.f32 %v1819_v2, %v7309_v54 }
 0x52d   : > { %v1864_v57 = vpack.c.bf16 %v1827_v36, %v1806_v63  ;;  %v1817_v60 = vpop.permute.xlu1 %1816  ;;  %v1753_v58 = vpop.permute.xlu0 %1752  ;;  %v1865_v23 = vpack.c.bf16 %v1828_v39, %v1807_v42  ;;  %v1737_v39 = vsel %vm11072_vm6, %v7925_v43, %v1727_v4 }
 0x52e   : > { %v1820_v5 = vsel %vm866_vm2, %v1815_v7, %v1817_v60  ;;  %v1826_v21 = vsel %vm866_vm2, %v1817_v60, %v1811_v16  ;;  %v1756_v45 = vsel %vm11086_vm5, %v7927_v33, %v1753_v58  ;;  %v1735_v16 = vsel %vm11072_vm6, %v7923_v17, %v1732_v8 }
 0x52f   : > { %v1829_v48 = vmul.f32 %v1820_v5, %v7312_v55  ;;  %v1830_v2 = vmul.f32 %v1826_v21, %v7302_v51  ;;  %1900 = vmatprep.subr.bf16.mxu0 %v1865_v23  ;;  %v1763_v23 = vsel %vm11086_vm5, %v1748_v47, %v7927_v33  ;;  %v1765_v62 = vmul.f32 %v1756_v45, %v7391_v13 }
 0x530   : > { %1901 = vmatpush1.bf16.msra.mxu0 %v1864_v57  ;;  %v1742_v60 = vsel %vm11072_vm6, %v1727_v4, %v7923_v17  ;;  %v1744_v21 = vmul.f32 %v1735_v16, %v7378_v6  ;;  %v1757_v45 = vsel %vm11086_vm5, %v1753_v58, %v7929_v34  ;;  %v1767_v17 = vmul.f32 %v1758_v35, %v7384_v10 }
 0x531   : > { %v1866_v38 = vpack.c.bf16 %v1829_v48, %v1808_v44  ;;  %v1771_v32 = vpop.permute.xlu1 %1770  ;;  %v1682_v63 = vpop.permute.xlu0 %1681  ;;  %v1867_v42 = vpack.c.bf16 %v1830_v2, %v1809_v0  ;;  %v1764_v2 = vmul.f32 %v1763_v23, %v7381_v9  ;;  %v1746_v34 = vmul.f32 %v1737_v39, %v7374_v61 }
 0x532   : > { %v1776_v7 = vsel %vm790_vm4, %v7935_v41, %v1771_v32  ;;  %v1777_v5 = vsel %vm790_vm4, %v1771_v32, %v7941_v40  ;;  %v1857_v32 = vpack.c.bf16 %v1765_v62, %v1744_v21  ;;  %v1766_v58 = vmul.f32 %v1757_v45, %v7394_v14 }
 0x533   : > { %v1785_v57 = vmul.f32 %v1776_v7, %v7335_v26  ;;  %v1786_v36 = vmul.f32 %v1777_v5, %v7342_v30  ;;  %1941 = vmatprep.subr.bf16.mxu1 %v1867_v42  ;;  %v1736_v42 = vsel %vm11072_vm6, %v1732_v8, %v7925_v43  ;;  %v1695_v23 = vsel %vm11061_vm8, %v7933_v15, %v1682_v63 }
 0x534   : > { %1942 = vmatpush1.bf16.msra.mxu1 %v1866_v38  ;;  %v1745_v43 = vmul.f32 %v1736_v42, %v7387_v11  ;;  %v1704_v39 = vmul.f32 %v1695_v23, %v7414_v1 }
 0x535   : > { %v1860_v33 = vpack.c.bf16 %v1785_v57, %v7848_v59  ;;  %v1775_v44 = vpop.permute.xlu1 %1774  ;;  %v1690_v0 = vpop.permute.xlu0 %1689  ;;  %v1861_v48 = vpack.c.bf16 %v1786_v36, %v7876_v18  ;;  %v1743_v18 = vmul.f32 %v1742_v60, %v7397_v19  ;;  %v1859_v57 = vpack.c.bf16 %v1767_v17, %v1746_v34 }
 0x536   : > { %v1778_v47 = vsel %vm790_vm4, %v7941_v40, %v1775_v44  ;;  %v1784_v38 = vsel %vm790_vm4, %v1775_v44, %v7935_v41  ;;  %v1693_v62 = vsel %vm11061_vm8, %v7931_v25, %v1690_v0  ;;  %v1858_v36 = vpack.c.bf16 %v1766_v58, %v1745_v43 }
 0x537   : > { %v1787_v4 = vmul.f32 %v1778_v47, %v7345_v31  ;;  %v1788_v59 = vmul.f32 %v1784_v38, %v7338_v28  ;;  %1902 = vmatprep.subr.bf16.mxu0 %v1861_v48  ;;  %v1856_v5 = vpack.c.bf16 %v1764_v2, %v1743_v18  ;;  %v1702_v35 = vmul.f32 %v1693_v62, %v7418_v12 }
 0x538   : > { %1903 = vmatpush1.bf16.msra.mxu0 %v1860_v33 }
 0x539   : > { %v1862_v41 = vpack.c.bf16 %v1787_v4, %v7854_v3  ;;  %v1709_v40 = vpop.permute.xlu1 %1708  ;;  %1904 = vmatprep.subr.bf16.mxu0 %v1857_v32  ;;  %v1706_v16 = vpop.permute.xlu0 %1705  ;;  %v1863_v7 = vpack.c.bf16 %v1788_v59, %v7882_v29  ;;  %v1694_v3 = vsel %vm11061_vm8, %v1690_v0, %v7933_v15  ;;  %v1700_v29 = vsel %vm11061_vm8, %v1682_v63, %v7931_v25  ;;  %v6812_v59 = vld [vmem:[%s10947_s5 + $0x8] sm:$0xf] }
 0x53a   : > { %v1721_v8 = vsel %vm11052_vm7, %v1706_v16, %v1709_v40  ;;  %v1703_v0 = vmul.f32 %v1694_v3, %v7427_v22  ;;  %v1701_v45 = vmul.f32 %v1700_v29, %v7437_v27  ;;  %v11248_v32 = vmov 0  }
 0x53b   : > { %1943 = vmatprep.subr.bf16.mxu1 %v1863_v7  ;;  %v1722_v33 = vmul.f32 %v1721_v8, %v7421_v20 }
 0x53c   : > { %1905 = vmatpush1.bf16.msra.mxu0 %v1856_v5  ;;  %1944 = vmatpush1.bf16.msra.mxu1 %v1862_v41 }
 0x53d   : > { %v1713_v60 = vpop.permute.xlu1 %1712  ;;  %1945 = vmatprep.subr.bf16.mxu1 %v1859_v57  ;;  %v1711_v21 = vpop.permute.xlu0 %1710  ;;  %v1852_v4 = vpack.c.bf16 %v1722_v33, %v1701_v45  ;;  %v6819_v33 = vld [vmem:[%s10948_s6 + $0x18] sm:$0xff] }
 0x53e   : > { %v1716_v44 = vsel %vm11052_vm7, %v1713_v60, %v1706_v16  ;;  %v1714_v48 = vsel %vm11052_vm7, %v1709_v40, %v1711_v21  ;;  %v1715_v15 = vsel %vm11052_vm7, %v1711_v21, %v1713_v60 }
 0x53f   : > { %v1725_v2 = vmul.f32 %v1716_v44, %v11237_v37  ;;  %v1723_v25 = vmul.f32 %v1714_v48, %v7431_v24  ;;  %v1724_v63 = vmul.f32 %v1715_v15, %v11236_v53 }
 0x540   : > { %1946 = vmatpush1.bf16.msra.mxu1 %v1858_v36 }
 0x541   : > { %v1854_v47 = vpack.c.bf16 %v1724_v63, %v1703_v0  ;;  %v1853_v38 = vpack.c.bf16 %v1723_v25, %v1702_v35  ;;  %v1855_v17 = vpack.c.bf16 %v1725_v2, %v1704_v39 }
 0x543   : > { %1906 = vmatprep.subr.bf16.mxu0 %v1853_v38  ;;  %1947 = vmatprep.subr.bf16.mxu1 %v1855_v17 }
 0x544   : > { %1907 = vmatpush1.bf16.msra.mxu0 %v1852_v4  ;;  %1948 = vmatpush1.bf16.msra.mxu1 %v1854_v47 }
 0x547   : > { %6815 = vmatmul.mubr.msk.bf16.vlgmr.msra.gmra.mxu0 %vm11024_vm9, %v6812_v59  ;;  %6817 = vmatmul.mubr.msk.bf16.vlgmr.msra.gmra.mxu1 %vm11024_vm9, %v6812_v59 }
 0x548   : > { %2234 = vmatprep.mubr.bf16.mxu0 %v11248_v32  ;;  %2275 = vmatprep.mubr.bf16.mxu1 %v11248_v32 }
 0x54a   : > { %v1875_v18 = vpop.permute.xlu0 %1874 }
 0x607   : > { %v1926_v42 = vpop.f32.mrf.mxu0  ;;  %v1967_v34 = vpop.f32.mrf.mxu1 }
 0x608   : > { %v1927_v58 = vadd.f32 %v1926_v42, %v1875_v18  ;;  %v1968_v41 = vadd.f32 %v1967_v34, %v1875_v18 }
 0x609   : > { %v1928_v40 = vpop.f32.mrf.mxu0  ;;  %v1969_v16 = vpop.f32.mrf.mxu1 }
 0x60a   : > { %vm1974_vm12 = vcmp.ge.f32.partialorder %v1927_v58, 0.0  ;;  %v1978_v7 = vmul.f32 0.01, %v1927_v58  ;;  %v1980_v43 = vmul.f32 0.01, %v1968_v41  ;;  %vm1976_vm13 = vcmp.ge.f32.partialorder %v1968_v41, 0.0 }
 0x60b   : > { %v1930_v5 = vpop.f32.mrf.mxu0  ;;  %v1971_v23 = vpop.f32.mrf.mxu1  ;;  %v1929_v36 = vadd.f32 %v1928_v40, %v1875_v18  ;;  %v1970_v39 = vadd.f32 %v1969_v16, %v1875_v18  ;;  %v11250_v40 = vld [vmem:[#allocation6_spill] sm:$0xff] }
 0x60c   : > { %v8034_v62 = vsel %vm1974_vm12, %v1927_v58, %v1978_v7  ;;  %v8040_v3 = vsel %vm1976_vm13, %v1968_v41, %v1980_v43  ;;  %v11249_v58 = vld [vmem:[#allocation7_spill] sm:$0xff] }
 0x60d   : > { %v1931_v8 = vpop.f32.mrf.mxu0  ;;  %v1972_v57 = vpop.f32.mrf.mxu1  ;;  %2039 = vrot.lane.b32.xlu0 %v8034_v62, %s10999_s20  ;;  %2141 = vrot.lane.b32.xlu1 %v8034_v62, %s11073_s0  ;;  %v1979_v29 = vmul.f32 0.01, %v1929_v36  ;;  %vm1975_vm14 = vcmp.ge.f32.partialorder %v1929_v36, 0.0  ;;  %v1981_v60 = vmul.f32 0.01, %v1970_v39  ;;  %vm1977_vm15 = vcmp.ge.f32.partialorder %v1970_v39, 0.0 }
 0x60f   : > { %v8062_v35 = vsel %vm1975_vm14, %v1929_v36, %v1979_v29  ;;  %v8068_v21 = vsel %vm1977_vm15, %v1970_v39, %v1981_v60  ;;  %v11251_v36 = vld [vmem:[#allocation5_spill] sm:$0xff]  ;;  %v11252_v39 = vld [vmem:[#allocation4_spill] sm:$0xff] }
 0x611   : > { %2043 = vrot.lane.b32.xlu0 %v8040_v3, %s10999_s20  ;;  %2145 = vrot.lane.b32.xlu1 %v8040_v3, %s11073_s0 }
 0x615   : > { %2060 = vrot.lane.b32.xlu0 %v8034_v62, %s11232_s25  ;;  %2099 = vrot.lane.b32.xlu1 %v8034_v62, %s11089_s17 }
 0x619   : > { %2064 = vrot.lane.b32.xlu0 %v8040_v3, %s11232_s25  ;;  %2103 = vrot.lane.b32.xlu1 %v8040_v3, %s11089_s17 }
 0x61d   : > { %1997 = vrot.lane.b32.xlu0 %v8034_v62, %s11234_s29  ;;  %2120 = vrot.lane.b32.xlu1 %v8034_v62, %s11001_s18 }
 0x621   : > { %2001 = vrot.lane.b32.xlu0 %v8040_v3, %s11234_s29  ;;  %2124 = vrot.lane.b32.xlu1 %v8040_v3, %s11001_s18 }
 0x625   : > { %2143 = vrot.lane.b32.xlu0 %v8062_v35, %s11073_s0  ;;  %2078 = vrot.lane.b32.xlu1 %v8034_v62, %s11233_s26 }
 0x629   : > { %2147 = vrot.lane.b32.xlu0 %v8068_v21, %s11073_s0  ;;  %2082 = vrot.lane.b32.xlu1 %v8040_v3, %s11233_s26 }
 0x62d   : > { %2101 = vrot.lane.b32.xlu0 %v8062_v35, %s11089_s17  ;;  %2036 = vrot.lane.b32.xlu1 %v8068_v21, %s10999_s20 }
 0x631   : > { %2105 = vrot.lane.b32.xlu0 %v8068_v21, %s11089_s17  ;;  %2041 = vrot.lane.b32.xlu1 %v8062_v35, %s10999_s20 }
 0x635   : > { %2122 = vrot.lane.b32.xlu0 %v8062_v35, %s11001_s18  ;;  %2057 = vrot.lane.b32.xlu1 %v8068_v21, %s11232_s25 }
 0x639   : > { %2126 = vrot.lane.b32.xlu0 %v8068_v21, %s11001_s18  ;;  %2062 = vrot.lane.b32.xlu1 %v8062_v35, %s11232_s25 }
 0x63d   : > { %2080 = vrot.lane.b32.xlu0 %v8062_v35, %s11233_s26  ;;  %1991 = vrot.lane.b32.xlu1 %v8068_v21, %s11234_s29 }
 0x641   : > { %2084 = vrot.lane.b32.xlu0 %v8068_v21, %s11233_s26  ;;  %1999 = vrot.lane.b32.xlu1 %v8062_v35, %s11234_s29 }
 0x645   : > { %2018 = vrot.lane.b32.xlu0 %v8034_v62, %s11235_s30  ;;  %2015 = vrot.lane.b32.xlu1 %v8068_v21, %s11235_s30 }
 0x649   : > { %2022 = vrot.lane.b32.xlu0 %v8040_v3, %s11235_s30  ;;  %2020 = vrot.lane.b32.xlu1 %v8062_v35, %s11235_s30 }
 0x64d   : > { %2184 = vperm.xlu1 %6946, %v6819_v33  }
 0x67f   : > { %v8109_v44 = vpop.permute.xlu0 %2039  ;;  %v2142_v48 = vpop.permute.xlu1 %2141 }
 0x683   : > { %v8111_v15 = vpop.permute.xlu0 %2043  ;;  %v2146_v0 = vpop.permute.xlu1 %2145 }
 0x687   : > { %v8113_v2 = vpop.permute.xlu0 %2060  ;;  %v2100_v25 = vpop.permute.xlu1 %2099 }
 0x68b   : > { %v8115_v63 = vpop.permute.xlu0 %2064  ;;  %v2104_v45 = vpop.permute.xlu1 %2103 }
 0x68f   : > { %v8117_v47 = vpop.permute.xlu0 %1997  ;;  %v2121_v38 = vpop.permute.xlu1 %2120 }
 0x693   : > { %v8119_v17 = vpop.permute.xlu0 %2001  ;;  %v2125_v4 = vpop.permute.xlu1 %2124 }
 0x697   : > { %v2144_v59 = vpop.permute.xlu0 %2143  ;;  %v8121_v18 = vpop.permute.xlu1 %2078 }
 0x698   : > { %v2149_v42 = vsel %vm11172_vm0, %v2142_v48, %v2144_v59  ;;  %v2150_v34 = vsel %vm11172_vm0, %v2144_v59, %v2146_v0 }
 0x699   : > { %v2158_v41 = vmul.f32 %v2149_v42, %v11249_v58  ;;  %v2159_v16 = vmul.f32 %v2150_v34, %v11250_v40 }
 0x69b   : > { %v2178_v7 = vpack.c.bf16 %v2158_v41, %v2158_v41  ;;  %v2179_v5 = vpack.c.bf16 %v2159_v16, %v2159_v16  ;;  %v2148_v23 = vpop.permute.xlu0 %2147  ;;  %v8127_v43 = vpop.permute.xlu1 %2082 }
 0x69c   : > { %v2151_v8 = vsel %vm11172_vm0, %v2146_v0, %v2148_v23  ;;  %v2157_v57 = vsel %vm11172_vm0, %v2148_v23, %v2142_v48 }
 0x69d   : > { %v2160_v29 = vmul.f32 %v2151_v8, %v11251_v36  ;;  %v2161_v60 = vmul.f32 %v2157_v57, %v11252_v39  ;;  %6820 = vmatprep.subr.msk.bf16.mxu0 %vm11170_vm1, %v2179_v5  ;;  %v2191_v33 = vsel %vm11170_vm1, %v2178_v7, 0 }
 0x69e   : > { %2209 = vmatpush1.bf16.msra.mxu0 %v2191_v33 }
 0x69f   : > { %v2180_v59 = vpack.c.bf16 %v2160_v29, %v2160_v29  ;;  %v2181_v42 = vpack.c.bf16 %v2161_v60, %v2161_v60  ;;  %v2102_v34 = vpop.permute.xlu0 %2101  ;;  %v2037_v41 = vpop.permute.xlu1 %2036 }
 0x6a0   : > { %v2107_v23 = vsel %vm828_vm3, %v2100_v25, %v2102_v34  ;;  %v2108_v8 = vsel %vm828_vm3, %v2102_v34, %v2104_v45 }
 0x6a1   : > { %6822 = vmatprep.subr.msk.bf16.mxu1 %vm11170_vm1, %v2181_v42  ;;  %v2197_v16 = vsel %vm11170_vm1, %v2180_v59, 0  ;;  %v2116_v60 = vmul.f32 %v2107_v23, %v7315_v56  ;;  %v2117_v33 = vmul.f32 %v2108_v8, %v7296_v49 }
 0x6a2   : > { %2250 = vmatpush1.bf16.msra.mxu1 %v2197_v16 }
 0x6a3   : > { %v2106_v0 = vpop.permute.xlu0 %2105  ;;  %v2042_v48 = vpop.permute.xlu1 %2041 }
 0x6a4   : > { %v2109_v16 = vsel %vm828_vm3, %v2104_v45, %v2106_v0  ;;  %v2115_v39 = vsel %vm828_vm3, %v2106_v0, %v2100_v25 }
 0x6a5   : > { %v2118_v23 = vmul.f32 %v2109_v16, %v7305_v52  ;;  %v2119_v8 = vmul.f32 %v2115_v39, %v7292_v46 }
 0x6a7   : > { %v2123_v57 = vpop.permute.xlu0 %2122  ;;  %v2058_v5 = vpop.permute.xlu1 %2057 }
 0x6a8   : > { %v2128_v7 = vsel %vm866_vm2, %v2121_v38, %v2123_v57  ;;  %v2129_v29 = vsel %vm866_vm2, %v2123_v57, %v2125_v4  ;;  %v2068_v16 = vsel %vm11086_vm5, %v8115_v63, %v2058_v5 }
 0x6a9   : > { %v2137_v42 = vmul.f32 %v2128_v7, %v7299_v50  ;;  %v2138_v59 = vmul.f32 %v2129_v29, %v7309_v54 }
 0x6ab   : > { %v2174_v36 = vpack.c.bf16 %v2137_v42, %v2116_v60  ;;  %v2127_v34 = vpop.permute.xlu0 %2126  ;;  %v2063_v40 = vpop.permute.xlu1 %2062  ;;  %v2175_v58 = vpack.c.bf16 %v2138_v59, %v2117_v33  ;;  %v2047_v59 = vsel %vm11072_vm6, %v8111_v15, %v2037_v41 }
 0x6ac   : > { %v2130_v32 = vsel %vm866_vm2, %v2125_v4, %v2127_v34  ;;  %v2136_v57 = vsel %vm866_vm2, %v2127_v34, %v2121_v38  ;;  %v2066_v25 = vsel %vm11086_vm5, %v8113_v2, %v2063_v40  ;;  %v2045_v38 = vsel %vm11072_vm6, %v8109_v44, %v2042_v48 }
 0x6ad   : > { %v2139_v7 = vmul.f32 %v2130_v32, %v7312_v55  ;;  %v2140_v29 = vmul.f32 %v2136_v57, %v7302_v51  ;;  %2210 = vmatprep.subr.bf16.mxu0 %v2175_v58  ;;  %v2073_v58 = vsel %vm11086_vm5, %v2058_v5, %v8113_v2  ;;  %v2075_v39 = vmul.f32 %v2066_v25, %v7391_v13 }
 0x6ae   : > { %2211 = vmatpush1.bf16.msra.mxu0 %v2174_v36  ;;  %v2052_v34 = vsel %vm11072_vm6, %v2037_v41, %v8109_v44  ;;  %v2054_v57 = vmul.f32 %v2045_v38, %v7378_v6  ;;  %v2067_v25 = vsel %vm11086_vm5, %v2063_v40, %v8115_v63  ;;  %v2077_v44 = vmul.f32 %v2068_v16, %v7384_v10 }
 0x6af   : > { %v2176_v45 = vpack.c.bf16 %v2139_v7, %v2118_v23  ;;  %v2081_v0 = vpop.permute.xlu0 %2080  ;;  %v1992_v60 = vpop.permute.xlu1 %1991  ;;  %v2177_v33 = vpack.c.bf16 %v2140_v29, %v2119_v8  ;;  %v2074_v29 = vmul.f32 %v2073_v58, %v7381_v9  ;;  %v2056_v63 = vmul.f32 %v2047_v59, %v7374_v61 }
 0x6b0   : > { %v2086_v4 = vsel %vm790_vm4, %v8121_v18, %v2081_v0  ;;  %v2087_v32 = vsel %vm790_vm4, %v2081_v0, %v8127_v43  ;;  %v2167_v0 = vpack.c.bf16 %v2075_v39, %v2054_v57  ;;  %v2076_v40 = vmul.f32 %v2067_v25, %v7394_v14 }
 0x6b1   : > { %v2095_v36 = vmul.f32 %v2086_v4, %v7335_v26  ;;  %v2096_v42 = vmul.f32 %v2087_v32, %v7342_v30  ;;  %2251 = vmatprep.subr.bf16.mxu1 %v2177_v33  ;;  %v2046_v33 = vsel %vm11072_vm6, %v2042_v48, %v8111_v15  ;;  %v2005_v58 = vsel %vm11061_vm8, %v8119_v17, %v1992_v60 }
 0x6b2   : > { %2252 = vmatpush1.bf16.msra.mxu1 %v2176_v45  ;;  %v2055_v15 = vmul.f32 %v2046_v33, %v7387_v11  ;;  %v2014_v59 = vmul.f32 %v2005_v58, %v7414_v1 }
 0x6b3   : > { %v2170_v2 = vpack.c.bf16 %v2095_v36, %v8034_v62  ;;  %v2085_v23 = vpop.permute.xlu0 %2084  ;;  %v2000_v8 = vpop.permute.xlu1 %1999  ;;  %v2171_v7 = vpack.c.bf16 %v2096_v42, %v8062_v35  ;;  %v2053_v35 = vmul.f32 %v2052_v34, %v7397_v19  ;;  %v2169_v36 = vpack.c.bf16 %v2077_v44, %v2056_v63 }
 0x6b4   : > { %v2088_v5 = vsel %vm790_vm4, %v8127_v43, %v2085_v23  ;;  %v2094_v45 = vsel %vm790_vm4, %v2085_v23, %v8121_v18  ;;  %v2003_v39 = vsel %vm11061_vm8, %v8117_v47, %v2000_v8  ;;  %v2168_v42 = vpack.c.bf16 %v2076_v40, %v2055_v15 }
 0x6b5   : > { %v2097_v41 = vmul.f32 %v2088_v5, %v7345_v31  ;;  %v2098_v62 = vmul.f32 %v2094_v45, %v7338_v28  ;;  %2212 = vmatprep.subr.bf16.mxu0 %v2171_v7  ;;  %v2166_v32 = vpack.c.bf16 %v2074_v29, %v2053_v35  ;;  %v2012_v16 = vmul.f32 %v2003_v39, %v7418_v12 }
 0x6b6   : > { %2213 = vmatpush1.bf16.msra.mxu0 %v2170_v2 }
 0x6b7   : > { %v2172_v18 = vpack.c.bf16 %v2097_v41, %v8040_v3  ;;  %v2019_v43 = vpop.permute.xlu0 %2018  ;;  %2214 = vmatprep.subr.bf16.mxu0 %v2167_v0  ;;  %v2016_v38 = vpop.permute.xlu1 %2015  ;;  %v2173_v4 = vpack.c.bf16 %v2098_v62, %v8068_v21  ;;  %v2004_v3 = vsel %vm11061_vm8, %v2000_v8, %v8119_v17  ;;  %v2010_v21 = vsel %vm11061_vm8, %v1992_v60, %v8117_v47  ;;  %v6818_v62 = vld [vmem:[%s10947_s5 + $0xc] sm:$0xf] }
 0x6b8   : > { %v2031_v48 = vsel %vm11052_vm7, %v2016_v38, %v2019_v43  ;;  %v2013_v8 = vmul.f32 %v2004_v3, %v7427_v22  ;;  %v2011_v25 = vmul.f32 %v2010_v21, %v7437_v27  ;;  %v11253_v0 = vmov 0  }
 0x6b9   : > { %2253 = vmatprep.subr.bf16.mxu1 %v2173_v4  ;;  %v2032_v2 = vmul.f32 %v2031_v48, %v7421_v20 }
 0x6ba   : > { %2215 = vmatpush1.bf16.msra.mxu0 %v2166_v32  ;;  %2254 = vmatpush1.bf16.msra.mxu1 %v2172_v18 }
 0x6bb   : > { %v2023_v34 = vpop.permute.xlu0 %2022  ;;  %2255 = vmatprep.subr.bf16.mxu1 %v2169_v36  ;;  %v2021_v57 = vpop.permute.xlu1 %2020  ;;  %v2162_v41 = vpack.c.bf16 %v2032_v2, %v2011_v25  ;;  %v6825_v36 = vld [vmem:[%s10948_s6 + $0x20] sm:$0xff] }
 0x6bc   : > { %v2026_v23 = vsel %vm11052_vm7, %v2023_v34, %v2016_v38  ;;  %v2024_v7 = vsel %vm11052_vm7, %v2019_v43, %v2021_v57  ;;  %v2025_v17 = vsel %vm11052_vm7, %v2021_v57, %v2023_v34 }
 0x6bd   : > { %v2035_v29 = vmul.f32 %v2026_v23, %v11237_v37  ;;  %v2033_v47 = vmul.f32 %v2024_v7, %v7431_v24  ;;  %v2034_v60 = vmul.f32 %v2025_v17, %v11236_v53 }
 0x6be   : > { %2256 = vmatpush1.bf16.msra.mxu1 %v2168_v42 }
 0x6bf   : > { %v2164_v5 = vpack.c.bf16 %v2034_v60, %v2013_v8  ;;  %v2163_v45 = vpack.c.bf16 %v2033_v47, %v2012_v16  ;;  %v2165_v44 = vpack.c.bf16 %v2035_v29, %v2014_v59 }
 0x6c1   : > { %2216 = vmatprep.subr.bf16.mxu0 %v2163_v45  ;;  %2257 = vmatprep.subr.bf16.mxu1 %v2165_v44  ;;  %v11255_v44 = vld [vmem:[#allocation6_spill] sm:$0xff] }
 0x6c2   : > { %2217 = vmatpush1.bf16.msra.mxu0 %v2162_v41  ;;  %2258 = vmatpush1.bf16.msra.mxu1 %v2164_v5  ;;  %v11254_v5 = vld [vmem:[#allocation7_spill] sm:$0xff] }
 0x6c5   : > { %6821 = vmatmul.mubr.msk.bf16.vlgmr.msra.gmra.mxu0 %vm11024_vm9, %v6818_v62  ;;  %6823 = vmatmul.mubr.msk.bf16.vlgmr.msra.gmra.mxu1 %vm11024_vm9, %v6818_v62 }
 0x6c6   : > { %2532 = vmatprep.mubr.bf16.mxu0 %v11253_v0  ;;  %2573 = vmatprep.mubr.bf16.mxu1 %v11253_v0 }
 0x6c8   : > { %v2185_v35 = vpop.permute.xlu1 %2184 }
 0x785   : > { %v2236_v33 = vpop.f32.mrf.mxu0  ;;  %v2277_v63 = vpop.f32.mrf.mxu1 }
 0x786   : > { %v8220_v40 = vadd.f32 %v2236_v33, %v2185_v35  ;;  %v8226_v32 = vadd.f32 %v2277_v63, %v2185_v35 }
 0x787   : > { %v2238_v18 = vpop.f32.mrf.mxu0  ;;  %v2279_v43 = vpop.f32.mrf.mxu1 }
 0x788   : > { %2337 = vrot.lane.b32.xlu1 %v8220_v40, %s10999_s20  ;;  %2439 = vrot.lane.b32.xlu0 %v8220_v40, %s11073_s0  ;;  %v8248_v15 = vadd.f32 %v2238_v18, %v2185_v35  ;;  %v8254_v48 = vadd.f32 %v2279_v43, %v2185_v35 }
 0x789   : > { %v2240_v38 = vpop.f32.mrf.mxu0  ;;  %v2281_v4 = vpop.f32.mrf.mxu1 }
 0x78a   : > { %v11256_v38 = vld [vmem:[#allocation5_spill] sm:$0xff] }
 0x78b   : > { %v2241_v58 = vpop.f32.mrf.mxu0  ;;  %v2282_v39 = vpop.f32.mrf.mxu1 }
 0x78c   : > { %2341 = vrot.lane.b32.xlu1 %v8226_v32, %s10999_s20  ;;  %2443 = vrot.lane.b32.xlu0 %v8226_v32, %s11073_s0  ;;  %v11257_v58 = vld [vmem:[#allocation4_spill] sm:$0xff] }
 0x790   : > { %2358 = vrot.lane.b32.xlu1 %v8220_v40, %s11232_s25  ;;  %2397 = vrot.lane.b32.xlu0 %v8220_v40, %s11089_s17 }
 0x794   : > { %2362 = vrot.lane.b32.xlu1 %v8226_v32, %s11232_s25  ;;  %2401 = vrot.lane.b32.xlu0 %v8226_v32, %s11089_s17 }
 0x798   : > { %2295 = vrot.lane.b32.xlu1 %v8220_v40, %s11234_s29  ;;  %2418 = vrot.lane.b32.xlu0 %v8220_v40, %s11001_s18 }
 0x79c   : > { %2299 = vrot.lane.b32.xlu1 %v8226_v32, %s11234_s29  ;;  %2422 = vrot.lane.b32.xlu0 %v8226_v32, %s11001_s18 }
 0x7a0   : > { %2441 = vrot.lane.b32.xlu1 %v8248_v15, %s11073_s0  ;;  %2376 = vrot.lane.b32.xlu0 %v8220_v40, %s11233_s26 }
 0x7a4   : > { %2445 = vrot.lane.b32.xlu1 %v8254_v48, %s11073_s0  ;;  %2380 = vrot.lane.b32.xlu0 %v8226_v32, %s11233_s26 }
 0x7a8   : > { %2399 = vrot.lane.b32.xlu1 %v8248_v15, %s11089_s17  ;;  %2334 = vrot.lane.b32.xlu0 %v8254_v48, %s10999_s20 }
 0x7ac   : > { %2403 = vrot.lane.b32.xlu1 %v8254_v48, %s11089_s17  ;;  %2339 = vrot.lane.b32.xlu0 %v8248_v15, %s10999_s20 }
 0x7b0   : > { %2420 = vrot.lane.b32.xlu1 %v8248_v15, %s11001_s18  ;;  %2355 = vrot.lane.b32.xlu0 %v8254_v48, %s11232_s25 }
 0x7b4   : > { %2424 = vrot.lane.b32.xlu1 %v8254_v48, %s11001_s18  ;;  %2360 = vrot.lane.b32.xlu0 %v8248_v15, %s11232_s25 }
 0x7b8   : > { %2378 = vrot.lane.b32.xlu1 %v8248_v15, %s11233_s26  ;;  %2289 = vrot.lane.b32.xlu0 %v8254_v48, %s11234_s29 }
 0x7bc   : > { %2382 = vrot.lane.b32.xlu1 %v8254_v48, %s11233_s26  ;;  %2297 = vrot.lane.b32.xlu0 %v8248_v15, %s11234_s29 }
 0x7c0   : > { %2316 = vrot.lane.b32.xlu1 %v8220_v40, %s11235_s30  ;;  %2313 = vrot.lane.b32.xlu0 %v8254_v48, %s11235_s30 }
 0x7c4   : > { %2320 = vrot.lane.b32.xlu1 %v8226_v32, %s11235_s30  ;;  %2318 = vrot.lane.b32.xlu0 %v8248_v15, %s11235_s30 }
 0x7c8   : > { %2482 = vperm.xlu0 %6945, %v6825_v36  }
 0x7fa   : > { %v8295_v3 = vpop.permute.xlu1 %2337  ;;  %v2440_v42 = vpop.permute.xlu0 %2439 }
 0x7fe   : > { %v8297_v21 = vpop.permute.xlu1 %2341  ;;  %v2444_v59 = vpop.permute.xlu0 %2443 }
 0x802   : > { %v8299_v16 = vpop.permute.xlu1 %2358  ;;  %v2398_v34 = vpop.permute.xlu0 %2397 }
 0x806   : > { %v8301_v57 = vpop.permute.xlu1 %2362  ;;  %v2402_v2 = vpop.permute.xlu0 %2401 }
 0x80a   : > { %v8303_v23 = vpop.permute.xlu1 %2295  ;;  %v2419_v7 = vpop.permute.xlu0 %2418 }
 0x80e   : > { %v8305_v17 = vpop.permute.xlu1 %2299  ;;  %v2423_v8 = vpop.permute.xlu0 %2422 }
 0x812   : > { %v2442_v29 = vpop.permute.xlu1 %2441  ;;  %v8307_v47 = vpop.permute.xlu0 %2376 }
 0x813   : > { %v2447_v60 = vsel %vm11172_vm0, %v2440_v42, %v2442_v29  ;;  %v2448_v25 = vsel %vm11172_vm0, %v2442_v29, %v2444_v59 }
 0x814   : > { %v2456_v45 = vmul.f32 %v2447_v60, %v11254_v5  ;;  %v2457_v41 = vmul.f32 %v2448_v25, %v11255_v44 }
 0x816   : > { %v2476_v62 = vpack.c.bf16 %v2456_v45, %v2456_v45  ;;  %v2477_v35 = vpack.c.bf16 %v2457_v41, %v2457_v41  ;;  %v2446_v33 = vpop.permute.xlu1 %2445  ;;  %v8313_v63 = vpop.permute.xlu0 %2380 }
 0x817   : > { %v2449_v18 = vsel %vm11172_vm0, %v2444_v59, %v2446_v33  ;;  %v2455_v43 = vsel %vm11172_vm0, %v2446_v33, %v2440_v42 }
 0x818   : > { %v2458_v4 = vmul.f32 %v2449_v18, %v11256_v38  ;;  %v2459_v39 = vmul.f32 %v2455_v43, %v11257_v58  ;;  %6826 = vmatprep.subr.msk.bf16.mxu0 %vm11170_vm1, %v2477_v35  ;;  %v2489_v36 = vsel %vm11170_vm1, %v2476_v62, 0 }
 0x819   : > { %2507 = vmatpush1.bf16.msra.mxu0 %v2489_v36 }
 0x81a   : > { %v2478_v29 = vpack.c.bf16 %v2458_v4, %v2458_v4  ;;  %v2479_v60 = vpack.c.bf16 %v2459_v39, %v2459_v39  ;;  %v2400_v25 = vpop.permute.xlu1 %2399  ;;  %v2335_v45 = vpop.permute.xlu0 %2334 }
 0x81b   : > { %v2405_v33 = vsel %vm828_vm3, %v2398_v34, %v2400_v25  ;;  %v2406_v18 = vsel %vm828_vm3, %v2400_v25, %v2402_v2 }
 0x81c   : > { %6828 = vmatprep.subr.msk.bf16.mxu1 %vm11170_vm1, %v2479_v60  ;;  %v2495_v41 = vsel %vm11170_vm1, %v2478_v29, 0  ;;  %v2414_v39 = vmul.f32 %v2405_v33, %v7315_v56  ;;  %v2415_v36 = vmul.f32 %v2406_v18, %v7296_v49 }
 0x81d   : > { %2548 = vmatpush1.bf16.msra.mxu1 %v2495_v41 }
 0x81e   : > { %v2404_v59 = vpop.permute.xlu1 %2403  ;;  %v2340_v42 = vpop.permute.xlu0 %2339 }
 0x81f   : > { %v2407_v41 = vsel %vm828_vm3, %v2402_v2, %v2404_v59  ;;  %v2413_v58 = vsel %vm828_vm3, %v2404_v59, %v2398_v34 }
 0x820   : > { %v2416_v33 = vmul.f32 %v2407_v41, %v7305_v52  ;;  %v2417_v18 = vmul.f32 %v2413_v58, %v7292_v46 }
 0x822   : > { %v2421_v43 = vpop.permute.xlu1 %2420  ;;  %v2356_v35 = vpop.permute.xlu0 %2355 }
 0x823   : > { %v2426_v62 = vsel %vm866_vm2, %v2419_v7, %v2421_v43  ;;  %v2427_v4 = vsel %vm866_vm2, %v2421_v43, %v2423_v8  ;;  %v2366_v41 = vsel %vm11086_vm5, %v8301_v57, %v2356_v35 }
 0x824   : > { %v2435_v60 = vmul.f32 %v2426_v62, %v7299_v50  ;;  %v2436_v29 = vmul.f32 %v2427_v4, %v7309_v54 }
 0x826   : > { %v2472_v38 = vpack.c.bf16 %v2435_v60, %v2414_v39  ;;  %v2425_v25 = vpop.permute.xlu1 %2424  ;;  %v2361_v44 = vpop.permute.xlu0 %2360  ;;  %v2473_v5 = vpack.c.bf16 %v2436_v29, %v2415_v36  ;;  %v2345_v29 = vsel %vm11072_vm6, %v8297_v21, %v2335_v45 }
 0x827   : > { %v2428_v0 = vsel %vm866_vm2, %v2423_v8, %v2425_v25  ;;  %v2434_v43 = vsel %vm866_vm2, %v2425_v25, %v2419_v7  ;;  %v2364_v34 = vsel %vm11086_vm5, %v8299_v16, %v2361_v44  ;;  %v2343_v7 = vsel %vm11072_vm6, %v8295_v3, %v2340_v42 }
 0x828   : > { %v2437_v62 = vmul.f32 %v2428_v0, %v7312_v55  ;;  %v2438_v4 = vmul.f32 %v2434_v43, %v7302_v51  ;;  %2508 = vmatprep.subr.bf16.mxu0 %v2473_v5  ;;  %v2371_v5 = vsel %vm11086_vm5, %v2356_v35, %v8299_v16  ;;  %v2373_v58 = vmul.f32 %v2364_v34, %v7391_v13 }
 0x829   : > { %2509 = vmatpush1.bf16.msra.mxu0 %v2472_v38  ;;  %v2350_v25 = vsel %vm11072_vm6, %v2335_v45, %v8295_v3  ;;  %v2352_v43 = vmul.f32 %v2343_v7, %v7378_v6  ;;  %v2365_v34 = vsel %vm11086_vm5, %v2361_v44, %v8301_v57  ;;  %v2375_v3 = vmul.f32 %v2366_v41, %v7384_v10 }
 0x82a   : > { %v2474_v2 = vpack.c.bf16 %v2437_v62, %v2416_v33  ;;  %v2379_v59 = vpop.permute.xlu1 %2378  ;;  %v2290_v39 = vpop.permute.xlu0 %2289  ;;  %v2475_v36 = vpack.c.bf16 %v2438_v4, %v2417_v18  ;;  %v2372_v4 = vmul.f32 %v2371_v5, %v7381_v9  ;;  %v2354_v57 = vmul.f32 %v2345_v29, %v7374_v61 }
 0x82b   : > { %v2384_v8 = vsel %vm790_vm4, %v8307_v47, %v2379_v59  ;;  %v2385_v0 = vsel %vm790_vm4, %v2379_v59, %v8313_v63  ;;  %v2465_v59 = vpack.c.bf16 %v2373_v58, %v2352_v43  ;;  %v2374_v44 = vmul.f32 %v2365_v34, %v7394_v14 }
 0x82c   : > { %v2393_v38 = vmul.f32 %v2384_v8, %v7335_v26  ;;  %v2394_v60 = vmul.f32 %v2385_v0, %v7342_v30  ;;  %2549 = vmatprep.subr.bf16.mxu1 %v2475_v36  ;;  %v2344_v36 = vsel %vm11072_vm6, %v2340_v42, %v8297_v21  ;;  %v2303_v5 = vsel %vm11061_vm8, %v8305_v17, %v2290_v39 }
 0x82d   : > { %2550 = vmatpush1.bf16.msra.mxu1 %v2474_v2  ;;  %v2353_v21 = vmul.f32 %v2344_v36, %v7387_v11  ;;  %v2312_v29 = vmul.f32 %v2303_v5, %v7414_v1 }
 0x82e   : > { %v2468_v16 = vpack.c.bf16 %v2393_v38, %v8220_v40  ;;  %v2383_v33 = vpop.permute.xlu1 %2382  ;;  %v2298_v18 = vpop.permute.xlu0 %2297  ;;  %v2469_v62 = vpack.c.bf16 %v2394_v60, %v8248_v15  ;;  %v2351_v15 = vmul.f32 %v2350_v25, %v7397_v19  ;;  %v2467_v38 = vpack.c.bf16 %v2375_v3, %v2354_v57 }
 0x82f   : > { %v2386_v35 = vsel %vm790_vm4, %v8313_v63, %v2383_v33  ;;  %v2392_v2 = vsel %vm790_vm4, %v2383_v33, %v8307_v47  ;;  %v2301_v58 = vsel %vm11061_vm8, %v8303_v23, %v2298_v18  ;;  %v2466_v60 = vpack.c.bf16 %v2374_v44, %v2353_v21 }
 0x830   : > { %v2395_v45 = vmul.f32 %v2386_v35, %v7345_v31  ;;  %v2396_v40 = vmul.f32 %v2392_v2, %v7338_v28  ;;  %2510 = vmatprep.subr.bf16.mxu0 %v2469_v62  ;;  %v2464_v0 = vpack.c.bf16 %v2372_v4, %v2351_v15  ;;  %v2310_v41 = vmul.f32 %v2301_v58, %v7418_v12 }
 0x831   : > { %2511 = vmatpush1.bf16.msra.mxu0 %v2468_v16 }
 0x832   : > { %v2470_v47 = vpack.c.bf16 %v2395_v45, %v8226_v32  ;;  %v2317_v63 = vpop.permute.xlu1 %2316  ;;  %2512 = vmatprep.subr.bf16.mxu0 %v2465_v59  ;;  %v2314_v7 = vpop.permute.xlu0 %2313  ;;  %v2471_v8 = vpack.c.bf16 %v2396_v40, %v8254_v48  ;;  %v2302_v32 = vsel %vm11061_vm8, %v2298_v18, %v8305_v17  ;;  %v2308_v48 = vsel %vm11061_vm8, %v2290_v39, %v8303_v23  ;;  %v6824_v40 = vld [vmem:[%s10947_s5 + $0x10] sm:$0xf] }
 0x833   : > { %v2329_v42 = vsel %vm11052_vm7, %v2314_v7, %v2317_v63  ;;  %v2311_v18 = vmul.f32 %v2302_v32, %v7427_v22  ;;  %v2309_v34 = vmul.f32 %v2308_v48, %v7437_v27  ;;  %v11258_v59 = vmov 0  }
 0x834   : > { %2551 = vmatprep.subr.bf16.mxu1 %v2471_v8  ;;  %v2330_v16 = vmul.f32 %v2329_v42, %v7421_v20 }
 0x835   : > { %2513 = vmatpush1.bf16.msra.mxu0 %v2464_v0  ;;  %2552 = vmatpush1.bf16.msra.mxu1 %v2470_v47 }
 0x836   : > { %v2321_v25 = vpop.permute.xlu1 %2320  ;;  %2553 = vmatprep.subr.bf16.mxu1 %v2467_v38  ;;  %v2319_v43 = vpop.permute.xlu0 %2318  ;;  %v2460_v45 = vpack.c.bf16 %v2330_v16, %v2309_v34  ;;  %v6831_v16 = vld [vmem:[%s10948_s6 + $0x28] sm:$0xff] }
 0x837   : > { %v2324_v33 = vsel %vm11052_vm7, %v2321_v25, %v2314_v7  ;;  %v2322_v62 = vsel %vm11052_vm7, %v2317_v63, %v2319_v43  ;;  %v2323_v17 = vsel %vm11052_vm7, %v2319_v43, %v2321_v25 }
 0x838   : > { %v2333_v4 = vmul.f32 %v2324_v33, %v11237_v37  ;;  %v2331_v23 = vmul.f32 %v2322_v62, %v7431_v24  ;;  %v2332_v39 = vmul.f32 %v2323_v17, %v11236_v53 }
 0x839   : > { %2554 = vmatpush1.bf16.msra.mxu1 %v2466_v60 }
 0x83a   : > { %v2462_v35 = vpack.c.bf16 %v2332_v39, %v2311_v18  ;;  %v2461_v2 = vpack.c.bf16 %v2331_v23, %v2310_v41  ;;  %v2463_v3 = vpack.c.bf16 %v2333_v4, %v2312_v29 }
 0x83c   : > { %2514 = vmatprep.subr.bf16.mxu0 %v2461_v2  ;;  %2555 = vmatprep.subr.bf16.mxu1 %v2463_v3 }
 0x83d   : > { %2515 = vmatpush1.bf16.msra.mxu0 %v2460_v45  ;;  %2556 = vmatpush1.bf16.msra.mxu1 %v2462_v35 }
 0x840   : > { %6827 = vmatmul.mubr.msk.bf16.vlgmr.msra.gmra.mxu0 %vm11024_vm9, %v6824_v40  ;;  %6829 = vmatmul.mubr.msk.bf16.vlgmr.msra.gmra.mxu1 %vm11024_vm9, %v6824_v40 }
 0x841   : > { %2842 = vmatprep.mubr.bf16.mxu0 %v11258_v59  ;;  %2883 = vmatprep.mubr.bf16.mxu1 %v11258_v59 }
 0x843   : > { %v2483_v15 = vpop.permute.xlu0 %2482 }
 0x900   : > { %v2534_v36 = vpop.f32.mrf.mxu0  ;;  %v2575_v57 = vpop.f32.mrf.mxu1 }
 0x901   : > { %v2535_v44 = vadd.f32 %v2534_v36, %v2483_v15  ;;  %v2576_v47 = vadd.f32 %v2575_v57, %v2483_v15 }
 0x902   : > { %v2536_v63 = vpop.f32.mrf.mxu0  ;;  %v2577_v7 = vpop.f32.mrf.mxu1 }
 0x903   : > { %vm2582_vm10 = vcmp.ge.f32.partialorder %v2535_v44, 0.0  ;;  %v2586_v8 = vmul.f32 0.01, %v2535_v44  ;;  %v2588_v21 = vmul.f32 0.01, %v2576_v47  ;;  %vm2584_vm11 = vcmp.ge.f32.partialorder %v2576_v47, 0.0 }
 0x904   : > { %v2538_v0 = vpop.f32.mrf.mxu0  ;;  %v2579_v5 = vpop.f32.mrf.mxu1  ;;  %v2537_v60 = vadd.f32 %v2536_v63, %v2483_v15  ;;  %v2578_v29 = vadd.f32 %v2577_v7, %v2483_v15  ;;  %v11260_v63 = vld [vmem:[#allocation6_spill] sm:$0xff] }
 0x905   : > { %v8406_v58 = vsel %vm2582_vm10, %v2535_v44, %v2586_v8  ;;  %v8412_v32 = vsel %vm2584_vm11, %v2576_v47, %v2588_v21  ;;  %v11259_v44 = vld [vmem:[#allocation7_spill] sm:$0xff] }
 0x906   : > { %v2539_v42 = vpop.f32.mrf.mxu0  ;;  %v2580_v38 = vpop.f32.mrf.mxu1  ;;  %2647 = vrot.lane.b32.xlu0 %v8406_v58, %s10999_s20  ;;  %2749 = vrot.lane.b32.xlu1 %v8406_v58, %s11073_s0  ;;  %v2587_v48 = vmul.f32 0.01, %v2537_v60  ;;  %vm2583_vm12 = vcmp.ge.f32.partialorder %v2537_v60, 0.0  ;;  %v2589_v25 = vmul.f32 0.01, %v2578_v29  ;;  %vm2585_vm13 = vcmp.ge.f32.partialorder %v2578_v29, 0.0 }
 0x908   : > { %v8434_v41 = vsel %vm2583_vm12, %v2537_v60, %v2587_v48  ;;  %v8440_v43 = vsel %vm2585_vm13, %v2578_v29, %v2589_v25  ;;  %v11261_v60 = vld [vmem:[#allocation5_spill] sm:$0xff]  ;;  %v11262_v29 = vld [vmem:[#allocation4_spill] sm:$0xff] }
 0x90a   : > { %2651 = vrot.lane.b32.xlu0 %v8412_v32, %s10999_s20  ;;  %2753 = vrot.lane.b32.xlu1 %v8412_v32, %s11073_s0 }
 0x90e   : > { %2668 = vrot.lane.b32.xlu0 %v8406_v58, %s11232_s25  ;;  %2707 = vrot.lane.b32.xlu1 %v8406_v58, %s11089_s17 }
 0x912   : > { %2672 = vrot.lane.b32.xlu0 %v8412_v32, %s11232_s25  ;;  %2711 = vrot.lane.b32.xlu1 %v8412_v32, %s11089_s17 }
 0x916   : > { %2605 = vrot.lane.b32.xlu0 %v8406_v58, %s11234_s29  ;;  %2728 = vrot.lane.b32.xlu1 %v8406_v58, %s11001_s18 }
 0x91a   : > { %2609 = vrot.lane.b32.xlu0 %v8412_v32, %s11234_s29  ;;  %2732 = vrot.lane.b32.xlu1 %v8412_v32, %s11001_s18 }
 0x91e   : > { %2751 = vrot.lane.b32.xlu0 %v8434_v41, %s11073_s0  ;;  %2686 = vrot.lane.b32.xlu1 %v8406_v58, %s11233_s26 }
 0x922   : > { %2755 = vrot.lane.b32.xlu0 %v8440_v43, %s11073_s0  ;;  %2690 = vrot.lane.b32.xlu1 %v8412_v32, %s11233_s26 }
 0x926   : > { %2709 = vrot.lane.b32.xlu0 %v8434_v41, %s11089_s17  ;;  %2644 = vrot.lane.b32.xlu1 %v8440_v43, %s10999_s20 }
 0x92a   : > { %2713 = vrot.lane.b32.xlu0 %v8440_v43, %s11089_s17  ;;  %2649 = vrot.lane.b32.xlu1 %v8434_v41, %s10999_s20 }
 0x92e   : > { %2730 = vrot.lane.b32.xlu0 %v8434_v41, %s11001_s18  ;;  %2665 = vrot.lane.b32.xlu1 %v8440_v43, %s11232_s25 }
 0x932   : > { %2734 = vrot.lane.b32.xlu0 %v8440_v43, %s11001_s18  ;;  %2670 = vrot.lane.b32.xlu1 %v8434_v41, %s11232_s25 }
 0x936   : > { %2688 = vrot.lane.b32.xlu0 %v8434_v41, %s11233_s26  ;;  %2599 = vrot.lane.b32.xlu1 %v8440_v43, %s11234_s29 }
 0x93a   : > { %2692 = vrot.lane.b32.xlu0 %v8440_v43, %s11233_s26  ;;  %2607 = vrot.lane.b32.xlu1 %v8434_v41, %s11234_s29 }
 0x93e   : > { %2626 = vrot.lane.b32.xlu0 %v8406_v58, %s11235_s30  ;;  %2623 = vrot.lane.b32.xlu1 %v8440_v43, %s11235_s30 }
 0x942   : > { %2630 = vrot.lane.b32.xlu0 %v8412_v32, %s11235_s30  ;;  %2628 = vrot.lane.b32.xlu1 %v8434_v41, %s11235_s30 }
 0x946   : > { %2792 = vperm.xlu1 %6946, %v6831_v16  }
 0x978   : > { %v8481_v33 = vpop.permute.xlu0 %2647  ;;  %v2750_v62 = vpop.permute.xlu1 %2749 }
 0x97c   : > { %v8483_v17 = vpop.permute.xlu0 %2651  ;;  %v2754_v18 = vpop.permute.xlu1 %2753 }
 0x980   : > { %v8485_v4 = vpop.permute.xlu0 %2668  ;;  %v2708_v23 = vpop.permute.xlu1 %2707 }
 0x984   : > { %v8487_v39 = vpop.permute.xlu0 %2672  ;;  %v2712_v34 = vpop.permute.xlu1 %2711 }
 0x988   : > { %v8489_v35 = vpop.permute.xlu0 %2605  ;;  %v2729_v2 = vpop.permute.xlu1 %2728 }
 0x98c   : > { %v8491_v3 = vpop.permute.xlu0 %2609  ;;  %v2733_v45 = vpop.permute.xlu1 %2732 }
 0x990   : > { %v2752_v40 = vpop.permute.xlu0 %2751  ;;  %v8493_v15 = vpop.permute.xlu1 %2686 }
 0x991   : > { %v2757_v36 = vsel %vm11172_vm0, %v2750_v62, %v2752_v40  ;;  %v2758_v57 = vsel %vm11172_vm0, %v2752_v40, %v2754_v18 }
 0x992   : > { %v2766_v47 = vmul.f32 %v2757_v36, %v11259_v44  ;;  %v2767_v7 = vmul.f32 %v2758_v57, %v11260_v63 }
 0x994   : > { %v2786_v8 = vpack.c.bf16 %v2766_v47, %v2766_v47  ;;  %v2787_v0 = vpack.c.bf16 %v2767_v7, %v2767_v7  ;;  %v2756_v5 = vpop.permute.xlu0 %2755  ;;  %v8499_v21 = vpop.permute.xlu1 %2690 }
 0x995   : > { %v2759_v42 = vsel %vm11172_vm0, %v2754_v18, %v2756_v5  ;;  %v2765_v38 = vsel %vm11172_vm0, %v2756_v5, %v2750_v62 }
 0x996   : > { %v2768_v48 = vmul.f32 %v2759_v42, %v11261_v60  ;;  %v2769_v25 = vmul.f32 %v2765_v38, %v11262_v29  ;;  %6832 = vmatprep.subr.msk.bf16.mxu0 %vm11170_vm1, %v2787_v0  ;;  %v2799_v16 = vsel %vm11170_vm1, %v2786_v8, 0 }
 0x997   : > { %2817 = vmatpush1.bf16.msra.mxu0 %v2799_v16 }
 0x998   : > { %v2788_v40 = vpack.c.bf16 %v2768_v48, %v2768_v48  ;;  %v2789_v36 = vpack.c.bf16 %v2769_v25, %v2769_v25  ;;  %v2710_v57 = vpop.permute.xlu0 %2709  ;;  %v2645_v47 = vpop.permute.xlu1 %2644 }
 0x999   : > { %v2715_v5 = vsel %vm828_vm3, %v2708_v23, %v2710_v57  ;;  %v2716_v42 = vsel %vm828_vm3, %v2710_v57, %v2712_v34 }
 0x99a   : > { %6834 = vmatprep.subr.msk.bf16.mxu1 %vm11170_vm1, %v2789_v36  ;;  %v2805_v7 = vsel %vm11170_vm1, %v2788_v40, 0  ;;  %v2724_v25 = vmul.f32 %v2715_v5, %v7315_v56  ;;  %v2725_v16 = vmul.f32 %v2716_v42, %v7296_v49 }
 0x99b   : > { %2858 = vmatpush1.bf16.msra.mxu1 %v2805_v7 }
 0x99c   : > { %v2714_v18 = vpop.permute.xlu0 %2713  ;;  %v2650_v62 = vpop.permute.xlu1 %2649 }
 0x99d   : > { %v2717_v7 = vsel %vm828_vm3, %v2712_v34, %v2714_v18  ;;  %v2723_v29 = vsel %vm828_vm3, %v2714_v18, %v2708_v23 }
 0x99e   : > { %v2726_v5 = vmul.f32 %v2717_v7, %v7305_v52  ;;  %v2727_v42 = vmul.f32 %v2723_v29, %v7292_v46 }
 0x9a0   : > { %v2731_v38 = vpop.permute.xlu0 %2730  ;;  %v2666_v0 = vpop.permute.xlu1 %2665 }
 0x9a1   : > { %v2736_v8 = vsel %vm866_vm2, %v2729_v2, %v2731_v38  ;;  %v2737_v48 = vsel %vm866_vm2, %v2731_v38, %v2733_v45  ;;  %v2676_v7 = vsel %vm11086_vm5, %v8487_v39, %v2666_v0 }
 0x9a2   : > { %v2745_v36 = vmul.f32 %v2736_v8, %v7299_v50  ;;  %v2746_v40 = vmul.f32 %v2737_v48, %v7309_v54 }
 0x9a4   : > { %v2782_v60 = vpack.c.bf16 %v2745_v36, %v2724_v25  ;;  %v2735_v57 = vpop.permute.xlu0 %2734  ;;  %v2671_v63 = vpop.permute.xlu1 %2670  ;;  %v2783_v44 = vpack.c.bf16 %v2746_v40, %v2725_v16  ;;  %v2655_v40 = vsel %vm11072_vm6, %v8483_v17, %v2645_v47 }
 0x9a5   : > { %v2738_v59 = vsel %vm866_vm2, %v2733_v45, %v2735_v57  ;;  %v2744_v38 = vsel %vm866_vm2, %v2735_v57, %v2729_v2  ;;  %v2674_v23 = vsel %vm11086_vm5, %v8485_v4, %v2671_v63  ;;  %v2653_v2 = vsel %vm11072_vm6, %v8481_v33, %v2650_v62 }
 0x9a6   : > { %v2747_v8 = vmul.f32 %v2738_v59, %v7312_v55  ;;  %v2748_v48 = vmul.f32 %v2744_v38, %v7302_v51  ;;  %2818 = vmatprep.subr.bf16.mxu0 %v2783_v44  ;;  %v2681_v44 = vsel %vm11086_vm5, %v2666_v0, %v8485_v4  ;;  %v2683_v29 = vmul.f32 %v2674_v23, %v7391_v13 }
 0x9a7   : > { %2819 = vmatpush1.bf16.msra.mxu0 %v2782_v60  ;;  %v2660_v57 = vsel %vm11072_vm6, %v2645_v47, %v8481_v33  ;;  %v2662_v38 = vmul.f32 %v2653_v2, %v7378_v6  ;;  %v2675_v23 = vsel %vm11086_vm5, %v2671_v63, %v8487_v39  ;;  %v2685_v33 = vmul.f32 %v2676_v7, %v7384_v10 }
 0x9a8   : > { %v2784_v34 = vpack.c.bf16 %v2747_v8, %v2726_v5  ;;  %v2689_v18 = vpop.permute.xlu0 %2688  ;;  %v2600_v25 = vpop.permute.xlu1 %2599  ;;  %v2785_v16 = vpack.c.bf16 %v2748_v48, %v2727_v42  ;;  %v2682_v48 = vmul.f32 %v2681_v44, %v7381_v9  ;;  %v2664_v39 = vmul.f32 %v2655_v40, %v7374_v61 }
 0x9a9   : > { %v2694_v45 = vsel %vm790_vm4, %v8493_v15, %v2689_v18  ;;  %v2695_v59 = vsel %vm790_vm4, %v2689_v18, %v8499_v21  ;;  %v2775_v18 = vpack.c.bf16 %v2683_v29, %v2662_v38  ;;  %v2684_v63 = vmul.f32 %v2675_v23, %v7394_v14 }
 0x9aa   : > { %v2703_v60 = vmul.f32 %v2694_v45, %v7335_v26  ;;  %v2704_v36 = vmul.f32 %v2695_v59, %v7342_v30  ;;  %2859 = vmatprep.subr.bf16.mxu1 %v2785_v16  ;;  %v2654_v16 = vsel %vm11072_vm6, %v2650_v62, %v8483_v17  ;;  %v2613_v44 = vsel %vm11061_vm8, %v8491_v3, %v2600_v25 }
 0x9ab   : > { %2860 = vmatpush1.bf16.msra.mxu1 %v2784_v34  ;;  %v2663_v17 = vmul.f32 %v2654_v16, %v7387_v11  ;;  %v2622_v40 = vmul.f32 %v2613_v44, %v7414_v1 }
 0x9ac   : > { %v2778_v4 = vpack.c.bf16 %v2703_v60, %v8406_v58  ;;  %v2693_v5 = vpop.permute.xlu0 %2692  ;;  %v2608_v42 = vpop.permute.xlu1 %2607  ;;  %v2779_v8 = vpack.c.bf16 %v2704_v36, %v8434_v41  ;;  %v2661_v41 = vmul.f32 %v2660_v57, %v7397_v19  ;;  %v2777_v60 = vpack.c.bf16 %v2685_v33, %v2664_v39 }
 0x9ad   : > { %v2696_v0 = vsel %vm790_vm4, %v8499_v21, %v2693_v5  ;;  %v2702_v34 = vsel %vm790_vm4, %v2693_v5, %v8493_v15  ;;  %v2611_v29 = vsel %vm11061_vm8, %v8489_v35, %v2608_v42  ;;  %v2776_v36 = vpack.c.bf16 %v2684_v63, %v2663_v17 }
 0x9ae   : > { %v2705_v47 = vmul.f32 %v2696_v0, %v7345_v31  ;;  %v2706_v58 = vmul.f32 %v2702_v34, %v7338_v28  ;;  %2820 = vmatprep.subr.bf16.mxu0 %v2779_v8  ;;  %v2774_v59 = vpack.c.bf16 %v2682_v48, %v2661_v41  ;;  %v2620_v7 = vmul.f32 %v2611_v29, %v7418_v12 }
 0x9af   : > { %2821 = vmatpush1.bf16.msra.mxu0 %v2778_v4 }
 0x9b0   : > { %v2780_v15 = vpack.c.bf16 %v2705_v47, %v8412_v32  ;;  %v2627_v21 = vpop.permute.xlu0 %2626  ;;  %2822 = vmatprep.subr.bf16.mxu0 %v2775_v18  ;;  %v2624_v2 = vpop.permute.xlu1 %2623  ;;  %v2781_v45 = vpack.c.bf16 %v2706_v58, %v8440_v43  ;;  %v2612_v32 = vsel %vm11061_vm8, %v2608_v42, %v8491_v3  ;;  %v2618_v43 = vsel %vm11061_vm8, %v2600_v25, %v8489_v35  ;;  %v6830_v58 = vld [vmem:[%s10947_s5 + $0x14] sm:$0xf] }
 0x9b1   : > { %v2639_v62 = vsel %vm11052_vm7, %v2624_v2, %v2627_v21  ;;  %v2621_v42 = vmul.f32 %v2612_v32, %v7427_v22  ;;  %v2619_v23 = vmul.f32 %v2618_v43, %v7437_v27  ;;  %v11263_v18 = vmov 0  }
 0x9b2   : > { %2861 = vmatprep.subr.bf16.mxu1 %v2781_v45  ;;  %v2640_v4 = vmul.f32 %v2639_v62, %v7421_v20 }
 0x9b3   : > { %2823 = vmatpush1.bf16.msra.mxu0 %v2774_v59  ;;  %2862 = vmatpush1.bf16.msra.mxu1 %v2780_v15 }
 0x9b4   : > { %v2631_v57 = vpop.permute.xlu0 %2630  ;;  %2863 = vmatprep.subr.bf16.mxu1 %v2777_v60  ;;  %v2629_v38 = vpop.permute.xlu1 %2628  ;;  %v2770_v47 = vpack.c.bf16 %v2640_v4, %v2619_v23  ;;  %v6837_v60 = vld [vmem:[%s10948_s6 + $0x30] sm:$0xff] }
 0x9b5   : > { %v2634_v5 = vsel %vm11052_vm7, %v2631_v57, %v2624_v2  ;;  %v2632_v8 = vsel %vm11052_vm7, %v2627_v21, %v2629_v38  ;;  %v2633_v3 = vsel %vm11052_vm7, %v2629_v38, %v2631_v57 }
 0x9b6   : > { %v2643_v48 = vmul.f32 %v2634_v5, %v11237_v37  ;;  %v2641_v35 = vmul.f32 %v2632_v8, %v7431_v24  ;;  %v2642_v25 = vmul.f32 %v2633_v3, %v11236_v53 }
 0x9b7   : > { %2864 = vmatpush1.bf16.msra.mxu1 %v2776_v36 }
 0x9b8   : > { %v2772_v0 = vpack.c.bf16 %v2642_v25, %v2621_v42  ;;  %v2771_v34 = vpack.c.bf16 %v2641_v35, %v2620_v7  ;;  %v2773_v33 = vpack.c.bf16 %v2643_v48, %v2622_v40 }
 0x9ba   : > { %2824 = vmatprep.subr.bf16.mxu0 %v2771_v34  ;;  %2865 = vmatprep.subr.bf16.mxu1 %v2773_v33  ;;  %v11265_v33 = vld [vmem:[#allocation6_spill] sm:$0xff] }
 0x9bb   : > { %2825 = vmatpush1.bf16.msra.mxu0 %v2770_v47  ;;  %2866 = vmatpush1.bf16.msra.mxu1 %v2772_v0  ;;  %v11264_v0 = vld [vmem:[#allocation7_spill] sm:$0xff] }
 0x9be   : > { %6833 = vmatmul.mubr.msk.bf16.vlgmr.msra.gmra.mxu0 %vm11024_vm9, %v6830_v58  ;;  %6835 = vmatmul.mubr.msk.bf16.vlgmr.msra.gmra.mxu1 %vm11024_vm9, %v6830_v58 }
 0x9bf   : > { %3140 = vmatprep.mubr.bf16.mxu0 %v11263_v18  ;;  %3181 = vmatprep.mubr.bf16.mxu1 %v11263_v18 }
 0x9c1   : > { %v2793_v41 = vpop.permute.xlu1 %2792 }
 0xa7e   : > { %v2844_v16 = vpop.f32.mrf.mxu0  ;;  %v2885_v39 = vpop.f32.mrf.mxu1 }
 0xa7f   : > { %v8592_v63 = vadd.f32 %v2844_v16, %v2793_v41  ;;  %v8598_v59 = vadd.f32 %v2885_v39, %v2793_v41 }
 0xa80   : > { %v2846_v15 = vpop.f32.mrf.mxu0  ;;  %v2887_v21 = vpop.f32.mrf.mxu1 }
 0xa81   : > { %2945 = vrot.lane.b32.xlu1 %v8592_v63, %s10999_s20  ;;  %3047 = vrot.lane.b32.xlu0 %v8592_v63, %s11073_s0  ;;  %v8620_v17 = vadd.f32 %v2846_v15, %v2793_v41  ;;  %v8626_v62 = vadd.f32 %v2887_v21, %v2793_v41 }
 0xa82   : > { %v2848_v2 = vpop.f32.mrf.mxu0  ;;  %v2889_v45 = vpop.f32.mrf.mxu1 }
 0xa83   : > { %v11266_v2 = vld [vmem:[#allocation5_spill] sm:$0xff] }
 0xa84   : > { %v2849_v44 = vpop.f32.mrf.mxu0  ;;  %v2890_v29 = vpop.f32.mrf.mxu1 }
 0xa85   : > { %2949 = vrot.lane.b32.xlu1 %v8598_v59, %s10999_s20  ;;  %3051 = vrot.lane.b32.xlu0 %v8598_v59, %s11073_s0  ;;  %v11267_v44 = vld [vmem:[#allocation4_spill] sm:$0xff] }
 0xa89   : > { %2966 = vrot.lane.b32.xlu1 %v8592_v63, %s11232_s25  ;;  %3005 = vrot.lane.b32.xlu0 %v8592_v63, %s11089_s17 }
 0xa8d   : > { %2970 = vrot.lane.b32.xlu1 %v8598_v59, %s11232_s25  ;;  %3009 = vrot.lane.b32.xlu0 %v8598_v59, %s11089_s17 }
 0xa91   : > { %2903 = vrot.lane.b32.xlu1 %v8592_v63, %s11234_s29  ;;  %3026 = vrot.lane.b32.xlu0 %v8592_v63, %s11001_s18 }
 0xa95   : > { %2907 = vrot.lane.b32.xlu1 %v8598_v59, %s11234_s29  ;;  %3030 = vrot.lane.b32.xlu0 %v8598_v59, %s11001_s18 }
 0xa99   : > { %3049 = vrot.lane.b32.xlu1 %v8620_v17, %s11073_s0  ;;  %2984 = vrot.lane.b32.xlu0 %v8592_v63, %s11233_s26 }
 0xa9d   : > { %3053 = vrot.lane.b32.xlu1 %v8626_v62, %s11073_s0  ;;  %2988 = vrot.lane.b32.xlu0 %v8598_v59, %s11233_s26 }
 0xaa1   : > { %3007 = vrot.lane.b32.xlu1 %v8620_v17, %s11089_s17  ;;  %2942 = vrot.lane.b32.xlu0 %v8626_v62, %s10999_s20 }
 0xaa5   : > { %3011 = vrot.lane.b32.xlu1 %v8626_v62, %s11089_s17  ;;  %2947 = vrot.lane.b32.xlu0 %v8620_v17, %s10999_s20  ;;  %s575_s20 = scalar_lea.vmem %s10955_s13, %s7143_s23 }
 0xaa9   : > { %3028 = vrot.lane.b32.xlu1 %v8620_v17, %s11001_s18  ;;  %2963 = vrot.lane.b32.xlu0 %v8626_v62, %s11232_s25 }
 0xaad   : > { %3032 = vrot.lane.b32.xlu1 %v8626_v62, %s11001_s18  ;;  %2968 = vrot.lane.b32.xlu0 %v8620_v17, %s11232_s25  ;;  %s11006_s18 = smov 19  }
 0xab1   : > { %2986 = vrot.lane.b32.xlu1 %v8620_v17, %s11233_s26  ;;  %2897 = vrot.lane.b32.xlu0 %v8626_v62, %s11234_s29 }
 0xab5   : > { %2990 = vrot.lane.b32.xlu1 %v8626_v62, %s11233_s26  ;;  %2905 = vrot.lane.b32.xlu0 %v8620_v17, %s11234_s29 }
 0xab9   : > { %2924 = vrot.lane.b32.xlu1 %v8592_v63, %s11235_s30  ;;  %2921 = vrot.lane.b32.xlu0 %v8626_v62, %s11235_s30 }
 0xabd   : > { %2928 = vrot.lane.b32.xlu1 %v8598_v59, %s11235_s30  ;;  %2926 = vrot.lane.b32.xlu0 %v8620_v17, %s11235_s30 }
 0xac1   : > { %3090 = vperm.xlu0 %6945, %v6837_v60  }
 0xaf3   : > { %v8667_v32 = vpop.permute.xlu1 %2945  ;;  %v3048_v36 = vpop.permute.xlu0 %3047 }
 0xaf7   : > { %v8669_v43 = vpop.permute.xlu1 %2949  ;;  %v3052_v40 = vpop.permute.xlu0 %3051 }
 0xafb   : > { %v8671_v7 = vpop.permute.xlu1 %2966  ;;  %v3006_v57 = vpop.permute.xlu0 %3005 }
 0xaff   : > { %v8673_v38 = vpop.permute.xlu1 %2970  ;;  %v3010_v4 = vpop.permute.xlu0 %3009 }
 0xb03   : > { %v8675_v5 = vpop.permute.xlu1 %2903  ;;  %v3027_v8 = vpop.permute.xlu0 %3026 }
 0xb07   : > { %v8677_v3 = vpop.permute.xlu1 %2907  ;;  %v3031_v42 = vpop.permute.xlu0 %3030 }
 0xb0b   : > { %v3050_v48 = vpop.permute.xlu1 %3049  ;;  %v8679_v35 = vpop.permute.xlu0 %2984 }
 0xb0c   : > { %v3055_v25 = vsel %vm11172_vm0, %v3048_v36, %v3050_v48  ;;  %v3056_v23 = vsel %vm11172_vm0, %v3050_v48, %v3052_v40 }
 0xb0d   : > { %v3064_v34 = vmul.f32 %v3055_v25, %v11264_v0  ;;  %v3065_v47 = vmul.f32 %v3056_v23, %v11265_v33 }
 0xb0f   : > { %v3084_v58 = vpack.c.bf16 %v3064_v34, %v3064_v34  ;;  %v3085_v41 = vpack.c.bf16 %v3065_v47, %v3065_v47  ;;  %v3054_v16 = vpop.permute.xlu1 %3053  ;;  %v8685_v39 = vpop.permute.xlu0 %2988 }
 0xb10   : > { %v3057_v15 = vsel %vm11172_vm0, %v3052_v40, %v3054_v16  ;;  %v3063_v21 = vsel %vm11172_vm0, %v3054_v16, %v3048_v36 }
 0xb11   : > { %v3066_v45 = vmul.f32 %v3057_v15, %v11266_v2  ;;  %v3067_v29 = vmul.f32 %v3063_v21, %v11267_v44  ;;  %6838 = vmatprep.subr.msk.bf16.mxu0 %vm11170_vm1, %v3085_v41  ;;  %v3097_v60 = vsel %vm11170_vm1, %v3084_v58, 0 }
 0xb12   : > { %3115 = vmatpush1.bf16.msra.mxu0 %v3097_v60 }
 0xb13   : > { %v3086_v48 = vpack.c.bf16 %v3066_v45, %v3066_v45  ;;  %v3087_v25 = vpack.c.bf16 %v3067_v29, %v3067_v29  ;;  %v3008_v23 = vpop.permute.xlu1 %3007  ;;  %v2943_v34 = vpop.permute.xlu0 %2942 }
 0xb14   : > { %v3013_v16 = vsel %vm828_vm3, %v3006_v57, %v3008_v23  ;;  %v3014_v15 = vsel %vm828_vm3, %v3008_v23, %v3010_v4 }
 0xb15   : > { %6840 = vmatprep.subr.msk.bf16.mxu1 %vm11170_vm1, %v3087_v25  ;;  %v3103_v47 = vsel %vm11170_vm1, %v3086_v48, 0  ;;  %v3022_v29 = vmul.f32 %v3013_v16, %v7315_v56  ;;  %v3023_v60 = vmul.f32 %v3014_v15, %v7296_v49 }
 0xb16   : > { %3156 = vmatpush1.bf16.msra.mxu1 %v3103_v47 }
 0xb17   : > { %v3012_v40 = vpop.permute.xlu1 %3011  ;;  %v2948_v36 = vpop.permute.xlu0 %2947 }
 0xb18   : > { %v3015_v47 = vsel %vm828_vm3, %v3010_v4, %v3012_v40  ;;  %v3021_v18 = vsel %vm828_vm3, %v3012_v40, %v3006_v57 }
 0xb19   : > { %v3024_v16 = vmul.f32 %v3015_v47, %v7305_v52  ;;  %v3025_v15 = vmul.f32 %v3021_v18, %v7292_v46 }
 0xb1b   : > { %v3029_v21 = vpop.permute.xlu1 %3028  ;;  %v2964_v41 = vpop.permute.xlu0 %2963 }
 0xb1c   : > { %v3034_v58 = vsel %vm866_vm2, %v3027_v8, %v3029_v21  ;;  %v3035_v45 = vsel %vm866_vm2, %v3029_v21, %v3031_v42  ;;  %v2974_v47 = vsel %vm11086_vm5, %v8673_v38, %v2964_v41 }
 0xb1d   : > { %v3043_v25 = vmul.f32 %v3034_v58, %v7299_v50  ;;  %v3044_v48 = vmul.f32 %v3035_v45, %v7309_v54 }
 0xb1f   : > { %v3080_v44 = vpack.c.bf16 %v3043_v25, %v3022_v29  ;;  %v3033_v23 = vpop.permute.xlu1 %3032  ;;  %v2969_v2 = vpop.permute.xlu0 %2968  ;;  %v3081_v0 = vpack.c.bf16 %v3044_v48, %v3023_v60  ;;  %v2953_v48 = vsel %vm11072_vm6, %v8669_v43, %v2943_v34 }
 0xb20   : > { %v3036_v33 = vsel %vm866_vm2, %v3031_v42, %v3033_v23  ;;  %v3042_v21 = vsel %vm866_vm2, %v3033_v23, %v3027_v8  ;;  %v2972_v57 = vsel %vm11086_vm5, %v8671_v7, %v2969_v2  ;;  %v2951_v8 = vsel %vm11072_vm6, %v8667_v32, %v2948_v36 }
 0xb21   : > { %v3045_v58 = vmul.f32 %v3036_v33, %v7312_v55  ;;  %v3046_v45 = vmul.f32 %v3042_v21, %v7302_v51  ;;  %3116 = vmatprep.subr.bf16.mxu0 %v3081_v0  ;;  %v2979_v0 = vsel %vm11086_vm5, %v2964_v41, %v8671_v7  ;;  %v2981_v33 = vmul.f32 %v2972_v57, %v7391_v13 }
 0xb22   : > { %3117 = vmatpush1.bf16.msra.mxu0 %v3080_v44  ;;  %v2958_v23 = vsel %vm11072_vm6, %v2943_v34, %v8667_v32  ;;  %v2960_v21 = vmul.f32 %v2951_v8, %v7378_v6  ;;  %v2973_v57 = vsel %vm11086_vm5, %v2969_v2, %v8673_v38  ;;  %v2983_v32 = vmul.f32 %v2974_v47, %v7384_v10 }
 0xb23   : > { %v3082_v4 = vpack.c.bf16 %v3045_v58, %v3024_v16  ;;  %v2987_v40 = vpop.permute.xlu1 %2986  ;;  %v2898_v29 = vpop.permute.xlu0 %2897  ;;  %v3083_v60 = vpack.c.bf16 %v3046_v45, %v3025_v15  ;;  %v2980_v45 = vmul.f32 %v2979_v0, %v7381_v9  ;;  %v2962_v38 = vmul.f32 %v2953_v48, %v7374_v61 }
 0xb24   : > { %v2992_v42 = vsel %vm790_vm4, %v8679_v35, %v2987_v40  ;;  %v2993_v18 = vsel %vm790_vm4, %v2987_v40, %v8685_v39  ;;  %v3073_v40 = vpack.c.bf16 %v2981_v33, %v2960_v21  ;;  %v2911_v0 = vsel %vm11061_vm8, %v8677_v3, %v2898_v29 }
 0xb25   : > { %v3001_v44 = vmul.f32 %v2992_v42, %v7335_v26  ;;  %v3002_v25 = vmul.f32 %v2993_v18, %v7342_v30  ;;  %3157 = vmatprep.subr.bf16.mxu1 %v3083_v60  ;;  %v2952_v60 = vsel %vm11072_vm6, %v2948_v36, %v8669_v43  ;;  %v2920_v48 = vmul.f32 %v2911_v0, %v7414_v1 }
 0xb26   : > { %3158 = vmatpush1.bf16.msra.mxu1 %v3082_v4  ;;  %v2961_v43 = vmul.f32 %v2952_v60, %v7387_v11  ;;  %vm11092_vm6 = vcmask 760832   ;;  %vm11093_vm5 = vcmask 64512  }
 0xb27   : > { %v3076_v7 = vpack.c.bf16 %v3001_v44, %v8592_v63  ;;  %v2991_v16 = vpop.permute.xlu1 %2990  ;;  %v2906_v15 = vpop.permute.xlu0 %2905  ;;  %v3077_v58 = vpack.c.bf16 %v3002_v25, %v8620_v17  ;;  %v2959_v17 = vmul.f32 %v2958_v23, %v7397_v19  ;;  %v3075_v44 = vpack.c.bf16 %v2983_v32, %v2962_v38 }
 0xb28   : > { %v2994_v41 = vsel %vm790_vm4, %v8685_v39, %v2991_v16  ;;  %v3000_v4 = vsel %vm790_vm4, %v2991_v16, %v8679_v35  ;;  %v2982_v39 = vmul.f32 %v2973_v57, %v7394_v14  ;;  %v2909_v33 = vsel %vm11061_vm8, %v8675_v5, %v2906_v15 }
 0xb29   : > { %v3003_v34 = vmul.f32 %v2994_v41, %v7345_v31  ;;  %v3004_v63 = vmul.f32 %v3000_v4, %v7338_v28  ;;  %3118 = vmatprep.subr.bf16.mxu0 %v3077_v58  ;;  %v3072_v18 = vpack.c.bf16 %v2980_v45, %v2959_v17  ;;  %v2918_v47 = vmul.f32 %v2909_v33, %v7418_v12 }
 0xb2a   : > { %3119 = vmatpush1.bf16.msra.mxu0 %v3076_v7  ;;  %v3074_v25 = vpack.c.bf16 %v2982_v39, %v2961_v43 }
 0xb2b   : > { %v3078_v35 = vpack.c.bf16 %v3003_v34, %v8598_v59  ;;  %v2925_v2 = vpop.permute.xlu1 %2924  ;;  %3120 = vmatprep.subr.bf16.mxu0 %v3073_v40  ;;  %v2922_v8 = vpop.permute.xlu0 %2921  ;;  %v3079_v42 = vpack.c.bf16 %v3004_v63, %v8626_v62  ;;  %v2910_v59 = vsel %vm11061_vm8, %v2906_v15, %v8677_v3  ;;  %v2916_v62 = vsel %vm11061_vm8, %v2898_v29, %v8675_v5  ;;  %v6836_v63 = vld [vmem:[%s10947_s5 + $0x18] sm:$0xf] }
 0xb2c   : > { %v2937_v36 = vsel %vm11052_vm7, %v2922_v8, %v2925_v2  ;;  %v2919_v15 = vmul.f32 %v2910_v59, %v7427_v22  ;;  %v2917_v57 = vmul.f32 %v2916_v62, %v7437_v27  ;;  %vm3628_vm8 = vcmask 277504  }
 0xb2d   : > { %3159 = vmatprep.subr.bf16.mxu1 %v3079_v42  ;;  %v2938_v7 = vmul.f32 %v2937_v36, %v7421_v20 }
 0xb2e   : > { %3121 = vmatpush1.bf16.msra.mxu0 %v3072_v18  ;;  %3160 = vmatpush1.bf16.msra.mxu1 %v3078_v35 }
 0xb2f   : > { %v2929_v23 = vpop.permute.xlu1 %2928  ;;  %3161 = vmatprep.subr.bf16.mxu1 %v3075_v44  ;;  %v2927_v21 = vpop.permute.xlu0 %2926  ;;  %v3068_v34 = vpack.c.bf16 %v2938_v7, %v2917_v57 }
 0xb30   : > { %v2932_v16 = vsel %vm11052_vm7, %v2929_v23, %v2922_v8  ;;  %v2930_v58 = vsel %vm11052_vm7, %v2925_v2, %v2927_v21  ;;  %v2931_v3 = vsel %vm11052_vm7, %v2927_v21, %v2929_v23  ;;  %vm11063_vm7 = vcmask 670720  }
 0xb31   : > { %v2941_v45 = vmul.f32 %v2932_v16, %v11237_v37  ;;  %v2939_v5 = vmul.f32 %v2930_v58, %v7431_v24  ;;  %v2940_v29 = vmul.f32 %v2931_v3, %v11236_v53 }
 0xb32   : > { %3162 = vmatpush1.bf16.msra.mxu1 %v3074_v25 }
 0xb33   : > { %v3070_v41 = vpack.c.bf16 %v2940_v29, %v2919_v15  ;;  %v3069_v4 = vpack.c.bf16 %v2939_v5, %v2918_v47  ;;  %v3071_v32 = vpack.c.bf16 %v2941_v45, %v2920_v48 }
 0xb35   : > { %3122 = vmatprep.subr.bf16.mxu0 %v3069_v4  ;;  %3163 = vmatprep.subr.bf16.mxu1 %v3071_v32 }
 0xb36   : > { %3123 = vmatpush1.bf16.msra.mxu0 %v3068_v34  ;;  %3164 = vmatpush1.bf16.msra.mxu1 %v3070_v41 }
 0xb39   : > { %6839 = vmatmul.mubr.msk.bf16.vlgmr.msra.gmra.mxu0 %vm11024_vm9, %v6836_v63  ;;  %6841 = vmatmul.mubr.msk.bf16.vlgmr.msra.gmra.mxu1 %vm11024_vm9, %v6836_v63  ;;  %vm11046_vm9 = vcmask 662528  }
 0xb3c   : > { %v3091_v40 = vpop.permute.xlu0 %3090 }
 0xbf9   : > { %v3142_v17 = vpop.f32.mrf.mxu0  ;;  %v3183_v60 = vpop.f32.mrf.mxu1 }
 0xbfa   : > { %v3143_v38 = vadd.f32 %v3142_v17, %v3091_v40  ;;  %v3184_v39 = vadd.f32 %v3183_v60, %v3091_v40 }
 0xbfb   : > { %v3144_v35 = vpop.f32.mrf.mxu0  ;;  %v3185_v2 = vpop.f32.mrf.mxu1 }
 0xbfc   : > { %vm3190_vm14 = vcmp.ge.f32.partialorder %v3143_v38, 0.0  ;;  %v3194_v8 = vmul.f32 0.01, %v3143_v38  ;;  %vm3192_vm15 = vcmp.ge.f32.partialorder %v3184_v39, 0.0  ;;  %v3196_v42 = vmul.f32 0.01, %v3184_v39 }
 0xbfd   : > { %v3145_v18 = vadd.f32 %v3144_v35, %v3091_v40  ;;  %v3186_v0 = vadd.f32 %v3185_v2, %v3091_v40  ;;  %v3146_v33 = vpop.f32.mrf.mxu0  ;;  %v3187_v43 = vpop.f32.mrf.mxu1 }
 0xbfe   : > { %v3198_v36 = vsel %vm3190_vm14, %v3143_v38, %v3194_v8  ;;  %v3200_v44 = vsel %vm3192_vm15, %v3184_v39, %v3196_v42  ;;  %vm3856_vm14 = vcmask 154624   ;;  %vm3894_vm15 = vcmask 146432  }
 0xbff   : > { %3202 = vst [vmem:[%s575_s20] sm:$0xff] %v3198_v36  ;;  %3204 = vst [vmem:[%s580_s24] sm:$0xff] %v3200_v44  ;;  %vm3191_vm10 = vcmp.ge.f32.partialorder %v3145_v18, 0.0  ;;  %v3195_v59 = vmul.f32 0.01, %v3145_v18  ;;  %vm3193_vm11 = vcmp.ge.f32.partialorder %v3186_v0, 0.0  ;;  %v3197_v25 = vmul.f32 0.01, %v3186_v0  ;;  %v3147_v62 = vpop.f32.mrf.mxu0  ;;  %v3188_v48 = vpop.f32.mrf.mxu1 }
 0xc01   : > { %v3199_v47 = vsel %vm3191_vm10, %v3145_v18, %v3195_v59  ;;  %v3201_v23 = vsel %vm3193_vm11, %v3186_v0, %v3197_v25  ;;  %vm11039_vm10 = vcmask 646144   ;;  %vm11027_vm11 = vcmask 637952  }
 0xc02   : > { %3203 = vst [vmem:[%s575_s20 + $0x8] sm:$0xff] %v3199_v47  ;;  %3205 = vst [vmem:[%s580_s24 + $0x8] sm:$0xff] %v3201_v23  ;;  %v3211_v21 = vadd.f32 %v3201_v23, %v3200_v44  ;;  %v3206_v7 = vadd.f32 %v3199_v47, %v3198_v36  ;;  %s11003_s20 = smov 18   ;;  %s11007_s24 = smov 29  }
 0xc04   : > { %3212 = vadd.xlane.f32.xlu0 %v3211_v21  ;;  %3207 = vadd.xlane.f32.xlu1 %v3206_v7 }
 0xc8d   : > { %v3213_v16 = vpop.xlane.xlu0 %3212  ;;  %v3208_v58 = vpop.xlane.xlu1 %3207 }
 0xc8e   : > { %v3214_v3 = vmul.f32 0.00390625, %v3213_v16  ;;  %v3210_v15 = vmul.f32 0.00390625, %v3208_v58 }
 0xc90   : > { %v3217_v45 = vmul.f32 1.442695, %v3214_v3  ;;  %v3215_v5 = vmul.f32 1.442695, %v3210_v15 }
 0xc92   : > { %6947 = vpow2.f32 %v3217_v45 }
 0xc93   : > { %6949 = vpow2.f32 %v3215_v5 }
 0xc9f   : > { %v6948_v29 = vpop.eup %6947 }
 0xca0   : > { %v6950_v57 = vpop.eup %6949 }
 0xca1   : > { %v3219_v41 = vadd.f32 %v6950_v57, %v6948_v29 }
 0xca3   : > { %v3220_v4 = vadd.f32 1e-10, %v3219_v41 }
 0xca5   : > { %6951 = vrcp.f32 %v3220_v4 }
 0xcb2   : > { %v6952_v32 = vpop.eup %6951 }
 0xcb3   : > { %v3222_v34 = vmul.f32 %v6952_v32, %v6950_v57  ;;  %v3223_v63 = vmul.f32 %v6952_v32, %v6948_v29 }
 0xcb5   : > { %v8784_v40 = vmul.f32 %v3222_v34, %v3198_v36  ;;  %v8786_v17 = vmul.f32 %v3222_v34, %v3199_v47  ;;  %v8788_v60 = vmul.f32 %v3223_v63, %v3200_v44  ;;  %v8790_v38 = vmul.f32 %v3223_v63, %v3201_v23 }
 0xcb7   : > { %11268 = vst [vmem:[#allocation40_spill] sm:$0xff] %v8784_v40  ;;  %11269 = vst [vmem:[#allocation41_spill] sm:$0xff] %v8786_v17  ;;  %v3243_v39 = vrot.slane %v8784_v40, 4  ;;  %v3249_v35 = vrot.slane %v8786_v17, 4  ;;  %v3255_v2 = vrot.slane %v8788_v60, 4  ;;  %v3261_v8 = vrot.slane %v8790_v38, 4 }
 0xcb8   : > { %11270 = vst [vmem:[#allocation42_spill] sm:$0xff] %v8788_v60  ;;  %11271 = vst [vmem:[#allocation43_spill] sm:$0xff] %v8790_v38 }
 0xcb9   : > { %v3244_v42 = vadd.f32 %v3243_v39, %v8784_v40  ;;  %v3250_v18 = vadd.f32 %v3249_v35, %v8786_v17  ;;  %v3256_v0 = vadd.f32 %v3255_v2, %v8788_v60  ;;  %v3273_v33 = vmax.f32 %v8784_v40, %v3243_v39  ;;  %v11272_v39 = vld [vmem:[#allocation2_spill] sm:$0xff] }
 0xcba   : > { %v3279_v43 = vmax.f32 %v8786_v17, %v3249_v35  ;;  %v3285_v36 = vmax.f32 %v8788_v60, %v3255_v2  ;;  %v3262_v62 = vadd.f32 %v3261_v8, %v8790_v38  ;;  %v3291_v32 = vmax.f32 %v8790_v38, %v3261_v8 }
 0xcbb   : > { %v3245_v44 = vrot.slane %v3244_v42, 2  ;;  %v3251_v59 = vrot.slane %v3250_v18, 2  ;;  %v3257_v25 = vrot.slane %v3256_v0, 2  ;;  %v3274_v48 = vrot.slane %v3273_v33, 2 }
 0xcbc   : > { %v3280_v47 = vrot.slane %v3279_v43, 2  ;;  %v3286_v23 = vrot.slane %v3285_v36, 2  ;;  %v3263_v29 = vrot.slane %v3262_v62, 2  ;;  %vm3296_vm12 = vcmp.eq.s32.totalorder %v11272_v39, 0 }
 0xcbd   : > { %v3246_v21 = vadd.f32 %v3245_v44, %v3244_v42  ;;  %v3252_v7 = vadd.f32 %v3251_v59, %v3250_v18  ;;  %v3258_v16 = vadd.f32 %v3257_v25, %v3256_v0  ;;  %v3275_v58 = vmax.f32 %v3273_v33, %v3274_v48 }
 0xcbe   : > { %v3281_v3 = vmax.f32 %v3279_v43, %v3280_v47  ;;  %v3287_v4 = vmax.f32 %v3285_v36, %v3286_v23  ;;  %vm3301_vm13 = vcmp.eq.s32.totalorder %v11272_v39, 1  ;;  %v3264_v18 = vadd.f32 %v3263_v29, %v3262_v62 }
 0xcbf   : > { %v3247_v15 = vrot.slane %v3246_v21, 1  ;;  %v3253_v45 = vrot.slane %v3252_v7, 1  ;;  %v3259_v5 = vrot.slane %v3258_v16, 1  ;;  %v3276_v57 = vrot.slane %v3275_v58, 1 }
 0xcc0   : > { %v3282_v41 = vrot.slane %v3281_v3, 1  ;;  %v3288_v43 = vrot.slane %v3287_v4, 1  ;;  %v3292_v44 = vrot.slane %v3291_v32, 2  ;;  %v3265_v62 = vrot.slane %v3264_v18, 1 }
 0xcc1   : > { %v3248_v34 = vadd.f32 %v3247_v15, %v3246_v21  ;;  %v3254_v63 = vadd.f32 %v3253_v45, %v3252_v7  ;;  %v3277_v35 = vmax.f32 %v3275_v58, %v3276_v57  ;;  %v3260_v42 = vadd.f32 %v3259_v5, %v3258_v16 }
 0xcc2   : > { %v3283_v2 = vmax.f32 %v3281_v3, %v3282_v41  ;;  %v3289_v21 = vmax.f32 %v3287_v4, %v3288_v43  ;;  %v3293_v7 = vmax.f32 %v3291_v32, %v3292_v44  ;;  %v3266_v16 = vadd.f32 %v3265_v62, %v3264_v18  ;;  %v8949_v32 = vld [vmem:[%s10944_s2 + $0x28] sm:$0xff] }
 0xcc3   : > { %v3268_v0 = vmul.f32 0.125, %v3248_v34  ;;  %v3269_v33 = vmul.f32 0.125, %v3254_v63  ;;  %v3302_v36 = vsel %vm3301_vm13, %v3277_v35, 0.0  ;;  %v3270_v23 = vmul.f32 0.125, %v3260_v42  ;;  %v11273_v35 = vld [vmem:[#allocation9_spill] sm:$0xff]  ;;  %v11274_v42 = vld [vmem:[#allocation8_spill] sm:$0xff] }
 0xcc4   : > { %v3303_v25 = vsel %vm3301_vm13, %v3283_v2, 0.0  ;;  %v3294_v3 = vrot.slane %v3293_v7, 1  ;;  %v3304_v15 = vsel %vm3301_vm13, %v3289_v21, 0.0  ;;  %v3271_v5 = vmul.f32 0.125, %v3266_v16  ;;  %v8989_v16 = vld [vmem:[%s10944_s2 + $0x20] sm:$0xff] }
 0xcc5   : > { %v3297_v59 = vsel %vm3296_vm12, %v3268_v0, 0.0  ;;  %v3298_v8 = vsel %vm3296_vm12, %v3269_v33, 0.0  ;;  %v3299_v58 = vsel %vm3296_vm12, %v3270_v23, 0.0  ;;  %v3872_v2 = vrot.slane %v8949_v32, %v11273_v35 }
 0xcc6   : > { %v8814_v48 = vadd.f32 %v3302_v36, %v3297_v59  ;;  %v8816_v47 = vadd.f32 %v3303_v25, %v3298_v8  ;;  %v8830_v45 = vadd.f32 %v3304_v15, %v3299_v58  ;;  %v3295_v29 = vmax.f32 %v3293_v7, %v3294_v3  ;;  %v8974_v36 = vld [vmem:[%s10944_s2 + $0xa8] sm:$0xff] }
 0xcc7   : > { %v3300_v57 = vsel %vm3296_vm12, %v3271_v5, 0.0  ;;  %v3910_v18 = vrot.slane %v8949_v32, %v11274_v42  ;;  %v4914_v21 = vrot.slane %v8974_v36, %v11273_v35  ;;  %v4952_v7 = vrot.slane %v8974_v36, %v11274_v42 }
 0xcc8   : > { %3852 = vrot.lane.b32.xlu1 %v8816_v47, %s11006_s18  ;;  %3850 = vrot.lane.b32.xlu0 %v8814_v48, %s11006_s18  ;;  %v3305_v41 = vsel %vm3301_vm13, %v3295_v29, 0.0  ;;  %v3868_v29 = vrot.slane %v8989_v16, %v11273_v35  ;;  %vm3780_vm12 = vcmask 244736   ;;  %vm3818_vm13 = vcmask 236544  }
 0xcc9   : > { %v8844_v4 = vadd.f32 %v3305_v41, %v3300_v57 }
 0xccc   : > { %3888 = vrot.lane.b32.xlu1 %v8814_v48, %s11003_s20  ;;  %3890 = vrot.lane.b32.xlu0 %v8816_v47, %s11003_s20 }
 0xcd0   : > { %4891 = vrot.lane.b32.xlu1 %v8816_v47, %s11005_s27  ;;  %4893 = vrot.lane.b32.xlu0 %v8830_v45, %s11005_s27 }
 0xcd4   : > { %4929 = vrot.lane.b32.xlu1 %v8816_v47, %s11004_s28  ;;  %4931 = vrot.lane.b32.xlu0 %v8830_v45, %s11004_s28 }
 0xcd8   : > { %3847 = vrot.lane.b32.xlu1 %v8844_v4, %s11006_s18  ;;  %3885 = vrot.lane.b32.xlu0 %v8844_v4, %s11003_s20  ;;  %s11009_s20 = smov 81   ;;  %s11011_s18 = smov 31  }
 0xcdc   : > { %4889 = vrot.lane.b32.xlu1 %v8814_v48, %s11005_s27  ;;  %4927 = vrot.lane.b32.xlu0 %v8814_v48, %s11004_s28  ;;  %s11008_s28 = smov 80   ;;  %s11014_s27 = smov 32  }
 0xce0   : > { %3774 = vrot.lane.b32.xlu1 %v8814_v48, %s11010_s19  ;;  %3776 = vrot.lane.b32.xlu0 %v8816_v47, %s11010_s19 }
 0xce4   : > { %3812 = vrot.lane.b32.xlu1 %v8814_v48, %s11007_s24  ;;  %3814 = vrot.lane.b32.xlu0 %v8816_v47, %s11007_s24 }
 0xce8   : > { %4815 = vrot.lane.b32.xlu1 %v8816_v47, %s11009_s20  ;;  %4817 = vrot.lane.b32.xlu0 %v8830_v45, %s11009_s20 }
 0xcec   : > { %4853 = vrot.lane.b32.xlu1 %v8816_v47, %s11008_s28  ;;  %4855 = vrot.lane.b32.xlu0 %v8830_v45, %s11008_s28 }
 0xcf0   : > { %3771 = vrot.lane.b32.xlu1 %v8844_v4, %s11010_s19  ;;  %3809 = vrot.lane.b32.xlu0 %v8844_v4, %s11007_s24  ;;  %s11013_s24 = smov 83   ;;  %s11015_s19 = smov 33  }
 0xcf4   : > { %4813 = vrot.lane.b32.xlu1 %v8814_v48, %s11009_s20  ;;  %4851 = vrot.lane.b32.xlu0 %v8814_v48, %s11008_s28  ;;  %s11012_s28 = smov 82   ;;  %s11018_s20 = smov 34  }
 0xcf8   : > { %3698 = vrot.lane.b32.xlu1 %v8814_v48, %s11014_s27  ;;  %3700 = vrot.lane.b32.xlu0 %v8816_v47, %s11014_s27 }
 0xcfc   : > { %3736 = vrot.lane.b32.xlu1 %v8814_v48, %s11011_s18  ;;  %3738 = vrot.lane.b32.xlu0 %v8816_v47, %s11011_s18 }
 0xd00   : > { %4739 = vrot.lane.b32.xlu1 %v8816_v47, %s11013_s24  ;;  %4741 = vrot.lane.b32.xlu0 %v8830_v45, %s11013_s24 }
 0xd04   : > { %4777 = vrot.lane.b32.xlu1 %v8816_v47, %s11012_s28  ;;  %4779 = vrot.lane.b32.xlu0 %v8830_v45, %s11012_s28 }
 0xd08   : > { %3695 = vrot.lane.b32.xlu1 %v8844_v4, %s11014_s27  ;;  %3733 = vrot.lane.b32.xlu0 %v8844_v4, %s11011_s18  ;;  %s11017_s18 = smov 94   ;;  %s11021_s27 = smov 35  }
 0xd0c   : > { %4737 = vrot.lane.b32.xlu1 %v8814_v48, %s11013_s24  ;;  %4775 = vrot.lane.b32.xlu0 %v8814_v48, %s11012_s28  ;;  %s11016_s28 = smov 93   ;;  %s11022_s24 = smov 45  }
 0xd10   : > { %3622 = vrot.lane.b32.xlu1 %v8814_v48, %s11018_s20  ;;  %3624 = vrot.lane.b32.xlu0 %v8816_v47, %s11018_s20 }
 0xd14   : > { %3660 = vrot.lane.b32.xlu1 %v8814_v48, %s11015_s19  ;;  %3662 = vrot.lane.b32.xlu0 %v8816_v47, %s11015_s19 }
 0xd18   : > { %4663 = vrot.lane.b32.xlu1 %v8816_v47, %s11017_s18  ;;  %4665 = vrot.lane.b32.xlu0 %v8830_v45, %s11017_s18 }
 0xd1c   : > { %4701 = vrot.lane.b32.xlu1 %v8816_v47, %s11016_s28  ;;  %4703 = vrot.lane.b32.xlu0 %v8830_v45, %s11016_s28 }
 0xd20   : > { %3619 = vrot.lane.b32.xlu1 %v8844_v4, %s11018_s20  ;;  %3657 = vrot.lane.b32.xlu0 %v8844_v4, %s11015_s19  ;;  %s11020_s19 = smov 96   ;;  %s11060_s20 = smov 48  }
 0xd24   : > { %4661 = vrot.lane.b32.xlu1 %v8814_v48, %s11017_s18  ;;  %4699 = vrot.lane.b32.xlu0 %v8814_v48, %s11016_s28  ;;  %s11019_s28 = smov 95   ;;  %s7026_s18 = smov 47  }
 0xd28   : > { %3546 = vrot.lane.b32.xlu1 %v8814_v48, %s11022_s24  ;;  %3548 = vrot.lane.b32.xlu0 %v8816_v47, %s11022_s24 }
 0xd2c   : > { %3584 = vrot.lane.b32.xlu1 %v8814_v48, %s11021_s27  ;;  %3586 = vrot.lane.b32.xlu0 %v8816_v47, %s11021_s27 }
 0xd30   : > { %4587 = vrot.lane.b32.xlu1 %v8816_v47, %s11020_s19  ;;  %4589 = vrot.lane.b32.xlu0 %v8830_v45, %s11020_s19 }
 0xd34   : > { %4625 = vrot.lane.b32.xlu1 %v8816_v47, %s11019_s28  ;;  %4627 = vrot.lane.b32.xlu0 %v8830_v45, %s11019_s28 }
 0xd38   : > { %3543 = vrot.lane.b32.xlu1 %v8844_v4, %s11022_s24  ;;  %3581 = vrot.lane.b32.xlu0 %v8844_v4, %s11021_s27  ;;  %s11038_s27 = smov 98   ;;  %s11030_s24 = smov 97  }
 0xd3a   : > { %v8951_v34 = vpop.permute.xlu1 %3852  ;;  %v3851_v63 = vpop.permute.xlu0 %3850 }
 0xd3b   : > { %v3857_v0 = vsel %vm3856_vm14, %v3851_v63, %v8951_v34 }
 0xd3c   : > { %4585 = vrot.lane.b32.xlu1 %v8814_v48, %s11020_s19  ;;  %4623 = vrot.lane.b32.xlu0 %v8814_v48, %s11019_s28  ;;  %v3882_v59 = vmul.f32 %v3872_v2, %v3857_v0  ;;  %s11095_s19 = smov 46   ;;  %v3906_v2 = vrot.slane %v8989_v16, %v11274_v42  ;;  %s11091_s28 = smov 49  }
 0xd3e   : > { %v3889_v33 = vpop.permute.xlu1 %3888  ;;  %v8963_v43 = vpop.permute.xlu0 %3890 }
 0xd3f   : > { %v3895_v44 = vsel %vm3894_vm15, %v3889_v33, %v8963_v43 }
 0xd40   : > { %v3920_v8 = vmul.f32 %v3910_v18, %v3895_v44  ;;  %3470 = vrot.lane.b32.xlu1 %v8814_v48, %s7026_s18  ;;  %3472 = vrot.lane.b32.xlu0 %v8816_v47, %s7026_s18  ;;  %v9008_v18 = vld [vmem:[%s10944_s2 + $0xa0] sm:$0xff] }
 0xd42   : > { %v4892_v25 = vpop.permute.xlu1 %4891  ;;  %v8976_v62 = vpop.permute.xlu0 %4893  ;;  %v5032_v23 = vpack.c.bf16 %v3920_v8, %v3882_v59 }
 0xd43   : > { %11275 = vst [vmem:[#allocation2_spill] sm:$0xff] %v8976_v62  ;;  %v4899_v58 = vsel %vm11039_vm10, %v4892_v25, %v8976_v62 }
 0xd44   : > { %3508 = vrot.lane.b32.xlu1 %v8814_v48, %s11095_s19  ;;  %3510 = vrot.lane.b32.xlu0 %v8816_v47, %s11095_s19  ;;  %v4924_v57 = vmul.f32 %v4914_v21, %v4899_v58  ;;  %v4910_v21 = vrot.slane %v9008_v18, %v11273_v35 }
 0xd45   : > { %5147 = vmatprep.subr.bf16.mxu0 %v5032_v23 }
 0xd46   : > { %v4930_v3 = vpop.permute.xlu1 %4929  ;;  %v8993_v15 = vpop.permute.xlu0 %4931 }
 0xd47   : > { %11276 = vst [vmem:[#allocation9_spill] sm:$0xff] %v8993_v15  ;;  %v4937_v5 = vsel %vm11027_vm11, %v4930_v3, %v8993_v15 }
 0xd48   : > { %v4962_v41 = vmul.f32 %v4952_v7, %v4937_v5  ;;  %4511 = vrot.lane.b32.xlu1 %v8816_v47, %s11038_s27  ;;  %4513 = vrot.lane.b32.xlu0 %v8830_v45, %s11038_s27  ;;  %v4948_v5 = vrot.slane %v9008_v18, %v11274_v42 }
 0xd4a   : > { %v9010_v0 = vpop.permute.xlu1 %3847  ;;  %v9012_v44 = vpop.permute.xlu0 %3885  ;;  %v5096_v59 = vpack.c.bf16 %v4962_v41, %v4924_v57 }
 0xd4b   : > { %v3864_v8 = vsel %vm3856_vm14, %v9010_v0, %v3851_v63  ;;  %v3902_v23 = vsel %vm3894_vm15, %v9012_v44, %v3889_v33 }
 0xd4c   : > { %v3881_v7 = vmul.f32 %v3868_v29, %v3864_v8  ;;  %v3919_v58 = vmul.f32 %v3906_v2, %v3902_v23  ;;  %4549 = vrot.lane.b32.xlu1 %v8816_v47, %s11030_s24  ;;  %4551 = vrot.lane.b32.xlu0 %v8830_v45, %s11030_s24  ;;  %v9042_v23 = vsub.s32 5, %v11272_v39 }
 0xd4d   : > { %5188 = vmatprep.subr.bf16.mxu1 %v5096_v59  ;;  %v9039_v59 = vsub.s32 4, %v11272_v39 }
 0xd4e   : > { %v5031_v63 = vpack.c.bf16 %v3919_v58, %v3881_v7  ;;  %v9026_v57 = vpop.permute.xlu1 %4889  ;;  %v9028_v33 = vpop.permute.xlu0 %4927 }
 0xd4f   : > { %11277 = vst [vmem:[#allocation8_spill] sm:$0xff] %v9026_v57  ;;  %11278 = vst [vmem:[#allocation44_spill] sm:$0xff] %v9028_v33  ;;  %v4898_v29 = vsel %vm11039_vm10, %v9026_v57, %v4892_v25  ;;  %v4936_v41 = vsel %vm11027_vm11, %v9028_v33, %v4930_v3  ;;  %v3796_v3 = vrot.slane %v8949_v32, %v9039_v59  ;;  %vm11042_vm11 = vcmask 654336  }
 0xd50   : > { %v4923_v2 = vmul.f32 %v4910_v21, %v4898_v29  ;;  %v4961_v8 = vmul.f32 %v4948_v5, %v4936_v41  ;;  %3467 = vrot.lane.b32.xlu1 %v8844_v4, %s7026_s18  ;;  %3505 = vrot.lane.b32.xlu0 %v8844_v4, %s11095_s19  ;;  %v3834_v21 = vrot.slane %v8949_v32, %v9042_v23  ;;  %vm3704_vm10 = vcmask 261120   ;;  %s11300_s19 = smov 30  }
 0xd51   : > { %5148 = vmatpush1.bf16.msra.mxu0 %v5031_v63  ;;  %v4838_v17 = vrot.slane %v8974_v36, %v9039_v59 }
 0xd52   : > { %v5095_v7 = vpack.c.bf16 %v4961_v8, %v4923_v2  ;;  %v3775_v25 = vpop.permute.xlu1 %3774  ;;  %v9044_v58 = vpop.permute.xlu0 %3776 }
 0xd53   : > { %v3781_v5 = vsel %vm3780_vm12, %v3775_v25, %v9044_v58 }
 0xd54   : > { %4509 = vrot.lane.b32.xlu1 %v8814_v48, %s11038_s27  ;;  %4547 = vrot.lane.b32.xlu0 %v8814_v48, %s11030_s24  ;;  %v3806_v2 = vmul.f32 %v3796_v3, %v3781_v5  ;;  %v4876_v3 = vrot.slane %v8974_v36, %v9042_v23  ;;  %s11043_s24 = smov 109   ;;  %s11051_s27 = smov 99  }
 0xd55   : > { %5189 = vmatpush1.bf16.msra.mxu1 %v5095_v7 }
 0xd56   : > { %v3813_v63 = vpop.permute.xlu1 %3812  ;;  %v9056_v29 = vpop.permute.xlu0 %3814 }
 0xd57   : > { %v3819_v41 = vsel %vm3818_vm13, %v3813_v63, %v9056_v29 }
 0xd58   : > { %v3844_v8 = vmul.f32 %v3834_v21, %v3819_v41  ;;  %3394 = vrot.lane.b32.xlu1 %v8814_v48, %s11091_s28  ;;  %3396 = vrot.lane.b32.xlu0 %v8816_v47, %s11091_s28 }
 0xd5a   : > { %v4816_v38 = vpop.permute.xlu1 %4815  ;;  %v9064_v60 = vpop.permute.xlu0 %4817  ;;  %v5028_v7 = vpack.c.bf16 %v3844_v8, %v3806_v2  ;;  %v3792_v8 = vrot.slane %v8989_v16, %v9039_v59 }
 0xd5b   : > { %11279 = vst [vmem:[#allocation45_spill] sm:$0xff] %v9064_v60  ;;  %v4823_v21 = vsel %vm11046_vm9, %v4816_v38, %v9064_v60  ;;  %v11288_v60 = vld [vmem:[#allocation3_spill] sm:$0xff] }
 0xd5c   : > { %3432 = vrot.lane.b32.xlu1 %v8814_v48, %s11060_s20  ;;  %3434 = vrot.lane.b32.xlu0 %v8816_v47, %s11060_s20  ;;  %v4848_v40 = vmul.f32 %v4838_v17, %v4823_v21  ;;  %v4686_v55 = vrot.slane %v8974_v36, %v11288_v60  ;;  %v3640_v46 = vrot.slane %v8989_v16, %v11288_v60 }
 0xd5d   : > { %5149 = vmatprep.subr.bf16.mxu0 %v5028_v7  ;;  %v3830_v7 = vrot.slane %v8989_v16, %v9042_v23 }
 0xd5e   : > { %v4854_v5 = vpop.permute.xlu1 %4853  ;;  %v9076_v41 = vpop.permute.xlu0 %4855 }
 0xd5f   : > { %11280 = vst [vmem:[#allocation46_spill] sm:$0xff] %v9076_v41  ;;  %v4861_v2 = vsel %vm11042_vm11, %v4854_v5, %v9076_v41 }
 0xd60   : > { %v4886_v37 = vmul.f32 %v4876_v3, %v4861_v2  ;;  %4435 = vrot.lane.b32.xlu1 %v8816_v47, %s11043_s24  ;;  %4437 = vrot.lane.b32.xlu0 %v8830_v45, %s11043_s24  ;;  %v4834_v3 = vrot.slane %v9008_v18, %v9039_v59 }
 0xd62   : > { %v9088_v53 = vpop.permute.xlu1 %3771  ;;  %v9090_v1 = vpop.permute.xlu0 %3809  ;;  %v5092_v22 = vpack.c.bf16 %v4886_v37, %v4848_v40  ;;  %v4872_v37 = vrot.slane %v9008_v18, %v9042_v23 }
 0xd63   : > { %v3788_v61 = vsel %vm3780_vm12, %v9088_v53, %v3775_v25  ;;  %v3826_v17 = vsel %vm3818_vm13, %v9090_v1, %v3813_v63 }
 0xd64   : > { %v3805_v21 = vmul.f32 %v3792_v8, %v3788_v61  ;;  %v3843_v2 = vmul.f32 %v3830_v7, %v3826_v17  ;;  %4473 = vrot.lane.b32.xlu1 %v8816_v47, %s11051_s27  ;;  %4475 = vrot.lane.b32.xlu0 %v8830_v45, %s11051_s27 }
 0xd65   : > { %5190 = vmatprep.subr.bf16.mxu1 %v5092_v22  ;;  %v9117_v22 = vsub.s32 3, %v11272_v39 }
 0xd66   : > { %v5027_v40 = vpack.c.bf16 %v3843_v2, %v3805_v21  ;;  %v9104_v25 = vpop.permute.xlu1 %4813  ;;  %v9106_v63 = vpop.permute.xlu0 %4851 }
 0xd67   : > { %11281 = vst [vmem:[#allocation47_spill] sm:$0xff] %v9104_v25  ;;  %11282 = vst [vmem:[#allocation48_spill] sm:$0xff] %v9106_v63  ;;  %v4822_v61 = vsel %vm11046_vm9, %v9104_v25, %v4816_v38  ;;  %v4860_v8 = vsel %vm11042_vm11, %v9106_v63, %v4854_v5  ;;  %v11283_v38 = vld [vmem:[#allocation23_spill] sm:$0xff]  ;;  %vm3742_vm11 = vcmask 252928   ;;  %vm11065_vm9 = vcmask 678912  }
 0xd68   : > { %v4847_v7 = vmul.f32 %v4834_v3, %v4822_v61  ;;  %v4885_v17 = vmul.f32 %v4872_v37, %v4860_v8  ;;  %3391 = vrot.lane.b32.xlu1 %v8844_v4, %s11091_s28  ;;  %3429 = vrot.lane.b32.xlu0 %v8844_v4, %s11060_s20  ;;  %v3720_v5 = vrot.slane %v8949_v32, %v11283_v38  ;;  %s11071_s20 = smov 110   ;;  %s11151_s28 = smov 115  }
 0xd69   : > { %5150 = vmatpush1.bf16.msra.mxu0 %v5027_v40  ;;  %v3758_v3 = vrot.slane %v8949_v32, %v9117_v22  ;;  %v4762_v28 = vrot.slane %v8974_v36, %v11283_v38 }
 0xd6a   : > { %v5091_v21 = vpack.c.bf16 %v4885_v17, %v4847_v7  ;;  %v3699_v2 = vpop.permute.xlu1 %3698  ;;  %v9119_v11 = vpop.permute.xlu0 %3700 }
 0xd6b   : > { %v3705_v37 = vsel %vm3704_vm10, %v3699_v2, %v9119_v11 }
 0xd6c   : > { %4433 = vrot.lane.b32.xlu1 %v8814_v48, %s11043_s24  ;;  %4471 = vrot.lane.b32.xlu0 %v8814_v48, %s11051_s27  ;;  %v3730_v7 = vmul.f32 %v3720_v5, %v3705_v37  ;;  %s11082_s24 = smov 51   ;;  %s11075_s27 = smov 50   ;;  %v4800_v5 = vrot.slane %v8974_v36, %v9117_v22 }
 0xd6d   : > { %5191 = vmatpush1.bf16.msra.mxu1 %v5091_v21 }
 0xd6e   : > { %v3737_v40 = vpop.permute.xlu1 %3736  ;;  %v9131_v61 = vpop.permute.xlu0 %3738 }
 0xd6f   : > { %v3743_v8 = vsel %vm3742_vm11, %v3737_v40, %v9131_v61 }
 0xd70   : > { %v3768_v17 = vmul.f32 %v3758_v3, %v3743_v8  ;;  %3318 = vrot.lane.b32.xlu1 %v8814_v48, %s11082_s24  ;;  %3320 = vrot.lane.b32.xlu0 %v8816_v47, %s11082_s24 }
 0xd72   : > { %v4740_v10 = vpop.permute.xlu1 %4739  ;;  %v9139_v14 = vpop.permute.xlu0 %4741  ;;  %v5024_v21 = vpack.c.bf16 %v3768_v17, %v3730_v7  ;;  %v3716_v17 = vrot.slane %v8989_v16, %v11283_v38 }
 0xd73   : > { %11284 = vst [vmem:[#allocation23_spill] sm:$0xff] %v9139_v14  ;;  %v4747_v3 = vsel %vm11065_vm9, %v4740_v10, %v9139_v14 }
 0xd74   : > { %3356 = vrot.lane.b32.xlu1 %v8814_v48, %s11075_s27  ;;  %3358 = vrot.lane.b32.xlu0 %v8816_v47, %s11075_s27  ;;  %v4772_v31 = vmul.f32 %v4762_v28, %v4747_v3 }
 0xd75   : > { %5151 = vmatprep.subr.bf16.mxu0 %v5024_v21  ;;  %v3754_v21 = vrot.slane %v8989_v16, %v9117_v22 }
 0xd76   : > { %v4778_v37 = vpop.permute.xlu1 %4777  ;;  %v9151_v8 = vpop.permute.xlu0 %4779 }
 0xd77   : > { %11285 = vst [vmem:[#allocation49_spill] sm:$0xff] %v9151_v8  ;;  %v4785_v7 = vsel %vm11063_vm7, %v4778_v37, %v9151_v8 }
 0xd78   : > { %v4810_v63 = vmul.f32 %v4800_v5, %v4785_v7  ;;  %4376 = vrot.lane.b32.xlu1 %v8816_v47, %s11073_s0  ;;  %4378 = vrot.lane.b32.xlu0 %v8830_v45, %s11073_s0  ;;  %v4758_v5 = vrot.slane %v9008_v18, %v11283_v38 }
 0xd7a   : > { %v9163_v14 = vpop.permute.xlu1 %3695  ;;  %v9165_v41 = vpop.permute.xlu0 %3733  ;;  %v5088_v25 = vpack.c.bf16 %v4810_v63, %v4772_v31  ;;  %v4796_v31 = vrot.slane %v9008_v18, %v9117_v22 }
 0xd7b   : > { %v3712_v8 = vsel %vm3704_vm10, %v9163_v14, %v3699_v2  ;;  %v3750_v28 = vsel %vm3742_vm11, %v9165_v41, %v3737_v40 }
 0xd7c   : > { %v3729_v3 = vmul.f32 %v3716_v17, %v3712_v8  ;;  %v3767_v7 = vmul.f32 %v3754_v21, %v3750_v28  ;;  %4397 = vrot.lane.b32.xlu1 %v8816_v47, %s11071_s20  ;;  %4399 = vrot.lane.b32.xlu0 %v8830_v45, %s11071_s20 }
 0xd7d   : > { %5192 = vmatprep.subr.bf16.mxu1 %v5088_v25 }
 0xd7e   : > { %v5023_v63 = vpack.c.bf16 %v3767_v7, %v3729_v3  ;;  %v9179_v2 = vpop.permute.xlu1 %4737  ;;  %v9181_v40 = vpop.permute.xlu0 %4775 }
 0xd7f   : > { %11286 = vst [vmem:[#allocation50_spill] sm:$0xff] %v9179_v2  ;;  %11287 = vst [vmem:[#allocation51_spill] sm:$0xff] %v9181_v40  ;;  %v4746_v8 = vsel %vm11065_vm9, %v9179_v2, %v4740_v10  ;;  %v4784_v17 = vsel %vm11063_vm7, %v9181_v40, %v4778_v37  ;;  %v3644_v10 = vrot.slane %v8949_v32, %v11288_v60  ;;  %vm11094_vm7 = vcmask 269312   ;;  %v11289_v37 = vld [vmem:[#allocation18_spill] sm:$0xff] }
 0xd80   : > { %v4771_v21 = vmul.f32 %v4758_v5, %v4746_v8  ;;  %v4809_v28 = vmul.f32 %v4796_v31, %v4784_v17  ;;  %3312 = vrot.lane.b32.xlu1 %v8844_v4, %s11082_s24  ;;  %3353 = vrot.lane.b32.xlu0 %v8844_v4, %s11075_s27  ;;  %v3682_v5 = vrot.slane %v8949_v32, %v11289_v37  ;;  %vm11088_vm9 = vcmask 769024   ;;  %s11087_s24 = smov 77   ;;  %s11301_s27 = smov 29  }
 0xd81   : > { %5152 = vmatpush1.bf16.msra.mxu0 %v5023_v63 }
 0xd82   : > { %v5087_v25 = vpack.c.bf16 %v4809_v28, %v4771_v21  ;;  %v3623_v3 = vpop.permute.xlu1 %3622  ;;  %v9191_v7 = vpop.permute.xlu0 %3624 }
 0xd83   : > { %v3629_v31 = vsel %vm3628_vm8, %v3623_v3, %v9191_v7 }
 0xd84   : > { %4374 = vrot.lane.b32.xlu1 %v8814_v48, %s11073_s0  ;;  %4395 = vrot.lane.b32.xlu0 %v8814_v48, %s11071_s20  ;;  %v3654_v21 = vmul.f32 %v3644_v10, %v3629_v31  ;;  %s11291_s20 = smov 112   ;;  %v4724_v10 = vrot.slane %v8974_v36, %v11289_v37  ;;  %s11296_s0 = smov 19  }
 0xd85   : > { %5193 = vmatpush1.bf16.msra.mxu1 %v5087_v25  ;;  %v7037_v25 = vmov 1966171168  }
 0xd86   : > { %v3661_v63 = vpop.permute.xlu1 %3660  ;;  %v9203_v8 = vpop.permute.xlu0 %3662  ;;  %v5113_v51 = vunpack.c.l.s4 %v7037_v25 }
 0xd87   : > { %v3667_v17 = vsel %vm11094_vm7, %v3661_v63, %v9203_v8 }
 0xd88   : > { %v3692_v28 = vmul.f32 %v3682_v5, %v3667_v17  ;;  %4334 = vrot.lane.b32.xlu1 %v8816_v47, %s11089_s17  ;;  %4336 = vrot.lane.b32.xlu0 %v8830_v45, %s11089_s17  ;;  %v5114_v31 = vunpack.c.0.s8 %v5113_v51  ;;  %v3678_v51 = vrot.slane %v8989_v16, %v11289_v37 }
 0xd8a   : > { %v4664_v40 = vpop.permute.xlu1 %4663  ;;  %v9211_v32 = vpop.permute.xlu0 %4665  ;;  %v5020_v2 = vpack.c.bf16 %v3692_v28, %v3654_v21  ;;  %v6846_v28 = vld.sshfl [vmem:[%s10949_s7] sm:$0x33 pattern:$0x75316420]  ;;  %v5117_v36 = vsub.s32 %v5114_v31, %v11272_v39 }
 0xd8b   : > { %11290 = vst [vmem:[#allocation3_spill] sm:$0xff] %v9211_v32  ;;  %v4671_v5 = vsel %vm11088_vm9, %v4664_v40, %v9211_v32  ;;  %v5111_v52 = vcombine.high %v6846_v28, %v6846_v28 }
 0xd8c   : > { %4355 = vrot.lane.b32.xlu1 %v8816_v47, %s11291_s20  ;;  %4357 = vrot.lane.b32.xlu0 %v8830_v45, %s11291_s20  ;;  %v4696_v33 = vmul.f32 %v4686_v55, %v4671_v5  ;;  %v9245_v39 = vrot.slane %v6846_v28, %v5117_v36  ;;  %v4682_v5 = vrot.slane %v9008_v18, %v11288_v60 }
 0xd8d   : > { %5153 = vmatprep.subr.bf16.mxu0 %v5020_v2  ;;  %v9239_v2 = vrot.slane %v5111_v52, %v5117_v36 }
 0xd8e   : > { %v4702_v17 = vpop.permute.xlu1 %4701  ;;  %v9223_v21 = vpop.permute.xlu0 %4703 }
 0xd8f   : > { %11292 = vst [vmem:[#allocation18_spill] sm:$0xff] %v9223_v21  ;;  %v4709_v25 = vsel %vm11092_vm6, %v4702_v17, %v9223_v21  ;;  %v9255_v52 = vcombine.high %v9239_v2, %v9239_v2  ;;  %5179 = vmatprep.mubr.bf16.mxu0 %v9239_v2 }
 0xd90   : > { %v4734_v32 = vmul.f32 %v4724_v10, %v4709_v25  ;;  %4965 = vrot.lane.b32.xlu1 %v8814_v48, %s11087_s24  ;;  %4967 = vrot.lane.b32.xlu0 %v8816_v47, %s11087_s24 }
 0xd91   : > { %11293 = vst [vmem:[#allocation52_spill] sm:$0xff] %v9255_v52  ;;  %6848 = vmatprep.mubr.msk.bf16.mxu1 %vm11093_vm5, %v9255_v52  ;;  %vm11108_vm5 = vcmask 785408  }
 0xd92   : > { %v9241_v21 = vpop.permute.xlu1 %3619  ;;  %v9243_v15 = vpop.permute.xlu0 %3657  ;;  %v5084_v57 = vpack.c.bf16 %v4734_v32, %v4696_v33  ;;  %v4720_v33 = vrot.slane %v9008_v18, %v11289_v37  ;;  %v9281_v18 = vld [vmem:[%s10944_s2 + $0x8] sm:$0xff] }
 0xd93   : > { %v3636_v55 = vsel %vm3628_vm8, %v9241_v21, %v3623_v3  ;;  %v3674_v10 = vsel %vm11094_vm7, %v9243_v15, %v3661_v63  ;;  %vm11107_vm7 = vcmask 777216  }
 0xd94   : > { %v3653_v16 = vmul.f32 %v3640_v46, %v3636_v55  ;;  %v3691_v31 = vmul.f32 %v3678_v51, %v3674_v10  ;;  %4969 = vrot.lane.b32.xlu1 %v8830_v45, %s11087_s24  ;;  %4332 = vrot.lane.b32.xlu0 %v8814_v48, %s11089_s17  ;;  %s11297_s17 = smov 18   ;;  %v3606_v55 = vrot.slane %v9281_v18, %v11274_v42  ;;  %s11127_s24 = smov 125  }
 0xd95   : > { %5194 = vmatprep.subr.bf16.mxu1 %v5084_v57 }
 0xd96   : > { %v5019_v3 = vpack.c.bf16 %v3691_v31, %v3653_v16  ;;  %v9266_v63 = vpop.permute.xlu1 %4661  ;;  %v9268_v32 = vpop.permute.xlu0 %4699 }
 0xd97   : > { %11294 = vst [vmem:[#allocation53_spill] sm:$0xff] %v9266_v63  ;;  %11295 = vst [vmem:[#allocation54_spill] sm:$0xff] %v9268_v32  ;;  %v4670_v46 = vsel %vm11088_vm9, %v9266_v63, %v4664_v40  ;;  %v4708_v28 = vsel %vm11092_vm6, %v9268_v32, %v4702_v17  ;;  %vm11111_vm9 = vcmask 367616   ;;  %v3568_v17 = vrot.slane %v9281_v18, %v11273_v35 }
 0xd98   : > { %v4695_v25 = vmul.f32 %v4682_v5, %v4670_v46  ;;  %v4733_v36 = vmul.f32 %v4720_v33, %v4708_v28  ;;  %4353 = vrot.lane.b32.xlu1 %v8814_v48, %s11291_s20  ;;  %3854 = vrot.lane.b32.xlu0 %v8830_v45, %s11296_s0  ;;  %vm11106_vm6 = vcmask 285696   ;;  %s11305_s0 = smov 32  }
 0xd99   : > { %5154 = vmatpush1.bf16.msra.mxu0 %v5019_v3 }
 0xd9a   : > { %v5083_v57 = vpack.c.bf16 %v4733_v36, %v4695_v25  ;;  %v3547_v51 = vpop.permute.xlu1 %3546  ;;  %v9283_v40 = vpop.permute.xlu0 %3548  ;;  %v9308_v36 = vld [vmem:[%s10944_s2 + $0x88] sm:$0xff] }
 0xd9b   : > { %v3553_v10 = vsel %vm11111_vm9, %v3547_v51, %v9283_v40 }
 0xd9c   : > { %3892 = vrot.lane.b32.xlu1 %v8830_v45, %s11297_s17  ;;  %4258 = vrot.lane.b32.xlu0 %v8816_v47, %s11151_s28  ;;  %v3578_v33 = vmul.f32 %v3568_v17, %v3553_v10  ;;  %s11150_s17 = smov 114   ;;  %v4648_v17 = vrot.slane %v9308_v36, %v11274_v42 }
 0xd9d   : > { %5195 = vmatpush1.bf16.msra.mxu1 %v5083_v57  ;;  %v4610_v57 = vrot.slane %v9308_v36, %v11273_v35 }
 0xd9e   : > { %v3585_v5 = vpop.permute.xlu1 %3584  ;;  %v9295_v16 = vpop.permute.xlu0 %3586 }
 0xd9f   : > { %v3591_v31 = vsel %vm11106_vm6, %v3585_v5, %v9295_v16 }
 0xda0   : > { %v3616_v3 = vmul.f32 %v3606_v55, %v3591_v31  ;;  %4260 = vrot.lane.b32.xlu1 %v8830_v45, %s11151_s28  ;;  %4296 = vrot.lane.b32.xlu0 %v8816_v47, %s11150_s17  ;;  %v9321_v55 = vld [vmem:[%s10944_s2] sm:$0xff] }
 0xda1   : > { %v3564_v32 = vrot.slane %v9321_v55, %v11273_v35 }
 0xda2   : > { %v4588_v46 = vpop.permute.xlu1 %4587  ;;  %v9303_v28 = vpop.permute.xlu0 %4589  ;;  %v5016_v25 = vpack.c.bf16 %v3616_v3, %v3578_v33 }
 0xda3   : > { %11298 = vst [vmem:[#allocation55_spill] sm:$0xff] %v9303_v28  ;;  %v4595_v10 = vsel %vm11108_vm5, %v4588_v46, %v9303_v28 }
 0xda4   : > { %4298 = vrot.lane.b32.xlu1 %v8830_v45, %s11150_s17  ;;  %4256 = vrot.lane.b32.xlu0 %v8814_v48, %s11151_s28  ;;  %v4620_v63 = vmul.f32 %v4610_v57, %v4595_v10  ;;  %s11350_s28 = smov 83  }
 0xda5   : > { %5155 = vmatprep.subr.bf16.mxu0 %v5016_v25  ;;  %v3602_v25 = vrot.slane %v9321_v55, %v11274_v42 }
 0xda6   : > { %v4626_v31 = vpop.permute.xlu1 %4625  ;;  %v9325_v33 = vpop.permute.xlu0 %4627 }
 0xda7   : > { %11299 = vst [vmem:[#allocation56_spill] sm:$0xff] %v9325_v33  ;;  %v4633_v3 = vsel %vm11107_vm7, %v4626_v31, %v9325_v33 }
 0xda8   : > { %v4658_v52 = vmul.f32 %v4648_v17, %v4633_v3  ;;  %4294 = vrot.lane.b32.xlu1 %v8814_v48, %s11150_s17  ;;  %3778 = vrot.lane.b32.xlu0 %v8830_v45, %s11300_s19  ;;  %v9348_v17 = vld [vmem:[%s10944_s2 + $0x80] sm:$0xff]  ;;  %s11149_s19 = smov 126   ;;  %s11348_s17 = smov 115  }
 0xda9   : > { %v4606_v10 = vrot.slane %v9348_v17, %v11273_v35 }
 0xdaa   : > { %v9337_v28 = vpop.permute.xlu1 %3543  ;;  %v9339_v62 = vpop.permute.xlu0 %3581  ;;  %v5080_v20 = vpack.c.bf16 %v4658_v52, %v4620_v63  ;;  %v4644_v52 = vrot.slane %v9348_v17, %v11274_v42 }
 0xdab   : > { %v3560_v33 = vsel %vm11111_vm9, %v9337_v28, %v3547_v51  ;;  %v3598_v57 = vsel %vm11106_vm6, %v9339_v62, %v3585_v5  ;;  %vm11128_vm6 = vcmask 384000   ;;  %vm11124_vm9 = vcmask 793600  }
 0xdac   : > { %v3577_v3 = vmul.f32 %v3564_v32, %v3560_v33  ;;  %v3615_v27 = vmul.f32 %v3602_v25, %v3598_v57  ;;  %3816 = vrot.lane.b32.xlu1 %v8830_v45, %s11301_s27  ;;  %4182 = vrot.lane.b32.xlu0 %v8816_v47, %s11149_s19  ;;  %s11307_s27 = smov 31  }
 0xdad   : > { %5196 = vmatprep.subr.bf16.mxu1 %v5080_v20 }
 0xdae   : > { %v5015_v63 = vpack.c.bf16 %v3615_v27, %v3577_v3  ;;  %v9358_v51 = vpop.permute.xlu1 %4585  ;;  %v9360_v5 = vpop.permute.xlu0 %4623 }
 0xdaf   : > { %11302 = vst [vmem:[#allocation57_spill] sm:$0xff] %v9358_v51  ;;  %11303 = vst [vmem:[#allocation58_spill] sm:$0xff] %v9360_v5  ;;  %v4594_v32 = vsel %vm11108_vm5, %v9358_v51, %v4588_v46  ;;  %v4632_v33 = vsel %vm11107_vm7, %v9360_v5, %v4626_v31  ;;  %v3492_v46 = vrot.slane %v9281_v18, %v9039_v59  ;;  %vm11123_vm7 = vcmask 375808  }
 0xdb0   : > { %v4619_v25 = vmul.f32 %v4606_v10, %v4594_v32  ;;  %v4657_v57 = vmul.f32 %v4644_v52, %v4632_v33  ;;  %4184 = vrot.lane.b32.xlu1 %v8830_v45, %s11149_s19  ;;  %4220 = vrot.lane.b32.xlu0 %v8816_v47, %s11127_s24  ;;  %v3530_v31 = vrot.slane %v9281_v18, %v9042_v23  ;;  %vm11125_vm5 = vcmask 801792  }
 0xdb1   : > { %5156 = vmatpush1.bf16.msra.mxu0 %v5015_v63 }
 0xdb2   : > { %v5079_v20 = vpack.c.bf16 %v4657_v57, %v4619_v25  ;;  %v3471_v27 = vpop.permute.xlu1 %3470  ;;  %v9370_v3 = vpop.permute.xlu0 %3472 }
 0xdb3   : > { %v3477_v10 = vsel %vm11128_vm6, %v3471_v27, %v9370_v3 }
 0xdb4   : > { %4222 = vrot.lane.b32.xlu1 %v8830_v45, %s11127_s24  ;;  %4180 = vrot.lane.b32.xlu0 %v8814_v48, %s11149_s19  ;;  %v3502_v33 = vmul.f32 %v3492_v46, %v3477_v10  ;;  %v4572_v46 = vrot.slane %v9308_v36, %v9042_v23  ;;  %s11338_s19 = smov 50  }
 0xdb5   : > { %5197 = vmatpush1.bf16.msra.mxu1 %v5079_v20  ;;  %v4534_v20 = vrot.slane %v9308_v36, %v9039_v59 }
 0xdb6   : > { %v3509_v52 = vpop.permute.xlu1 %3508  ;;  %v9382_v63 = vpop.permute.xlu0 %3510 }
 0xdb7   : > { %11304 = vst [vmem:[#allocation59_spill] sm:$0xff] %v9382_v63  ;;  %v3515_v32 = vsel %vm11123_vm7, %v3509_v52, %v9382_v63 }
 0xdb8   : > { %v3540_v25 = vmul.f32 %v3530_v31, %v3515_v32  ;;  %4218 = vrot.lane.b32.xlu1 %v8814_v48, %s11127_s24  ;;  %3702 = vrot.lane.b32.xlu0 %v8830_v45, %s11305_s0  ;;  %s11310_s0 = smov 34   ;;  %s11318_s24 = smov 35  }
 0xdba   : > { %v4512_v57 = vpop.permute.xlu1 %4511  ;;  %v9390_v5 = vpop.permute.xlu0 %4513  ;;  %v5012_v51 = vpack.c.bf16 %v3540_v25, %v3502_v33  ;;  %v3488_v25 = vrot.slane %v9321_v55, %v9039_v59 }
 0xdbb   : > { %11306 = vst [vmem:[#allocation60_spill] sm:$0xff] %v9390_v5  ;;  %v4519_v31 = vsel %vm11125_vm5, %v4512_v57, %v9390_v5 }
 0xdbc   : > { %3740 = vrot.lane.b32.xlu1 %v8830_v45, %s11307_s27  ;;  %4161 = vrot.lane.b32.xlu0 %v8816_v47, %s11233_s26  ;;  %v4544_v24 = vmul.f32 %v4534_v20, %v4519_v31  ;;  %s11311_s27 = smov 33  }
 0xdbd   : > { %5157 = vmatprep.subr.bf16.mxu0 %v5012_v51  ;;  %v3526_v51 = vrot.slane %v9321_v55, %v9042_v23 }
 0xdbe   : > { %v4550_v10 = vpop.permute.xlu1 %4549  ;;  %v9402_v32 = vpop.permute.xlu0 %4551 }
 0xdbf   : > { %11308 = vst [vmem:[#allocation61_spill] sm:$0xff] %v9402_v32  ;;  %v4557_v33 = vsel %vm11124_vm9, %v4550_v10, %v9402_v32 }
 0xdc0   : > { %v4582_v12 = vmul.f32 %v4572_v46, %v4557_v33  ;;  %4163 = vrot.lane.b32.xlu1 %v8830_v45, %s11233_s26  ;;  %4159 = vrot.lane.b32.xlu0 %v8814_v48, %s11233_s26  ;;  %v4530_v46 = vrot.slane %v9348_v17, %v9039_v59 }
 0xdc2   : > { %v9414_v5 = vpop.permute.xlu1 %3467  ;;  %v9416_v19 = vpop.permute.xlu0 %3505  ;;  %v5076_v6 = vpack.c.bf16 %v4582_v12, %v4544_v24  ;;  %v4568_v12 = vrot.slane %v9348_v17, %v9042_v23 }
 0xdc3   : > { %11309 = vst [vmem:[#allocation62_spill] sm:$0xff] %v9416_v19  ;;  %v3484_v32 = vsel %vm11128_vm6, %v9414_v5, %v3471_v27  ;;  %v3522_v20 = vsel %vm11123_vm7, %v9416_v19, %v3509_v52  ;;  %vm3400_vm7 = vcmask 400384   ;;  %vm11137_vm6 = vcmask 809984  }
 0xdc4   : > { %v3501_v31 = vmul.f32 %v3488_v25, %v3484_v32  ;;  %v3539_v33 = vmul.f32 %v3526_v51, %v3522_v20  ;;  %3626 = vrot.lane.b32.xlu1 %v8830_v45, %s11310_s0  ;;  %3664 = vrot.lane.b32.xlu0 %v8830_v45, %s11311_s27  ;;  %s11136_s0 = smov 2   ;;  %s11317_s27 = smov 45  }
 0xdc5   : > { %5198 = vmatprep.subr.bf16.mxu1 %v5076_v6 }
 0xdc6   : > { %v5011_v24 = vpack.c.bf16 %v3539_v33, %v3501_v31  ;;  %v9430_v27 = vpop.permute.xlu1 %4509  ;;  %v9432_v63 = vpop.permute.xlu0 %4547 }
 0xdc7   : > { %11312 = vst [vmem:[#allocation63_spill] sm:$0xff] %v9430_v27  ;;  %11313 = vst [vmem:[#allocation64_spill] sm:$0xff] %v9432_v63  ;;  %v4518_v52 = vsel %vm11125_vm5, %v9430_v27, %v4512_v57  ;;  %v4556_v32 = vsel %vm11124_vm9, %v9432_v63, %v4550_v10  ;;  %v3416_v57 = vrot.slane %v9281_v18, %v11283_v38  ;;  %vm11135_vm9 = vcmask 392192  }
 0xdc8   : > { %v4543_v25 = vmul.f32 %v4530_v46, %v4518_v52  ;;  %v4581_v51 = vmul.f32 %v4568_v12, %v4556_v32  ;;  %4103 = vrot.lane.b32.xlu1 %v8814_v48, %s11136_s0  ;;  %4105 = vrot.lane.b32.xlu0 %v8816_v47, %s11136_s0  ;;  %v3454_v10 = vrot.slane %v9281_v18, %v9117_v22  ;;  %vm11139_vm5 = vcmask 891904  }
 0xdc9   : > { %5158 = vmatpush1.bf16.msra.mxu0 %v5011_v24 }
 0xdca   : > { %v5075_v6 = vpack.c.bf16 %v4581_v51, %v4543_v25  ;;  %v3395_v20 = vpop.permute.xlu1 %3394  ;;  %v9442_v31 = vpop.permute.xlu0 %3396 }
 0xdcb   : > { %11314 = vst [vmem:[#allocation65_spill] sm:$0xff] %v9442_v31  ;;  %v3401_v46 = vsel %vm3400_vm7, %v3395_v20, %v9442_v31 }
 0xdcc   : > { %4141 = vrot.lane.b32.xlu1 %v8814_v48, %s11232_s25  ;;  %4143 = vrot.lane.b32.xlu0 %v8816_v47, %s11232_s25  ;;  %v3426_v52 = vmul.f32 %v3416_v57, %v3401_v46  ;;  %v4496_v57 = vrot.slane %v9308_v36, %v9117_v22 }
 0xdcd   : > { %5199 = vmatpush1.bf16.msra.mxu1 %v5075_v6  ;;  %v4458_v6 = vrot.slane %v9308_v36, %v11283_v38 }
 0xdce   : > { %v3433_v33 = vpop.permute.xlu1 %3432  ;;  %v9454_v12 = vpop.permute.xlu0 %3434 }
 0xdcf   : > { %11315 = vst [vmem:[#allocation66_spill] sm:$0xff] %v9454_v12  ;;  %v3439_v24 = vsel %vm11135_vm9, %v3433_v33, %v9454_v12 }
 0xdd0   : > { %v3464_v32 = vmul.f32 %v3454_v10, %v3439_v24  ;;  %4100 = vrot.lane.b32.xlu1 %v8844_v4, %s11136_s0  ;;  %4138 = vrot.lane.b32.xlu0 %v8844_v4, %s11232_s25  ;;  %s11323_s0 = smov 46  }
 0xdd2   : > { %v4436_v25 = vpop.permute.xlu1 %4435  ;;  %v9462_v51 = vpop.permute.xlu0 %4437  ;;  %v5008_v63 = vpack.c.bf16 %v3464_v32, %v3426_v52  ;;  %v3412_v32 = vrot.slane %v9321_v55, %v11283_v38 }
 0xdd3   : > { %11316 = vst [vmem:[#allocation67_spill] sm:$0xff] %v9462_v51  ;;  %v4443_v10 = vsel %vm11139_vm5, %v4436_v25, %v9462_v51 }
 0xdd4   : > { %3550 = vrot.lane.b32.xlu1 %v8830_v45, %s11317_s27  ;;  %3588 = vrot.lane.b32.xlu0 %v8830_v45, %s11318_s24  ;;  %v4468_v27 = vmul.f32 %v4458_v6, %v4443_v10  ;;  %s11148_s24 = smov 13   ;;  %s11145_s27 = smov 3  }
 0xdd5   : > { %5159 = vmatprep.subr.bf16.mxu0 %v5008_v63  ;;  %v3450_v63 = vrot.slane %v9321_v55, %v9117_v22 }
 0xdd6   : > { %v4474_v46 = vpop.permute.xlu1 %4473  ;;  %v9474_v24 = vpop.permute.xlu0 %4475 }
 0xdd7   : > { %11319 = vst [vmem:[#allocation68_spill] sm:$0xff] %v9474_v24  ;;  %v4481_v52 = vsel %vm11137_vm6, %v4474_v46, %v9474_v24 }
 0xdd8   : > { %v4506_v12 = vmul.f32 %v4496_v57, %v4481_v52  ;;  %4027 = vrot.lane.b32.xlu1 %v8814_v48, %s11148_s24  ;;  %4029 = vrot.lane.b32.xlu0 %v8816_v47, %s11148_s24  ;;  %v4454_v57 = vrot.slane %v9348_v17, %v11283_v38 }
 0xdda   : > { %v9486_v51 = vpop.permute.xlu1 %3391  ;;  %v9488_v31 = vpop.permute.xlu0 %3429  ;;  %v5072_v24 = vpack.c.bf16 %v4506_v12, %v4468_v27  ;;  %v4492_v27 = vrot.slane %v9348_v17, %v9117_v22 }
 0xddb   : > { %v3408_v19 = vsel %vm3400_vm7, %v9486_v51, %v3395_v20  ;;  %v3446_v6 = vsel %vm11135_vm9, %v9488_v31, %v3433_v33  ;;  %vm3324_vm9 = vcmask 416768  }
 0xddc   : > { %v3425_v10 = vmul.f32 %v3412_v32, %v3408_v19  ;;  %v3463_v52 = vmul.f32 %v3450_v63, %v3446_v6  ;;  %4065 = vrot.lane.b32.xlu1 %v8814_v48, %s11145_s27  ;;  %4067 = vrot.lane.b32.xlu0 %v8816_v47, %s11145_s27 }
 0xddd   : > { %5200 = vmatprep.subr.bf16.mxu1 %v5072_v24 }
 0xdde   : > { %v5007_v20 = vpack.c.bf16 %v3463_v52, %v3425_v10  ;;  %v9502_v12 = vpop.permute.xlu1 %4433  ;;  %v9504_v33 = vpop.permute.xlu0 %4471 }
 0xddf   : > { %11320 = vst [vmem:[#allocation69_spill] sm:$0xff] %v9502_v12  ;;  %11321 = vst [vmem:[#allocation70_spill] sm:$0xff] %v9504_v33  ;;  %v4442_v19 = vsel %vm11139_vm5, %v9502_v12, %v4436_v25  ;;  %v4480_v32 = vsel %vm11137_vm6, %v9504_v33, %v4474_v46  ;;  %v3340_v25 = vrot.slane %v9281_v18, %v11288_v60  ;;  %vm3362_vm6 = vcmask 408576  }
 0xde0   : > { %v4467_v63 = vmul.f32 %v4454_v57, %v4442_v19  ;;  %v4505_v6 = vmul.f32 %v4492_v27, %v4480_v32  ;;  %4024 = vrot.lane.b32.xlu1 %v8844_v4, %s11148_s24  ;;  %4062 = vrot.lane.b32.xlu0 %v8844_v4, %s11145_s27  ;;  %v3378_v46 = vrot.slane %v9281_v18, %v11289_v37  ;;  %vm11147_vm5 = vcmask 900096   ;;  %s11329_s27 = smov 49   ;;  %s11337_s24 = smov 51  }
 0xde1   : > { %5160 = vmatpush1.bf16.msra.mxu0 %v5007_v20 }
 0xde2   : > { %v5071_v24 = vpack.c.bf16 %v4505_v6, %v4467_v63  ;;  %v3319_v10 = vpop.permute.xlu1 %3318  ;;  %v9514_v52 = vpop.permute.xlu0 %3320 }
 0xde3   : > { %11322 = vst [vmem:[#allocation71_spill] sm:$0xff] %v9514_v52  ;;  %v3325_v57 = vsel %vm3324_vm9, %v3319_v10, %v9514_v52 }
 0xde4   : > { %3474 = vrot.lane.b32.xlu1 %v8830_v45, %s7026_s18  ;;  %3512 = vrot.lane.b32.xlu0 %v8830_v45, %s11323_s0  ;;  %v3350_v32 = vmul.f32 %v3340_v25, %v3325_v57  ;;  %s11325_s18 = smov 15   ;;  %s11146_s0 = smov 14  }
 0xde5   : > { %5201 = vmatpush1.bf16.msra.mxu1 %v5071_v24  ;;  %v4420_v24 = vrot.slane %v9308_v36, %v11289_v37  ;;  %v3374_v36 = vrot.slane %v9321_v55, %v11289_v37 }
 0xde6   : > { %v3357_v27 = vpop.permute.xlu1 %3356  ;;  %v9526_v20 = vpop.permute.xlu0 %3358 }
 0xde7   : > { %11324 = vst [vmem:[#allocation72_spill] sm:$0xff] %v9526_v20  ;;  %v3363_v19 = vsel %vm3362_vm6, %v3357_v27, %v9526_v20 }
 0xde8   : > { %v3388_v63 = vmul.f32 %v3378_v46, %v3363_v19  ;;  %3968 = vrot.lane.b32.xlu1 %v8814_v48, %s11325_s18  ;;  %3970 = vrot.lane.b32.xlu0 %v8816_v47, %s11325_s18 }
 0xdea   : > { %v4377_v6 = vpop.permute.xlu1 %4376  ;;  %v9534_v18 = vpop.permute.xlu0 %4378  ;;  %v5004_v33 = vpack.c.bf16 %v3388_v63, %v3350_v32  ;;  %v3336_v32 = vrot.slane %v9321_v55, %v11288_v60  ;;  %v11328_v63 = vld [vmem:[#allocation6_spill] sm:$0xff]  ;;  %v4416_v55 = vrot.slane %v9348_v17, %v11289_v37 }
 0xdeb   : > { %11326 = vst [vmem:[#allocation73_spill] sm:$0xff] %v9534_v18  ;;  %v4383_v25 = vsel %vm11172_vm0, %v4377_v6, %v9534_v18 }
 0xdec   : > { %3989 = vrot.lane.b32.xlu1 %v8814_v48, %s11146_s0  ;;  %3991 = vrot.lane.b32.xlu0 %v8816_v47, %s11146_s0  ;;  %v4392_v12 = vmul.f32 %v4383_v25, %v11328_v63 }
 0xded   : > { %5161 = vmatprep.subr.bf16.mxu0 %v5004_v33 }
 0xdee   : > { %v4398_v46 = vpop.permute.xlu1 %4397  ;;  %v9544_v57 = vpop.permute.xlu0 %4399 }
 0xdef   : > { %11327 = vst [vmem:[#allocation74_spill] sm:$0xff] %v9544_v57  ;;  %v4405_v19 = vsel %vm11147_vm5, %v4398_v46, %v9544_v57 }
 0xdf0   : > { %v4430_v20 = vmul.f32 %v4420_v24, %v4405_v19  ;;  %3965 = vrot.lane.b32.xlu1 %v8844_v4, %s11325_s18  ;;  %3986 = vrot.lane.b32.xlu0 %v8844_v4, %s11146_s0  ;;  %s11330_s0 = smov 48  }
 0xdf2   : > { %v9557_v33 = vpop.permute.xlu1 %3312  ;;  %v9559_v18 = vpop.permute.xlu0 %3353  ;;  %v5068_v57 = vpack.c.bf16 %v4430_v20, %v4392_v12 }
 0xdf3   : > { %v3332_v52 = vsel %vm3324_vm9, %v9557_v33, %v3319_v10  ;;  %v3370_v24 = vsel %vm3362_vm6, %v9559_v18, %v3357_v27  ;;  %v11333_v27 = vld [vmem:[#allocation7_spill] sm:$0xff] }
 0xdf4   : > { %v3349_v25 = vmul.f32 %v3336_v32, %v3332_v52  ;;  %v3387_v19 = vmul.f32 %v3374_v36, %v3370_v24  ;;  %3398 = vrot.lane.b32.xlu1 %v8830_v45, %s11329_s27  ;;  %3436 = vrot.lane.b32.xlu0 %v8830_v45, %s11330_s0  ;;  %s11344_s27 = smov 113   ;;  %s11346_s0 = smov 81  }
 0xdf5   : > { %5202 = vmatprep.subr.bf16.mxu1 %v5068_v57 }
 0xdf6   : > { %v5003_v63 = vpack.c.bf16 %v3387_v19, %v3349_v25  ;;  %v9571_v12 = vpop.permute.xlu1 %4374  ;;  %v9573_v20 = vpop.permute.xlu0 %4395 }
 0xdf7   : > { %11331 = vst [vmem:[#allocation75_spill] sm:$0xff] %v9571_v12  ;;  %11332 = vst [vmem:[#allocation76_spill] sm:$0xff] %v9573_v20  ;;  %v4382_v10 = vsel %vm11172_vm0, %v9571_v12, %v4377_v6  ;;  %v4404_v52 = vsel %vm11147_vm5, %v9573_v20, %v4398_v46  ;;  %vm11171_vm5 = vcmask 629760   ;;  %vm4033_vm0 = vcmask 105472  }
 0xdf8   : > { %v4391_v32 = vmul.f32 %v4382_v10, %v11333_v27  ;;  %v4429_v36 = vmul.f32 %v4416_v55, %v4404_v52  ;;  %3926 = vrot.lane.b32.xlu1 %v8814_v48, %s11234_s29  ;;  %3928 = vrot.lane.b32.xlu0 %v8816_v47, %s11234_s29  ;;  %v6842_v52 = vld [vmem:[%s10944_s2 + $0xc0] ss:$0 sm:$0xff] }
 0xdf9   : > { %5162 = vmatpush1.bf16.msra.mxu0 %v5003_v63 }
 0xdfa   : > { %v5067_v17 = vpack.c.bf16 %v4429_v36, %v4391_v32  ;;  %v4335_v57 = vpop.permute.xlu1 %4334  ;;  %v9584_v24 = vpop.permute.xlu0 %4336 }
 0xdfb   : > { %11334 = vst [vmem:[#allocation77_spill] sm:$0xff] %v9584_v24  ;;  %v4341_v6 = vsel %vm828_vm3, %v4335_v57, %v9584_v24 }
 0xdfc   : > { %3947 = vrot.lane.b32.xlu1 %v8814_v48, %s11235_s30  ;;  %3949 = vrot.lane.b32.xlu0 %v8816_v47, %s11235_s30  ;;  %v4350_v19 = vmul.f32 %v4341_v6, %v7296_v49 }
 0xdfd   : > { %5203 = vmatpush1.bf16.msra.mxu1 %v5067_v17 }
 0xdfe   : > { %v4356_v46 = vpop.permute.xlu1 %4355  ;;  %v9592_v25 = vpop.permute.xlu0 %4357 }
 0xdff   : > { %11335 = vst [vmem:[#allocation78_spill] sm:$0xff] %v9592_v25  ;;  %v4362_v63 = vsel %vm866_vm2, %v4356_v46, %v9592_v25 }
 0xe00   : > { %v4371_v55 = vmul.f32 %v4362_v63, %v7309_v54  ;;  %3923 = vrot.lane.b32.xlu1 %v8844_v4, %s11234_s29  ;;  %3944 = vrot.lane.b32.xlu0 %v8844_v4, %s11235_s30  ;;  %v6843_v63 = vld [vmem:[%s10944_s2 + $0xc8] ss:$0 sm:$0xff] }
 0xe02   : > { %v9602_v10 = vpop.permute.xlu1 %4965  ;;  %v4968_v32 = vpop.permute.xlu0 %4967  ;;  %v5064_v36 = vpack.c.bf16 %v4371_v55, %v4350_v19  ;;  %v9625_v55 = vld [vmem:[%s10944_s2 + $0x30] sm:$0xff] }
 0xe03   : > { %11336 = vst [vmem:[#allocation79_spill] sm:$0xff] %v9602_v10  ;;  %v4974_v17 = vsel %vm11171_vm5, %v9602_v10, %v4968_v32  ;;  %v3914_v12 = vrot.slane %v9625_v55, %v11274_v42 }
 0xe04   : > { %3322 = vrot.lane.b32.xlu1 %v8830_v45, %s11337_s24  ;;  %3360 = vrot.lane.b32.xlu0 %v8830_v45, %s11338_s19  ;;  %v4999_v6 = vmul.f32 %v6842_v52, %v4974_v17  ;;  %s11341_s19 = smov 79   ;;  %s11342_s24 = smov 78   ;;  %v9634_v52 = vld [vmem:[%s10944_s2 + $0x38] sm:$0xff] }
 0xe05   : > { %5163 = vmatprep.subr.bf16.mxu0 %v5064_v36  ;;  %v3880_v20 = vrot.slane %v9634_v52, %v11273_v35 }
 0xe06   : > { %v9616_v54 = vpop.permute.xlu1 %4969  ;;  %v9618_v49 = vpop.permute.xlu0 %4332  ;;  %v5099_v36 = vpack.c.bf16 %v4999_v6, %v4999_v6  ;;  %v3918_v6 = vrot.slane %v9634_v52, %v11274_v42 }
 0xe07   : > { %11339 = vst [vmem:[#allocation80_spill] sm:$0xff] %v9616_v54  ;;  %11340 = vst [vmem:[#allocation81_spill] sm:$0xff] %v9618_v49  ;;  %v4975_v19 = vsel %vm11171_vm5, %v4968_v32, %v9616_v54  ;;  %v4340_v32 = vsel %vm828_vm3, %v9618_v49, %v4335_v57 }
 0xe08   : > { %v5000_v27 = vmul.f32 %v6843_v63, %v4975_v19  ;;  %4895 = vrot.lane.b32.xlu1 %v8844_v4, %s11341_s19  ;;  %4933 = vrot.lane.b32.xlu0 %v8844_v4, %s11342_s24  ;;  %v3876_v63 = vrot.slane %v9625_v55, %v11273_v35  ;;  %s11347_s19 = smov 80   ;;  %s11355_s24 = smov 94  }
 0xe0a   : > { %v5100_v17 = vpack.c.bf16 %v5000_v27, %v5000_v27  ;;  %v9638_v10 = vpop.permute.xlu1 %4353  ;;  %v3855_v19 = vpop.permute.xlu0 %3854  ;;  %v4349_v27 = vmul.f32 %v4340_v32, %v7315_v56  ;;  %v9664_v32 = vcombine.high %v9245_v39, %v9245_v39 }
 0xe0b   : > { %11343 = vst [vmem:[#allocation82_spill] sm:$0xff] %v9638_v10  ;;  %v4361_v54 = vsel %vm866_vm2, %v9638_v10, %v4356_v46  ;;  %v3858_v25 = vsel %vm3856_vm14, %v8951_v34, %v3855_v19  ;;  %v3859_v46 = vsel %vm3856_vm14, %v3855_v19, %v9010_v0  ;;  %v5136_v10 = vsel %vm11170_vm1, %v5099_v36, 0 }
 0xe0c   : > { %v4370_v57 = vmul.f32 %v4361_v54, %v7299_v50  ;;  %4338 = vrot.lane.b32.xlu1 %v8844_v4, %s11344_s27  ;;  %4359 = vrot.lane.b32.xlu0 %v8844_v4, %s11291_s20  ;;  %11345 = vst [vmem:[#allocation83_spill] sm:$0xff] %v9664_v32  ;;  %v3883_v50 = vmul.f32 %v3876_v63, %v3858_v25  ;;  %vm4264_vm14 = vcmask 941056   ;;  %v9702_v63 = vld [vmem:[%s10944_s2 + $0x60] sm:$0xff] }
 0xe0d   : > { %6847 = vmatprep.subr.msk.bf16.mxu1 %vm11170_vm1, %v5100_v17  ;;  %v3884_v0 = vmul.f32 %v3880_v20, %v3859_v46  ;;  %v4315_v46 = vrot.slane %v9702_v63, %v9042_v23  ;;  %vm11376_vm1 = vcmask 285696  }
 0xe0e   : > { %v5063_v54 = vpack.c.bf16 %v4370_v57, %v4349_v27  ;;  %5219 = vmatpush2.bf16.msra.mxu1 %v5136_v10  ;;  %v3893_v34 = vpop.permute.xlu1 %3892  ;;  %v4259_v56 = vpop.permute.xlu0 %4258  ;;  %vm11377_vm5 = vmmov %vm11376_vm1 }
 0xe0f   : > { %v3896_v49 = vsel %vm3894_vm15, %v8963_v43, %v3893_v34  ;;  %v3897_v24 = vsel %vm3894_vm15, %v3893_v34, %v9012_v44  ;;  %vm4302_vm15 = vcmask 932864  }
 0xe10   : > { %v3921_v19 = vmul.f32 %v3914_v12, %v3896_v49  ;;  %v3922_v17 = vmul.f32 %v3918_v6, %v3897_v24  ;;  %4819 = vrot.lane.b32.xlu1 %v8844_v4, %s11346_s0  ;;  %4857 = vrot.lane.b32.xlu0 %v8844_v4, %s11347_s19  ;;  %v9681_v49 = vld [vmem:[%s10944_s2 + $0x68] sm:$0xff]  ;;  %s11349_s0 = smov 114   ;;  %v4277_v6 = vrot.slane %v9702_v63, %v9039_v59  ;;  %s11354_s19 = smov 125  }
 0xe11   : > { %5164 = vmatpush2.bf16.msra.mxu0 %v5063_v54  ;;  %5221 = vmatmul.mubr.bf16.vlgmr.msra.gmra.mxu1 %v9664_v32  ;;  %v4281_v44 = vrot.slane %v9681_v49, %v9039_v59 }
 0xe12   : > { %v5033_v10 = vpack.c.bf16 %v3921_v19, %v3883_v50  ;;  %v9675_v25 = vpop.permute.xlu1 %4260  ;;  %v4297_v43 = vpop.permute.xlu0 %4296  ;;  %v5034_v36 = vpack.c.bf16 %v3922_v17, %v3884_v0  ;;  %5261 = vmatprep.mubr.bf16.mxu1 %v9239_v2  ;;  %v4319_v50 = vrot.slane %v9681_v49, %v9042_v23  ;;  %v3800_v0 = vrot.slane %v9625_v55, %v9039_v59 }
 0xe13   : > { %v4266_v2 = vsel %vm4264_vm14, %v4259_v56, %v9675_v25 }
 0xe14   : > { %4262 = vrot.lane.b32.xlu1 %v8844_v4, %s11348_s17  ;;  %4300 = vrot.lane.b32.xlu0 %v8844_v4, %s11349_s0  ;;  %v4291_v27 = vmul.f32 %v4281_v44, %v4266_v2  ;;  %s11351_s17 = smov 82   ;;  %v3838_v44 = vrot.slane %v9625_v55, %v9042_v23  ;;  %s11353_s0 = smov 126  }
 0xe15   : > { %5229 = vmatprep.subr.bf16.mxu1 %v5034_v36  ;;  %v3804_v36 = vrot.slane %v9634_v52, %v9039_v59 }
 0xe16   : > { %5230 = vmatpush1.bf16.msra.mxu1 %v5033_v10  ;;  %v9693_v12 = vpop.permute.xlu1 %4298  ;;  %v9695_v20 = vpop.permute.xlu0 %4256 }
 0xe17   : > { %v4304_v24 = vsel %vm4302_vm15, %v4297_v43, %v9693_v12  ;;  %v4265_v54 = vsel %vm4264_vm14, %v9695_v20, %v4259_v56 }
 0xe18   : > { %v4329_v57 = vmul.f32 %v4319_v50, %v4304_v24  ;;  %4743 = vrot.lane.b32.xlu1 %v8844_v4, %s11350_s28  ;;  %4781 = vrot.lane.b32.xlu0 %v8844_v4, %s11351_s17  ;;  %v3842_v50 = vrot.slane %v9634_v52, %v9042_v23  ;;  %v4290_v56 = vmul.f32 %v4277_v6, %v4265_v54  ;;  %s11356_s28 = smov 93   ;;  %s11357_s17 = smov 96  }
 0xe1a   : > { %v9714_v34 = vpop.permute.xlu1 %4294  ;;  %v3779_v19 = vpop.permute.xlu0 %3778  ;;  %v5060_v17 = vpack.c.bf16 %v4329_v57, %v4291_v27 }
 0xe1b   : > { %11352 = vst [vmem:[#allocation84_spill] sm:$0xff] %v9714_v34  ;;  %v4303_v10 = vsel %vm4302_vm15, %v9714_v34, %v4297_v43  ;;  %v3782_v24 = vsel %vm3780_vm12, %v9044_v58, %v3779_v19  ;;  %v3783_v43 = vsel %vm3780_vm12, %v3779_v19, %v9088_v53  ;;  %vm4188_vm12 = vcmask 1031168  }
 0xe1c   : > { %v4328_v2 = vmul.f32 %v4315_v46, %v4303_v10  ;;  %4186 = vrot.lane.b32.xlu1 %v8844_v4, %s11353_s0  ;;  %4224 = vrot.lane.b32.xlu0 %v8844_v4, %s11354_s19  ;;  %v3807_v34 = vmul.f32 %v3800_v0, %v3782_v24  ;;  %v3808_v46 = vmul.f32 %v3804_v36, %v3783_v43  ;;  %s11358_s0 = smov 95   ;;  %s11359_s19 = smov 2  }
 0xe1d   : > { %5165 = vmatprep.subr.bf16.mxu0 %v5060_v17 }
 0xe1e   : > { %v5059_v27 = vpack.c.bf16 %v4328_v2, %v4290_v56  ;;  %v3817_v57 = vpop.permute.xlu1 %3816  ;;  %v4183_v32 = vpop.permute.xlu0 %4182  ;;  %v4201_v56 = vrot.slane %v9702_v63, %v11283_v38 }
 0xe1f   : > { %v3820_v6 = vsel %vm3818_vm13, %v9056_v29, %v3817_v57  ;;  %v3821_v58 = vsel %vm3818_vm13, %v3817_v57, %v9090_v1  ;;  %v4205_v29 = vrot.slane %v9681_v49, %v11283_v38  ;;  %vm4226_vm13 = vcmask 1022976  }
 0xe20   : > { %v3845_v54 = vmul.f32 %v3838_v44, %v3820_v6  ;;  %v3846_v10 = vmul.f32 %v3842_v50, %v3821_v58  ;;  %4667 = vrot.lane.b32.xlu1 %v8844_v4, %s11355_s24  ;;  %4705 = vrot.lane.b32.xlu0 %v8844_v4, %s11356_s28  ;;  %v4243_v1 = vrot.slane %v9681_v49, %v9117_v22  ;;  %s11360_s24 = smov 98   ;;  %s11361_s28 = smov 97  }
 0xe21   : > { %5166 = vmatpush2.bf16.msra.mxu0 %v5059_v27  ;;  %v4239_v49 = vrot.slane %v9702_v63, %v9117_v22  ;;  %v3724_v57 = vrot.slane %v9625_v55, %v11283_v38  ;;  %v3766_v63 = vrot.slane %v9634_v52, %v9117_v22 }
 0xe22   : > { %v5029_v53 = vpack.c.bf16 %v3845_v54, %v3807_v34  ;;  %v9742_v19 = vpop.permute.xlu1 %4184  ;;  %v4221_v0 = vpop.permute.xlu0 %4220  ;;  %v5030_v17 = vpack.c.bf16 %v3846_v10, %v3808_v46  ;;  %v3728_v54 = vrot.slane %v9634_v52, %v11283_v38  ;;  %v3762_v10 = vrot.slane %v9625_v55, %v9117_v22 }
 0xe23   : > { %v4190_v34 = vsel %vm4188_vm12, %v4183_v32, %v9742_v19 }
 0xe24   : > { %4165 = vrot.lane.b32.xlu1 %v8844_v4, %s11233_s26  ;;  %4591 = vrot.lane.b32.xlu0 %v8844_v4, %s11357_s17  ;;  %v4215_v2 = vmul.f32 %v4205_v29, %v4190_v34  ;;  %s11362_s17 = smov 13  }
 0xe25   : > { %5231 = vmatprep.subr.bf16.mxu1 %v5030_v17 }
 0xe26   : > { %5232 = vmatpush1.bf16.msra.mxu1 %v5029_v53  ;;  %v9754_v36 = vpop.permute.xlu1 %4222  ;;  %v9756_v44 = vpop.permute.xlu0 %4180 }
 0xe27   : > { %v4228_v50 = vsel %vm4226_vm13, %v4221_v0, %v9754_v36  ;;  %v4189_v43 = vsel %vm4188_vm12, %v9756_v44, %v4183_v32 }
 0xe28   : > { %v4253_v24 = vmul.f32 %v4243_v1, %v4228_v50  ;;  %4629 = vrot.lane.b32.xlu1 %v8844_v4, %s11358_s0  ;;  %4107 = vrot.lane.b32.xlu0 %v8830_v45, %s11359_s19  ;;  %v4214_v32 = vmul.f32 %v4201_v56, %v4189_v43  ;;  %s11363_s0 = smov 3   ;;  %s11364_s19 = smov 109  }
 0xe2a   : > { %v9770_v27 = vpop.permute.xlu1 %4218  ;;  %v3703_v6 = vpop.permute.xlu0 %3702  ;;  %v5056_v58 = vpack.c.bf16 %v4253_v24, %v4215_v2 }
 0xe2b   : > { %v4227_v46 = vsel %vm4226_vm13, %v9770_v27, %v4221_v0  ;;  %v3706_v17 = vsel %vm3704_vm10, %v9119_v11, %v3703_v6  ;;  %v3707_v0 = vsel %vm3704_vm10, %v3703_v6, %v9163_v14  ;;  %vm11365_vm10 = vcmask 269312  }
 0xe2c   : > { %v4252_v53 = vmul.f32 %v4239_v49, %v4227_v46  ;;  %4145 = vrot.lane.b32.xlu1 %v8830_v45, %s11232_s25  ;;  %4515 = vrot.lane.b32.xlu0 %v8844_v4, %s11360_s24  ;;  %v3731_v50 = vmul.f32 %v3724_v57, %v3706_v17  ;;  %v3732_v2 = vmul.f32 %v3728_v54, %v3707_v0  ;;  %s11367_s24 = smov 99  }
 0xe2d   : > { %5167 = vmatprep.subr.bf16.mxu0 %v5056_v58  ;;  %v3652_v46 = vrot.slane %v9634_v52, %v11288_v60  ;;  %v3686_v54 = vrot.slane %v9625_v55, %v11289_v37 }
 0xe2e   : > { %v5055_v29 = vpack.c.bf16 %v4252_v53, %v4214_v32  ;;  %v3741_v1 = vpop.permute.xlu1 %3740  ;;  %v4162_v34 = vpop.permute.xlu0 %4161  ;;  %v3690_v32 = vrot.slane %v9634_v52, %v11289_v37 }
 0xe2f   : > { %v3744_v56 = vsel %vm3742_vm11, %v9131_v61, %v3741_v1  ;;  %v3745_v11 = vsel %vm3742_vm11, %v3741_v1, %v9165_v41  ;;  %v3648_v61 = vrot.slane %v9625_v55, %v11288_v60  ;;  %vm11366_vm11 = vmmov %vm11365_vm10 }
 0xe30   : > { %v3769_v24 = vmul.f32 %v3762_v10, %v3744_v56  ;;  %v3770_v49 = vmul.f32 %v3766_v63, %v3745_v11  ;;  %4553 = vrot.lane.b32.xlu1 %v8844_v4, %s11361_s28  ;;  %4031 = vrot.lane.b32.xlu0 %v8830_v45, %s11362_s17  ;;  %s11371_s17 = smov 110  }
 0xe31   : > { %5168 = vmatpush2.bf16.msra.mxu0 %v5055_v29 }
 0xe32   : > { %v5025_v14 = vpack.c.bf16 %v3769_v24, %v3731_v50  ;;  %v9798_v43 = vpop.permute.xlu1 %4163  ;;  %v9800_v57 = vpop.permute.xlu0 %4159  ;;  %v5026_v6 = vpack.c.bf16 %v3770_v49, %v3732_v2 }
 0xe33   : > { %v4168_v41 = vsel %vm790_vm4, %v4162_v34, %v9798_v43  ;;  %v4167_v58 = vsel %vm790_vm4, %v9800_v57, %v4162_v34 }
 0xe34   : > { %v4177_v10 = vmul.f32 %v4168_v41, %v7342_v30  ;;  %v4176_v63 = vmul.f32 %v4167_v58, %v7335_v26  ;;  %4069 = vrot.lane.b32.xlu1 %v8830_v45, %s11363_s0  ;;  %4439 = vrot.lane.b32.xlu0 %v8844_v4, %s11364_s19  ;;  %s11368_s0 = smov 14   ;;  %s11369_s19 = smov 111  }
 0xe35   : > { %5233 = vmatprep.subr.bf16.mxu1 %v5026_v6 }
 0xe36   : > { %v5051_v53 = vpack.c.bf16 %v4176_v63, %v8814_v48  ;;  %5234 = vmatpush1.bf16.msra.mxu1 %v5025_v14  ;;  %v3627_v17 = vpop.permute.xlu1 %3626  ;;  %v3665_v0 = vpop.permute.xlu0 %3664  ;;  %v5052_v55 = vpack.c.bf16 %v4177_v10, %v8816_v47  ;;  %v9871_v10 = vld [vmem:[%s10944_s2 + $0x18] sm:$0xff] }
 0xe37   : > { %v3630_v29 = vsel %vm3628_vm8, %v9191_v7, %v3627_v17  ;;  %v3631_v1 = vsel %vm3628_vm8, %v3627_v17, %v9241_v21  ;;  %v3668_v34 = vsel %vm11365_vm10, %v9203_v8, %v3665_v0  ;;  %v3669_v52 = vsel %vm11366_vm11, %v3665_v0, %v9243_v15  ;;  %v9839_v15 = vld [vmem:[%s10944_s2 + $0x48] sm:$0xff] }
 0xe38   : > { %v3655_v50 = vmul.f32 %v3648_v61, %v3630_v29  ;;  %v3656_v56 = vmul.f32 %v3652_v46, %v3631_v1  ;;  %v3693_v48 = vmul.f32 %v3686_v54, %v3668_v34  ;;  %v3694_v11 = vmul.f32 %v3690_v32, %v3669_v52  ;;  %4477 = vrot.lane.b32.xlu1 %v8844_v4, %s11367_s24  ;;  %v9856_v61 = vld [vmem:[%s10944_s2 + $0x10] sm:$0xff]  ;;  %v9864_v46 = vld [vmem:[%s10944_s2 + $0x40] sm:$0xff] }
 0xe39   : > { %3972 = vrot.lane.b32.xlu0 %v8830_v45, %s11325_s18  ;;  %5169 = vmatprep.subr.bf16.mxu0 %v5052_v55  ;;  %vm4109_vm8 = vcmask 15360   ;;  %v4125_v2 = vrot.slane %v9839_v15, %v11273_v35  ;;  %vm11370_vm10 = vcmask 7168   ;;  %v4121_v54 = vrot.slane %v9864_v46, %v11273_v35 }
 0xe3a   : > { %v5021_v47 = vpack.c.bf16 %v3693_v48, %v3655_v50  ;;  %5170 = vmatpush2.bf16.msra.mxu0 %v5051_v53  ;;  %v4104_v7 = vpop.permute.xlu1 %4103  ;;  %v9834_v21 = vpop.permute.xlu0 %4105  ;;  %v5022_v8 = vpack.c.bf16 %v3694_v11, %v3656_v56  ;;  %v3572_v17 = vrot.slane %v9856_v61, %v11273_v35  ;;  %vm11372_vm11 = vmmov %vm11370_vm10  ;;  %v3576_v29 = vrot.slane %v9871_v10, %v11273_v35 }
 0xe3b   : > { %v4110_v24 = vsel %vm4109_vm8, %v4104_v7, %v9834_v21  ;;  %v3610_v1 = vrot.slane %v9856_v61, %v11274_v42  ;;  %v3614_v50 = vrot.slane %v9871_v10, %v11274_v42 }
 0xe3c   : > { %3993 = vrot.lane.b32.xlu1 %v8830_v45, %s11368_s0  ;;  %5235 = vmatprep.subr.bf16.mxu1 %v5022_v8  ;;  %v4135_v41 = vmul.f32 %v4125_v2, %v4110_v24 }
 0xe3d   : > { %4380 = vrot.lane.b32.xlu0 %v8844_v4, %s11369_s19  ;;  %5236 = vmatpush1.bf16.msra.mxu1 %v5021_v47 }
 0xe3e   : > { %v4142_v49 = vpop.permute.xlu1 %4141  ;;  %v9849_v14 = vpop.permute.xlu0 %4143 }
 0xe3f   : > { %v4147_v6 = vsel %vm11370_vm10, %v4142_v49, %v9849_v14  ;;  %vm11374_vm10 = vcmask 367616  }
 0xe40   : > { %v4156_v58 = vmul.f32 %v4147_v6, %v7391_v13  ;;  %4401 = vrot.lane.b32.xlu1 %v8844_v4, %s11371_s17  ;;  %s590_s17 = scalar_lea.vmem %s10958_s16, %s7143_s23 }
 0xe41   : > { %3930 = vrot.lane.b32.xlu0 %v8830_v45, %s11234_s29 }
 0xe42   : > { %v9875_v63 = vpop.permute.xlu1 %4100  ;;  %v9877_v32 = vpop.permute.xlu0 %4138  ;;  %v5048_v53 = vpack.c.bf16 %v4156_v58, %v4135_v41 }
 0xe43   : > { %v4117_v0 = vsel %vm4109_vm8, %v9875_v63, %v4104_v7  ;;  %v4154_v55 = vsel %vm11372_vm11, %v9877_v32, %v4142_v49  ;;  %vm11375_vm11 = vmmov %vm11374_vm10 }
 0xe44   : > { %v4134_v34 = vmul.f32 %v4121_v54, %v4117_v0  ;;  %v4155_v52 = vmul.f32 %v4154_v55, %v7381_v9  ;;  %3951 = vrot.lane.b32.xlu1 %v8830_v45, %s11235_s30  ;;  %5171 = vmatprep.subr.bf16.mxu0 %v5048_v53 }
 0xe45   : > { %4971 = vrot.lane.b32.xlu0 %v8844_v4, %s11373_s1 }
 0xe46   : > { %v5047_v56 = vpack.c.bf16 %v4155_v52, %v4134_v34  ;;  %v3551_v48 = vpop.permute.xlu1 %3550  ;;  %v3589_v11 = vpop.permute.xlu0 %3588  ;;  %v4045_v34 = vrot.slane %v9864_v46, %v9039_v59  ;;  %v4083_v52 = vrot.slane %v9864_v46, %v9042_v23 }
 0xe47   : > { %v3554_v47 = vsel %vm11374_vm10, %v9283_v40, %v3551_v48  ;;  %v3555_v7 = vsel %vm11375_vm11, %v3551_v48, %v9337_v28  ;;  %v3592_v8 = vsel %vm11376_vm1, %v9295_v16, %v3589_v11  ;;  %v3593_v2 = vsel %vm11377_vm5, %v3589_v11, %v9339_v62 }
 0xe48   : > { %v3579_v24 = vmul.f32 %v3572_v17, %v3554_v47  ;;  %v3580_v49 = vmul.f32 %v3576_v29, %v3555_v7  ;;  %v3617_v6 = vmul.f32 %v3610_v1, %v3592_v8  ;;  %v3618_v41 = vmul.f32 %v3614_v50, %v3593_v2  ;;  %5172 = vmatpush2.bf16.msra.mxu0 %v5047_v56 }
 0xe49   : > { %v4049_v28 = vrot.slane %v9839_v15, %v9039_v59  ;;  %vm11173_vm10 = vcmask 23552   ;;  %v4087_v16 = vrot.slane %v9839_v15, %v9042_v23  ;;  %v3496_v7 = vrot.slane %v9856_v61, %v9039_v59 }
 0xe4a   : > { %v5017_v58 = vpack.c.bf16 %v3617_v6, %v3579_v24  ;;  %v4028_v54 = vpop.permute.xlu1 %4027  ;;  %v9904_v53 = vpop.permute.xlu0 %4029  ;;  %v5018_v40 = vpack.c.bf16 %v3618_v41, %v3580_v49  ;;  %v3500_v8 = vrot.slane %v9871_v10, %v9039_v59  ;;  %v3534_v49 = vrot.slane %v9856_v61, %v9042_v23 }
 0xe4b   : > { %v4034_v62 = vsel %vm4033_vm0, %v4028_v54, %v9904_v53  ;;  %v3538_v6 = vrot.slane %v9871_v10, %v9042_v23  ;;  %vm11378_vm1 = vcmask 384000   ;;  %vm11381_vm11 = vcmask 375808  }
 0xe4c   : > { %5237 = vmatprep.subr.bf16.mxu1 %v5018_v40  ;;  %v4059_v29 = vmul.f32 %v4049_v28, %v4034_v62  ;;  %vm11379_vm5 = vmmov %vm11378_vm1 }
 0xe4d   : > { %5238 = vmatpush1.bf16.msra.mxu1 %v5017_v58 }
 0xe4e   : > { %v4066_v17 = vpop.permute.xlu1 %4065  ;;  %v9912_v0 = vpop.permute.xlu0 %4067 }
 0xe4f   : > { %v4072_v55 = vsel %vm11173_vm10, %v4066_v17, %v9912_v0 }
 0xe50   : > { %v4097_v1 = vmul.f32 %v4087_v16, %v4072_v55  ;;  %v11380_v16 = vld [vmem:[#allocation59_spill] sm:$0xff] }
 0xe52   : > { %v9920_v50 = vpop.permute.xlu1 %4024  ;;  %v9922_v56 = vpop.permute.xlu0 %4062  ;;  %v5044_v48 = vpack.c.bf16 %v4097_v1, %v4059_v29 }
 0xe53   : > { %v4041_v11 = vsel %vm4033_vm0, %v9920_v50, %v4028_v54  ;;  %v4079_v47 = vsel %vm11173_vm10, %v9922_v56, %v4066_v17  ;;  %v11382_v17 = vld [vmem:[#allocation62_spill] sm:$0xff]  ;;  %vm11383_vm10 = vmmov %vm11381_vm11 }
 0xe54   : > { %v4058_v2 = vmul.f32 %v4045_v34, %v4041_v11  ;;  %v4096_v24 = vmul.f32 %v4083_v52, %v4079_v47  ;;  %5173 = vmatprep.subr.bf16.mxu0 %v5044_v48 }
 0xe56   : > { %v5043_v41 = vpack.c.bf16 %v4096_v24, %v4058_v2  ;;  %v3475_v58 = vpop.permute.xlu1 %3474  ;;  %v3513_v54 = vpop.permute.xlu0 %3512 }
 0xe57   : > { %v3478_v40 = vsel %vm11378_vm1, %v9370_v3, %v3475_v58  ;;  %v3479_v28 = vsel %vm11379_vm5, %v3475_v58, %v9414_v5  ;;  %v3516_v62 = vsel %vm11381_vm11, %v11380_v16, %v3513_v54  ;;  %v3517_v55 = vsel %vm11383_vm10, %v3513_v54, %v11382_v17 }
 0xe58   : > { %v3503_v29 = vmul.f32 %v3496_v7, %v3478_v40  ;;  %v3504_v1 = vmul.f32 %v3500_v8, %v3479_v28  ;;  %v3541_v34 = vmul.f32 %v3534_v49, %v3516_v62  ;;  %v3542_v52 = vmul.f32 %v3538_v6, %v3517_v55  ;;  %5174 = vmatpush2.bf16.msra.mxu0 %v5043_v41  ;;  %v11385_v49 = vld [vmem:[#allocation25_spill] sm:$0xff]  ;;  %v11387_v55 = vld [vmem:[#allocation31_spill] sm:$0xff] }
 0xe59   : > { %vm3995_vm1 = vcmask 113664   ;;  %v4011_v5 = vrot.slane %v9839_v15, %v9117_v22  ;;  %vm11384_vm5 = vcmask 121856   ;;  %v4007_v58 = vrot.slane %v9864_v46, %v9117_v22 }
 0xe5a   : > { %v5013_v48 = vpack.c.bf16 %v3541_v34, %v3503_v29  ;;  %v3969_v11 = vpop.permute.xlu1 %3968  ;;  %v9944_v47 = vpop.permute.xlu0 %3970  ;;  %v5014_v2 = vpack.c.bf16 %v3542_v52, %v3504_v1  ;;  %vm11386_vm10 = vmmov %vm11384_vm5  ;;  %v3420_v62 = vrot.slane %v9856_v61, %v11283_v38  ;;  %v3424_v17 = vrot.slane %v9871_v10, %v11283_v38 }
 0xe5b   : > { %v3974_v3 = vsel %vm11384_vm5, %v3969_v11, %v9944_v47  ;;  %v3458_v1 = vrot.slane %v9856_v61, %v9117_v22  ;;  %v3462_v34 = vrot.slane %v9871_v10, %v9117_v22  ;;  %vm11390_vm11 = vcmask 392192  }
 0xe5c   : > { %5239 = vmatprep.subr.bf16.mxu1 %v5014_v2  ;;  %v3983_v6 = vmul.f32 %v3974_v3, %v11385_v49  ;;  %v11388_v2 = vld [vmem:[#allocation65_spill] sm:$0xff]  ;;  %vm11391_vm5 = vmmov %vm11390_vm11 }
 0xe5d   : > { %5240 = vmatpush1.bf16.msra.mxu1 %v5013_v48 }
 0xe5e   : > { %v3990_v24 = vpop.permute.xlu1 %3989  ;;  %v9950_v7 = vpop.permute.xlu0 %3991 }
 0xe5f   : > { %v3996_v8 = vsel %vm3995_vm1, %v3990_v24, %v9950_v7 }
 0xe60   : > { %v4021_v41 = vmul.f32 %v4011_v5, %v3996_v8 }
 0xe62   : > { %v9957_v54 = vpop.permute.xlu1 %3965  ;;  %v9959_v40 = vpop.permute.xlu0 %3986  ;;  %v5040_v15 = vpack.c.bf16 %v4021_v41, %v3983_v6 }
 0xe63   : > { %v3981_v28 = vsel %vm11386_vm10, %v9957_v54, %v3969_v11  ;;  %v4003_v16 = vsel %vm3995_vm1, %v9959_v40, %v3990_v24  ;;  %v11389_v24 = vld [vmem:[#allocation66_spill] sm:$0xff]  ;;  %vm11393_vm10 = vcmask 138240  }
 0xe64   : > { %v3982_v29 = vmul.f32 %v3981_v28, %v11387_v55  ;;  %v4020_v46 = vmul.f32 %v4007_v58, %v4003_v16  ;;  %5175 = vmatprep.subr.bf16.mxu0 %v5040_v15 }
 0xe66   : > { %v5039_v52 = vpack.c.bf16 %v4020_v46, %v3982_v29  ;;  %v3399_v48 = vpop.permute.xlu1 %3398  ;;  %v3437_v11 = vpop.permute.xlu0 %3436 }
 0xe67   : > { %v3402_v5 = vsel %vm3400_vm7, %v11388_v2, %v3399_v48  ;;  %v3403_v3 = vsel %vm3400_vm7, %v3399_v48, %v9486_v51  ;;  %v3440_v8 = vsel %vm11390_vm11, %v11389_v24, %v3437_v11  ;;  %v3441_v6 = vsel %vm11391_vm5, %v3437_v11, %v9488_v31  ;;  %vm11400_vm11 = vmmov %vm11393_vm10 }
 0xe68   : > { %v3427_v41 = vmul.f32 %v3420_v62, %v3402_v5  ;;  %v3428_v58 = vmul.f32 %v3424_v17, %v3403_v3  ;;  %v3465_v15 = vmul.f32 %v3458_v1, %v3440_v8  ;;  %v3466_v28 = vmul.f32 %v3462_v34, %v3441_v6  ;;  %5176 = vmatpush2.bf16.msra.mxu0 %v5039_v52  ;;  %v11396_v62 = vld [vmem:[#allocation33_spill] sm:$0xff] }
 0xe69   : > { %vm11395_vm7 = vcmask 130048   ;;  %v11397_v1 = vld [vmem:[#allocation37_spill] sm:$0xff]  ;;  %v3344_v8 = vrot.slane %v9856_v61, %v11288_v60  ;;  %v3348_v6 = vrot.slane %v9871_v10, %v11288_v60 }
 0xe6a   : > { %v5009_v16 = vpack.c.bf16 %v3465_v15, %v3427_v41  ;;  %v3927_v29 = vpop.permute.xlu1 %3926  ;;  %v9982_v46 = vpop.permute.xlu0 %3928  ;;  %v5010_v9 = vpack.c.bf16 %v3466_v28, %v3428_v58  ;;  %vm11401_vm5 = vmmov %vm11395_vm7  ;;  %v10012_v41 = vld [vmem:[%s10944_s2 + $0xb8] sm:$0xff]  ;;  %v11402_v58 = vld [vmem:[#allocation39_spill] sm:$0xff] }
 0xe6b   : > { %11392 = vst [vmem:[#allocation59_spill] sm:$0xff] %v9982_v46  ;;  %v3932_v51 = vsel %vm11393_vm10, %v3927_v29, %v9982_v46  ;;  %v11403_v28 = vld [vmem:[#allocation34_spill] sm:$0xff]  ;;  %vm11407_vm10 = vcmask 646144   ;;  %v11412_v46 = vld [vmem:[#allocation44_spill] sm:$0xff] }
 0xe6c   : > { %5241 = vmatprep.subr.bf16.mxu1 %v5010_v9  ;;  %v3941_v17 = vmul.f32 %v3932_v51, %v11396_v62  ;;  %v9999_v9 = vld [vmem:[%s10944_s2 + $0xb0] sm:$0xff]  ;;  %v3386_v51 = vrot.slane %v9871_v10, %v11289_v37 }
 0xe6d   : > { %5242 = vmatpush1.bf16.msra.mxu1 %v5009_v16 }
 0xe6e   : > { %v3948_v48 = vpop.permute.xlu1 %3947  ;;  %v9986_v2 = vpop.permute.xlu0 %3949 }
 0xe6f   : > { %11394 = vst [vmem:[#allocation62_spill] sm:$0xff] %v9986_v2  ;;  %v3953_v31 = vsel %vm11395_vm7, %v3948_v48, %v9986_v2  ;;  %v11406_v2 = vld [vmem:[#allocation2_spill] sm:$0xff]  ;;  %vm11411_vm7 = vcmask 637952  }
 0xe70   : > { %v3962_v34 = vmul.f32 %v3953_v31, %v11397_v1  ;;  %v4922_v1 = vrot.slane %v10012_v41, %v11273_v35 }
 0xe72   : > { %v9992_v52 = vpop.permute.xlu1 %3923  ;;  %v9994_v11 = vpop.permute.xlu0 %3944  ;;  %v5036_v5 = vpack.c.bf16 %v3962_v34, %v3941_v17 }
 0xe73   : > { %11398 = vst [vmem:[#allocation65_spill] sm:$0xff] %v9992_v52  ;;  %11399 = vst [vmem:[#allocation66_spill] sm:$0xff] %v9994_v11  ;;  %v3939_v3 = vsel %vm11400_vm11, %v9992_v52, %v3927_v29  ;;  %v3960_v24 = vsel %vm11401_vm5, %v9994_v11, %v3948_v48  ;;  %v3382_v29 = vrot.slane %v9856_v61, %v11289_v37  ;;  %v11408_v52 = vld [vmem:[#allocation8_spill] sm:$0xff]  ;;  %vm11415_vm11 = vcmask 64512  }
 0xe74   : > { %v3940_v15 = vmul.f32 %v3939_v3, %v11402_v58  ;;  %v3961_v16 = vmul.f32 %v3960_v24, %v11403_v28  ;;  %5177 = vmatprep.subr.bf16.mxu0 %v5036_v5  ;;  %v4918_v48 = vrot.slane %v9999_v9, %v11273_v35  ;;  %v4956_v3 = vrot.slane %v9999_v9, %v11274_v42  ;;  %v11404_v24 = vld [vmem:[#allocation71_spill] sm:$0xff]  ;;  %v11405_v58 = vld [vmem:[#allocation72_spill] sm:$0xff] }
 0xe75   : > { %v4960_v5 = vrot.slane %v10012_v41, %v11274_v42  ;;  %vm11425_vm5 = vcmask 662528  }
 0xe76   : > { %v5035_v31 = vpack.c.bf16 %v3961_v16, %v3940_v15  ;;  %v3323_v17 = vpop.permute.xlu1 %3322  ;;  %v3361_v34 = vpop.permute.xlu0 %3360 }
 0xe77   : > { %v3326_v61 = vsel %vm3324_vm9, %v11404_v24, %v3323_v17  ;;  %v3327_v10 = vsel %vm3324_vm9, %v3323_v17, %v9557_v33  ;;  %v3364_v15 = vsel %vm3362_vm6, %v11405_v58, %v3361_v34  ;;  %v3365_v16 = vsel %vm3362_vm6, %v3361_v34, %v9559_v18  ;;  %vm11409_vm9 = vmmov %vm11407_vm10  ;;  %v11410_v17 = vld [vmem:[#allocation9_spill] sm:$0xff] }
 0xe78   : > { %v3351_v28 = vmul.f32 %v3344_v8, %v3326_v61  ;;  %v3352_v62 = vmul.f32 %v3348_v6, %v3327_v10  ;;  %v3389_v55 = vmul.f32 %v3382_v29, %v3364_v15  ;;  %v3390_v49 = vmul.f32 %v3386_v51, %v3365_v16  ;;  %5178 = vmatpush2.bf16.msra.mxu0 %v5035_v31  ;;  %vm11413_vm6 = vmmov %vm11411_vm7  ;;  %v11417_v51 = vld [vmem:[#allocation81_spill] sm:$0xff]  ;;  %v11418_v31 = vld [vmem:[#allocation78_spill] sm:$0xff] }
 0xe79   : > { %v11420_v61 = vld [vmem:[#allocation14_spill] sm:$0xff] }
 0xe7a   : > { %v5005_v30 = vpack.c.bf16 %v3389_v55, %v3351_v28  ;;  %v4896_v13 = vpop.permute.xlu1 %4895  ;;  %v4934_v26 = vpop.permute.xlu0 %4933  ;;  %v5006_v11 = vpack.c.bf16 %v3390_v49, %v3352_v62  ;;  %v4842_v49 = vrot.slane %v9999_v9, %v9039_v59  ;;  %v11421_v15 = vld [vmem:[#allocation10_spill] sm:$0xff] }
 0xe7b   : > { %v4900_v24 = vsel %vm11407_vm10, %v11406_v2, %v4896_v13  ;;  %v4906_v33 = vsel %vm11409_vm9, %v4896_v13, %v11408_v52  ;;  %v4938_v58 = vsel %vm11411_vm7, %v11410_v17, %v4934_v26  ;;  %v4944_v18 = vsel %vm11413_vm6, %v4934_v26, %v11412_v46  ;;  %5180 = vmatmul.mubr.bf16.vlgmr.msra.gmra.mxu0 %v9245_v39  ;;  %v11414_v2 = vld [vmem:[#allocation52_spill] sm:$0xff]  ;;  %v11423_v17 = vld [vmem:[#allocation13_spill] sm:$0xff]  ;;  %vm11427_vm10 = vmmov %vm11425_vm5 }
 0xe7c   : > { %v4925_v8 = vmul.f32 %v4918_v48, %v4900_v24  ;;  %v4926_v6 = vmul.f32 %v4922_v1, %v4906_v33  ;;  %v4963_v55 = vmul.f32 %v4956_v3, %v4938_v58  ;;  %v4964_v28 = vmul.f32 %v4960_v5, %v4944_v18  ;;  %5243 = vmatprep.subr.bf16.mxu1 %v5006_v11  ;;  %v11419_v3 = vld [vmem:[#allocation82_spill] sm:$0xff]  ;;  %v11422_v24 = vld [vmem:[#allocation16_spill] sm:$0xff] }
 0xe7d   : > { %5244 = vmatpush1.bf16.msra.mxu1 %v5005_v30  ;;  %v4846_v13 = vrot.slane %v10012_v41, %v9039_v59  ;;  %6850 = vmatprep.mubr.msk.bf16.mxu0 %vm11415_vm11, %v11414_v2  ;;  %v4880_v1 = vrot.slane %v9999_v9, %v9042_v23  ;;  %v4884_v11 = vrot.slane %v10012_v41, %v9042_v23  ;;  %v11416_v30 = vld [vmem:[#allocation77_spill] sm:$0xff]  ;;  %v10070_v18 = vld [vmem:[%s10944_s2 + $0x70] sm:$0xff]  ;;  %vm11429_vm9 = vcmask 654336  }
 0xe7e   : > { %v5097_v62 = vpack.c.bf16 %v4963_v55, %v4925_v8  ;;  %v4339_v52 = vpop.permute.xlu1 %4338  ;;  %v4360_v26 = vpop.permute.xlu0 %4359  ;;  %v5098_v46 = vpack.c.bf16 %v4964_v28, %v4926_v6  ;;  %v4285_v8 = vrot.slane %v10070_v18, %v9039_v59  ;;  %v10077_v6 = vld [vmem:[%s10944_s2 + $0x78] sm:$0xff]  ;;  %vm11431_vm7 = vmmov %vm11429_vm9  ;;  %vm11438_vm6 = vcmask 670720  }
 0xe7f   : > { %v4342_v29 = vsel %vm828_vm3, %v11416_v30, %v4339_v52  ;;  %v4348_v48 = vsel %vm828_vm3, %v4339_v52, %v11417_v51  ;;  %v4363_v34 = vsel %vm866_vm2, %v11418_v31, %v4360_v26  ;;  %v4369_v5 = vsel %vm866_vm2, %v4360_v26, %v11419_v3  ;;  %v11424_v30 = vld [vmem:[#allocation45_spill] sm:$0xff]  ;;  %v11426_v51 = vld [vmem:[#allocation47_spill] sm:$0xff]  ;;  %v11428_v31 = vld [vmem:[#allocation46_spill] sm:$0xff] }
 0xe80   : > { %v4351_v10 = vmul.f32 %v4342_v29, %v11420_v61  ;;  %v4352_v16 = vmul.f32 %v4348_v48, %v11421_v15  ;;  %v4372_v33 = vmul.f32 %v4363_v34, %v11422_v24  ;;  %v4373_v58 = vmul.f32 %v4369_v5, %v11423_v17  ;;  %5270 = vmatprep.subr.bf16.mxu0 %v5098_v46  ;;  %v11430_v3 = vld [vmem:[#allocation48_spill] sm:$0xff]  ;;  %vm11440_vm11 = vmmov %vm11438_vm6 }
 0xe81   : > { %5271 = vmatpush1.bf16.msra.mxu0 %v5097_v62  ;;  %v4289_v55 = vrot.slane %v10077_v6, %v9039_v59  ;;  %v4323_v26 = vrot.slane %v10070_v18, %v9042_v23  ;;  %v4327_v46 = vrot.slane %v10077_v6, %v9042_v23  ;;  %v4766_v17 = vrot.slane %v9999_v9, %v11283_v38 }
 0xe82   : > { %v5065_v28 = vpack.c.bf16 %v4372_v33, %v4351_v10  ;;  %v4820_v2 = vpop.permute.xlu1 %4819  ;;  %v4858_v52 = vpop.permute.xlu0 %4857  ;;  %v5066_v62 = vpack.c.bf16 %v4373_v58, %v4352_v16 }
 0xe83   : > { %v4824_v29 = vsel %vm11425_vm5, %v11424_v30, %v4820_v2  ;;  %v4830_v48 = vsel %vm11427_vm10, %v4820_v2, %v11426_v51  ;;  %v4862_v34 = vsel %vm11429_vm9, %v11428_v31, %v4858_v52  ;;  %v4868_v5 = vsel %vm11431_vm7, %v4858_v52, %v11430_v3 }
 0xe84   : > { %v4849_v10 = vmul.f32 %v4842_v49, %v4824_v29  ;;  %v4850_v16 = vmul.f32 %v4846_v13, %v4830_v48  ;;  %v4887_v33 = vmul.f32 %v4880_v1, %v4862_v34  ;;  %v4888_v58 = vmul.f32 %v4884_v11, %v4868_v5  ;;  %5245 = vmatprep.subr.bf16.mxu1 %v5066_v62 }
 0xe85   : > { %5246 = vmatpush2.bf16.msra.mxu1 %v5065_v28  ;;  %v4770_v30 = vrot.slane %v10012_v41, %v11283_v38  ;;  %v4804_v31 = vrot.slane %v9999_v9, %v9117_v22  ;;  %v4808_v49 = vrot.slane %v10012_v41, %v9117_v22  ;;  %v11432_v28 = vld [vmem:[#allocation84_spill] sm:$0xff]  ;;  %v4209_v3 = vrot.slane %v10070_v18, %v11283_v38 }
 0xe86   : > { %v5093_v24 = vpack.c.bf16 %v4887_v33, %v4849_v10  ;;  %v4263_v2 = vpop.permute.xlu1 %4262  ;;  %v4301_v51 = vpop.permute.xlu0 %4300  ;;  %v5094_v15 = vpack.c.bf16 %v4888_v58, %v4850_v16  ;;  %v11439_v58 = vld [vmem:[#allocation51_spill] sm:$0xff]  ;;  %vm11442_vm5 = vcmask 769024   ;;  %vm11446_vm10 = vcmask 760832  }
 0xe87   : > { %v4267_v13 = vsel %vm4264_vm14, %v9675_v25, %v4263_v2  ;;  %v4273_v1 = vsel %vm4264_vm14, %v4263_v2, %v9695_v20  ;;  %v4305_v11 = vsel %vm4302_vm15, %v9693_v12, %v4301_v51  ;;  %v4311_v52 = vsel %vm4302_vm15, %v4301_v51, %v11432_v28 }
 0xe88   : > { %v4292_v62 = vmul.f32 %v4285_v8, %v4267_v13  ;;  %v4293_v29 = vmul.f32 %v4289_v55, %v4273_v1  ;;  %v4330_v48 = vmul.f32 %v4323_v26, %v4305_v11  ;;  %v4331_v34 = vmul.f32 %v4327_v46, %v4311_v52  ;;  %5272 = vmatprep.subr.bf16.mxu0 %v5094_v15  ;;  %v11433_v55 = vld [vmem:[#allocation23_spill] sm:$0xff]  ;;  %v11437_v46 = vld [vmem:[#allocation49_spill] sm:$0xff] }
 0xe89   : > { %5273 = vmatpush1.bf16.msra.mxu0 %v5093_v24  ;;  %v4213_v25 = vrot.slane %v10077_v6, %v11283_v38  ;;  %v4247_v12 = vrot.slane %v10070_v18, %v9117_v22  ;;  %v4251_v8 = vrot.slane %v10077_v6, %v9117_v22  ;;  %vm11434_vm14 = vcmask 678912   ;;  %v11435_v24 = vld [vmem:[#allocation50_spill] sm:$0xff] }
 0xe8a   : > { %v5061_v5 = vpack.c.bf16 %v4330_v48, %v4292_v62  ;;  %v4744_v20 = vpop.permute.xlu1 %4743  ;;  %v4782_v10 = vpop.permute.xlu0 %4781  ;;  %v5062_v16 = vpack.c.bf16 %v4331_v34, %v4293_v29  ;;  %vm11436_vm15 = vmmov %vm11434_vm14  ;;  %v4690_v18 = vrot.slane %v9999_v9, %v11288_v60  ;;  %v4694_v6 = vrot.slane %v10012_v41, %v11288_v60 }
 0xe8b   : > { %v4748_v15 = vsel %vm11434_vm14, %v11433_v55, %v4744_v20  ;;  %v4754_v26 = vsel %vm11436_vm15, %v4744_v20, %v11435_v24  ;;  %v4786_v33 = vsel %vm11438_vm6, %v11437_v46, %v4782_v10  ;;  %v4792_v2 = vsel %vm11440_vm11, %v4782_v10, %v11439_v58 }
 0xe8c   : > { %v4773_v51 = vmul.f32 %v4766_v17, %v4748_v15  ;;  %v4774_v13 = vmul.f32 %v4770_v30, %v4754_v26  ;;  %v4811_v1 = vmul.f32 %v4804_v31, %v4786_v33  ;;  %v4812_v11 = vmul.f32 %v4808_v49, %v4792_v2  ;;  %5247 = vmatprep.subr.bf16.mxu1 %v5062_v16 }
 0xe8d   : > { %5248 = vmatpush2.bf16.msra.mxu1 %v5061_v5  ;;  %v4728_v48 = vrot.slane %v9999_v9, %v11289_v37  ;;  %v4732_v17 = vrot.slane %v10012_v41, %v11289_v37  ;;  %vm11452_vm9 = vcmask 785408   ;;  %vm11456_vm14 = vcmask 777216  }
 0xe8e   : > { %v5089_v28 = vpack.c.bf16 %v4811_v1, %v4773_v51  ;;  %v4187_v52 = vpop.permute.xlu1 %4186  ;;  %v4225_v62 = vpop.permute.xlu0 %4224  ;;  %v5090_v29 = vpack.c.bf16 %v4812_v11, %v4774_v13  ;;  %v10152_v51 = vld [vmem:[%s10944_s2 + $0x90] sm:$0xff]  ;;  %v10159_v1 = vld [vmem:[%s10944_s2 + $0x98] sm:$0xff]  ;;  %vm11454_vm7 = vmmov %vm11452_vm9  ;;  %vm11464_vm11 = vcmask 801792  }
 0xe8f   : > { %v4191_v30 = vsel %vm4188_vm12, %v9742_v19, %v4187_v52  ;;  %v4197_v31 = vsel %vm4188_vm12, %v4187_v52, %v9756_v44  ;;  %v4229_v49 = vsel %vm4226_vm13, %v9754_v36, %v4225_v62  ;;  %v4235_v34 = vsel %vm4226_vm13, %v4225_v62, %v9770_v27  ;;  %v11441_v19 = vld [vmem:[#allocation3_spill] sm:$0xff]  ;;  %v11443_v44 = vld [vmem:[#allocation53_spill] sm:$0xff]  ;;  %vm11444_vm12 = vmmov %vm11442_vm5 }
 0xe90   : > { %v4216_v5 = vmul.f32 %v4209_v3, %v4191_v30  ;;  %v4217_v20 = vmul.f32 %v4213_v25, %v4197_v31  ;;  %v4254_v10 = vmul.f32 %v4247_v12, %v4229_v49  ;;  %v4255_v16 = vmul.f32 %v4251_v8, %v4235_v34  ;;  %5274 = vmatprep.subr.bf16.mxu0 %v5090_v29  ;;  %v11445_v36 = vld [vmem:[#allocation18_spill] sm:$0xff]  ;;  %vm11448_vm13 = vmmov %vm11446_vm10  ;;  %v11450_v30 = vld [vmem:[#allocation20_spill] sm:$0xff] }
 0xe91   : > { %5275 = vmatpush1.bf16.msra.mxu0 %v5089_v28  ;;  %v11447_v27 = vld [vmem:[#allocation54_spill] sm:$0xff]  ;;  %v4614_v13 = vrot.slane %v10152_v51, %v11273_v35  ;;  %v4618_v11 = vrot.slane %v10159_v1, %v11273_v35  ;;  %v4652_v62 = vrot.slane %v10152_v51, %v11274_v42  ;;  %v4656_v29 = vrot.slane %v10159_v1, %v11274_v42  ;;  %v11451_v49 = vld [vmem:[#allocation55_spill] sm:$0xff]  ;;  %vm11458_vm15 = vmmov %vm11456_vm14 }
 0xe92   : > { %v5057_v9 = vpack.c.bf16 %v4254_v10, %v4216_v5  ;;  %v4668_v41 = vpop.permute.xlu1 %4667  ;;  %v4706_v55 = vpop.permute.xlu0 %4705  ;;  %v5058_v15 = vpack.c.bf16 %v4255_v16, %v4217_v20  ;;  %v11453_v5 = vld [vmem:[#allocation57_spill] sm:$0xff]  ;;  %v10181_v10 = vld [vmem:[%s10944_s2 + $0x50] sm:$0xff] }
 0xe93   : > { %v4672_v24 = vsel %vm11442_vm5, %v11441_v19, %v4668_v41  ;;  %v4678_v26 = vsel %vm11444_vm12, %v4668_v41, %v11443_v44  ;;  %v4710_v46 = vsel %vm11446_vm10, %v11445_v36, %v4706_v55  ;;  %v4716_v3 = vsel %vm11448_vm13, %v4706_v55, %v11447_v27  ;;  %v10188_v16 = vld [vmem:[%s10944_s2 + $0x58] sm:$0xff]  ;;  %v11455_v19 = vld [vmem:[#allocation56_spill] sm:$0xff]  ;;  %v11457_v44 = vld [vmem:[#allocation58_spill] sm:$0xff] }
 0xe94   : > { %v4697_v25 = vmul.f32 %v4690_v18, %v4672_v24  ;;  %v4698_v12 = vmul.f32 %v4694_v6, %v4678_v26  ;;  %v4735_v8 = vmul.f32 %v4728_v48, %v4710_v46  ;;  %v4736_v33 = vmul.f32 %v4732_v17, %v4716_v3  ;;  %5249 = vmatprep.subr.bf16.mxu1 %v5058_v15  ;;  %v11449_v48 = vld [vmem:[#allocation22_spill] sm:$0xff]  ;;  %vm11466_vm5 = vmmov %vm11464_vm11 }
 0xe95   : > { %5250 = vmatpush2.bf16.msra.mxu1 %v5057_v9  ;;  %v4129_v42 = vrot.slane %v10181_v10, %v11273_v35  ;;  %v4133_v9 = vrot.slane %v10188_v16, %v11273_v35  ;;  %v4542_v35 = vrot.slane %v10159_v1, %v9039_v59  ;;  %vm11468_vm12 = vcmask 793600  }
 0xe96   : > { %v5085_v58 = vpack.c.bf16 %v4735_v8, %v4697_v25  ;;  %v4166_v2 = vpop.permute.xlu1 %4165  ;;  %v4592_v18 = vpop.permute.xlu0 %4591  ;;  %v5086_v6 = vpack.c.bf16 %v4736_v33, %v4698_v12  ;;  %vm11470_vm10 = vmmov %vm11468_vm12 }
 0xe97   : > { %v4169_v28 = vsel %vm790_vm4, %v9798_v43, %v4166_v2  ;;  %v4175_v52 = vsel %vm790_vm4, %v4166_v2, %v9800_v57  ;;  %v4596_v34 = vsel %vm11452_vm9, %v11451_v49, %v4592_v18  ;;  %v4602_v20 = vsel %vm11454_vm7, %v4592_v18, %v11453_v5  ;;  %v11461_v18 = vld [vmem:[#allocation30_spill] sm:$0xff] }
 0xe98   : > { %v4178_v17 = vmul.f32 %v4169_v28, %v11449_v48  ;;  %v4179_v31 = vmul.f32 %v4175_v52, %v11450_v30  ;;  %5276 = vmatprep.subr.bf16.mxu0 %v5086_v6  ;;  %v4621_v55 = vmul.f32 %v4614_v13, %v4596_v34  ;;  %v4622_v15 = vmul.f32 %v4618_v11, %v4602_v20  ;;  %v11462_v28 = vld [vmem:[#allocation27_spill] sm:$0xff] }
 0xe99   : > { %5277 = vmatpush1.bf16.msra.mxu0 %v5085_v58  ;;  %v4576_v58 = vrot.slane %v10152_v51, %v9042_v23  ;;  %v4053_v49 = vrot.slane %v10181_v10, %v9039_v59  ;;  %vm11474_vm9 = vcmask 891904  }
 0xe9a   : > { %v5053_v43 = vpack.c.bf16 %v4178_v17, %v8830_v45  ;;  %v4630_v57 = vpop.permute.xlu1 %4629  ;;  %v4108_v41 = vpop.permute.xlu0 %4107  ;;  %v5054_v45 = vpack.c.bf16 %v4179_v31, %v8844_v4  ;;  %v4538_v4 = vrot.slane %v10152_v51, %v9039_v59  ;;  %v11465_v17 = vld [vmem:[#allocation63_spill] sm:$0xff]  ;;  %vm11476_vm7 = vmmov %vm11474_vm9 }
 0xe9b   : > { %v4634_v24 = vsel %vm11456_vm14, %v11455_v19, %v4630_v57  ;;  %v4640_v26 = vsel %vm11458_vm15, %v4630_v57, %v11457_v44  ;;  %v4111_v27 = vsel %vm4109_vm8, %v9834_v21, %v4108_v41  ;;  %v4112_v3 = vsel %vm4109_vm8, %v4108_v41, %v9875_v63  ;;  %v11467_v41 = vld [vmem:[#allocation61_spill] sm:$0xff] }
 0xe9c   : > { %v4659_v36 = vmul.f32 %v4652_v62, %v4634_v24  ;;  %v4660_v46 = vmul.f32 %v4656_v29, %v4640_v26  ;;  %5251 = vmatprep.subr.bf16.mxu1 %v5054_v45  ;;  %v4580_v21 = vrot.slane %v10159_v1, %v9042_v23  ;;  %v4136_v2 = vmul.f32 %v4129_v42, %v4111_v27  ;;  %v11463_v62 = vld [vmem:[#allocation60_spill] sm:$0xff] }
 0xe9d   : > { %5252 = vmatpush2.bf16.msra.mxu1 %v5053_v43  ;;  %v4137_v63 = vmul.f32 %v4133_v9, %v4112_v3  ;;  %vm11459_vm8 = vcmask 7168   ;;  %v4091_v43 = vrot.slane %v10181_v10, %v9042_v23  ;;  %v4095_v57 = vrot.slane %v10188_v16, %v9042_v23 }
 0xe9e   : > { %v5081_v25 = vpack.c.bf16 %v4659_v36, %v4621_v55  ;;  %v4146_v12 = vpop.permute.xlu1 %4145  ;;  %v4516_v8 = vpop.permute.xlu0 %4515  ;;  %v5082_v33 = vpack.c.bf16 %v4660_v46, %v4622_v15  ;;  %vm11460_vm6 = vmmov %vm11459_vm8  ;;  %v11469_v55 = vld [vmem:[#allocation64_spill] sm:$0xff]  ;;  %v4462_v23 = vrot.slane %v10152_v51, %v11283_v38  ;;  %v4466_v26 = vrot.slane %v10159_v1, %v11283_v38 }
 0xe9f   : > { %v4148_v13 = vsel %vm11459_vm8, %v9849_v14, %v4146_v12  ;;  %v4149_v11 = vsel %vm11460_vm6, %v4146_v12, %v9877_v32  ;;  %v4520_v29 = vsel %vm11464_vm11, %v11463_v62, %v4516_v8  ;;  %v4526_v31 = vsel %vm11466_vm5, %v4516_v8, %v11465_v17  ;;  %v11477_v62 = vld [vmem:[#allocation68_spill] sm:$0xff]  ;;  %v11479_v17 = vld [vmem:[#allocation70_spill] sm:$0xff] }
 0xea0   : > { %v4157_v6 = vmul.f32 %v4148_v13, %v11461_v18  ;;  %v4158_v52 = vmul.f32 %v4149_v11, %v11462_v28  ;;  %5278 = vmatprep.subr.bf16.mxu0 %v5082_v33  ;;  %v4057_v14 = vrot.slane %v10188_v16, %v9039_v59  ;;  %v4545_v42 = vmul.f32 %v4538_v4, %v4520_v29  ;;  %v11473_v33 = vld [vmem:[#allocation67_spill] sm:$0xff] }
 0xea1   : > { %5279 = vmatpush1.bf16.msra.mxu0 %v5081_v25  ;;  %v4546_v9 = vmul.f32 %v4542_v35, %v4526_v31  ;;  %v4500_v4 = vrot.slane %v10152_v51, %v9117_v22  ;;  %vm11478_vm14 = vcmask 809984   ;;  %vm11481_vm8 = vcmask 121856  }
 0xea2   : > { %v5049_v34 = vpack.c.bf16 %v4157_v6, %v4136_v2  ;;  %v4554_v32 = vpop.permute.xlu1 %4553  ;;  %v4032_v5 = vpop.permute.xlu0 %4031  ;;  %v5050_v20 = vpack.c.bf16 %v4158_v52, %v4137_v63  ;;  %v4015_v6 = vrot.slane %v10181_v10, %v9117_v22  ;;  %vm11480_vm15 = vmmov %vm11478_vm14  ;;  %vm11486_vm11 = vcmask 908288  }
 0xea3   : > { %v4558_v45 = vsel %vm11468_vm12, %v11467_v41, %v4554_v32  ;;  %v4564_v15 = vsel %vm11470_vm10, %v4554_v32, %v11469_v55  ;;  %v4035_v24 = vsel %vm4033_vm0, %v9904_v53, %v4032_v5  ;;  %v4036_v44 = vsel %vm4033_vm0, %v4032_v5, %v9920_v50  ;;  %vm11482_vm6 = vmmov %vm11481_vm8 }
 0xea4   : > { %v4583_v19 = vmul.f32 %v4576_v58, %v4558_v45  ;;  %v4584_v59 = vmul.f32 %v4580_v21, %v4564_v15  ;;  %5253 = vmatprep.subr.bf16.mxu1 %v5050_v20  ;;  %v4504_v53 = vrot.slane %v10159_v1, %v9117_v22  ;;  %v4060_v35 = vmul.f32 %v4053_v49, %v4035_v24  ;;  %v11475_v21 = vld [vmem:[#allocation69_spill] sm:$0xff]  ;;  %vm11488_vm5 = vmmov %vm11486_vm11 }
 0xea5   : > { %5254 = vmatpush2.bf16.msra.mxu1 %v5049_v34  ;;  %v4061_v50 = vmul.f32 %v4057_v14, %v4036_v44  ;;  %vm11471_vm0 = vcmask 23552   ;;  %v4424_v20 = vrot.slane %v10152_v51, %v11289_v37  ;;  %v11487_v51 = vld [vmem:[#allocation75_spill] sm:$0xff]  ;;  %vm11496_vm10 = vcmask 138240  }
 0xea6   : > { %v5077_v36 = vpack.c.bf16 %v4583_v19, %v4545_v42  ;;  %v4070_v46 = vpop.permute.xlu1 %4069  ;;  %v4440_v27 = vpop.permute.xlu0 %4439  ;;  %v5078_v3 = vpack.c.bf16 %v4584_v59, %v4546_v9  ;;  %vm11472_vm13 = vmmov %vm11471_vm0  ;;  %v11484_v9 = vld [vmem:[#allocation24_spill] sm:$0xff]  ;;  %v11485_v19 = vld [vmem:[#allocation73_spill] sm:$0xff] }
 0xea7   : > { %v4073_v25 = vsel %vm11471_vm0, %v9912_v0, %v4070_v46  ;;  %v4074_v12 = vsel %vm11472_vm13, %v4070_v46, %v9922_v56  ;;  %v4444_v58 = vsel %vm11474_vm9, %v11473_v33, %v4440_v27  ;;  %v4450_v2 = vsel %vm11476_vm7, %v4440_v27, %v11475_v21  ;;  %v11491_v46 = vld [vmem:[#allocation74_spill] sm:$0xff]  ;;  %v11493_v27 = vld [vmem:[#allocation76_spill] sm:$0xff]  ;;  %vm11498_vm0 = vmmov %vm11496_vm10 }
 0xea8   : > { %v4098_v8 = vmul.f32 %v4091_v43, %v4073_v25  ;;  %v4099_v38 = vmul.f32 %v4095_v57, %v4074_v12  ;;  %5280 = vmatprep.subr.bf16.mxu0 %v5078_v3  ;;  %v4019_v0 = vrot.slane %v10188_v16, %v9117_v22  ;;  %v4469_v56 = vmul.f32 %v4462_v23, %v4444_v58  ;;  %v11483_v57 = vld [vmem:[#allocation28_spill] sm:$0xff]  ;;  %v11489_v23 = vld [vmem:[#allocation5_spill] sm:$0xff] }
 0xea9   : > { %5281 = vmatpush1.bf16.msra.mxu0 %v5077_v36  ;;  %v4470_v52 = vmul.f32 %v4466_v26, %v4450_v2  ;;  %v4428_v43 = vrot.slane %v10159_v1, %v11289_v37  ;;  %v11497_v12 = vld [vmem:[#allocation65_spill] sm:$0xff]  ;;  %v6844_v58 = vld [vmem:[%s10944_s2 + $0xd0] ss:$0 sm:$0xff]  ;;  %vm11502_vm13 = vcmask 130048   ;;  %vm11508_vm7 = vcmask 629760  }
 0xeaa   : > { %v5045_v63 = vpack.c.bf16 %v4098_v8, %v4060_v35  ;;  %v4478_v13 = vpop.permute.xlu1 %4477  ;;  %v5046_v11 = vpack.c.bf16 %v4099_v38, %v4061_v50  ;;  %v11495_v50 = vld [vmem:[#allocation59_spill] sm:$0xff]  ;;  %v6845_v21 = vld [vmem:[%s10944_s2 + $0xd8] ss:$0 sm:$0xff]  ;;  %vm11504_vm9 = vmmov %vm11502_vm13 }
 0xeab   : > { %v4482_v29 = vsel %vm11478_vm14, %v11477_v62, %v4478_v13  ;;  %v4488_v31 = vsel %vm11480_vm15, %v4478_v13, %v11479_v17  ;;  %v3973_v49 = vpop.permute.xlu0 %3972  ;;  %v11505_v17 = vld [vmem:[#allocation38_spill] sm:$0xff]  ;;  %vm11510_vm14 = vmmov %vm11508_vm7  ;;  %vm11511_vm15 = vcmask 1043456  }
 0xeac   : > { %v4507_v14 = vmul.f32 %v4500_v4, %v4482_v29  ;;  %v4508_v34 = vmul.f32 %v4504_v53, %v4488_v31  ;;  %v3975_v32 = vsel %vm11481_vm8, %v9944_v47, %v3973_v49  ;;  %v3976_v10 = vsel %vm11482_vm6, %v3973_v49, %v9957_v54  ;;  %5255 = vmatprep.subr.bf16.mxu1 %v5046_v11  ;;  %v11500_v11 = vld [vmem:[#allocation32_spill] sm:$0xff]  ;;  %v11506_v49 = vld [vmem:[#allocation35_spill] sm:$0xff]  ;;  %vm11512_vm8 = vmmov %vm11511_vm15 }
 0xead   : > { %5256 = vmatpush2.bf16.msra.mxu1 %v5045_v63  ;;  %v3984_v42 = vmul.f32 %v3975_v32, %v11483_v57  ;;  %v3985_v41 = vmul.f32 %v3976_v10, %v11484_v9  ;;  %v11499_v63 = vld [vmem:[#allocation36_spill] sm:$0xff]  ;;  %v11509_v10 = vld [vmem:[#allocation79_spill] sm:$0xff]  ;;  %vm11519_vm6 = vmmov %vm11488_vm5 }
 0xeae   : > { %v5073_v22 = vpack.c.bf16 %v4507_v14, %v4469_v56  ;;  %v3994_v16 = vpop.permute.xlu1 %3993  ;;  %v5074_v5 = vpack.c.bf16 %v4508_v34, %v4470_v52  ;;  %v11503_v52 = vld [vmem:[#allocation66_spill] sm:$0xff]  ;;  %v11507_v34 = vld [vmem:[#allocation80_spill] sm:$0xff] }
 0xeaf   : > { %v3997_v47 = vsel %vm3995_vm1, %v9950_v7, %v3994_v16  ;;  %v3998_v54 = vsel %vm3995_vm1, %v3994_v16, %v9959_v40  ;;  %v4381_v45 = vpop.permute.xlu0 %4380  ;;  %v11490_v7 = vld [vmem:[#allocation4_spill] sm:$0xff]  ;;  %vm11492_vm1 = vcmask 900096  }
 0xeb0   : > { %v4022_v55 = vmul.f32 %v4015_v6, %v3997_v47  ;;  %v4023_v15 = vmul.f32 %v4019_v0, %v3998_v54  ;;  %v4384_v59 = vsel %vm11486_vm11, %v11485_v19, %v4381_v45  ;;  %v4390_v24 = vsel %vm11488_vm5, %v4381_v45, %v11487_v51  ;;  %5282 = vmatprep.subr.bf16.mxu0 %v5074_v5  ;;  %vm11494_vm12 = vmmov %vm11492_vm1  ;;  %v11501_v0 = vld [vmem:[#allocation62_spill] sm:$0xff]  ;;  %v11513_v54 = vld [vmem:[#allocation83_spill] sm:$0xff] }
 0xeb1   : > { %5283 = vmatpush1.bf16.msra.mxu0 %v5073_v22  ;;  %v4393_v26 = vmul.f32 %v4384_v59, %v11489_v23  ;;  %v4394_v36 = vmul.f32 %v4390_v24, %v11490_v7  ;;  %v11514_v45 = vmov 0   ;;  %vm11521_vm11 = vmmov %vm11488_vm5 }
 0xeb2   : > { %v5041_v37 = vpack.c.bf16 %v4022_v55, %v3984_v42  ;;  %v4402_v1 = vpop.permute.xlu1 %4401  ;;  %v5042_v44 = vpack.c.bf16 %v4023_v15, %v3985_v41  ;;  %vm11523_vm5 = vmmov %vm11512_vm8 }
 0xeb3   : > { %v4406_v40 = vsel %vm11492_vm1, %v11491_v46, %v4402_v1  ;;  %v4412_v3 = vsel %vm11494_vm12, %v4402_v1, %v11493_v27  ;;  %v3931_v4 = vpop.permute.xlu0 %3930  ;;  %vm11524_vm1 = vmmov %vm11523_vm5  ;;  %vm11529_vm12 = vcmask 7168  }
 0xeb4   : > { %v4431_v53 = vmul.f32 %v4424_v20, %v4406_v40  ;;  %v4432_v35 = vmul.f32 %v4428_v43, %v4412_v3  ;;  %v3933_v25 = vsel %vm11496_vm10, %v11495_v50, %v3931_v4  ;;  %v3934_v8 = vsel %vm11498_vm0, %v3931_v4, %v11497_v12  ;;  %5257 = vmatprep.subr.bf16.mxu1 %v5042_v44  ;;  %vm11532_vm0 = vmmov %vm11519_vm6 }
 0xeb5   : > { %5258 = vmatpush2.bf16.msra.mxu1 %v5041_v37  ;;  %v3942_v13 = vmul.f32 %v3933_v25, %v11499_v63  ;;  %v3943_v6 = vmul.f32 %v3934_v8, %v11500_v11  ;;  %vm11530_vm10 = vcmask 121856  }
 0xeb6   : > { %v5069_v38 = vpack.c.bf16 %v4431_v53, %v4393_v26  ;;  %v3952_v33 = vpop.permute.xlu1 %3951  ;;  %v5070_v2 = vpack.c.bf16 %v4432_v35, %v4394_v36 }
 0xeb7   : > { %v3954_v56 = vsel %vm11502_vm13, %v11501_v0, %v3952_v33  ;;  %v3955_v62 = vsel %vm11504_vm9, %v3952_v33, %v11503_v52  ;;  %v4972_v29 = vpop.permute.xlu0 %4971  ;;  %vm11533_vm13 = vmmov %vm11532_vm0 }
 0xeb8   : > { %v3963_v31 = vmul.f32 %v3954_v56, %v11505_v17  ;;  %v3964_v14 = vmul.f32 %v3955_v62, %v11506_v49  ;;  %v4976_v32 = vsel %vm11508_vm7, %v11507_v34, %v4972_v29  ;;  %v4982_v22 = vsel %vm11510_vm14, %v4972_v29, %v11509_v10  ;;  %5284 = vmatprep.subr.bf16.mxu0 %v5070_v2  ;;  %vm11537_vm9 = vmmov %vm11530_vm10 }
 0xeb9   : > { %v5001_v16 = vmul.f32 %v6844_v58, %v4976_v32  ;;  %v5002_v5 = vmul.f32 %v6845_v21, %v4982_v22  ;;  %5285 = vmatpush1.bf16.msra.mxu0 %v5069_v38  ;;  %vm11538_vm7 = vmmov %vm11524_vm1 }
 0xeba   : > { %v5037_v20 = vpack.c.bf16 %v3963_v31, %v3942_v13  ;;  %v5038_v43 = vpack.c.bf16 %v3964_v14, %v3943_v6  ;;  %vm11539_vm14 = vmmov %vm11524_vm1 }
 0xebb   : > { %v5101_v42 = vpack.c.bf16 %v5001_v16, %v5001_v16  ;;  %v5102_v41 = vpack.c.bf16 %v5002_v5, %v5002_v5 }
 0xebc   : > { %5259 = vmatprep.subr.bf16.mxu1 %v5038_v43 }
 0xebd   : > { %6849 = vmatprep.subr.msk.bf16.mxu0 %vm11511_vm15, %v5102_v41  ;;  %5260 = vmatpush2.bf16.msra.mxu1 %v5037_v20  ;;  %v5142_v47 = vsel %vm11512_vm8, %v5101_v42, 0  ;;  %vm11541_vm15 = vmmov %vm11529_vm12 }
 0xebe   : > { %5301 = vmatpush2.bf16.msra.mxu0 %v5142_v47  ;;  %vm11546_vm8 = vmmov %vm11529_vm12 }
 0xec0   : > { %5262 = vmatmul.mubr.bf16.vlgmr.msra.gmra.mxu1 %v9245_v39 }
 0xec1   : > { %5303 = vmatmul.mubr.bf16.vlgmr.msra.gmra.mxu0 %v11513_v54  ;;  %5672 = vmatprep.mubr.bf16.mxu1 %v11514_v45 }
 0xec2   : > { %5631 = vmatprep.mubr.bf16.mxu0 %v11514_v45 }
 0xed1   : > { %v5222_v55 = vpop.f32.mrf.mxu1 }
 0xed3   : > { %v5224_v15 = vpop.f32.mrf.mxu1 }
 0xed5   : > { %v5226_v19 = vpop.f32.mrf.mxu1 }
 0xed7   : > { %v5227_v59 = vpop.f32.mrf.mxu1 }
 0xed8   : > { %v11515_v59 = vld [vmem:[#allocation40_spill] sm:$0xff] }
 0xf3b   : > { %v5181_v51 = vpop.f32.mrf.mxu0 }
 0xf3c   : > { %v5223_v44 = vadd.f32 %v5222_v55, %v5181_v51 }
 0xf3d   : > { %v5183_v24 = vpop.f32.mrf.mxu0 }
 0xf3e   : > { %v5225_v46 = vadd.f32 %v5224_v15, %v5183_v24  ;;  %v5311_v27 = vmul.f32 1.442695, %v5223_v44  ;;  %v11516_v44 = vld [vmem:[#allocation41_spill] sm:$0xff] }
 0xf3f   : > { %v5185_v37 = vpop.f32.mrf.mxu0 }
 0xf40   : > { %v5313_v25 = vmul.f32 1.442695, %v5225_v46 }
 0xf41   : > { %v5186_v1 = vpop.f32.mrf.mxu0 }
 0xf80   : > { %v5263_v26 = vpop.f32.mrf.mxu1 }
 0xf81   : > { %v5304_v36 = vpop.f32.mrf.mxu0 }
 0xf82   : > { %v5305_v40 = vadd.f32 %v5304_v36, %v5263_v26  ;;  %v5265_v39 = vpop.f32.mrf.mxu1  ;;  %v11517_v36 = vld [vmem:[#allocation42_spill] sm:$0xff] }
 0xf83   : > { %v5306_v3 = vpop.f32.mrf.mxu0 }
 0xf84   : > { %v5315_v4 = vmul.f32 1.442695, %v5305_v40  ;;  %v5307_v53 = vadd.f32 %v5306_v3, %v5265_v39  ;;  %v5267_v35 = vpop.f32.mrf.mxu1  ;;  %v11518_v39 = vld [vmem:[#allocation43_spill] sm:$0xff]  ;;  %v6852_v3 = vld [vmem:[%s10948_s6 + $0x38] sm:$0xff] }
 0xf85   : > { %v5308_v50 = vpop.f32.mrf.mxu0 }
 0xf86   : > { %6953 = vpow2.f32 %v5315_v4  ;;  %v5317_v12 = vmul.f32 1.442695, %v5307_v53  ;;  %v5268_v8 = vpop.f32.mrf.mxu1 }
 0xf87   : > { %6955 = vpow2.f32 %v5311_v27  ;;  %v5309_v38 = vpop.f32.mrf.mxu0 }
 0xf88   : > { %6957 = vpow2.f32 %v5317_v12 }
 0xf89   : > { %6959 = vpow2.f32 %v5313_v25 }
 0xf93   : > { %v6954_v33 = vpop.eup %6953 }
 0xf94   : > { %v6956_v58 = vpop.eup %6955  ;;  %v5319_v21 = vadd.f32 %v6954_v33, %v6954_v33  ;;  %v5335_v2 = vrot.slane %v6954_v33, 1 }
 0xf95   : > { %v6958_v13 = vpop.eup %6957 }
 0xf96   : > { %v5321_v6 = vadd.f32 1e-10, %v5319_v21  ;;  %v5339_v0 = vadd.f32 %v6956_v58, %v5335_v2  ;;  %v5320_v56 = vadd.f32 %v6958_v13, %v6958_v13  ;;  %v5336_v52 = vrot.slane %v6958_v13, 1  ;;  %v6960_v62 = vpop.eup %6959 }
 0xf98   : > { %v5325_v29 = vrot.slane %v5321_v6, 1  ;;  %v5341_v31 = vadd.f32 1e-10, %v5339_v0  ;;  %v5322_v14 = vadd.f32 1e-10, %v5320_v56  ;;  %v5340_v34 = vadd.f32 %v6960_v62, %v5336_v52  ;;  %v11520_v56 = vld [vmem:[#allocation7_spill] sm:$0xff] }
 0xf9a   : > { %6961 = vrcp.f32 %v5325_v29  ;;  %v5345_v32 = vrot.slane %v5341_v31, 7  ;;  %v5326_v10 = vrot.slane %v5322_v14, 1  ;;  %v5342_v22 = vadd.f32 1e-10, %v5340_v34  ;;  %v11522_v34 = vld [vmem:[#allocation6_spill] sm:$0xff] }
 0xf9c   : > { %6963 = vrcp.f32 %v5345_v32  ;;  %v5346_v16 = vrot.slane %v5342_v22, 7 }
 0xf9d   : > { %6965 = vrcp.f32 %v5326_v10 }
 0xf9e   : > { %6967 = vrcp.f32 %v5346_v16 }
 0xfa7   : > { %v6962_v5 = vpop.eup %6961 }
 0xfa8   : > { %v5330_v20 = vmul.f32 %v6962_v5, %v6956_v58 }
 0xfa9   : > { %v6964_v43 = vpop.eup %6963 }
 0xfaa   : > { %v6966_v42 = vpop.eup %6965  ;;  %v5350_v41 = vmul.f32 %v6964_v43, %v6954_v33  ;;  %v5362_v47 = vrot.slane %v5330_v20, %v11288_v60 }
 0xfab   : > { %v6968_v54 = vpop.eup %6967  ;;  %v5332_v55 = vmul.f32 %v6966_v42, %v6960_v62 }
 0xfac   : > { %v5355_v15 = vrot.slane %v5350_v41, 1  ;;  %v5352_v19 = vmul.f32 %v6968_v54, %v6958_v13  ;;  %v10317_v51 = vmul.f32 %v5362_v47, %v11515_v59  ;;  %v11525_v41 = vld [vmem:[#allocation12_spill] sm:$0xff] }
 0xfad   : > { %v5366_v24 = vrot.slane %v5332_v55, %v11288_v60 }
 0xfae   : > { %v5370_v37 = vrot.slane %v5355_v15, %v11288_v60  ;;  %v5356_v1 = vrot.slane %v5352_v19, 1  ;;  %5436 = vrot.lane.b32.xlu0 %v10317_v51, %s11325_s18  ;;  %5379 = vst [vmem:[%s585_s4] sm:$0xff] %v10317_v51  ;;  %5538 = vrot.lane.b32.xlu1 %v10317_v51, %s11369_s19  ;;  %v11526_v19 = vld [vmem:[#allocation17_spill] sm:$0xff] }
 0xfaf   : > { %v10331_v26 = vmul.f32 %v5366_v24, %v11516_v44  ;;  %v11528_v44 = vld [vmem:[#allocation15_spill] sm:$0xff] }
 0xfb0   : > { %v10334_v46 = vmul.f32 %v5370_v37, %v11517_v36  ;;  %v5374_v40 = vrot.slane %v5356_v1, %v11288_v60  ;;  %v5694_v60 = vld [vmem:[%s10951_s9] sm:$0xff]  ;;  %v11527_v37 = vld [vmem:[#allocation11_spill] sm:$0xff] }
 0xfb1   : > { %5380 = vst [vmem:[%s585_s4 + $0x8] sm:$0xff] %v10331_v26 }
 0xfb2   : > { %5381 = vst [vmem:[%s590_s17] sm:$0xff] %v10334_v46  ;;  %v10340_v27 = vmul.f32 %v5374_v40, %v11518_v39  ;;  %5457 = vrot.lane.b32.xlu0 %v10317_v51, %s11232_s25  ;;  %5496 = vrot.lane.b32.xlu1 %v10317_v51, %s11344_s27 }
 0xfb4   : > { %5382 = vst [vmem:[%s590_s17 + $0x8] sm:$0xff] %v10340_v27 }
 0xfb6   : > { %5394 = vrot.lane.b32.xlu0 %v10317_v51, %s11234_s29  ;;  %5517 = vrot.lane.b32.xlu1 %v10317_v51, %s11291_s20 }
 0xfba   : > { %5540 = vrot.lane.b32.xlu0 %v10331_v26, %s11369_s19  ;;  %5475 = vrot.lane.b32.xlu1 %v10317_v51, %s11233_s26 }
 0xfbe   : > { %5498 = vrot.lane.b32.xlu0 %v10331_v26, %s11344_s27  ;;  %5438 = vrot.lane.b32.xlu1 %v10331_v26, %s11325_s18 }
 0xfc2   : > { %5519 = vrot.lane.b32.xlu0 %v10331_v26, %s11291_s20  ;;  %5459 = vrot.lane.b32.xlu1 %v10331_v26, %s11232_s25 }
 0xfc6   : > { %5477 = vrot.lane.b32.xlu0 %v10331_v26, %s11233_s26  ;;  %5396 = vrot.lane.b32.xlu1 %v10331_v26, %s11234_s29 }
 0xfca   : > { %5440 = vrot.lane.b32.xlu0 %v10334_v46, %s11325_s18  ;;  %5542 = vrot.lane.b32.xlu1 %v10334_v46, %s11369_s19 }
 0xfce   : > { %5461 = vrot.lane.b32.xlu0 %v10334_v46, %s11232_s25  ;;  %5500 = vrot.lane.b32.xlu1 %v10334_v46, %s11344_s27 }
 0xfd2   : > { %5398 = vrot.lane.b32.xlu0 %v10334_v46, %s11234_s29  ;;  %5521 = vrot.lane.b32.xlu1 %v10334_v46, %s11291_s20 }
 0xfd6   : > { %5544 = vrot.lane.b32.xlu0 %v10340_v27, %s11369_s19  ;;  %5479 = vrot.lane.b32.xlu1 %v10334_v46, %s11233_s26 }
 0xfda   : > { %5502 = vrot.lane.b32.xlu0 %v10340_v27, %s11344_s27  ;;  %5433 = vrot.lane.b32.xlu1 %v10340_v27, %s11325_s18 }
 0xfde   : > { %5523 = vrot.lane.b32.xlu0 %v10340_v27, %s11291_s20  ;;  %5454 = vrot.lane.b32.xlu1 %v10340_v27, %s11232_s25 }
 0xfe2   : > { %5481 = vrot.lane.b32.xlu0 %v10340_v27, %s11233_s26  ;;  %5388 = vrot.lane.b32.xlu1 %v10340_v27, %s11234_s29 }
 0xfe6   : > { %5415 = vrot.lane.b32.xlu0 %v10317_v51, %s11235_s30  ;;  %5412 = vrot.lane.b32.xlu1 %v10340_v27, %s11235_s30 }
 0xfea   : > { %5419 = vrot.lane.b32.xlu0 %v10334_v46, %s11235_s30  ;;  %5417 = vrot.lane.b32.xlu1 %v10331_v26, %s11235_s30 }
 0xfee   : > { %5699 = vperm.xlu0 %6945, %v5694_v60   ;;  %5581 = vperm.xlu1 %6946, %v6852_v3  }
0x1020   : > { %v10409_v4 = vpop.permute.xlu0 %5436  ;;  %v5539_v53 = vpop.permute.xlu1 %5538 }
0x1024   : > { %v10411_v35 = vpop.permute.xlu0 %5457  ;;  %v5497_v50 = vpop.permute.xlu1 %5496 }
0x1028   : > { %v10413_v25 = vpop.permute.xlu0 %5394  ;;  %v10415_v12 = vpop.permute.xlu1 %5517 }
0x102c   : > { %v5541_v8 = vpop.permute.xlu0 %5540  ;;  %v10417_v38 = vpop.permute.xlu1 %5475 }
0x102d   : > { %v5546_v13 = vsel %vm11519_vm6, %v5539_v53, %v5541_v8  ;;  %vm11547_vm6 = vmmov %vm11546_vm8 }
0x102e   : > { %v5555_v52 = vmul.f32 %v5546_v13, %v11520_v56 }
0x1030   : > { %v5499_v33 = vpop.permute.xlu0 %5498  ;;  %v10419_v58 = vpop.permute.xlu1 %5438  ;;  %v5575_v14 = vpack.c.bf16 %v5555_v52, %v5555_v52 }
0x1031   : > { %v5504_v43 = vsel %vm828_vm3, %v5497_v50, %v5499_v33  ;;  %v5442_v39 = vsel %vm11530_vm10, %v10409_v4, %v10419_v58  ;;  %vm11552_vm10 = vcmask 130048  }
0x1032   : > { %v5588_v20 = vsel %vm11524_vm1, %v5575_v14, 0  ;;  %v5513_v59 = vmul.f32 %v5504_v43, %v11526_v19  ;;  %v11535_v43 = vld [vmem:[#allocation21_spill] sm:$0xff]  ;;  %vm11550_vm1 = vcmask 138240  }
0x1034   : > { %v5520_v21 = vpop.permute.xlu0 %5519  ;;  %v10421_v2 = vpop.permute.xlu1 %5459 }
0x1035   : > { %v5525_v5 = vsel %vm866_vm2, %v10415_v12, %v5520_v21  ;;  %v5463_v40 = vsel %vm11529_vm12, %v10411_v35, %v10421_v2  ;;  %vm11551_vm12 = vmmov %vm11550_vm1 }
0x1036   : > { %v5534_v47 = vmul.f32 %v5525_v5, %v11525_v41 }
0x1038   : > { %v5478_v6 = vpop.permute.xlu0 %5477  ;;  %v10424_v0 = vpop.permute.xlu1 %5396  ;;  %v5571_v60 = vpack.c.bf16 %v5534_v47, %v5513_v59  ;;  %v11536_v47 = vld [vmem:[#allocation25_spill] sm:$0xff] }
0x1039   : > { %v5483_v24 = vsel %vm790_vm4, %v10417_v38, %v5478_v6 }
0x103c   : > { %v10427_v62 = vpop.permute.xlu0 %5440  ;;  %v5543_v29 = vpop.permute.xlu1 %5542 }
0x103d   : > { %v5547_v31 = vsel %vm11521_vm11, %v5541_v8, %v5543_v29  ;;  %vm11548_vm11 = vmmov %vm11537_vm9 }
0x103e   : > { %v5556_v32 = vmul.f32 %v5547_v31, %v11522_v34 }
0x1040   : > { %v5576_v10 = vpack.c.bf16 %v5556_v32, %v5556_v32  ;;  %v10431_v22 = vpop.permute.xlu0 %5461  ;;  %v5501_v16 = vpop.permute.xlu1 %5500  ;;  %v11534_v32 = vld [vmem:[#allocation29_spill] sm:$0xff] }
0x1041   : > { %v5505_v42 = vsel %vm828_vm3, %v5499_v33, %v5501_v16 }
0x1042   : > { %6853 = vmatprep.subr.msk.bf16.mxu0 %vm11523_vm5, %v5576_v10  ;;  %v5514_v1 = vmul.f32 %v5505_v42, %v11527_v37  ;;  %v5472_v10 = vmul.f32 %v5463_v40, %v11534_v32  ;;  %vm11549_vm5 = vmmov %vm11537_vm9 }
0x1043   : > { %5606 = vmatpush1.bf16.msra.mxu0 %v5588_v20 }
0x1044   : > { %v10440_v54 = vpop.permute.xlu0 %5398  ;;  %v5522_v55 = vpop.permute.xlu1 %5521 }
0x1045   : > { %v5526_v15 = vsel %vm866_vm2, %v5520_v21, %v5522_v55  ;;  %v11531_v21 = vld [vmem:[#allocation19_spill] sm:$0xff] }
0x1046   : > { %v5535_v36 = vmul.f32 %v5526_v15, %v11528_v44  ;;  %v5492_v13 = vmul.f32 %v5483_v24, %v11531_v21  ;;  %v5451_v15 = vmul.f32 %v5442_v39, %v11536_v47 }
0x1048   : > { %v5545_v3 = vpop.permute.xlu0 %5544  ;;  %v5480_v8 = vpop.permute.xlu1 %5479  ;;  %v5572_v33 = vpack.c.bf16 %v5535_v36, %v5514_v1 }
0x1049   : > { %v5548_v52 = vsel %vm11532_vm0, %v5543_v29, %v5545_v3  ;;  %v5554_v31 = vsel %vm11533_vm13, %v5545_v3, %v5539_v53  ;;  %v5484_v14 = vsel %vm790_vm4, %v5478_v6, %v5480_v8  ;;  %v5567_v6 = vpack.c.bf16 %v5492_v13, %v10317_v51  ;;  %v11540_v3 = vld [vmem:[#allocation10_spill] sm:$0xff]  ;;  %v11542_v13 = vld [vmem:[#allocation31_spill] sm:$0xff]  ;;  %vm11553_vm0 = vmmov %vm11550_vm1 }
0x104a   : > { %v5557_v5 = vmul.f32 %v5548_v52, %v11489_v23  ;;  %v5558_v20 = vmul.f32 %v5554_v31, %v11490_v7  ;;  %v5493_v42 = vmul.f32 %v5484_v14, %v11535_v43  ;;  %5607 = vmatprep.subr.bf16.mxu0 %v5572_v33  ;;  %v5564_v7 = vpack.c.bf16 %v5472_v10, %v5451_v15  ;;  %v11543_v31 = vld [vmem:[#allocation16_spill] sm:$0xff]  ;;  %v11544_v10 = vld [vmem:[#allocation13_spill] sm:$0xff]  ;;  %vm11555_vm13 = vmmov %vm11553_vm0 }
0x104b   : > { %5608 = vmatpush1.bf16.msra.mxu0 %v5571_v60 }
0x104c   : > { %v5577_v59 = vpack.c.bf16 %v5557_v5, %v5557_v5  ;;  %v5578_v24 = vpack.c.bf16 %v5558_v20, %v5558_v20  ;;  %v5503_v1 = vpop.permute.xlu0 %5502  ;;  %v5434_v29 = vpop.permute.xlu1 %5433  ;;  %v5568_v53 = vpack.c.bf16 %v5493_v42, %v10331_v26  ;;  %v11545_v5 = vld [vmem:[#allocation26_spill] sm:$0xff] }
0x104d   : > { %v5506_v36 = vsel %vm828_vm3, %v5501_v16, %v5503_v1  ;;  %v5512_v23 = vsel %vm828_vm3, %v5503_v1, %v5497_v50  ;;  %v5449_v40 = vsel %vm11537_vm9, %v5434_v29, %v10409_v4  ;;  %vm11557_vm9 = vmmov %vm11552_vm10 }
0x104e   : > { %5609 = vmatprep.subr.bf16.mxu0 %v5568_v53  ;;  %6855 = vmatprep.subr.msk.bf16.mxu1 %vm11538_vm7, %v5578_v24  ;;  %v5594_v39 = vsel %vm11539_vm14, %v5577_v59, 0  ;;  %v5515_v60 = vmul.f32 %v5506_v36, %v11420_v61  ;;  %v5516_v16 = vmul.f32 %v5512_v23, %v11540_v3  ;;  %v5450_v52 = vmul.f32 %v5449_v40, %v11542_v13  ;;  %v11556_v3 = vld [vmem:[#allocation34_spill] sm:$0xff]  ;;  %vm11558_vm7 = vmmov %vm11557_vm9 }
0x104f   : > { %5610 = vmatpush1.bf16.msra.mxu0 %v5567_v6  ;;  %5647 = vmatpush1.bf16.msra.mxu1 %v5594_v39  ;;  %v5444_v6 = vsel %vm11548_vm11, %v10427_v62, %v5434_v29  ;;  %vm11559_vm14 = vmmov %vm11558_vm7 }
0x1050   : > { %v5524_v26 = vpop.permute.xlu0 %5523  ;;  %5611 = vmatprep.subr.bf16.mxu0 %v5564_v7  ;;  %v5455_v51 = vpop.permute.xlu1 %5454  ;;  %v5443_v7 = vsel %vm11549_vm5, %v10419_v58, %v10427_v62 }
0x1051   : > { %v5527_v50 = vsel %vm866_vm2, %v5522_v55, %v5524_v26  ;;  %v5533_v33 = vsel %vm866_vm2, %v5524_v26, %v10415_v12  ;;  %v5470_v4 = vsel %vm11541_vm15, %v5455_v51, %v10411_v35  ;;  %v5465_v15 = vsel %vm11546_vm8, %v10431_v22, %v5455_v51 }
0x1052   : > { %v5536_v14 = vmul.f32 %v5527_v50, %v11543_v31  ;;  %v5537_v61 = vmul.f32 %v5533_v33, %v11544_v10  ;;  %v5471_v20 = vmul.f32 %v5470_v4, %v11545_v5  ;;  %v5464_v35 = vsel %vm11547_vm6, %v10421_v2, %v10431_v22  ;;  %v11561_v31 = vld [vmem:[#allocation39_spill] sm:$0xff] }
0x1053   : > { %v5474_v40 = vmul.f32 %v5465_v15, %v11462_v28  ;;  %v5473_v2 = vmul.f32 %v5464_v35, %v11461_v18  ;;  %v5453_v28 = vmul.f32 %v5444_v6, %v11484_v9  ;;  %v5452_v58 = vmul.f32 %v5443_v7, %v11483_v57 }
0x1054   : > { %v5573_v42 = vpack.c.bf16 %v5536_v14, %v5515_v60  ;;  %v5563_v59 = vpack.c.bf16 %v5471_v20, %v5450_v52  ;;  %v5482_v55 = vpop.permute.xlu0 %5481  ;;  %v5389_v24 = vpop.permute.xlu1 %5388  ;;  %v5574_v1 = vpack.c.bf16 %v5537_v61, %v5516_v16  ;;  %vm11562_vm15 = vcmask 588800  }
0x1055   : > { %v5485_v12 = vsel %vm790_vm4, %v5480_v8, %v5482_v55  ;;  %v5491_v53 = vsel %vm790_vm4, %v5482_v55, %v10417_v38  ;;  %v5566_v62 = vpack.c.bf16 %v5474_v40, %v5453_v28  ;;  %v5565_v60 = vpack.c.bf16 %v5473_v2, %v5452_v58  ;;  %vm11563_vm8 = vmmov %vm11562_vm15  ;;  %v5693_v58 = vld [vmem:[%s10950_s8] sm:$0xf] }
0x1056   : > { %v5494_v36 = vmul.f32 %v5485_v12, %v11449_v48  ;;  %v5495_v23 = vmul.f32 %v5491_v53, %v11450_v30  ;;  %5612 = vmatpush1.bf16.msra.mxu0 %v5563_v59  ;;  %5648 = vmatprep.subr.bf16.mxu1 %v5574_v1  ;;  %v5400_v48 = vsel %vm11550_vm1, %v10413_v25, %v10424_v0 }
0x1057   : > { %5649 = vmatpush1.bf16.msra.mxu1 %v5573_v42  ;;  %v5401_v30 = vsel %vm11551_vm12, %v10424_v0, %v10440_v54  ;;  %v5407_v51 = vsel %vm11555_vm13, %v5389_v24, %v10413_v25  ;;  %vm11564_vm12 = vmmov %vm11558_vm7  ;;  %vm11567_vm13 = vcmask 1043456  }
0x1058   : > { %v5569_v22 = vpack.c.bf16 %v5494_v36, %v10334_v46  ;;  %v5416_v38 = vpop.permute.xlu0 %5415  ;;  %v5413_v8 = vpop.permute.xlu1 %5412  ;;  %v5570_v29 = vpack.c.bf16 %v5495_v23, %v10340_v27  ;;  %v5402_v46 = vsel %vm11553_vm0, %v10440_v54, %v5389_v24  ;;  %v11554_v27 = vld [vmem:[#allocation33_spill] sm:$0xff]  ;;  %v5410_v26 = vmul.f32 %v5401_v30, %v11499_v63 }
0x1059   : > { %v5428_v18 = vsel %vm11552_vm10, %v5413_v8, %v5416_v38  ;;  %v5409_v39 = vmul.f32 %v5400_v48, %v11554_v27  ;;  %v5411_v33 = vmul.f32 %v5402_v46, %v11500_v11  ;;  %v11560_v63 = vld [vmem:[#allocation37_spill] sm:$0xff]  ;;  %v5408_v14 = vmul.f32 %v5407_v51, %v11561_v31 }
0x105a   : > { %5650 = vmatprep.subr.bf16.mxu1 %v5570_v29  ;;  %v5429_v57 = vmul.f32 %v5428_v18, %v11556_v3  ;;  %v6851_v11 = vld [vmem:[%s10947_s5 + $0x1c] sm:$0xf]  ;;  %vm11565_vm10 = vcmask 908288  }
0x105b   : > { %5651 = vmatpush1.bf16.msra.mxu1 %v5569_v22  ;;  %vm11566_vm0 = vmmov %vm11565_vm10 }
0x105c   : > { %v5420_v0 = vpop.permute.xlu0 %5419  ;;  %v5418_v9 = vpop.permute.xlu1 %5417  ;;  %5652 = vmatprep.subr.bf16.mxu1 %v5566_v62  ;;  %v5559_v42 = vpack.c.bf16 %v5429_v57, %v5408_v14 }
0x105d   : > { %v5423_v16 = vsel %vm11557_vm9, %v5420_v0, %v5413_v8  ;;  %v5421_v50 = vsel %vm11558_vm7, %v5416_v38, %v5418_v9  ;;  %v5422_v54 = vsel %vm11559_vm14, %v5418_v9, %v5420_v0  ;;  %v6859_v0 = vld [vmem:[%s10948_s6 + $0x40] sm:$0xff]  ;;  %vm11568_vm9 = vmmov %vm11567_vm13  ;;  %vm11569_vm7 = vcmask 121856  }
0x105e   : > { %v5432_v4 = vmul.f32 %v5423_v16, %v11506_v49  ;;  %v5430_v52 = vmul.f32 %v5421_v50, %v11560_v63  ;;  %v5431_v25 = vmul.f32 %v5422_v54, %v11505_v17  ;;  %vm11570_vm14 = vcmask 7168  }
0x105f   : > { %5653 = vmatpush1.bf16.msra.mxu1 %v5565_v60 }
0x1060   : > { %v5561_v10 = vpack.c.bf16 %v5431_v25, %v5410_v26  ;;  %v5560_v61 = vpack.c.bf16 %v5430_v52, %v5409_v39  ;;  %v5562_v20 = vpack.c.bf16 %v5432_v4, %v5411_v33 }
0x1062   : > { %5613 = vmatprep.subr.bf16.mxu0 %v5560_v61  ;;  %5654 = vmatprep.subr.bf16.mxu1 %v5562_v20 }
0x1063   : > { %5614 = vmatpush1.bf16.msra.mxu0 %v5559_v42  ;;  %5655 = vmatpush1.bf16.msra.mxu1 %v5561_v10 }
0x1066   : > { %6854 = vmatmul.mubr.msk.bf16.vlgmr.msra.gmra.mxu0 %vm11562_vm15, %v6851_v11  ;;  %6856 = vmatmul.mubr.msk.bf16.vlgmr.msra.gmra.mxu1 %vm11563_vm8, %v6851_v11  ;;  %vm11571_vm15 = vmmov %vm11570_vm14 }
0x1067   : > { %5737 = vmatprep.mubr.bf16.mxu0 %v11514_v45  ;;  %5896 = vmatprep.mubr.bf16.mxu1 %v11514_v45  ;;  %vm11572_vm8 = vmmov %vm11569_vm7 }
0x1069   : > { %v5582_v17 = vpop.permute.xlu1 %5581  ;;  %v5700_v18 = vpop.permute.xlu0 %5699 }
0x1126   : > { %v5633_v49 = vpop.f32.mrf.mxu0  ;;  %v5674_v59 = vpop.f32.mrf.mxu1 }
0x1127   : > { %v5634_v15 = vadd.f32 %v5633_v49, %v5582_v17  ;;  %v5675_v55 = vadd.f32 %v5674_v59, %v5582_v17 }
0x1128   : > { %v5635_v24 = vpop.f32.mrf.mxu0  ;;  %v5676_v12 = vpop.f32.mrf.mxu1 }
0x1129   : > { %v5685_v1 = vmul.f32 0.01, %v5634_v15  ;;  %v5636_v35 = vadd.f32 %v5635_v24, %v5582_v17  ;;  %vm5681_vm6 = vcmp.ge.f32.partialorder %v5634_v15, 0.0  ;;  %vm5683_vm11 = vcmp.ge.f32.partialorder %v5675_v55, 0.0 }
0x112a   : > { %v5687_v53 = vmul.f32 0.01, %v5675_v55  ;;  %v5677_v6 = vadd.f32 %v5676_v12, %v5582_v17  ;;  %v5637_v36 = vpop.f32.mrf.mxu0  ;;  %v5678_v7 = vpop.f32.mrf.mxu1 }
0x112b   : > { %vm5682_vm5 = vcmp.ge.f32.partialorder %v5636_v35, 0.0  ;;  %v5686_v23 = vmul.f32 0.01, %v5636_v35  ;;  %v5689_v22 = vsel %vm5681_vm6, %v5634_v15, %v5685_v1  ;;  %vm11573_vm6 = vcmask 138240  }
0x112c   : > { %vm5684_vm1 = vcmp.ge.f32.partialorder %v5677_v6, 0.0  ;;  %v5688_v40 = vmul.f32 0.01, %v5677_v6  ;;  %v5638_v2 = vpop.f32.mrf.mxu0  ;;  %v5691_v38 = vsel %vm5683_vm11, %v5675_v55, %v5687_v53  ;;  %v5679_v8 = vpop.f32.mrf.mxu1  ;;  %vm11574_vm11 = vmmov %vm11573_vm6 }
0x112d   : > { %v5690_v29 = vsel %vm5682_vm5, %v5636_v35, %v5686_v23  ;;  %v5695_v28 = vpack.c.bf16 %v5691_v38, %v5689_v22  ;;  %vm11575_vm5 = vmmov %vm11564_vm12 }
0x112e   : > { %v5692_v48 = vsel %vm5684_vm1, %v5677_v6, %v5688_v40  ;;  %vm11576_vm1 = vmmov %vm11575_vm5 }
0x112f   : > { %v5696_v30 = vpack.c.bf16 %v5692_v48, %v5690_v29 }
0x1131   : > { %5719 = vmatprep.subr.bf16.mxu0 %v5696_v30 }
0x1132   : > { %5720 = vmatpush1.bf16.msra.mxu0 %v5695_v28 }
0x1135   : > { %6857 = vmatmul.mubr.msk.bf16.vlgmr.msra.gmra.mxu0 %vm11564_vm12, %v5693_v58  ;;  %vm11577_vm12 = vcmask 588800  }
0x1136   : > { %6061 = vmatprep.mubr.bf16.mxu0 %v11514_v45 }
0x11f5   : > { %v5739_v46 = vpop.f32.mrf.mxu0 }
0x11f6   : > { %v10537_v62 = vadd.f32 %v5739_v46, %v5700_v18 }
0x11f7   : > { %v5741_v39 = vpop.f32.mrf.mxu0 }
0x11f8   : > { %5777 = vrot.lane.b32.xlu0 %v10537_v62, %s11325_s18  ;;  %5829 = vrot.lane.b32.xlu1 %v10537_v62, %s11369_s19  ;;  %v10547_v51 = vadd.f32 %v5741_v39, %v5700_v18 }
0x11f9   : > { %v5743_v60 = vpop.f32.mrf.mxu0 }
0x11fb   : > { %v5744_v26 = vpop.f32.mrf.mxu0 }
0x11fc   : > { %5788 = vrot.lane.b32.xlu0 %v10537_v62, %s11232_s25  ;;  %5807 = vrot.lane.b32.xlu1 %v10537_v62, %s11344_s27 }
0x1200   : > { %5831 = vrot.lane.b32.xlu0 %v10547_v51, %s11369_s19  ;;  %5818 = vrot.lane.b32.xlu1 %v10537_v62, %s11291_s20 }
0x1204   : > { %5809 = vrot.lane.b32.xlu0 %v10547_v51, %s11344_s27  ;;  %5796 = vrot.lane.b32.xlu1 %v10537_v62, %s11233_s26 }
0x1208   : > { %5820 = vrot.lane.b32.xlu0 %v10547_v51, %s11291_s20  ;;  %5774 = vrot.lane.b32.xlu1 %v10547_v51, %s11325_s18 }
0x120c   : > { %5798 = vrot.lane.b32.xlu0 %v10547_v51, %s11233_s26  ;;  %5785 = vrot.lane.b32.xlu1 %v10547_v51, %s11232_s25 }
0x1210   : > { %5755 = vrot.lane.b32.xlu0 %v10537_v62, %s11234_s29  ;;  %5751 = vrot.lane.b32.xlu1 %v10547_v51, %s11234_s29 }
0x1214   : > { %5766 = vrot.lane.b32.xlu0 %v10537_v62, %s11235_s30  ;;  %5763 = vrot.lane.b32.xlu1 %v10547_v51, %s11235_s30 }
0x1218   : > { %5852 = vperm.xlu1 %6946, %v6859_v0  }
0x126a   : > { %v5778_v9 = vpop.permute.xlu0 %5777  ;;  %v5830_v57 = vpop.permute.xlu1 %5829 }
0x126e   : > { %v5789_v16 = vpop.permute.xlu0 %5788  ;;  %v5808_v50 = vpop.permute.xlu1 %5807 }
0x1272   : > { %v5832_v54 = vpop.permute.xlu0 %5831  ;;  %v5819_v33 = vpop.permute.xlu1 %5818 }
0x1273   : > { %v5833_v4 = vsel %vm11565_vm10, %v5830_v57, %v5832_v54  ;;  %v5837_v52 = vsel %vm11566_vm0, %v5832_v54, %v5830_v57 }
0x1274   : > { %v5838_v25 = vmul.f32 %v5833_v4, %v11520_v56  ;;  %v5839_v14 = vmul.f32 %v5837_v52, %v11522_v34 }
0x1276   : > { %v5848_v10 = vpack.c.bf16 %v5838_v25, %v5838_v25  ;;  %v5849_v61 = vpack.c.bf16 %v5839_v14, %v5839_v14  ;;  %v5810_v20 = vpop.permute.xlu0 %5809  ;;  %v5797_v42 = vpop.permute.xlu1 %5796 }
0x1277   : > { %v5811_v17 = vsel %vm828_vm3, %v5808_v50, %v5810_v20  ;;  %v5815_v49 = vsel %vm828_vm3, %v5810_v20, %v5808_v50  ;;  %v6858_v20 = vld [vmem:[%s10947_s5 + $0x20] sm:$0xf] }
0x1278   : > { %6860 = vmatprep.subr.msk.bf16.mxu1 %vm11567_vm13, %v5849_v61  ;;  %v5859_v11 = vsel %vm11568_vm9, %v5848_v10, 0  ;;  %v5816_v1 = vmul.f32 %v5811_v17, %v11526_v19  ;;  %v5817_v35 = vmul.f32 %v5815_v49, %v11527_v37  ;;  %vm11578_vm13 = vcmask 908288  }
0x1279   : > { %5871 = vmatpush1.bf16.msra.mxu1 %v5859_v11  ;;  %vm11579_vm9 = vmmov %vm11578_vm13 }
0x127a   : > { %v5821_v15 = vpop.permute.xlu0 %5820  ;;  %v5775_v59 = vpop.permute.xlu1 %5774 }
0x127b   : > { %v5822_v55 = vsel %vm866_vm2, %v5819_v33, %v5821_v15  ;;  %v5826_v24 = vsel %vm866_vm2, %v5821_v15, %v5819_v33  ;;  %v5779_v40 = vsel %vm11569_vm7, %v5778_v9, %v5775_v59  ;;  %v5782_v28 = vsel %vm11572_vm8, %v5775_v59, %v5778_v9 }
0x127c   : > { %v5827_v12 = vmul.f32 %v5822_v55, %v11525_v41  ;;  %v5828_v53 = vmul.f32 %v5826_v24, %v11528_v44  ;;  %v5784_v58 = vmul.f32 %v5779_v40, %v11536_v47  ;;  %v5783_v57 = vmul.f32 %v5782_v28, %v11542_v13 }
0x127d   : > { %vm11580_vm7 = vcmask 1043456  }
0x127e   : > { %v5846_v6 = vpack.c.bf16 %v5827_v12, %v5816_v1  ;;  %v5799_v36 = vpop.permute.xlu0 %5798  ;;  %v5786_v23 = vpop.permute.xlu1 %5785  ;;  %v5847_v7 = vpack.c.bf16 %v5828_v53, %v5817_v35  ;;  %v6863_v53 = vld [vmem:[%s10948_s6 + $0x48] sm:$0xff] }
0x127f   : > { %v5800_v2 = vsel %vm790_vm4, %v5797_v42, %v5799_v36  ;;  %v5804_v22 = vsel %vm790_vm4, %v5799_v36, %v5797_v42  ;;  %v5790_v38 = vsel %vm11570_vm14, %v5789_v16, %v5786_v23  ;;  %v5793_v48 = vsel %vm11571_vm15, %v5786_v23, %v5789_v16  ;;  %vm11581_vm14 = vmmov %vm11580_vm7 }
0x1280   : > { %v5805_v8 = vmul.f32 %v5800_v2, %v11531_v21  ;;  %v5806_v29 = vmul.f32 %v5804_v22, %v11535_v43  ;;  %v5795_v30 = vmul.f32 %v5790_v38, %v11534_v32  ;;  %5872 = vmatprep.subr.bf16.mxu1 %v5847_v7  ;;  %v5794_v26 = vmul.f32 %v5793_v48, %v11545_v5  ;;  %vm11582_vm15 = vmmov %vm11572_vm8 }
0x1281   : > { %5873 = vmatpush1.bf16.msra.mxu1 %v5846_v6  ;;  %vm11583_vm8 = vcmask 7168  }
0x1282   : > { %v5844_v18 = vpack.c.bf16 %v5805_v8, %v10537_v62  ;;  %v5756_v46 = vpop.permute.xlu0 %5755  ;;  %v5752_v39 = vpop.permute.xlu1 %5751  ;;  %v5845_v60 = vpack.c.bf16 %v5806_v29, %v10547_v51  ;;  %v5843_v0 = vpack.c.bf16 %v5795_v30, %v5784_v58  ;;  %v5842_v33 = vpack.c.bf16 %v5794_v26, %v5783_v57 }
0x1283   : > { %v5757_v16 = vsel %vm11573_vm6, %v5756_v46, %v5752_v39  ;;  %v5760_v50 = vsel %vm11574_vm11, %v5752_v39, %v5756_v46  ;;  %vm11584_vm6 = vmmov %vm11583_vm8 }
0x1284   : > { %5874 = vmatprep.subr.bf16.mxu1 %v5845_v60  ;;  %v5761_v51 = vmul.f32 %v5760_v50, %v11561_v31  ;;  %v5762_v52 = vmul.f32 %v5757_v16, %v11554_v27  ;;  %vm11585_vm11 = vmmov %vm11582_vm15 }
0x1285   : > { %5875 = vmatpush1.bf16.msra.mxu1 %v5844_v18 }
0x1286   : > { %v5767_v9 = vpop.permute.xlu0 %5766  ;;  %5876 = vmatprep.subr.bf16.mxu1 %v5843_v0  ;;  %v5764_v54 = vpop.permute.xlu1 %5763 }
0x1287   : > { %v5768_v62 = vsel %vm11575_vm5, %v5767_v9, %v5764_v54  ;;  %v5771_v4 = vsel %vm11576_vm1, %v5764_v54, %v5767_v9  ;;  %vm11586_vm5 = vcmask 138240  }
0x1288   : > { %v5772_v25 = vmul.f32 %v5771_v4, %v11556_v3  ;;  %v5773_v14 = vmul.f32 %v5768_v62, %v11560_v63  ;;  %vm11587_vm1 = vmmov %vm11586_vm5 }
0x1289   : > { %5877 = vmatpush1.bf16.msra.mxu1 %v5842_v33 }
0x128a   : > { %v5840_v10 = vpack.c.bf16 %v5772_v25, %v5761_v51  ;;  %v5841_v61 = vpack.c.bf16 %v5773_v14, %v5762_v52 }
0x128c   : > { %5878 = vmatprep.subr.bf16.mxu1 %v5841_v61 }
0x128d   : > { %5879 = vmatpush1.bf16.msra.mxu1 %v5840_v10 }
0x1290   : > { %6861 = vmatmul.mubr.msk.bf16.vlgmr.msra.gmra.mxu1 %vm11577_vm12, %v6858_v20  ;;  %vm11588_vm12 = vcmask 130048  }
0x1291   : > { %6226 = vmatprep.mubr.bf16.mxu1 %v11514_v45 }
0x1293   : > { %v5853_v42 = vpop.permute.xlu1 %5852 }
0x1350   : > { %v5898_v11 = vpop.f32.mrf.mxu1 }
0x1351   : > { %v5899_v17 = vadd.f32 %v5898_v11, %v5853_v42 }
0x1352   : > { %v5900_v49 = vpop.f32.mrf.mxu1 }
0x1353   : > { %vm5905_vm10 = vcmp.ge.f32.partialorder %v5899_v17, 0.0  ;;  %v5907_v15 = vmul.f32 0.01, %v5899_v17  ;;  %v5901_v24 = vadd.f32 %v5900_v49, %v5853_v42 }
0x1354   : > { %v5902_v59 = vpop.f32.mrf.mxu1 }
0x1355   : > { %v10617_v55 = vsel %vm5905_vm10, %v5899_v17, %v5907_v15  ;;  %v5908_v35 = vmul.f32 0.01, %v5901_v24  ;;  %vm5906_vm0 = vcmp.ge.f32.partialorder %v5901_v24, 0.0  ;;  %vm11589_vm10 = vmmov %vm11588_vm12 }
0x1356   : > { %v5903_v1 = vpop.f32.mrf.mxu1  ;;  %5942 = vrot.lane.b32.xlu1 %v10617_v55, %s11325_s18  ;;  %5994 = vrot.lane.b32.xlu0 %v10617_v55, %s11369_s19 }
0x1357   : > { %v10627_v12 = vsel %vm5906_vm0, %v5901_v24, %v5908_v35  ;;  %vm11590_vm0 = vcmask 588800  }
0x135a   : > { %5953 = vrot.lane.b32.xlu1 %v10617_v55, %s11232_s25  ;;  %5972 = vrot.lane.b32.xlu0 %v10617_v55, %s11344_s27 }
0x135e   : > { %5996 = vrot.lane.b32.xlu1 %v10627_v12, %s11369_s19  ;;  %5983 = vrot.lane.b32.xlu0 %v10617_v55, %s11291_s20 }
0x1362   : > { %5974 = vrot.lane.b32.xlu1 %v10627_v12, %s11344_s27  ;;  %5961 = vrot.lane.b32.xlu0 %v10617_v55, %s11233_s26 }
0x1366   : > { %5985 = vrot.lane.b32.xlu1 %v10627_v12, %s11291_s20  ;;  %5939 = vrot.lane.b32.xlu0 %v10627_v12, %s11325_s18 }
0x136a   : > { %5963 = vrot.lane.b32.xlu1 %v10627_v12, %s11233_s26  ;;  %5950 = vrot.lane.b32.xlu0 %v10627_v12, %s11232_s25 }
0x136e   : > { %5920 = vrot.lane.b32.xlu1 %v10617_v55, %s11234_s29  ;;  %5916 = vrot.lane.b32.xlu0 %v10627_v12, %s11234_s29 }
0x1372   : > { %5931 = vrot.lane.b32.xlu1 %v10617_v55, %s11235_s30  ;;  %5928 = vrot.lane.b32.xlu0 %v10627_v12, %s11235_s30 }
0x1376   : > { %6017 = vperm.xlu0 %6945, %v6863_v53  }
0x13c8   : > { %v5943_v6 = vpop.permute.xlu1 %5942  ;;  %v5995_v36 = vpop.permute.xlu0 %5994 }
0x13cc   : > { %v5954_v23 = vpop.permute.xlu1 %5953  ;;  %v5973_v7 = vpop.permute.xlu0 %5972 }
0x13d0   : > { %v5997_v40 = vpop.permute.xlu1 %5996  ;;  %v5984_v2 = vpop.permute.xlu0 %5983 }
0x13d1   : > { %v5998_v22 = vsel %vm11578_vm13, %v5995_v36, %v5997_v40  ;;  %v6002_v38 = vsel %vm11579_vm9, %v5997_v40, %v5995_v36 }
0x13d2   : > { %v6003_v8 = vmul.f32 %v5998_v22, %v11520_v56  ;;  %v6004_v29 = vmul.f32 %v6002_v38, %v11522_v34 }
0x13d4   : > { %v6013_v48 = vpack.c.bf16 %v6003_v8, %v6003_v8  ;;  %v6014_v30 = vpack.c.bf16 %v6004_v29, %v6004_v29  ;;  %v5975_v28 = vpop.permute.xlu1 %5974  ;;  %v5962_v58 = vpop.permute.xlu0 %5961 }
0x13d5   : > { %v5976_v46 = vsel %vm828_vm3, %v5973_v7, %v5975_v28  ;;  %v5980_v39 = vsel %vm828_vm3, %v5975_v28, %v5973_v7  ;;  %v6862_v28 = vld [vmem:[%s10947_s5 + $0x24] sm:$0xf] }
0x13d6   : > { %6864 = vmatprep.subr.msk.bf16.mxu0 %vm11580_vm7, %v6014_v30  ;;  %v6024_v18 = vsel %vm11581_vm14, %v6013_v48, 0  ;;  %v5981_v16 = vmul.f32 %v5976_v46, %v11526_v19  ;;  %v5982_v50 = vmul.f32 %v5980_v39, %v11527_v37  ;;  %vm11591_vm7 = vcmask 908288  }
0x13d7   : > { %6036 = vmatpush1.bf16.msra.mxu0 %v6024_v18  ;;  %vm11592_vm14 = vmmov %vm11591_vm7 }
0x13d8   : > { %v5986_v60 = vpop.permute.xlu1 %5985  ;;  %v5940_v26 = vpop.permute.xlu0 %5939 }
0x13d9   : > { %v5987_v0 = vsel %vm866_vm2, %v5984_v2, %v5986_v60  ;;  %v5991_v57 = vsel %vm866_vm2, %v5986_v60, %v5984_v2  ;;  %v5944_v52 = vsel %vm11582_vm15, %v5943_v6, %v5940_v26  ;;  %v5947_v17 = vsel %vm11585_vm11, %v5940_v26, %v5943_v6 }
0x13da   : > { %v5992_v9 = vmul.f32 %v5987_v0, %v11525_v41  ;;  %v5993_v54 = vmul.f32 %v5991_v57, %v11528_v44  ;;  %v5949_v49 = vmul.f32 %v5944_v52, %v11536_v47  ;;  %v5948_v36 = vmul.f32 %v5947_v17, %v11542_v13 }
0x13db   : > { %vm11593_vm15 = vcmask 1043456  }
0x13dc   : > { %v6011_v33 = vpack.c.bf16 %v5992_v9, %v5981_v16  ;;  %v5964_v62 = vpop.permute.xlu1 %5963  ;;  %v5951_v4 = vpop.permute.xlu0 %5950  ;;  %v6012_v51 = vpack.c.bf16 %v5993_v54, %v5982_v50  ;;  %v6867_v54 = vld [vmem:[%s10948_s6 + $0x50] sm:$0xff] }
0x13dd   : > { %v5965_v25 = vsel %vm790_vm4, %v5962_v58, %v5964_v62  ;;  %v5969_v14 = vsel %vm790_vm4, %v5964_v62, %v5962_v58  ;;  %v5955_v10 = vsel %vm11583_vm8, %v5954_v23, %v5951_v4  ;;  %v5958_v42 = vsel %vm11584_vm6, %v5951_v4, %v5954_v23  ;;  %vm11594_vm8 = vmmov %vm11593_vm15 }
0x13de   : > { %v5970_v61 = vmul.f32 %v5965_v25, %v11531_v21  ;;  %v5971_v20 = vmul.f32 %v5969_v14, %v11535_v43  ;;  %v5960_v11 = vmul.f32 %v5955_v10, %v11534_v32  ;;  %6037 = vmatprep.subr.bf16.mxu0 %v6012_v51  ;;  %v5959_v35 = vmul.f32 %v5958_v42, %v11545_v5  ;;  %vm11595_vm6 = vmmov %vm11585_vm11 }
0x13df   : > { %6038 = vmatpush1.bf16.msra.mxu0 %v6011_v33  ;;  %vm11596_vm11 = vcmask 7168  }
0x13e0   : > { %v6009_v15 = vpack.c.bf16 %v5970_v61, %v10617_v55  ;;  %v5921_v59 = vpop.permute.xlu1 %5920  ;;  %v5917_v24 = vpop.permute.xlu0 %5916  ;;  %v6010_v1 = vpack.c.bf16 %v5971_v20, %v10627_v12  ;;  %v6008_v53 = vpack.c.bf16 %v5960_v11, %v5949_v49  ;;  %v6007_v2 = vpack.c.bf16 %v5959_v35, %v5948_v36 }
0x13e1   : > { %v5922_v23 = vsel %vm11586_vm5, %v5921_v59, %v5917_v24  ;;  %v5925_v7 = vsel %vm11587_vm1, %v5917_v24, %v5921_v59  ;;  %vm11597_vm5 = vmmov %vm11596_vm11 }
0x13e2   : > { %6039 = vmatprep.subr.bf16.mxu0 %v6010_v1  ;;  %v5926_v12 = vmul.f32 %v5925_v7, %v11561_v31  ;;  %v5927_v38 = vmul.f32 %v5922_v23, %v11554_v27  ;;  %vm11598_vm1 = vmmov %vm11595_vm6 }
0x13e3   : > { %6040 = vmatpush1.bf16.msra.mxu0 %v6009_v15 }
0x13e4   : > { %v5932_v6 = vpop.permute.xlu1 %5931  ;;  %6041 = vmatprep.subr.bf16.mxu0 %v6008_v53  ;;  %v5929_v40 = vpop.permute.xlu0 %5928 }
0x13e5   : > { %v5933_v55 = vsel %vm11588_vm12, %v5932_v6, %v5929_v40  ;;  %v5936_v22 = vsel %vm11589_vm10, %v5929_v40, %v5932_v6  ;;  %vm11599_vm12 = vcmask 138240  }
0x13e6   : > { %v5937_v8 = vmul.f32 %v5936_v22, %v11556_v3  ;;  %v5938_v29 = vmul.f32 %v5933_v55, %v11560_v63  ;;  %vm11600_vm10 = vmmov %vm11599_vm12 }
0x13e7   : > { %6042 = vmatpush1.bf16.msra.mxu0 %v6007_v2 }
0x13e8   : > { %v6005_v48 = vpack.c.bf16 %v5937_v8, %v5926_v12  ;;  %v6006_v30 = vpack.c.bf16 %v5938_v29, %v5927_v38 }
0x13ea   : > { %6043 = vmatprep.subr.bf16.mxu0 %v6006_v30 }
0x13eb   : > { %6044 = vmatpush1.bf16.msra.mxu0 %v6005_v48 }
0x13ee   : > { %6865 = vmatmul.mubr.msk.bf16.vlgmr.msra.gmra.mxu0 %vm11590_vm0, %v6862_v28  ;;  %vm11601_vm0 = vcmask 130048  }
0x13ef   : > { %6391 = vmatprep.mubr.bf16.mxu0 %v11514_v45 }
0x13f1   : > { %v6018_v58 = vpop.permute.xlu0 %6017 }
0x14ae   : > { %v6063_v18 = vpop.f32.mrf.mxu0 }
0x14af   : > { %v6064_v46 = vadd.f32 %v6063_v18, %v6018_v58 }
0x14b0   : > { %v6065_v39 = vpop.f32.mrf.mxu0 }
0x14b1   : > { %vm6070_vm13 = vcmp.ge.f32.partialorder %v6064_v46, 0.0  ;;  %v6072_v60 = vmul.f32 0.01, %v6064_v46  ;;  %v6066_v57 = vadd.f32 %v6065_v39, %v6018_v58 }
0x14b2   : > { %v6067_v26 = vpop.f32.mrf.mxu0 }
0x14b3   : > { %v10697_v0 = vsel %vm6070_vm13, %v6064_v46, %v6072_v60  ;;  %v6073_v50 = vmul.f32 0.01, %v6066_v57  ;;  %vm6071_vm9 = vcmp.ge.f32.partialorder %v6066_v57, 0.0  ;;  %vm11602_vm13 = vmmov %vm11601_vm0 }
0x14b4   : > { %v6068_v16 = vpop.f32.mrf.mxu0  ;;  %6107 = vrot.lane.b32.xlu0 %v10697_v0, %s11325_s18  ;;  %6159 = vrot.lane.b32.xlu1 %v10697_v0, %s11369_s19 }
0x14b5   : > { %v10707_v9 = vsel %vm6071_vm9, %v6066_v57, %v6073_v50  ;;  %vm11603_vm9 = vcmask 588800  }
0x14b8   : > { %6118 = vrot.lane.b32.xlu0 %v10697_v0, %s11232_s25  ;;  %6137 = vrot.lane.b32.xlu1 %v10697_v0, %s11344_s27 }
0x14bc   : > { %6161 = vrot.lane.b32.xlu0 %v10707_v9, %s11369_s19  ;;  %6148 = vrot.lane.b32.xlu1 %v10697_v0, %s11291_s20 }
0x14c0   : > { %6139 = vrot.lane.b32.xlu0 %v10707_v9, %s11344_s27  ;;  %6126 = vrot.lane.b32.xlu1 %v10697_v0, %s11233_s26 }
0x14c4   : > { %6150 = vrot.lane.b32.xlu0 %v10707_v9, %s11291_s20  ;;  %6104 = vrot.lane.b32.xlu1 %v10707_v9, %s11325_s18 }
0x14c8   : > { %6128 = vrot.lane.b32.xlu0 %v10707_v9, %s11233_s26  ;;  %6115 = vrot.lane.b32.xlu1 %v10707_v9, %s11232_s25 }
0x14cc   : > { %6085 = vrot.lane.b32.xlu0 %v10697_v0, %s11234_s29  ;;  %6081 = vrot.lane.b32.xlu1 %v10707_v9, %s11234_s29 }
0x14d0   : > { %6096 = vrot.lane.b32.xlu0 %v10697_v0, %s11235_s30  ;;  %6093 = vrot.lane.b32.xlu1 %v10707_v9, %s11235_s30 }
0x14d4   : > { %6182 = vperm.xlu1 %6946, %v6867_v54  }
0x1526   : > { %v6108_v33 = vpop.permute.xlu0 %6107  ;;  %v6160_v62 = vpop.permute.xlu1 %6159 }
0x152a   : > { %v6119_v4 = vpop.permute.xlu0 %6118  ;;  %v6138_v51 = vpop.permute.xlu1 %6137 }
0x152e   : > { %v6162_v52 = vpop.permute.xlu0 %6161  ;;  %v6149_v25 = vpop.permute.xlu1 %6148 }
0x152f   : > { %v6163_v14 = vsel %vm11591_vm7, %v6160_v62, %v6162_v52  ;;  %v6167_v10 = vsel %vm11592_vm14, %v6162_v52, %v6160_v62 }
0x1530   : > { %v6168_v61 = vmul.f32 %v6163_v14, %v11520_v56  ;;  %v6169_v20 = vmul.f32 %v6167_v10, %v11522_v34 }
0x1532   : > { %v6178_v42 = vpack.c.bf16 %v6168_v61, %v6168_v61  ;;  %v6179_v11 = vpack.c.bf16 %v6169_v20, %v6169_v20  ;;  %v6140_v17 = vpop.permute.xlu0 %6139  ;;  %v6127_v49 = vpop.permute.xlu1 %6126 }
0x1533   : > { %v6141_v59 = vsel %vm828_vm3, %v6138_v51, %v6140_v17  ;;  %v6145_v24 = vsel %vm828_vm3, %v6140_v17, %v6138_v51  ;;  %v6866_v17 = vld [vmem:[%s10947_s5 + $0x28] sm:$0xf] }
0x1534   : > { %6868 = vmatprep.subr.msk.bf16.mxu1 %vm11593_vm15, %v6179_v11  ;;  %v6189_v15 = vsel %vm11594_vm8, %v6178_v42, 0  ;;  %v6146_v23 = vmul.f32 %v6141_v59, %v11526_v19  ;;  %v6147_v7 = vmul.f32 %v6145_v24, %v11527_v37  ;;  %vm11604_vm15 = vcmask 908288  }
0x1535   : > { %6201 = vmatpush1.bf16.msra.mxu1 %v6189_v15  ;;  %vm11605_vm8 = vmmov %vm11604_vm15 }
0x1536   : > { %v6151_v1 = vpop.permute.xlu0 %6150  ;;  %v6105_v35 = vpop.permute.xlu1 %6104 }
0x1537   : > { %v6152_v53 = vsel %vm866_vm2, %v6149_v25, %v6151_v1  ;;  %v6156_v36 = vsel %vm866_vm2, %v6151_v1, %v6149_v25  ;;  %v6109_v38 = vsel %vm11595_vm6, %v6108_v33, %v6105_v35  ;;  %v6112_v46 = vsel %vm11598_vm1, %v6105_v35, %v6108_v33 }
0x1538   : > { %v6157_v6 = vmul.f32 %v6152_v53, %v11525_v41  ;;  %v6158_v40 = vmul.f32 %v6156_v36, %v11528_v44  ;;  %v6114_v39 = vmul.f32 %v6109_v38, %v11536_v47  ;;  %v6113_v62 = vmul.f32 %v6112_v46, %v11542_v13 }
0x1539   : > { %vm11606_vm6 = vcmask 1043456  }
0x153a   : > { %v6176_v2 = vpack.c.bf16 %v6157_v6, %v6146_v23  ;;  %v6129_v55 = vpop.permute.xlu0 %6128  ;;  %v6116_v22 = vpop.permute.xlu1 %6115  ;;  %v6177_v12 = vpack.c.bf16 %v6158_v40, %v6147_v7  ;;  %v6871_v6 = vld [vmem:[%s10948_s6 + $0x58] sm:$0xff] }
0x153b   : > { %v6130_v8 = vsel %vm790_vm4, %v6127_v49, %v6129_v55  ;;  %v6134_v29 = vsel %vm790_vm4, %v6129_v55, %v6127_v49  ;;  %v6120_v48 = vsel %vm11596_vm11, %v6119_v4, %v6116_v22  ;;  %v6123_v58 = vsel %vm11597_vm5, %v6116_v22, %v6119_v4  ;;  %vm11607_vm11 = vmmov %vm11606_vm6 }
0x153c   : > { %v6135_v30 = vmul.f32 %v6130_v8, %v11531_v21  ;;  %v6136_v28 = vmul.f32 %v6134_v29, %v11535_v43  ;;  %v6125_v18 = vmul.f32 %v6120_v48, %v11534_v32  ;;  %6202 = vmatprep.subr.bf16.mxu1 %v6177_v12  ;;  %v6124_v50 = vmul.f32 %v6123_v58, %v11545_v5  ;;  %vm11608_vm5 = vmmov %vm11598_vm1 }
0x153d   : > { %6203 = vmatpush1.bf16.msra.mxu1 %v6176_v2  ;;  %vm11609_vm1 = vcmask 7168  }
0x153e   : > { %v6174_v60 = vpack.c.bf16 %v6135_v30, %v10697_v0  ;;  %v6086_v26 = vpop.permute.xlu0 %6085  ;;  %v6082_v57 = vpop.permute.xlu1 %6081  ;;  %v6175_v16 = vpack.c.bf16 %v6136_v28, %v10707_v9  ;;  %v6173_v54 = vpack.c.bf16 %v6125_v18, %v6114_v39  ;;  %v6172_v25 = vpack.c.bf16 %v6124_v50, %v6113_v62 }
0x153f   : > { %v6087_v4 = vsel %vm11599_vm12, %v6086_v26, %v6082_v57  ;;  %v6090_v51 = vsel %vm11600_vm10, %v6082_v57, %v6086_v26  ;;  %vm11610_vm12 = vmmov %vm11609_vm1 }
0x1540   : > { %6204 = vmatprep.subr.bf16.mxu1 %v6175_v16  ;;  %v6091_v9 = vmul.f32 %v6090_v51, %v11561_v31  ;;  %v6092_v10 = vmul.f32 %v6087_v4, %v11554_v27  ;;  %vm11611_vm10 = vmmov %vm11608_vm5 }
0x1541   : > { %6205 = vmatpush1.bf16.msra.mxu1 %v6174_v60 }
0x1542   : > { %v6097_v33 = vpop.permute.xlu0 %6096  ;;  %6206 = vmatprep.subr.bf16.mxu1 %v6173_v54  ;;  %v6094_v52 = vpop.permute.xlu1 %6093 }
0x1543   : > { %v6098_v0 = vsel %vm11601_vm0, %v6097_v33, %v6094_v52  ;;  %v6101_v14 = vsel %vm11602_vm13, %v6094_v52, %v6097_v33  ;;  %vm11612_vm0 = vcmask 138240  }
0x1544   : > { %v6102_v61 = vmul.f32 %v6101_v14, %v11556_v3  ;;  %v6103_v20 = vmul.f32 %v6098_v0, %v11560_v63  ;;  %vm11613_vm13 = vmmov %vm11612_vm0 }
0x1545   : > { %6207 = vmatpush1.bf16.msra.mxu1 %v6172_v25 }
0x1546   : > { %v6170_v42 = vpack.c.bf16 %v6102_v61, %v6091_v9  ;;  %v6171_v11 = vpack.c.bf16 %v6103_v20, %v6092_v10 }
0x1548   : > { %6208 = vmatprep.subr.bf16.mxu1 %v6171_v11 }
0x1549   : > { %6209 = vmatpush1.bf16.msra.mxu1 %v6170_v42 }
0x154c   : > { %6869 = vmatmul.mubr.msk.bf16.vlgmr.msra.gmra.mxu1 %vm11603_vm9, %v6866_v17  ;;  %vm11614_vm9 = vcmask 130048  }
0x154d   : > { %6554 = vmatprep.mubr.bf16.mxu1 %v11514_v45 }
0x154f   : > { %v6183_v49 = vpop.permute.xlu1 %6182 }
0x160c   : > { %v6228_v15 = vpop.f32.mrf.mxu1 }
0x160d   : > { %v6229_v59 = vadd.f32 %v6228_v15, %v6183_v49 }
0x160e   : > { %v6230_v24 = vpop.f32.mrf.mxu1 }
0x160f   : > { %vm6235_vm7 = vcmp.ge.f32.partialorder %v6229_v59, 0.0  ;;  %v6237_v1 = vmul.f32 0.01, %v6229_v59  ;;  %v6231_v36 = vadd.f32 %v6230_v24, %v6183_v49 }
0x1610   : > { %v6232_v35 = vpop.f32.mrf.mxu1 }
0x1611   : > { %v10777_v53 = vsel %vm6235_vm7, %v6229_v59, %v6237_v1  ;;  %v6238_v7 = vmul.f32 0.01, %v6231_v36  ;;  %vm6236_vm14 = vcmp.ge.f32.partialorder %v6231_v36, 0.0  ;;  %vm11615_vm7 = vmmov %vm11614_vm9 }
0x1612   : > { %v6233_v23 = vpop.f32.mrf.mxu1  ;;  %6272 = vrot.lane.b32.xlu1 %v10777_v53, %s11325_s18  ;;  %6324 = vrot.lane.b32.xlu0 %v10777_v53, %s11369_s19 }
0x1613   : > { %v10787_v45 = vsel %vm6236_vm14, %v6231_v36, %v6238_v7  ;;  %vm11616_vm14 = vcmask 588800  }
0x1616   : > { %6283 = vrot.lane.b32.xlu1 %v10777_v53, %s11232_s25  ;;  %6302 = vrot.lane.b32.xlu0 %v10777_v53, %s11344_s27 }
0x161a   : > { %6326 = vrot.lane.b32.xlu1 %v10787_v45, %s11369_s19  ;;  %6313 = vrot.lane.b32.xlu0 %v10777_v53, %s11291_s20 }
0x161e   : > { %6304 = vrot.lane.b32.xlu1 %v10787_v45, %s11344_s27  ;;  %6291 = vrot.lane.b32.xlu0 %v10777_v53, %s11233_s26 }
0x1622   : > { %6315 = vrot.lane.b32.xlu1 %v10787_v45, %s11291_s20  ;;  %6269 = vrot.lane.b32.xlu0 %v10787_v45, %s11325_s18 }
0x1626   : > { %6293 = vrot.lane.b32.xlu1 %v10787_v45, %s11233_s26  ;;  %6280 = vrot.lane.b32.xlu0 %v10787_v45, %s11232_s25 }
0x162a   : > { %6250 = vrot.lane.b32.xlu1 %v10777_v53, %s11234_s29  ;;  %6246 = vrot.lane.b32.xlu0 %v10787_v45, %s11234_s29 }
0x162e   : > { %6261 = vrot.lane.b32.xlu1 %v10777_v53, %s11235_s30  ;;  %6258 = vrot.lane.b32.xlu0 %v10787_v45, %s11235_s30 }
0x1632   : > { %6347 = vperm.xlu0 %6945, %v6871_v6  }
0x1684   : > { %v6273_v40 = vpop.permute.xlu1 %6272  ;;  %v6325_v2 = vpop.permute.xlu0 %6324 }
0x1688   : > { %v6284_v55 = vpop.permute.xlu1 %6283  ;;  %v6303_v22 = vpop.permute.xlu0 %6302 }
0x168c   : > { %v6327_v12 = vpop.permute.xlu1 %6326  ;;  %v6314_v38 = vpop.permute.xlu0 %6313 }
0x168d   : > { %v6328_v8 = vsel %vm11604_vm15, %v6325_v2, %v6327_v12  ;;  %v6332_v29 = vsel %vm11605_vm8, %v6327_v12, %v6325_v2 }
0x168e   : > { %v6333_v48 = vmul.f32 %v6328_v8, %v11520_v56  ;;  %v6334_v30 = vmul.f32 %v6332_v29, %v11522_v34 }
0x1690   : > { %v6343_v28 = vpack.c.bf16 %v6333_v48, %v6333_v48  ;;  %v6344_v58 = vpack.c.bf16 %v6334_v30, %v6334_v30  ;;  %v6305_v18 = vpop.permute.xlu1 %6304  ;;  %v6292_v46 = vpop.permute.xlu0 %6291 }
0x1691   : > { %v6306_v60 = vsel %vm828_vm3, %v6303_v22, %v6305_v18  ;;  %v6310_v26 = vsel %vm828_vm3, %v6305_v18, %v6303_v22 }
0x1692   : > { %6872 = vmatprep.subr.msk.bf16.mxu0 %vm11606_vm6, %v6344_v58  ;;  %v6354_v39 = vsel %vm11607_vm11, %v6343_v28, 0  ;;  %v6311_v62 = vmul.f32 %v6306_v60, %v11526_v19  ;;  %v6312_v4 = vmul.f32 %v6310_v26, %v11527_v37  ;;  %v6870_v58 = vld [vmem:[%s10947_s5 + $0x2c] sm:$0xf]  ;;  %vm11617_vm6 = vcmask 908288  }
0x1693   : > { %6366 = vmatpush1.bf16.msra.mxu0 %v6354_v39  ;;  %vm11618_vm11 = vmmov %vm11617_vm6 }
0x1694   : > { %v6316_v57 = vpop.permute.xlu1 %6315  ;;  %v6270_v16 = vpop.permute.xlu0 %6269 }
0x1695   : > { %v6317_v50 = vsel %vm866_vm2, %v6314_v38, %v6316_v57  ;;  %v6321_v54 = vsel %vm866_vm2, %v6316_v57, %v6314_v38  ;;  %v6274_v9 = vsel %vm11608_vm5, %v6273_v40, %v6270_v16  ;;  %v6277_v15 = vsel %vm11611_vm10, %v6270_v16, %v6273_v40 }
0x1696   : > { %v6322_v51 = vmul.f32 %v6317_v50, %v11525_v41  ;;  %v6323_v33 = vmul.f32 %v6321_v54, %v11528_v44  ;;  %v6279_v59 = vmul.f32 %v6274_v9, %v11536_v47  ;;  %v6278_v6 = vmul.f32 %v6277_v15, %v11542_v13 }
0x1697   : > { %vm11619_vm5 = vcmask 1043456  }
0x1698   : > { %v6341_v52 = vpack.c.bf16 %v6322_v51, %v6311_v62  ;;  %v6294_v25 = vpop.permute.xlu1 %6293  ;;  %v6281_v0 = vpop.permute.xlu0 %6280  ;;  %v6342_v14 = vpack.c.bf16 %v6323_v33, %v6312_v4  ;;  %v6407_v51 = vld [vmem:[%s10953_s11] sm:$0xf] }
0x1699   : > { %v6295_v10 = vsel %vm790_vm4, %v6292_v46, %v6294_v25  ;;  %v6299_v61 = vsel %vm790_vm4, %v6294_v25, %v6292_v46  ;;  %v6285_v20 = vsel %vm11609_vm1, %v6284_v55, %v6281_v0  ;;  %v6288_v17 = vsel %vm11610_vm12, %v6281_v0, %v6284_v55  ;;  %vm11620_vm1 = vmmov %vm11619_vm5 }
0x169a   : > { %v6300_v42 = vmul.f32 %v6295_v10, %v11531_v21  ;;  %v6301_v11 = vmul.f32 %v6299_v61, %v11535_v43  ;;  %v6290_v49 = vmul.f32 %v6285_v20, %v11534_v32  ;;  %6367 = vmatprep.subr.bf16.mxu0 %v6342_v14  ;;  %v6289_v23 = vmul.f32 %v6288_v17, %v11545_v5 }
0x169b   : > { %6368 = vmatpush1.bf16.msra.mxu0 %v6341_v52 }
0x169c   : > { %v6339_v24 = vpack.c.bf16 %v6300_v42, %v10777_v53  ;;  %v6251_v1 = vpop.permute.xlu1 %6250  ;;  %v6247_v35 = vpop.permute.xlu0 %6246  ;;  %v6340_v36 = vpack.c.bf16 %v6301_v11, %v10787_v45  ;;  %v6338_v7 = vpack.c.bf16 %v6290_v49, %v6279_v59  ;;  %v6337_v12 = vpack.c.bf16 %v6289_v23, %v6278_v6 }
0x169d   : > { %v6252_v2 = vsel %vm11612_vm0, %v6251_v1, %v6247_v35  ;;  %v6255_v55 = vsel %vm11613_vm13, %v6247_v35, %v6251_v1  ;;  %vm11625_vm13 = vmmov %vm11615_vm7 }
0x169e   : > { %6369 = vmatprep.subr.bf16.mxu0 %v6340_v36  ;;  %v6256_v45 = vmul.f32 %v6255_v55, %v11561_v31  ;;  %v6257_v8 = vmul.f32 %v6252_v2, %v11554_v27 }
0x169f   : > { %6370 = vmatpush1.bf16.msra.mxu0 %v6339_v24 }
0x16a0   : > { %v6262_v40 = vpop.permute.xlu1 %6261  ;;  %6371 = vmatprep.subr.bf16.mxu0 %v6338_v7  ;;  %v6259_v22 = vpop.permute.xlu0 %6258 }
0x16a1   : > { %v6263_v53 = vsel %vm11614_vm9, %v6262_v40, %v6259_v22  ;;  %v6266_v38 = vsel %vm11615_vm7, %v6259_v22, %v6262_v40  ;;  %vm11626_vm9 = vmmov %vm11615_vm7 }
0x16a2   : > { %v6267_v29 = vmul.f32 %v6266_v38, %v11556_v3  ;;  %v6268_v48 = vmul.f32 %v6263_v53, %v11560_v63  ;;  %vm11627_vm7 = vmmov %vm11616_vm14 }
0x16a3   : > { %6372 = vmatpush1.bf16.msra.mxu0 %v6337_v12 }
0x16a4   : > { %v6335_v30 = vpack.c.bf16 %v6267_v29, %v6256_v45  ;;  %v6336_v28 = vpack.c.bf16 %v6268_v48, %v6257_v8 }
0x16a6   : > { %6373 = vmatprep.subr.bf16.mxu0 %v6336_v28 }
0x16a7   : > { %6374 = vmatpush1.bf16.msra.mxu0 %v6335_v30 }
0x16aa   : > { %6873 = vmatmul.mubr.msk.bf16.vlgmr.msra.gmra.mxu0 %vm11616_vm14, %v6870_v58 }
0x16ad   : > { %v6348_v18 = vpop.permute.xlu0 %6347 }
0x176a   : > { %v6393_v46 = vpop.f32.mrf.mxu0 }
0x176b   : > { %v6394_v39 = vadd.f32 %v6393_v46, %v6348_v18 }
0x176c   : > { %v6395_v60 = vpop.f32.mrf.mxu0 }
0x176d   : > { %vm6400_vm15 = vcmp.ge.f32.partialorder %v6394_v39, 0.0  ;;  %v6402_v26 = vmul.f32 0.01, %v6394_v39  ;;  %v6396_v50 = vadd.f32 %v6395_v60, %v6348_v18 }
0x176e   : > { %v6397_v57 = vpop.f32.mrf.mxu0 }
0x176f   : > { %v10856_v16 = vsel %vm6400_vm15, %v6394_v39, %v6402_v26  ;;  %v6403_v62 = vmul.f32 0.01, %v6396_v50  ;;  %vm6401_vm8 = vcmp.ge.f32.partialorder %v6396_v50, 0.0 }
0x1770   : > { %v6398_v54 = vpop.f32.mrf.mxu0  ;;  %6435 = vrot.lane.b32.xlu0 %v10856_v16, %s11325_s18  ;;  %6487 = vrot.lane.b32.xlu1 %v10856_v16, %s11369_s19 }
0x1771   : > { %v10866_v4 = vsel %vm6401_vm8, %v6396_v50, %v6403_v62 }
0x1774   : > { %6446 = vrot.lane.b32.xlu0 %v10856_v16, %s11232_s25  ;;  %6465 = vrot.lane.b32.xlu1 %v10856_v16, %s11344_s27 }
0x1778   : > { %6489 = vrot.lane.b32.xlu0 %v10866_v4, %s11369_s19  ;;  %6476 = vrot.lane.b32.xlu1 %v10856_v16, %s11291_s20 }
0x177c   : > { %6467 = vrot.lane.b32.xlu0 %v10866_v4, %s11344_s27  ;;  %6454 = vrot.lane.b32.xlu1 %v10856_v16, %s11233_s26 }
0x1780   : > { %6478 = vrot.lane.b32.xlu0 %v10866_v4, %s11291_s20  ;;  %6432 = vrot.lane.b32.xlu1 %v10866_v4, %s11325_s18 }
0x1784   : > { %6456 = vrot.lane.b32.xlu0 %v10866_v4, %s11233_s26  ;;  %6443 = vrot.lane.b32.xlu1 %v10866_v4, %s11232_s25 }
0x1788   : > { %6413 = vrot.lane.b32.xlu0 %v10856_v16, %s11234_s29  ;;  %6409 = vrot.lane.b32.xlu1 %v10866_v4, %s11234_s29  ;;  %s6882_s29 = sshll.u32 %s11629_s22, 3 }
0x1789   : > { %s570_s19 = scalar_lea.vmem %s10954_s12, %s6882_s29 }
0x178c   : > { %6424 = vrot.lane.b32.xlu0 %v10856_v16, %s11235_s30  ;;  %6421 = vrot.lane.b32.xlu1 %v10866_v4, %s11235_s30 }
0x1790   : > { %6510 = vperm.xlu1 %6946, %v6407_v51   ;;  %v6406_v51 = vld [vmem:[%s10952_s10] sm:$0x3] }
0x17e2   : > { %v6436_v33 = vpop.permute.xlu0 %6435  ;;  %v6488_v52 = vpop.permute.xlu1 %6487 }
0x17e6   : > { %v6447_v25 = vpop.permute.xlu0 %6446  ;;  %v6466_v0 = vpop.permute.xlu1 %6465 }
0x17ea   : > { %v6490_v14 = vpop.permute.xlu0 %6489  ;;  %v6477_v9 = vpop.permute.xlu1 %6476 }
0x17eb   : > { %v6491_v10 = vsel %vm11617_vm6, %v6488_v52, %v6490_v14  ;;  %v6495_v61 = vsel %vm11618_vm11, %v6490_v14, %v6488_v52 }
0x17ec   : > { %v6496_v20 = vmul.f32 %v6491_v10, %v11520_v56  ;;  %v6497_v42 = vmul.f32 %v6495_v61, %v11522_v34 }
0x17ee   : > { %v6506_v11 = vpack.c.bf16 %v6496_v20, %v6496_v20  ;;  %v6507_v17 = vpack.c.bf16 %v6497_v42, %v6497_v42  ;;  %v6468_v49 = vpop.permute.xlu0 %6467  ;;  %v6455_v15 = vpop.permute.xlu1 %6454 }
0x17ef   : > { %v6469_v24 = vsel %vm828_vm3, %v6466_v0, %v6468_v49  ;;  %v6473_v1 = vsel %vm828_vm3, %v6468_v49, %v6466_v0  ;;  %vm11621_vm3 = vmmov %vm11611_vm10 }
0x17f0   : > { %6874 = vmatprep.subr.msk.bf16.mxu1 %vm11619_vm5, %v6507_v17  ;;  %v6517_v59 = vsel %vm11620_vm1, %v6506_v11, 0  ;;  %v6474_v34 = vmul.f32 %v6469_v24, %v11526_v19  ;;  %v6475_v7 = vmul.f32 %v6473_v1, %v11527_v37  ;;  %vm11623_vm10 = vmmov %vm11621_vm3 }
0x17f1   : > { %6529 = vmatpush1.bf16.msra.mxu1 %v6517_v59 }
0x17f2   : > { %v6479_v35 = vpop.permute.xlu0 %6478  ;;  %v6433_v36 = vpop.permute.xlu1 %6432 }
0x17f3   : > { %v6480_v23 = vsel %vm866_vm2, %v6477_v9, %v6479_v35  ;;  %v6484_v56 = vsel %vm866_vm2, %v6479_v35, %v6477_v9  ;;  %v6437_v53 = vsel %vm11621_vm3, %v6436_v33, %v6433_v36  ;;  %vm11622_vm2 = vmmov %vm11610_vm12  ;;  %v6440_v29 = vsel %vm11623_vm10, %v6433_v36, %v6436_v33 }
0x17f4   : > { %v6485_v6 = vmul.f32 %v6480_v23, %v11525_v41  ;;  %v6486_v2 = vmul.f32 %v6484_v56, %v11528_v44  ;;  %v6442_v48 = vmul.f32 %v6437_v53, %v11536_v47  ;;  %v6441_v46 = vmul.f32 %v6440_v29, %v11542_v13 }
0x17f6   : > { %v6504_v55 = vpack.c.bf16 %v6485_v6, %v6474_v34  ;;  %v6457_v40 = vpop.permute.xlu0 %6456  ;;  %v6444_v22 = vpop.permute.xlu1 %6443  ;;  %v6505_v12 = vpack.c.bf16 %v6486_v2, %v6475_v7 }
0x17f7   : > { %v6458_v38 = vsel %vm790_vm4, %v6455_v15, %v6457_v40  ;;  %v6462_v45 = vsel %vm790_vm4, %v6457_v40, %v6455_v15  ;;  %v6448_v8 = vsel %vm11610_vm12, %v6447_v25, %v6444_v22  ;;  %v6451_v41 = vsel %vm11622_vm2, %v6444_v22, %v6447_v25  ;;  %vm11624_vm4 = vmmov %vm11612_vm0 }
0x17f8   : > { %v6463_v19 = vmul.f32 %v6458_v38, %v11531_v21  ;;  %v6464_v37 = vmul.f32 %v6462_v45, %v11535_v43  ;;  %v6453_v44 = vmul.f32 %v6448_v8, %v11534_v32  ;;  %6530 = vmatprep.subr.bf16.mxu1 %v6505_v12  ;;  %v6452_v21 = vmul.f32 %v6451_v41, %v11545_v5 }
0x17f9   : > { %6531 = vmatpush1.bf16.msra.mxu1 %v6504_v55 }
0x17fa   : > { %v6502_v30 = vpack.c.bf16 %v6463_v19, %v10856_v16  ;;  %v6414_v28 = vpop.permute.xlu0 %6413  ;;  %v6410_v58 = vpop.permute.xlu1 %6409  ;;  %v6503_v18 = vpack.c.bf16 %v6464_v37, %v10866_v4  ;;  %v6501_v43 = vpack.c.bf16 %v6453_v44, %v6442_v48  ;;  %v6500_v26 = vpack.c.bf16 %v6452_v21, %v6441_v46 }
0x17fb   : > { %v6415_v32 = vsel %vm11624_vm4, %v6414_v28, %v6410_v58  ;;  %v6418_v39 = vsel %vm11612_vm0, %v6410_v58, %v6414_v28 }
0x17fc   : > { %6532 = vmatprep.subr.bf16.mxu1 %v6503_v18  ;;  %v6419_v50 = vmul.f32 %v6418_v39, %v11561_v31  ;;  %v6420_v5 = vmul.f32 %v6415_v32, %v11554_v27 }
0x17fd   : > { %6533 = vmatpush1.bf16.msra.mxu1 %v6502_v30 }
0x17fe   : > { %v6425_v60 = vpop.permute.xlu0 %6424  ;;  %6534 = vmatprep.subr.bf16.mxu1 %v6501_v43  ;;  %v6422_v47 = vpop.permute.xlu1 %6421 }
0x17ff   : > { %v6426_v57 = vsel %vm11625_vm13, %v6425_v60, %v6422_v47  ;;  %v6429_v16 = vsel %vm11626_vm9, %v6422_v47, %v6425_v60 }
0x1800   : > { %v6430_v54 = vmul.f32 %v6429_v16, %v11556_v3  ;;  %v6431_v13 = vmul.f32 %v6426_v57, %v11560_v63 }
0x1801   : > { %6535 = vmatpush1.bf16.msra.mxu1 %v6500_v26 }
0x1802   : > { %v6498_v62 = vpack.c.bf16 %v6430_v54, %v6419_v50  ;;  %v6499_v4 = vpack.c.bf16 %v6431_v13, %v6420_v5 }
0x1804   : > { %6536 = vmatprep.subr.bf16.mxu1 %v6499_v4 }
0x1805   : > { %6537 = vmatpush1.bf16.msra.mxu1 %v6498_v62 }
0x1808   : > { %6875 = vmatmul.mubr.msk.bf16.vlgmr.msra.gmra.mxu1 %vm11627_vm7, %v6406_v51 }
0x180b   : > { %v6511_v33 = vpop.permute.xlu1 %6510 }
0x18c8   : > { %v6556_v52 = vpop.f32.mrf.mxu1 }
0x18c9   : > { %v6557_v31 = vadd.f32 %v6556_v52, %v6511_v33 }
0x18ca   : > { %v6558_v27 = vpop.f32.mrf.mxu1 }
0x18cb   : > { %v6876_v25 = vmul.f32 -1.442695, %v6557_v31  ;;  %v6559_v3 = vadd.f32 %v6558_v27, %v6511_v33 }
0x18cc   : > { %v6560_v0 = vpop.f32.mrf.mxu1 }
0x18cd   : > { %6969 = vpow2.f32 %v6876_v25  ;;  %v6877_v63 = vmul.f32 -1.442695, %v6559_v3 }
0x18ce   : > { %v6561_v14 = vpop.f32.mrf.mxu1 }
0x18cf   : > { %6971 = vpow2.f32 %v6877_v63 }
0x18da   : > { %v6970_v9 = vpop.eup %6969 }
0x18db   : > { %v6569_v10 = vadd.f32 1.0, %v6970_v9 }
0x18dc   : > { %v6972_v61 = vpop.eup %6971 }
0x18dd   : > { %v6570_v20 = vadd.f32 1.0, %v6972_v61  ;;  %6973 = vrcp.f32 %v6569_v10 }
0x18df   : > { %6975 = vrcp.f32 %v6570_v20 }
0x18ea   : > { %v6974_v42 = vpop.eup %6973 }
0x18ec   : > { %v6976_v11 = vpop.eup %6975 }
0x18ed   : > { %v6577_v17 = vcombine.low %v6974_v42, %v6976_v11 }
0x18ef   : > { %6579 = vst [vmem:[%s570_s19] sm:$0xff] %v6577_v17 }
0x18f0 PF: > { %s27_s21 = sadd.s32 1, %s6995_s21  }
0x18f1   : > { %p24_p4 = scmp.ge.s32.totalorder %s27_s21, 4  }
0x18f3   :  { %26 = sbr.rel (!%p24_p4) target bundleno = 5 (0x5), region = 171 }

</bundles_post_ra>
